<compile_context>
chip_gen: v5e
topology: v5e:2x2
jax: 0.10.0
libtpu: 0.0.40
codegen_flags: <defaults>
</compile_context>

<pallas_src>
import functools

import numpy as np

import jax
import jax.numpy as jnp
from jax.experimental import pallas as pl
from jax.experimental.pallas import tpu as pltpu


_PARALLEL = pltpu.CompilerParams(dimension_semantics=("parallel",))


# --------------------------------------------------------------------------
# Fused per-layer kernel: top-down 1x1 conv + prediction 1x1 conv + pos/neg
# error + ConvLSTM cell.  One image per grid step; every 2-D view is
# (channels, H*W) with pixels on the lane axis.
# --------------------------------------------------------------------------

def _layer_core(x, td, h, c, pw, pb, lw, lb, masks, *, cin, hidden, width):
    """Shared body operating on VMEM values.

      x:  (cin, HW)      bottom-up input
      td: (hid, HW)      top-down input (already at this layer's resolution)
      h, c: (hid, HW)    previous LSTM state (f32)
      pw: (cin, hid)     bf16  == conv_pred.weight[:, :, 0, 0]
      pb: (cin, 1)       f32
      lw: (4*hid, 9*Cc)  bf16; lw[:, t*Cc:(t+1)*Cc] == conv.weight[:, :, t//3, t%3]
                         with Cc = 2*cin + 2*hid, channel order [err, td, h]
      lb: (4*hid, 1)     f32
      masks: (9, HW)     0/1 validity of 3x3 tap t at each pixel (zero padding)
    Returns (pred, err, h_new, c_new) values.
    """
    # Prediction: 1x1 conv of h_prev (bf16 MXU, f32 accumulate).
    pred = (jnp.dot(pw, h.astype(jnp.bfloat16),
                    preferred_element_type=jnp.float32) + pb)
    diff = x - pred

    # Pos/neg error via two VPU relus (no [+I;-I] matmul), concatenated straight
    # into the ConvLSTM input tensor [err, td, h].
    combined = jnp.concatenate(
        [jnp.maximum(diff, 0.0), jnp.maximum(-diff, 0.0), td, h], axis=0)
    err = combined[: 2 * cin]

    # 3x3 "same" conv as ONE MXU dot: sublane-stack the 9 lane-rolled,
    # boundary-masked views -> (9*Cc, HW).  K = 9*Cc fills the MXU depth and the
    # (4*hid, HW) gate accumulator stays inside the MXU.
    hw = combined.shape[1]
    views = []
    for t in range(9):
        dy, dx = t // 3 - 1, t % 3 - 1
        off = dy * width + dx
        if off == 0:
            views.append(combined)
        else:
            views.append(pltpu.roll(combined, (-off) % hw, axis=1)
                         * masks[t:t + 1, :])
    stacked = jnp.concatenate(views, axis=0).astype(jnp.bfloat16)   # (9*Cc, HW)
    gates = jnp.dot(lw, stacked, preferred_element_type=jnp.float32) + lb

    ingate = jax.nn.sigmoid(gates[0 * hidden:1 * hidden])
    forgetgate = jax.nn.sigmoid(gates[1 * hidden:2 * hidden])
    cellgate = jnp.tanh(gates[2 * hidden:3 * hidden])
    outgate = jax.nn.sigmoid(gates[3 * hidden:4 * hidden])

    c_new = forgetgate * c + ingate * cellgate
    h_new = outgate * jnp.tanh(c_new)
    return pred, err, h_new, c_new


def _layer_kernel(x_ref, hup_ref, h_ref, c_ref, pw_ref, pb_ref, uw_ref, ub_ref,
                  lw_ref, lb_ref, msk_ref,
                  pred_ref, err_ref, hn_ref, cn_ref, *, cin, hidden, width):
    """Non-top layer: also runs the top-down 1x1 conv on the (already nearest-2x
    upsampled) h state of the layer above -- interpolate-then-conv exactly as in
    the reference."""
    td = (jnp.dot(uw_ref[...], hup_ref[...].astype(jnp.bfloat16),
                  preferred_element_type=jnp.float32) + ub_ref[...])
    pred, err, h_new, c_new = _layer_core(
        x_ref[...], td, h_ref[...], c_ref[...], pw_ref[...], pb_ref[...],
        lw_ref[...], lb_ref[...], msk_ref[...],
        cin=cin, hidden=hidden, width=width)
    pred_ref[...] = pred
    err_ref[...] = err
    hn_ref[...] = h_new
    cn_ref[...] = c_new


def _layer_kernel_top(x_ref, h_ref, c_ref, pw_ref, pb_ref, lw_ref, lb_ref,
                      msk_ref, pred_ref, err_ref, hn_ref, cn_ref,
                      *, cin, hidden, width):
    # TODO(synk): the reference PyTorch forward has a channel mismatch on the top
    # layer (no top_down, but its ConvLSTM conv expects those channels and would
    # raise); we model the missing top_down as zeros.
    hw = h_ref.shape[-1]
    td = jnp.zeros((hidden, hw), jnp.float32)
    pred, err, h_new, c_new = _layer_core(
        x_ref[...], td, h_ref[...], c_ref[...], pw_ref[...], pb_ref[...],
        lw_ref[...], lb_ref[...], msk_ref[...],
        cin=cin, hidden=hidden, width=width)
    pred_ref[...] = pred
    err_ref[...] = err
    hn_ref[...] = h_new
    cn_ref[...] = c_new


# --------------------------------------------------------------------------
# pallas_call wrappers (grid over batch, one image per program).
# --------------------------------------------------------------------------

def _img_spec(c, hw):
    return pl.BlockSpec((None, c, hw), lambda i: (i, 0, 0))


def _const_spec(shape):
    n = len(shape)
    return pl.BlockSpec(tuple(shape), lambda i: (0,) * n)


def prednet_layer_step(x, hup, h, c, pw, pb, uw, ub, lw, lb, masks, *, width):
    bsz, cin, hw = x.shape
    hid = h.shape[1]
    hid_up = hup.shape[1]
    kernel = functools.partial(_layer_kernel, cin=cin, hidden=hid, width=width)
    return pl.pallas_call(
        kernel,
        grid=(bsz,),
        in_specs=[
            _img_spec(cin, hw),        # x
            _img_spec(hid_up, hw),     # upsampled h of the layer above
            _img_spec(hid, hw),        # h_prev
            _img_spec(hid, hw),        # c_prev
            _const_spec(pw.shape),
            _const_spec(pb.shape),
            _const_spec(uw.shape),
            _const_spec(ub.shape),
            _const_spec(lw.shape),
            _const_spec(lb.shape),
            _const_spec(masks.shape),
        ],
        out_specs=(
            _img_spec(cin, hw),        # pred
            _img_spec(2 * cin, hw),    # err
            _img_spec(hid, hw),        # h_new
            _img_spec(hid, hw),        # c_new
        ),
        out_shape=(
            jax.ShapeDtypeStruct((bsz, cin, hw), jnp.float32),
            jax.ShapeDtypeStruct((bsz, 2 * cin, hw), jnp.float32),
            jax.ShapeDtypeStruct((bsz, hid, hw), jnp.float32),
            jax.ShapeDtypeStruct((bsz, hid, hw), jnp.float32),
        ),
        input_output_aliases={2: 2, 3: 3},   # in-place LSTM state update
        compiler_params=_PARALLEL,
    )(x, hup, h, c, pw, pb, uw, ub, lw, lb, masks)


def prednet_layer_step_top(x, h, c, pw, pb, lw, lb, masks, *, width):
    bsz, cin, hw = x.shape
    hid = h.shape[1]
    kernel = functools.partial(_layer_kernel_top, cin=cin, hidden=hid, width=width)
    return pl.pallas_call(
        kernel,
        grid=(bsz,),
        in_specs=[
            _img_spec(cin, hw),
            _img_spec(hid, hw),
            _img_spec(hid, hw),
            _const_spec(pw.shape),
            _const_spec(pb.shape),
            _const_spec(lw.shape),
            _const_spec(lb.shape),
            _const_spec(masks.shape),
        ],
        out_specs=(
            _img_spec(cin, hw),
            _img_spec(2 * cin, hw),
            _img_spec(hid, hw),
            _img_spec(hid, hw),
        ),
        out_shape=(
            jax.ShapeDtypeStruct((bsz, cin, hw), jnp.float32),
            jax.ShapeDtypeStruct((bsz, 2 * cin, hw), jnp.float32),
            jax.ShapeDtypeStruct((bsz, hid, hw), jnp.float32),
            jax.ShapeDtypeStruct((bsz, hid, hw), jnp.float32),
        ),
        input_output_aliases={1: 2, 2: 3},   # in-place LSTM state update
        compiler_params=_PARALLEL,
    )(x, h, c, pw, pb, lw, lb, masks)


# --------------------------------------------------------------------------
# Static constants & XLA glue.
# --------------------------------------------------------------------------

def _shift_masks(h, w):
    """(9, H*W) 0/1 validity of each 3x3 tap (dy,dx) at each pixel of one image."""
    y = np.arange(h * w, dtype=np.int64) // w
    x = np.arange(h * w, dtype=np.int64) % w
    m = np.zeros((9, h * w), np.float32)
    for t in range(9):
        dy, dx = t // 3 - 1, t % 3 - 1
        m[t] = ((y + dy >= 0) & (y + dy < h) & (x + dx >= 0) & (x + dx < w))
    return jnp.asarray(m)


def _nearest_up2(t, hs, ws):
    """Nearest 2x upsample of (B, C, Hs*Ws) -> (B, C, 4*Hs*Ws).  XLA glue."""
    bsz, c, _ = t.shape
    t = t.reshape(bsz, c, hs, ws)
    t = jnp.repeat(jnp.repeat(t, 2, axis=2), 2, axis=3)
    return t.reshape(bsz, c, 4 * hs * ws)


def _maxpool2x2(e, h, w):
    """2x2 / stride-2 max-pool of (B, C, H*W) -> (B, C, (H/2)*(W/2)).  XLA glue on
    the err kernel output (replaces the old in-kernel O(HW^2) selection matmul)."""
    bsz, c, _ = e.shape
    e = e.reshape(bsz, c, h // 2, 2, w // 2, 2)
    return jnp.max(e, axis=(3, 5)).reshape(bsz, c, (h // 2) * (w // 2))


# --------------------------------------------------------------------------
# Parameters & forward pass.
# --------------------------------------------------------------------------

def init_params(key, input_channels, hidden_channels):
    """Weight layout (vs. the PyTorch reference):
      pred_w (cin, hid) bf16           == conv_pred.weight[:, :, 0, 0]
      lstm_w (4*hid, 9*Cc) bf16        ; lstm_w[:, t*Cc:(t+1)*Cc] ==
                                         conv.weight[:, :, t//3, t%3],
                                         Cc = 2*cin + 2*hid, channels [err, td, h]
      up_w (hid_l, hid_{l+1}) bf16     == upsample_convs[l].weight[:, :, 0, 0]
      biases stored f32 (added after the f32 accumulate).
    """
    num_layers = len(input_channels)
    params = {"layers": [], "upsample": []}
    for l in range(num_layers):
        cin, hid = input_channels[l], hidden_channels[l]
        cc = 2 * cin + 2 * hid
        key, k1, k2, k3, k4 = jax.random.split(key, 5)
        params["layers"].append({
            "pred_w": (0.1 * jax.random.normal(k1, (cin, hid))).astype(jnp.bfloat16),
            "pred_b": 0.05 * jax.random.normal(k2, (cin, 1), jnp.float32),
            "lstm_w": (0.1 * jax.random.normal(k3, (4 * hid, 9 * cc))
                       ).astype(jnp.bfloat16),
            "lstm_b": 0.05 * jax.random.normal(k4, (4 * hid, 1), jnp.float32),
        })
    for l in range(num_layers - 1):
        key, k1, k2 = jax.random.split(key, 3)
        params["upsample"].append({
            "w": (0.1 * jax.random.normal(
                k1, (hidden_channels[l], hidden_channels[l + 1]))
                  ).astype(jnp.bfloat16),
            "b": 0.05 * jax.random.normal(k2, (hidden_channels[l], 1), jnp.float32),
        })
    return params


def prednet_forward(params, x_seq):
    """x_seq: (B, T, C0, H, W) -> (predictions (B,T,Ctop,Ht,Wt), [errors per layer])."""
    bsz, seq_len, c0, height, width = x_seq.shape
    layers = params["layers"]
    num_layers = len(layers)
    cins = [lay["pred_b"].shape[0] for lay in layers]
    hids = [lay["lstm_b"].shape[0] // 4 for lay in layers]

    sizes = []
    h_l, w_l = height, width
    for _ in range(num_layers):
        sizes.append((h_l, w_l))
        h_l //= 2
        w_l //= 2

    shift_masks = [_shift_masks(h, w) for (h, w) in sizes]

    states0 = tuple(
        (jnp.zeros((bsz, hids[l], sizes[l][0] * sizes[l][1]), jnp.float32),
         jnp.zeros((bsz, hids[l], sizes[l][0] * sizes[l][1]), jnp.float32))
        for l in range(num_layers))

    # time-major, pixel-flattened input: (T, B, C0, H*W)
    x_tm = jnp.transpose(x_seq, (1, 0, 2, 3, 4)).reshape(
        seq_len, bsz, c0, height * width)

    def step(states, x_t):
        x_l = x_t
        new_states = []
        errs = []
        pred_top = None
        for l in range(num_layers):
            lay = layers[l]
            h_prev, c_prev = states[l]
            h_sp, w_sp = sizes[l]

            if l < num_layers - 1:
                hs, ws = sizes[l + 1]
                # nearest-2x upsample of the next layer's h (previous timestep);
                # the top-down 1x1 conv itself runs inside the fused kernel.
                hup = _nearest_up2(states[l + 1][0], hs, ws)
                pred, err, h_new, c_new = prednet_layer_step(
                    x_l, hup, h_prev, c_prev,
                    lay["pred_w"], lay["pred_b"],
                    params["upsample"][l]["w"], params["upsample"][l]["b"],
                    lay["lstm_w"], lay["lstm_b"], shift_masks[l], width=w_sp)
                # bottom-up input of the next layer: 2x2 max-pool of the error.
                x_l = _maxpool2x2(err, h_sp, w_sp)
            else:
                pred, err, h_new, c_new = prednet_layer_step_top(
                    x_l, h_prev, c_prev, lay["pred_w"], lay["pred_b"],
                    lay["lstm_w"], lay["lstm_b"], shift_masks[l], width=w_sp)
                pred_top = pred

            new_states.append((h_new, c_new))
            errs.append(err)
        return tuple(new_states), (pred_top, tuple(errs))

    _, (preds_t, errs_t) = jax.lax.scan(step, states0, x_tm)

    ht, wt = sizes[-1]
    preds = jnp.transpose(
        preds_t.reshape(seq_len, bsz, cins[-1], ht, wt), (1, 0, 2, 3, 4))
    errors = [
        jnp.transpose(
            errs_t[l].reshape(seq_len, bsz, 2 * cins[l], sizes[l][0], sizes[l][1]),
            (1, 0, 2, 3, 4))
        for l in range(num_layers)]
    return preds, errors


# ----------------------------------- main -----------------------------------

if __name__ == "__main__":
    key = jax.random.PRNGKey(0)
    # layer-1 bottom-up input is the pooled error of layer 0
    #   -> input_channels[1] == 2 * input_channels[0]
    input_channels = [4, 8]
    hidden_channels = [16, 16]
    batch, seq, height, width = 2, 4, 32, 32

    kparams, kdata = jax.random.split(key)
    params = init_params(kparams, input_channels, hidden_channels)
    x_seq = jax.random.normal(
        kdata, (batch, seq, input_channels[0], height, width), jnp.float32)

    fwd = jax.jit(prednet_forward)
    preds, errors = fwd(params, x_seq)
    preds = jax.block_until_ready(preds)
    errors = [jax.block_until_ready(e) for e in errors]

    assert preds.shape == (batch, seq, input_channels[-1], height // 2, width // 2)
    assert errors[0].shape == (batch, seq, 2 * input_channels[0], height, width)
    assert errors[1].shape == (batch, seq, 2 * input_channels[1],
                               height // 2, width // 2)
    assert preds.dtype == jnp.float32
    assert bool(jnp.all(jnp.isfinite(preds)))
    assert all(bool(jnp.all(jnp.isfinite(e))) for e in errors)

    print("KERNEL_OK")
</pallas_src>

<mosaic_0001>
module attributes {stable_mosaic.version = 11 : i64} {
  func.func @_layer_kernel(%arg0: i32, %arg1: memref<1x4x1024xf32, #tpu.memory_space<vmem>>, %arg2: memref<1x16x1024xf32, #tpu.memory_space<vmem>>, %arg3: memref<1x16x1024xf32, #tpu.memory_space<vmem>>, %arg4: memref<1x16x1024xf32, #tpu.memory_space<vmem>>, %arg5: memref<4x16xbf16, #tpu.memory_space<vmem>>, %arg6: memref<4x1xf32, #tpu.memory_space<vmem>>, %arg7: memref<16x16xbf16, #tpu.memory_space<vmem>>, %arg8: memref<16x1xf32, #tpu.memory_space<vmem>>, %arg9: memref<64x360xbf16, #tpu.memory_space<vmem>>, %arg10: memref<64x1xf32, #tpu.memory_space<vmem>>, %arg11: memref<9x1024xf32, #tpu.memory_space<vmem>>, %arg12: memref<1x4x1024xf32, #tpu.memory_space<vmem>>, %arg13: memref<1x8x1024xf32, #tpu.memory_space<vmem>>, %arg14: memref<1x16x1024xf32, #tpu.memory_space<vmem>>, %arg15: memref<1x16x1024xf32, #tpu.memory_space<vmem>>) attributes {dimension_semantics = [#tpu.dimension_semantics<parallel>], iteration_bounds = array<i64: 2>, scalar_prefetch = 0 : i64, scratch_operands = 0 : i64, tpu.core_type = #tpu.core_type<tc>, window_params = [{transform_indices = @transform_0, window_bounds = array<i64: 1, 4, 1024>}, {transform_indices = @transform_1, window_bounds = array<i64: 1, 16, 1024>}, {transform_indices = @transform_2, window_bounds = array<i64: 1, 16, 1024>}, {transform_indices = @transform_3, window_bounds = array<i64: 1, 16, 1024>}, {pipeline_mode = #tpu.pipeline_mode<synchronous>, transform_indices = @transform_4, window_bounds = array<i64: 4, 16>}, {pipeline_mode = #tpu.pipeline_mode<synchronous>, transform_indices = @transform_5, window_bounds = array<i64: 4, 1>}, {pipeline_mode = #tpu.pipeline_mode<synchronous>, transform_indices = @transform_6, window_bounds = array<i64: 16, 16>}, {pipeline_mode = #tpu.pipeline_mode<synchronous>, transform_indices = @transform_7, window_bounds = array<i64: 16, 1>}, {pipeline_mode = #tpu.pipeline_mode<synchronous>, transform_indices = @transform_8, window_bounds = array<i64: 64, 360>}, {pipeline_mode = #tpu.pipeline_mode<synchronous>, transform_indices = @transform_9, window_bounds = array<i64: 64, 1>}, {pipeline_mode = #tpu.pipeline_mode<synchronous>, transform_indices = @transform_10, window_bounds = array<i64: 9, 1024>}, {transform_indices = @transform_11, window_bounds = array<i64: 1, 4, 1024>}, {transform_indices = @transform_12, window_bounds = array<i64: 1, 8, 1024>}, {transform_indices = @transform_13, window_bounds = array<i64: 1, 16, 1024>}, {transform_indices = @transform_14, window_bounds = array<i64: 1, 16, 1024>}]} {
    %c0 = arith.constant 0 : index
    %c0_0 = arith.constant 0 : index
    %0 = vector.load %arg7[%c0, %c0_0] : memref<16x16xbf16, #tpu.memory_space<vmem>>, vector<16x16xbf16>
    %c0_1 = arith.constant 0 : index
    %c0_2 = arith.constant 0 : index
    %c0_3 = arith.constant 0 : index
    %1 = vector.load %arg2[%c0_1, %c0_2, %c0_3] : memref<1x16x1024xf32, #tpu.memory_space<vmem>>, vector<1x16x1024xf32>
    %2 = vector.shape_cast %1 : vector<1x16x1024xf32> to vector<16x1024xf32>
    %3 = arith.truncf %2 : vector<16x1024xf32> to vector<16x1024xbf16>
    %cst = arith.constant dense<0.000000e+00> : vector<16x1024xf32>
    %4 = tpu.matmul %0, %3, %cst {dimension_numbers = #tpu.dot_dimension_numbers<[1], [0], [0], [1], [0, 0, 1, 1], [], []>} : vector<16x16xbf16>, vector<16x1024xbf16>, vector<16x1024xf32> -> vector<16x1024xf32>
    %c0_4 = arith.constant 0 : index
    %c0_5 = arith.constant 0 : index
    %5 = vector.load %arg8[%c0_4, %c0_5] : memref<16x1xf32, #tpu.memory_space<vmem>>, vector<16x1xf32>
    %6 = vector.broadcast %5 : vector<16x1xf32> to vector<16x1024xf32>
    %7 = arith.addf %4, %6 : vector<16x1024xf32>
    %c0_6 = arith.constant 0 : index
    %c0_7 = arith.constant 0 : index
    %c0_8 = arith.constant 0 : index
    %8 = vector.load %arg1[%c0_6, %c0_7, %c0_8] : memref<1x4x1024xf32, #tpu.memory_space<vmem>>, vector<1x4x1024xf32>
    %9 = vector.shape_cast %8 : vector<1x4x1024xf32> to vector<4x1024xf32>
    %c0_9 = arith.constant 0 : index
    %c0_10 = arith.constant 0 : index
    %c0_11 = arith.constant 0 : index
    %10 = vector.load %arg3[%c0_9, %c0_10, %c0_11] : memref<1x16x1024xf32, #tpu.memory_space<vmem>>, vector<1x16x1024xf32>
    %11 = vector.shape_cast %10 : vector<1x16x1024xf32> to vector<16x1024xf32>
    %c0_12 = arith.constant 0 : index
    %c0_13 = arith.constant 0 : index
    %c0_14 = arith.constant 0 : index
    %12 = vector.load %arg4[%c0_12, %c0_13, %c0_14] : memref<1x16x1024xf32, #tpu.memory_space<vmem>>, vector<1x16x1024xf32>
    %13 = vector.shape_cast %12 : vector<1x16x1024xf32> to vector<16x1024xf32>
    %c0_15 = arith.constant 0 : index
    %c0_16 = arith.constant 0 : index
    %14 = vector.load %arg5[%c0_15, %c0_16] : memref<4x16xbf16, #tpu.memory_space<vmem>>, vector<4x16xbf16>
    %c0_17 = arith.constant 0 : index
    %c0_18 = arith.constant 0 : index
    %15 = vector.load %arg6[%c0_17, %c0_18] : memref<4x1xf32, #tpu.memory_space<vmem>>, vector<4x1xf32>
    %c0_19 = arith.constant 0 : index
    %c0_20 = arith.constant 0 : index
    %16 = vector.load %arg9[%c0_19, %c0_20] : memref<64x360xbf16, #tpu.memory_space<vmem>>, vector<64x360xbf16>
    %c0_21 = arith.constant 0 : index
    %c0_22 = arith.constant 0 : index
    %17 = vector.load %arg10[%c0_21, %c0_22] : memref<64x1xf32, #tpu.memory_space<vmem>>, vector<64x1xf32>
    %c0_23 = arith.constant 0 : index
    %c0_24 = arith.constant 0 : index
    %18 = vector.load %arg11[%c0_23, %c0_24] : memref<9x1024xf32, #tpu.memory_space<vmem>>, vector<9x1024xf32>
    %19 = arith.truncf %11 : vector<16x1024xf32> to vector<16x1024xbf16>
    %cst_25 = arith.constant dense<0.000000e+00> : vector<4x1024xf32>
    %20 = tpu.matmul %14, %19, %cst_25 {dimension_numbers = #tpu.dot_dimension_numbers<[1], [0], [0], [1], [0, 0, 1, 1], [], []>} : vector<4x16xbf16>, vector<16x1024xbf16>, vector<4x1024xf32> -> vector<4x1024xf32>
    %21 = vector.broadcast %15 : vector<4x1xf32> to vector<4x1024xf32>
    %22 = arith.addf %20, %21 : vector<4x1024xf32>
    %23 = arith.subf %9, %22 : vector<4x1024xf32>
    %cst_26 = arith.constant 0.000000e+00 : f32
    %24 = vector.broadcast %cst_26 : f32 to vector<4x1024xf32>
    %25 = arith.maximumf %23, %24 : vector<4x1024xf32>
    %cst_27 = arith.constant 0.000000e+00 : f32
    %26 = vector.broadcast %cst_27 : f32 to vector<4x1024xf32>
    %27 = arith.subf %26, %23 : vector<4x1024xf32>
    %cst_28 = arith.constant 0.000000e+00 : f32
    %28 = vector.broadcast %cst_28 : f32 to vector<4x1024xf32>
    %29 = arith.maximumf %27, %28 : vector<4x1024xf32>
    %30 = tpu.concatenate %25, %29, %7, %11 in 0 : vector<4x1024xf32>, vector<4x1024xf32>, vector<16x1024xf32>, vector<16x1024xf32> -> vector<40x1024xf32>
    %31 = vector.extract_strided_slice %30 {offsets = [0, 0], sizes = [8, 1024], strides = [1, 1]} : vector<40x1024xf32> to vector<8x1024xf32>
    %c33_i32 = arith.constant 33 : i32
    %32 = tpu.dynamic_rotate %30 by %c33_i32 dim 1 : vector<40x1024xf32>, i32 -> vector<40x1024xf32>
    %33 = vector.extract_strided_slice %18 {offsets = [0, 0], sizes = [1, 1024], strides = [1, 1]} : vector<9x1024xf32> to vector<1x1024xf32>
    %34 = vector.broadcast %33 : vector<1x1024xf32> to vector<40x1024xf32>
    %35 = arith.mulf %32, %34 : vector<40x1024xf32>
    %c32_i32 = arith.constant 32 : i32
    %36 = tpu.dynamic_rotate %30 by %c32_i32 dim 1 : vector<40x1024xf32>, i32 -> vector<40x1024xf32>
    %37 = vector.extract_strided_slice %18 {offsets = [1, 0], sizes = [1, 1024], strides = [1, 1]} : vector<9x1024xf32> to vector<1x1024xf32>
    %38 = vector.broadcast %37 : vector<1x1024xf32> to vector<40x1024xf32>
    %39 = arith.mulf %36, %38 : vector<40x1024xf32>
    %c31_i32 = arith.constant 31 : i32
    %40 = tpu.dynamic_rotate %30 by %c31_i32 dim 1 : vector<40x1024xf32>, i32 -> vector<40x1024xf32>
    %41 = vector.extract_strided_slice %18 {offsets = [2, 0], sizes = [1, 1024], strides = [1, 1]} : vector<9x1024xf32> to vector<1x1024xf32>
    %42 = vector.broadcast %41 : vector<1x1024xf32> to vector<40x1024xf32>
    %43 = arith.mulf %40, %42 : vector<40x1024xf32>
    %c1_i32 = arith.constant 1 : i32
    %44 = tpu.dynamic_rotate %30 by %c1_i32 dim 1 : vector<40x1024xf32>, i32 -> vector<40x1024xf32>
    %45 = vector.extract_strided_slice %18 {offsets = [3, 0], sizes = [1, 1024], strides = [1, 1]} : vector<9x1024xf32> to vector<1x1024xf32>
    %46 = vector.broadcast %45 : vector<1x1024xf32> to vector<40x1024xf32>
    %47 = arith.mulf %44, %46 : vector<40x1024xf32>
    %c1023_i32 = arith.constant 1023 : i32
    %48 = tpu.dynamic_rotate %30 by %c1023_i32 dim 1 : vector<40x1024xf32>, i32 -> vector<40x1024xf32>
    %49 = vector.extract_strided_slice %18 {offsets = [5, 0], sizes = [1, 1024], strides = [1, 1]} : vector<9x1024xf32> to vector<1x1024xf32>
    %50 = vector.broadcast %49 : vector<1x1024xf32> to vector<40x1024xf32>
    %51 = arith.mulf %48, %50 : vector<40x1024xf32>
    %c993_i32 = arith.constant 993 : i32
    %52 = tpu.dynamic_rotate %30 by %c993_i32 dim 1 : vector<40x1024xf32>, i32 -> vector<40x1024xf32>
    %53 = vector.extract_strided_slice %18 {offsets = [6, 0], sizes = [1, 1024], strides = [1, 1]} : vector<9x1024xf32> to vector<1x1024xf32>
    %54 = vector.broadcast %53 : vector<1x1024xf32> to vector<40x1024xf32>
    %55 = arith.mulf %52, %54 : vector<40x1024xf32>
    %c992_i32 = arith.constant 992 : i32
    %56 = tpu.dynamic_rotate %30 by %c992_i32 dim 1 : vector<40x1024xf32>, i32 -> vector<40x1024xf32>
    %57 = vector.extract_strided_slice %18 {offsets = [7, 0], sizes = [1, 1024], strides = [1, 1]} : vector<9x1024xf32> to vector<1x1024xf32>
    %58 = vector.broadcast %57 : vector<1x1024xf32> to vector<40x1024xf32>
    %59 = arith.mulf %56, %58 : vector<40x1024xf32>
    %c991_i32 = arith.constant 991 : i32
    %60 = tpu.dynamic_rotate %30 by %c991_i32 dim 1 : vector<40x1024xf32>, i32 -> vector<40x1024xf32>
    %61 = vector.extract_strided_slice %18 {offsets = [8, 0], sizes = [1, 1024], strides = [1, 1]} : vector<9x1024xf32> to vector<1x1024xf32>
    %62 = vector.broadcast %61 : vector<1x1024xf32> to vector<40x1024xf32>
    %63 = arith.mulf %60, %62 : vector<40x1024xf32>
    %64 = tpu.concatenate %35, %39, %43, %47, %30, %51, %55, %59, %63 in 0 : vector<40x1024xf32>, vector<40x1024xf32>, vector<40x1024xf32>, vector<40x1024xf32>, vector<40x1024xf32>, vector<40x1024xf32>, vector<40x1024xf32>, vector<40x1024xf32>, vector<40x1024xf32> -> vector<360x1024xf32>
    %65 = arith.truncf %64 : vector<360x1024xf32> to vector<360x1024xbf16>
    %cst_29 = arith.constant dense<0.000000e+00> : vector<64x1024xf32>
    %66 = tpu.matmul %16, %65, %cst_29 {dimension_numbers = #tpu.dot_dimension_numbers<[1], [0], [0], [1], [0, 0, 1, 1], [], []>} : vector<64x360xbf16>, vector<360x1024xbf16>, vector<64x1024xf32> -> vector<64x1024xf32>
    %67 = vector.broadcast %17 : vector<64x1xf32> to vector<64x1024xf32>
    %68 = arith.addf %66, %67 : vector<64x1024xf32>
    %69 = vector.extract_strided_slice %68 {offsets = [0, 0], sizes = [16, 1024], strides = [1, 1]} : vector<64x1024xf32> to vector<16x1024xf32>
    %70 = arith.negf %69 : vector<16x1024xf32>
    %71 = math.exp %70 : vector<16x1024xf32>
    %cst_30 = arith.constant 1.000000e+00 : f32
    %72 = vector.broadcast %cst_30 : f32 to vector<16x1024xf32>
    %73 = arith.addf %72, %71 : vector<16x1024xf32>
    %74 = arith.divf %72, %73 : vector<16x1024xf32>
    %75 = vector.extract_strided_slice %68 {offsets = [16, 0], sizes = [16, 1024], strides = [1, 1]} : vector<64x1024xf32> to vector<16x1024xf32>
    %76 = arith.negf %75 : vector<16x1024xf32>
    %77 = math.exp %76 : vector<16x1024xf32>
    %cst_31 = arith.constant 1.000000e+00 : f32
    %78 = vector.broadcast %cst_31 : f32 to vector<16x1024xf32>
    %79 = arith.addf %78, %77 : vector<16x1024xf32>
    %80 = arith.divf %78, %79 : vector<16x1024xf32>
    %81 = vector.extract_strided_slice %68 {offsets = [32, 0], sizes = [16, 1024], strides = [1, 1]} : vector<64x1024xf32> to vector<16x1024xf32>
    %82 = math.tanh %81 : vector<16x1024xf32>
    %83 = vector.extract_strided_slice %68 {offsets = [48, 0], sizes = [16, 1024], strides = [1, 1]} : vector<64x1024xf32> to vector<16x1024xf32>
    %84 = arith.negf %83 : vector<16x1024xf32>
    %85 = math.exp %84 : vector<16x1024xf32>
    %cst_32 = arith.constant 1.000000e+00 : f32
    %86 = vector.broadcast %cst_32 : f32 to vector<16x1024xf32>
    %87 = arith.addf %86, %85 : vector<16x1024xf32>
    %88 = arith.divf %86, %87 : vector<16x1024xf32>
    %89 = arith.mulf %80, %13 : vector<16x1024xf32>
    %90 = arith.mulf %74, %82 : vector<16x1024xf32>
    %91 = arith.addf %89, %90 : vector<16x1024xf32>
    %92 = math.tanh %91 : vector<16x1024xf32>
    %93 = arith.mulf %88, %92 : vector<16x1024xf32>
    %c0_33 = arith.constant 0 : index
    %c0_34 = arith.constant 0 : index
    %c0_35 = arith.constant 0 : index
    %94 = vector.load %arg12[%c0_33, %c0_34, %c0_35] : memref<1x4x1024xf32, #tpu.memory_space<vmem>>, vector<1x4x1024xf32>
    %95 = vector.shape_cast %94 : vector<1x4x1024xf32> to vector<4x1024xf32>
    %96 = vector.shape_cast %22 : vector<4x1024xf32> to vector<1x4x1024xf32>
    tpu.vector_store %arg12[%c0_33, %c0_34, %c0_35], %96 {strides = array<i32>} : memref<1x4x1024xf32, #tpu.memory_space<vmem>>, vector<1x4x1024xf32>,
    %c0_36 = arith.constant 0 : index
    %c0_37 = arith.constant 0 : index
    %c0_38 = arith.constant 0 : index
    %97 = vector.load %arg13[%c0_36, %c0_37, %c0_38] : memref<1x8x1024xf32, #tpu.memory_space<vmem>>, vector<1x8x1024xf32>
    %98 = vector.shape_cast %97 : vector<1x8x1024xf32> to vector<8x1024xf32>
    %99 = vector.shape_cast %31 : vector<8x1024xf32> to vector<1x8x1024xf32>
    tpu.vector_store %arg13[%c0_36, %c0_37, %c0_38], %99 {strides = array<i32>} : memref<1x8x1024xf32, #tpu.memory_space<vmem>>, vector<1x8x1024xf32>,
    %c0_39 = arith.constant 0 : index
    %c0_40 = arith.constant 0 : index
    %c0_41 = arith.constant 0 : index
    %100 = vector.load %arg14[%c0_39, %c0_40, %c0_41] : memref<1x16x1024xf32, #tpu.memory_space<vmem>>, vector<1x16x1024xf32>
    %101 = vector.shape_cast %100 : vector<1x16x1024xf32> to vector<16x1024xf32>
    %102 = vector.shape_cast %93 : vector<16x1024xf32> to vector<1x16x1024xf32>
    tpu.vector_store %arg14[%c0_39, %c0_40, %c0_41], %102 {strides = array<i32>} : memref<1x16x1024xf32, #tpu.memory_space<vmem>>, vector<1x16x1024xf32>,
    %c0_42 = arith.constant 0 : index
    %c0_43 = arith.constant 0 : index
    %c0_44 = arith.constant 0 : index
    %103 = vector.load %arg15[%c0_42, %c0_43, %c0_44] : memref<1x16x1024xf32, #tpu.memory_space<vmem>>, vector<1x16x1024xf32>
    %104 = vector.shape_cast %103 : vector<1x16x1024xf32> to vector<16x1024xf32>
    %105 = vector.shape_cast %91 : vector<16x1024xf32> to vector<1x16x1024xf32>
    tpu.vector_store %arg15[%c0_42, %c0_43, %c0_44], %105 {strides = array<i32>} : memref<1x16x1024xf32, #tpu.memory_space<vmem>>, vector<1x16x1024xf32>,
    return
  }
  func.func @transform_0(%arg0: i32) -> (i32, i32, i32) {
    %c0_i32 = arith.constant 0 : i32
    %c0_i32_0 = arith.constant 0 : i32
    %c0_i32_1 = arith.constant 0 : i32
    return %arg0, %c0_i32, %c0_i32_0 : i32, i32, i32
  }
  func.func @transform_1(%arg0: i32) -> (i32, i32, i32) {
    %c0_i32 = arith.constant 0 : i32
    %c0_i32_0 = arith.constant 0 : i32
    %c0_i32_1 = arith.constant 0 : i32
    return %arg0, %c0_i32, %c0_i32_0 : i32, i32, i32
  }
  func.func @transform_2(%arg0: i32) -> (i32, i32, i32) {
    %c0_i32 = arith.constant 0 : i32
    %c0_i32_0 = arith.constant 0 : i32
    %c0_i32_1 = arith.constant 0 : i32
    return %arg0, %c0_i32, %c0_i32_0 : i32, i32, i32
  }
  func.func @transform_3(%arg0: i32) -> (i32, i32, i32) {
    %c0_i32 = arith.constant 0 : i32
    %c0_i32_0 = arith.constant 0 : i32
    %c0_i32_1 = arith.constant 0 : i32
    return %arg0, %c0_i32, %c0_i32_0 : i32, i32, i32
  }
  func.func @transform_4(%arg0: i32) -> (i32, i32) {
    %c0_i32 = arith.constant 0 : i32
    %c0_i32_0 = arith.constant 0 : i32
    %c0_i32_1 = arith.constant 0 : i32
    return %c0_i32, %c0_i32_0 : i32, i32
  }
  func.func @transform_5(%arg0: i32) -> (i32, i32) {
    %c0_i32 = arith.constant 0 : i32
    %c0_i32_0 = arith.constant 0 : i32
    %c0_i32_1 = arith.constant 0 : i32
    return %c0_i32, %c0_i32_0 : i32, i32
  }
  func.func @transform_6(%arg0: i32) -> (i32, i32) {
    %c0_i32 = arith.constant 0 : i32
    %c0_i32_0 = arith.constant 0 : i32
    %c0_i32_1 = arith.constant 0 : i32
    return %c0_i32, %c0_i32_0 : i32, i32
  }
  func.func @transform_7(%arg0: i32) -> (i32, i32) {
    %c0_i32 = arith.constant 0 : i32
    %c0_i32_0 = arith.constant 0 : i32
    %c0_i32_1 = arith.constant 0 : i32
    return %c0_i32, %c0_i32_0 : i32, i32
  }
  func.func @transform_8(%arg0: i32) -> (i32, i32) {
    %c0_i32 = arith.constant 0 : i32
    %c0_i32_0 = arith.constant 0 : i32
    %c0_i32_1 = arith.constant 0 : i32
    return %c0_i32, %c0_i32_0 : i32, i32
  }
  func.func @transform_9(%arg0: i32) -> (i32, i32) {
    %c0_i32 = arith.constant 0 : i32
    %c0_i32_0 = arith.constant 0 : i32
    %c0_i32_1 = arith.constant 0 : i32
    return %c0_i32, %c0_i32_0 : i32, i32
  }
  func.func @transform_10(%arg0: i32) -> (i32, i32) {
    %c0_i32 = arith.constant 0 : i32
    %c0_i32_0 = arith.constant 0 : i32
    %c0_i32_1 = arith.constant 0 : i32
    return %c0_i32, %c0_i32_0 : i32, i32
  }
  func.func @transform_11(%arg0: i32) -> (i32, i32, i32) {
    %c0_i32 = arith.constant 0 : i32
    %c0_i32_0 = arith.constant 0 : i32
    %c0_i32_1 = arith.constant 0 : i32
    return %arg0, %c0_i32, %c0_i32_0 : i32, i32, i32
  }
  func.func @transform_12(%arg0: i32) -> (i32, i32, i32) {
    %c0_i32 = arith.constant 0 : i32
    %c0_i32_0 = arith.constant 0 : i32
    %c0_i32_1 = arith.constant 0 : i32
    return %arg0, %c0_i32, %c0_i32_0 : i32, i32, i32
  }
  func.func @transform_13(%arg0: i32) -> (i32, i32, i32) {
    %c0_i32 = arith.constant 0 : i32
    %c0_i32_0 = arith.constant 0 : i32
    %c0_i32_1 = arith.constant 0 : i32
    return %arg0, %c0_i32, %c0_i32_0 : i32, i32, i32
  }
  func.func @transform_14(%arg0: i32) -> (i32, i32, i32) {
    %c0_i32 = arith.constant 0 : i32
    %c0_i32_0 = arith.constant 0 : i32
    %c0_i32_1 = arith.constant 0 : i32
    return %arg0, %c0_i32, %c0_i32_0 : i32, i32, i32
  }
}

module attributes {stable_mosaic.version = 11 : i64} {
  func.func @_layer_kernel_top(%arg0: i32, %arg1: memref<1x8x256xf32, #tpu.memory_space<vmem>>, %arg2: memref<1x16x256xf32, #tpu.memory_space<vmem>>, %arg3: memref<1x16x256xf32, #tpu.memory_space<vmem>>, %arg4: memref<8x16xbf16, #tpu.memory_space<vmem>>, %arg5: memref<8x1xf32, #tpu.memory_space<vmem>>, %arg6: memref<64x432xbf16, #tpu.memory_space<vmem>>, %arg7: memref<64x1xf32, #tpu.memory_space<vmem>>, %arg8: memref<9x256xf32, #tpu.memory_space<vmem>>, %arg9: memref<1x8x256xf32, #tpu.memory_space<vmem>>, %arg10: memref<1x16x256xf32, #tpu.memory_space<vmem>>, %arg11: memref<1x16x256xf32, #tpu.memory_space<vmem>>, %arg12: memref<1x16x256xf32, #tpu.memory_space<vmem>>) attributes {dimension_semantics = [#tpu.dimension_semantics<parallel>], iteration_bounds = array<i64: 2>, scalar_prefetch = 0 : i64, scratch_operands = 0 : i64, tpu.core_type = #tpu.core_type<tc>, window_params = [{transform_indices = @transform_0, window_bounds = array<i64: 1, 8, 256>}, {transform_indices = @transform_1, window_bounds = array<i64: 1, 16, 256>}, {transform_indices = @transform_2, window_bounds = array<i64: 1, 16, 256>}, {pipeline_mode = #tpu.pipeline_mode<synchronous>, transform_indices = @transform_3, window_bounds = array<i64: 8, 16>}, {pipeline_mode = #tpu.pipeline_mode<synchronous>, transform_indices = @transform_4, window_bounds = array<i64: 8, 1>}, {pipeline_mode = #tpu.pipeline_mode<synchronous>, transform_indices = @transform_5, window_bounds = array<i64: 64, 432>}, {pipeline_mode = #tpu.pipeline_mode<synchronous>, transform_indices = @transform_6, window_bounds = array<i64: 64, 1>}, {pipeline_mode = #tpu.pipeline_mode<synchronous>, transform_indices = @transform_7, window_bounds = array<i64: 9, 256>}, {transform_indices = @transform_8, window_bounds = array<i64: 1, 8, 256>}, {transform_indices = @transform_9, window_bounds = array<i64: 1, 16, 256>}, {transform_indices = @transform_10, window_bounds = array<i64: 1, 16, 256>}, {transform_indices = @transform_11, window_bounds = array<i64: 1, 16, 256>}]} {
    %cst = arith.constant 0.000000e+00 : f32
    %0 = vector.broadcast %cst : f32 to vector<16x256xf32>
    %c0 = arith.constant 0 : index
    %c0_0 = arith.constant 0 : index
    %c0_1 = arith.constant 0 : index
    %1 = vector.load %arg1[%c0, %c0_0, %c0_1] : memref<1x8x256xf32, #tpu.memory_space<vmem>>, vector<1x8x256xf32>
    %2 = vector.shape_cast %1 : vector<1x8x256xf32> to vector<8x256xf32>
    %c0_2 = arith.constant 0 : index
    %c0_3 = arith.constant 0 : index
    %c0_4 = arith.constant 0 : index
    %3 = vector.load %arg2[%c0_2, %c0_3, %c0_4] : memref<1x16x256xf32, #tpu.memory_space<vmem>>, vector<1x16x256xf32>
    %4 = vector.shape_cast %3 : vector<1x16x256xf32> to vector<16x256xf32>
    %c0_5 = arith.constant 0 : index
    %c0_6 = arith.constant 0 : index
    %c0_7 = arith.constant 0 : index
    %5 = vector.load %arg3[%c0_5, %c0_6, %c0_7] : memref<1x16x256xf32, #tpu.memory_space<vmem>>, vector<1x16x256xf32>
    %6 = vector.shape_cast %5 : vector<1x16x256xf32> to vector<16x256xf32>
    %c0_8 = arith.constant 0 : index
    %c0_9 = arith.constant 0 : index
    %7 = vector.load %arg4[%c0_8, %c0_9] : memref<8x16xbf16, #tpu.memory_space<vmem>>, vector<8x16xbf16>
    %c0_10 = arith.constant 0 : index
    %c0_11 = arith.constant 0 : index
    %8 = vector.load %arg5[%c0_10, %c0_11] : memref<8x1xf32, #tpu.memory_space<vmem>>, vector<8x1xf32>
    %c0_12 = arith.constant 0 : index
    %c0_13 = arith.constant 0 : index
    %9 = vector.load %arg6[%c0_12, %c0_13] : memref<64x432xbf16, #tpu.memory_space<vmem>>, vector<64x432xbf16>
    %c0_14 = arith.constant 0 : index
    %c0_15 = arith.constant 0 : index
    %10 = vector.load %arg7[%c0_14, %c0_15] : memref<64x1xf32, #tpu.memory_space<vmem>>, vector<64x1xf32>
    %c0_16 = arith.constant 0 : index
    %c0_17 = arith.constant 0 : index
    %11 = vector.load %arg8[%c0_16, %c0_17] : memref<9x256xf32, #tpu.memory_space<vmem>>, vector<9x256xf32>
    %12 = arith.truncf %4 : vector<16x256xf32> to vector<16x256xbf16>
    %cst_18 = arith.constant dense<0.000000e+00> : vector<8x256xf32>
    %13 = tpu.matmul %7, %12, %cst_18 {dimension_numbers = #tpu.dot_dimension_numbers<[1], [0], [0], [1], [0, 0, 1, 1], [], []>} : vector<8x16xbf16>, vector<16x256xbf16>, vector<8x256xf32> -> vector<8x256xf32>
    %14 = vector.broadcast %8 : vector<8x1xf32> to vector<8x256xf32>
    %15 = arith.addf %13, %14 : vector<8x256xf32>
    %16 = arith.subf %2, %15 : vector<8x256xf32>
    %cst_19 = arith.constant 0.000000e+00 : f32
    %17 = vector.broadcast %cst_19 : f32 to vector<8x256xf32>
    %18 = arith.maximumf %16, %17 : vector<8x256xf32>
    %cst_20 = arith.constant 0.000000e+00 : f32
    %19 = vector.broadcast %cst_20 : f32 to vector<8x256xf32>
    %20 = arith.subf %19, %16 : vector<8x256xf32>
    %cst_21 = arith.constant 0.000000e+00 : f32
    %21 = vector.broadcast %cst_21 : f32 to vector<8x256xf32>
    %22 = arith.maximumf %20, %21 : vector<8x256xf32>
    %23 = tpu.concatenate %18, %22, %0, %4 in 0 : vector<8x256xf32>, vector<8x256xf32>, vector<16x256xf32>, vector<16x256xf32> -> vector<48x256xf32>
    %24 = vector.extract_strided_slice %23 {offsets = [0, 0], sizes = [16, 256], strides = [1, 1]} : vector<48x256xf32> to vector<16x256xf32>
    %c17_i32 = arith.constant 17 : i32
    %25 = tpu.dynamic_rotate %23 by %c17_i32 dim 1 : vector<48x256xf32>, i32 -> vector<48x256xf32>
    %26 = vector.extract_strided_slice %11 {offsets = [0, 0], sizes = [1, 256], strides = [1, 1]} : vector<9x256xf32> to vector<1x256xf32>
    %27 = vector.broadcast %26 : vector<1x256xf32> to vector<48x256xf32>
    %28 = arith.mulf %25, %27 : vector<48x256xf32>
    %c16_i32 = arith.constant 16 : i32
    %29 = tpu.dynamic_rotate %23 by %c16_i32 dim 1 : vector<48x256xf32>, i32 -> vector<48x256xf32>
    %30 = vector.extract_strided_slice %11 {offsets = [1, 0], sizes = [1, 256], strides = [1, 1]} : vector<9x256xf32> to vector<1x256xf32>
    %31 = vector.broadcast %30 : vector<1x256xf32> to vector<48x256xf32>
    %32 = arith.mulf %29, %31 : vector<48x256xf32>
    %c15_i32 = arith.constant 15 : i32
    %33 = tpu.dynamic_rotate %23 by %c15_i32 dim 1 : vector<48x256xf32>, i32 -> vector<48x256xf32>
    %34 = vector.extract_strided_slice %11 {offsets = [2, 0], sizes = [1, 256], strides = [1, 1]} : vector<9x256xf32> to vector<1x256xf32>
    %35 = vector.broadcast %34 : vector<1x256xf32> to vector<48x256xf32>
    %36 = arith.mulf %33, %35 : vector<48x256xf32>
    %c1_i32 = arith.constant 1 : i32
    %37 = tpu.dynamic_rotate %23 by %c1_i32 dim 1 : vector<48x256xf32>, i32 -> vector<48x256xf32>
    %38 = vector.extract_strided_slice %11 {offsets = [3, 0], sizes = [1, 256], strides = [1, 1]} : vector<9x256xf32> to vector<1x256xf32>
    %39 = vector.broadcast %38 : vector<1x256xf32> to vector<48x256xf32>
    %40 = arith.mulf %37, %39 : vector<48x256xf32>
    %c255_i32 = arith.constant 255 : i32
    %41 = tpu.dynamic_rotate %23 by %c255_i32 dim 1 : vector<48x256xf32>, i32 -> vector<48x256xf32>
    %42 = vector.extract_strided_slice %11 {offsets = [5, 0], sizes = [1, 256], strides = [1, 1]} : vector<9x256xf32> to vector<1x256xf32>
    %43 = vector.broadcast %42 : vector<1x256xf32> to vector<48x256xf32>
    %44 = arith.mulf %41, %43 : vector<48x256xf32>
    %c241_i32 = arith.constant 241 : i32
    %45 = tpu.dynamic_rotate %23 by %c241_i32 dim 1 : vector<48x256xf32>, i32 -> vector<48x256xf32>
    %46 = vector.extract_strided_slice %11 {offsets = [6, 0], sizes = [1, 256], strides = [1, 1]} : vector<9x256xf32> to vector<1x256xf32>
    %47 = vector.broadcast %46 : vector<1x256xf32> to vector<48x256xf32>
    %48 = arith.mulf %45, %47 : vector<48x256xf32>
    %c240_i32 = arith.constant 240 : i32
    %49 = tpu.dynamic_rotate %23 by %c240_i32 dim 1 : vector<48x256xf32>, i32 -> vector<48x256xf32>
    %50 = vector.extract_strided_slice %11 {offsets = [7, 0], sizes = [1, 256], strides = [1, 1]} : vector<9x256xf32> to vector<1x256xf32>
    %51 = vector.broadcast %50 : vector<1x256xf32> to vector<48x256xf32>
    %52 = arith.mulf %49, %51 : vector<48x256xf32>
    %c239_i32 = arith.constant 239 : i32
    %53 = tpu.dynamic_rotate %23 by %c239_i32 dim 1 : vector<48x256xf32>, i32 -> vector<48x256xf32>
    %54 = vector.extract_strided_slice %11 {offsets = [8, 0], sizes = [1, 256], strides = [1, 1]} : vector<9x256xf32> to vector<1x256xf32>
    %55 = vector.broadcast %54 : vector<1x256xf32> to vector<48x256xf32>
    %56 = arith.mulf %53, %55 : vector<48x256xf32>
    %57 = tpu.concatenate %28, %32, %36, %40, %23, %44, %48, %52, %56 in 0 : vector<48x256xf32>, vector<48x256xf32>, vector<48x256xf32>, vector<48x256xf32>, vector<48x256xf32>, vector<48x256xf32>, vector<48x256xf32>, vector<48x256xf32>, vector<48x256xf32> -> vector<432x256xf32>
    %58 = arith.truncf %57 : vector<432x256xf32> to vector<432x256xbf16>
    %cst_22 = arith.constant dense<0.000000e+00> : vector<64x256xf32>
    %59 = tpu.matmul %9, %58, %cst_22 {dimension_numbers = #tpu.dot_dimension_numbers<[1], [0], [0], [1], [0, 0, 1, 1], [], []>} : vector<64x432xbf16>, vector<432x256xbf16>, vector<64x256xf32> -> vector<64x256xf32>
    %60 = vector.broadcast %10 : vector<64x1xf32> to vector<64x256xf32>
    %61 = arith.addf %59, %60 : vector<64x256xf32>
    %62 = vector.extract_strided_slice %61 {offsets = [0, 0], sizes = [16, 256], strides = [1, 1]} : vector<64x256xf32> to vector<16x256xf32>
    %63 = arith.negf %62 : vector<16x256xf32>
    %64 = math.exp %63 : vector<16x256xf32>
    %cst_23 = arith.constant 1.000000e+00 : f32
    %65 = vector.broadcast %cst_23 : f32 to vector<16x256xf32>
    %66 = arith.addf %65, %64 : vector<16x256xf32>
    %67 = arith.divf %65, %66 : vector<16x256xf32>
    %68 = vector.extract_strided_slice %61 {offsets = [16, 0], sizes = [16, 256], strides = [1, 1]} : vector<64x256xf32> to vector<16x256xf32>
    %69 = arith.negf %68 : vector<16x256xf32>
    %70 = math.exp %69 : vector<16x256xf32>
    %cst_24 = arith.constant 1.000000e+00 : f32
    %71 = vector.broadcast %cst_24 : f32 to vector<16x256xf32>
    %72 = arith.addf %71, %70 : vector<16x256xf32>
    %73 = arith.divf %71, %72 : vector<16x256xf32>
    %74 = vector.extract_strided_slice %61 {offsets = [32, 0], sizes = [16, 256], strides = [1, 1]} : vector<64x256xf32> to vector<16x256xf32>
    %75 = math.tanh %74 : vector<16x256xf32>
    %76 = vector.extract_strided_slice %61 {offsets = [48, 0], sizes = [16, 256], strides = [1, 1]} : vector<64x256xf32> to vector<16x256xf32>
    %77 = arith.negf %76 : vector<16x256xf32>
    %78 = math.exp %77 : vector<16x256xf32>
    %cst_25 = arith.constant 1.000000e+00 : f32
    %79 = vector.broadcast %cst_25 : f32 to vector<16x256xf32>
    %80 = arith.addf %79, %78 : vector<16x256xf32>
    %81 = arith.divf %79, %80 : vector<16x256xf32>
    %82 = arith.mulf %73, %6 : vector<16x256xf32>
    %83 = arith.mulf %67, %75 : vector<16x256xf32>
    %84 = arith.addf %82, %83 : vector<16x256xf32>
    %85 = math.tanh %84 : vector<16x256xf32>
    %86 = arith.mulf %81, %85 : vector<16x256xf32>
    %c0_26 = arith.constant 0 : index
    %c0_27 = arith.constant 0 : index
    %c0_28 = arith.constant 0 : index
    %87 = vector.load %arg9[%c0_26, %c0_27, %c0_28] : memref<1x8x256xf32, #tpu.memory_space<vmem>>, vector<1x8x256xf32>
    %88 = vector.shape_cast %87 : vector<1x8x256xf32> to vector<8x256xf32>
    %89 = vector.shape_cast %15 : vector<8x256xf32> to vector<1x8x256xf32>
    tpu.vector_store %arg9[%c0_26, %c0_27, %c0_28], %89 {strides = array<i32>} : memref<1x8x256xf32, #tpu.memory_space<vmem>>, vector<1x8x256xf32>,
    %c0_29 = arith.constant 0 : index
    %c0_30 = arith.constant 0 : index
    %c0_31 = arith.constant 0 : index
    %90 = vector.load %arg10[%c0_29, %c0_30, %c0_31] : memref<1x16x256xf32, #tpu.memory_space<vmem>>, vector<1x16x256xf32>
    %91 = vector.shape_cast %90 : vector<1x16x256xf32> to vector<16x256xf32>
    %92 = vector.shape_cast %24 : vector<16x256xf32> to vector<1x16x256xf32>
    tpu.vector_store %arg10[%c0_29, %c0_30, %c0_31], %92 {strides = array<i32>} : memref<1x16x256xf32, #tpu.memory_space<vmem>>, vector<1x16x256xf32>,
    %c0_32 = arith.constant 0 : index
    %c0_33 = arith.constant 0 : index
    %c0_34 = arith.constant 0 : index
    %93 = vector.load %arg11[%c0_32, %c0_33, %c0_34] : memref<1x16x256xf32, #tpu.memory_space<vmem>>, vector<1x16x256xf32>
    %94 = vector.shape_cast %93 : vector<1x16x256xf32> to vector<16x256xf32>
    %95 = vector.shape_cast %86 : vector<16x256xf32> to vector<1x16x256xf32>
    tpu.vector_store %arg11[%c0_32, %c0_33, %c0_34], %95 {strides = array<i32>} : memref<1x16x256xf32, #tpu.memory_space<vmem>>, vector<1x16x256xf32>,
    %c0_35 = arith.constant 0 : index
    %c0_36 = arith.constant 0 : index
    %c0_37 = arith.constant 0 : index
    %96 = vector.load %arg12[%c0_35, %c0_36, %c0_37] : memref<1x16x256xf32, #tpu.memory_space<vmem>>, vector<1x16x256xf32>
    %97 = vector.shape_cast %96 : vector<1x16x256xf32> to vector<16x256xf32>
    %98 = vector.shape_cast %84 : vector<16x256xf32> to vector<1x16x256xf32>
    tpu.vector_store %arg12[%c0_35, %c0_36, %c0_37], %98 {strides = array<i32>} : memref<1x16x256xf32, #tpu.memory_space<vmem>>, vector<1x16x256xf32>,
    return
  }
  func.func @transform_0(%arg0: i32) -> (i32, i32, i32) {
    %c0_i32 = arith.constant 0 : i32
    %c0_i32_0 = arith.constant 0 : i32
    %c0_i32_1 = arith.constant 0 : i32
    return %arg0, %c0_i32, %c0_i32_0 : i32, i32, i32
  }
  func.func @transform_1(%arg0: i32) -> (i32, i32, i32) {
    %c0_i32 = arith.constant 0 : i32
    %c0_i32_0 = arith.constant 0 : i32
    %c0_i32_1 = arith.constant 0 : i32
    return %arg0, %c0_i32, %c0_i32_0 : i32, i32, i32
  }
  func.func @transform_2(%arg0: i32) -> (i32, i32, i32) {
    %c0_i32 = arith.constant 0 : i32
    %c0_i32_0 = arith.constant 0 : i32
    %c0_i32_1 = arith.constant 0 : i32
    return %arg0, %c0_i32, %c0_i32_0 : i32, i32, i32
  }
  func.func @transform_3(%arg0: i32) -> (i32, i32) {
    %c0_i32 = arith.constant 0 : i32
    %c0_i32_0 = arith.constant 0 : i32
    %c0_i32_1 = arith.constant 0 : i32
    return %c0_i32, %c0_i32_0 : i32, i32
  }
  func.func @transform_4(%arg0: i32) -> (i32, i32) {
    %c0_i32 = arith.constant 0 : i32
    %c0_i32_0 = arith.constant 0 : i32
    %c0_i32_1 = arith.constant 0 : i32
    return %c0_i32, %c0_i32_0 : i32, i32
  }
  func.func @transform_5(%arg0: i32) -> (i32, i32) {
    %c0_i32 = arith.constant 0 : i32
    %c0_i32_0 = arith.constant 0 : i32
    %c0_i32_1 = arith.constant 0 : i32
    return %c0_i32, %c0_i32_0 : i32, i32
  }
  func.func @transform_6(%arg0: i32) -> (i32, i32) {
    %c0_i32 = arith.constant 0 : i32
    %c0_i32_0 = arith.constant 0 : i32
    %c0_i32_1 = arith.constant 0 : i32
    return %c0_i32, %c0_i32_0 : i32, i32
  }
  func.func @transform_7(%arg0: i32) -> (i32, i32) {
    %c0_i32 = arith.constant 0 : i32
    %c0_i32_0 = arith.constant 0 : i32
    %c0_i32_1 = arith.constant 0 : i32
    return %c0_i32, %c0_i32_0 : i32, i32
  }
  func.func @transform_8(%arg0: i32) -> (i32, i32, i32) {
    %c0_i32 = arith.constant 0 : i32
    %c0_i32_0 = arith.constant 0 : i32
    %c0_i32_1 = arith.constant 0 : i32
    return %arg0, %c0_i32, %c0_i32_0 : i32, i32, i32
  }
  func.func @transform_9(%arg0: i32) -> (i32, i32, i32) {
    %c0_i32 = arith.constant 0 : i32
    %c0_i32_0 = arith.constant 0 : i32
    %c0_i32_1 = arith.constant 0 : i32
    return %arg0, %c0_i32, %c0_i32_0 : i32, i32, i32
  }
  func.func @transform_10(%arg0: i32) -> (i32, i32, i32) {
    %c0_i32 = arith.constant 0 : i32
    %c0_i32_0 = arith.constant 0 : i32
    %c0_i32_1 = arith.constant 0 : i32
    return %arg0, %c0_i32, %c0_i32_0 : i32, i32, i32
  }
  func.func @transform_11(%arg0: i32) -> (i32, i32, i32) {
    %c0_i32 = arith.constant 0 : i32
    %c0_i32_0 = arith.constant 0 : i32
    %c0_i32_1 = arith.constant 0 : i32
    return %arg0, %c0_i32, %c0_i32_0 : i32, i32, i32
  }
}

</mosaic_0001>

<bundles_post_ra>
// kernel: custom-call
= control target key start
LH: loop header
LB: loop body
LE: loop exit
PB: predicated region body
PF: predicated region fallthrough
CT: control target
= control target key end

     0   :  { %s6_s0 = inlined_call_operand.vmem [shape: f32[4,2,8,256], index: 0, kind: output, shape index: {}]  }

// kernel: custom-call.2
= control target key start
LH: loop header
LB: loop body
LE: loop exit
PB: predicated region body
PF: predicated region fallthrough
CT: control target
= control target key end

     0   :  { %s6_s0 = inlined_call_operand.vmem [shape: f32[4,2,16,256], index: 0, kind: output, shape index: {}]  }

// kernel: custom-call.1
= control target key start
LH: loop header
LB: loop body
LE: loop exit
PB: predicated region body
PF: predicated region fallthrough
CT: control target
= control target key end

     0   :  { %s6_s0 = inlined_call_operand.vmem [shape: f32[4,2,8,1024], index: 0, kind: output, shape index: {}]  }

// kernel: closed_call.25
= control target key start
LH: loop header
LB: loop body
LE: loop exit
PB: predicated region body
PF: predicated region fallthrough
CT: control target
= control target key end

     0   :  { %s2017_s17 = smov 0   ;;  %s3074_s0 = inlined_call_operand.vmem [shape: f32[2,8,256], index: 0, kind: input, shape index: {}]   ;;  %s3075_s1 = inlined_call_operand.vmem [shape: f32[2,16,256], index: 1, kind: input, shape index: {}, may-alias: {1,10}]   ;;  %s3076_s2 = inlined_call_operand.vmem [shape: f32[2,16,256], index: 2, kind: input, shape index: {}, may-alias: {2,11}]   ;;  %s3077_s3 = inlined_call_operand.vmem [shape: bf16[8,16], index: 3, kind: input, shape index: {}]   ;;  %s3078_s4 = inlined_call_operand.vmem [shape: f32[8,1], index: 4, kind: input, shape index: {}]   ;;  %s3079_s5 = inlined_call_operand.vmem [shape: bf16[64,432], index: 5, kind: input, shape index: {}]   ;;  %s3080_s6 = inlined_call_operand.vmem [shape: f32[64,1], index: 6, kind: input, shape index: {}]   ;;  %s3081_s7 = inlined_call_operand.vmem [shape: f32[9,256], index: 7, kind: input, shape index: {}]   ;;  %s3082_s8 = inlined_call_operand.vmem [shape: f32[2,8,256], index: 8, kind: output, shape index: {0}]   ;;  %s3083_s9 = inlined_call_operand.vmem [shape: f32[2,16,256], index: 9, kind: output, shape index: {1}]   ;;  %s3084_s10 = inlined_call_operand.vmem [shape: f32[2,16,256], index: 10, kind: output, shape index: {2}, may-alias: {1,10}]   ;;  %s3085_s11 = inlined_call_operand.vmem [shape: f32[2,16,256], index: 11, kind: output, shape index: {3}, may-alias: {2,11}]  }
   0x1 LB: > { %s1720_s18 = sadd.s32 4294967295, %s1944_s17   ;;  %p1724_p0 = scmp.ge.s32.totalorder %s1944_s17, 1  ;;  %s1944_s17 = sphi %s2017_s17, %s22_s17  }
   0x2   : > { %p364_p1 = scmp.lt.s32.totalorder %s1944_s17, 3 }
   0x4   : > { %p365_p2 = pnand %p1724_p0, %p364_p1 }
   0x6   : > { %368 = sbr.rel (%p365_p2) target bundleno = 664 (0x298), region = 52 }
   0xb   : > { %p429_p3 = scmp.lt.s32.totalorder %s1720_s18, 1  ;;  %v476_v0 = vld [vmem:[%s3078_s4] sm:$0xff]  ;;  %v1946_v1 = vmov 0   ;;  %s1947_s25 = smov 16   ;;  %vm512_vm0 = vcmask 130048   ;;  %v1948_v9 = vmov 0.0   ;;  %v568_v17 = vlaneseq }
   0xc   : > { %1869 = vset.pattern.permute.xlu0 %v1946_v1  ;;  %1870 = vset.pattern.permute.xlu1 %v1946_v1  ;;  %v475_v8 = vld [vmem:[%s3077_s3] sm:$0xf]  ;;  %s1949_s28 = smov 15   ;;  %s1950_s29 = smov 112   ;;  %v2147_v27 = vld [vmem:[%s3081_s7 + $0x8] sm:$0xff]  ;;  %vm1031_vm9 = vcmask 392192  }
   0xd   : > { %s3162_s18 = smov (!%p429_p3, %s1720_s18), 1  ;;  %509 = vperm.xlu0 %1869, %v476_v0   ;;  %1871 = vset.pattern.permute.xlu2 %v1946_v1  ;;  %s1951_s30 = smov 1   ;;  %v2133_v23 = vand.u32 127, %v568_v17  ;;  %v2138_v25 = vld [vmem:[%s3081_s7] sm:$0xff]  ;;  %v2169_v37 = vperm.slane %v2147_v27, 1  ;;  %v2201_v52 = vperm.slane %v2147_v27, 7 }
   0xe   : > { %s2031_s21 = sshll.u32 %s3162_s18, 5  ;;  %s1952_s12 = smov 17   ;;  %v2159_v35 = vperm.slane %v2138_v25, 1  ;;  %v2198_v50 = vperm.slane %v2138_v25, 7  ;;  %v2206_v54 = vperm.slane %v2138_v25, 2 }
   0xf   : > { %s438_s24 = scalar_lea.vmem %s3075_s1, %s2031_s21  ;;  %s1953_s13 = smov 113   ;;  %vm609_vm1 = vcmp.lt.s32.totalorder %v2133_v23, 16  ;;  %3107 = vst [vmem:[#allocation3_spill] sm:$0xff] %v2169_v37  ;;  %vm804_vm2 = vcmp.lt.s32.totalorder %v2133_v23, 112  ;;  %vm687_vm3 = vcmp.lt.s32.totalorder %v2133_v23, 1  ;;  %vm570_vm4 = vcmp.lt.s32.totalorder %v2133_v23, 17 }
  0x10   : > { %v2037_v2 = vld [vmem:[%s438_s24] sm:$0xff]  ;;  %v2039_v3 = vld [vmem:[%s438_s24 + $0x10] sm:$0xff]  ;;  %v2041_v4 = vld [vmem:[%s438_s24 + $0x8] sm:$0xff]  ;;  %s1954_s14 = smov 111   ;;  %s1827_s15 = sshll.u32 %s3162_s18, 4  ;;  %vm765_vm5 = vcmp.lt.s32.totalorder %v2133_v23, 113 }
  0x11   : > { %v2045_v5 = vpack.c.bf16 %v2039_v3, %v2037_v2  ;;  %v2047_v6 = vld [vmem:[%s438_s24 + $0x18] sm:$0xff]  ;;  %599 = vrot.lane.b32.xlu2 %v2039_v3, %s1947_s25  ;;  %597 = vrot.lane.b32.xlu1 %v2037_v2, %s1947_s25  ;;  %s433_s20 = scalar_lea.vmem %s3074_s0, %s1827_s15  ;;  %s448_s24 = scalar_lea.vmem %s3082_s8, %s1827_s15  ;;  %vm843_vm6 = vcmp.lt.s32.totalorder %v2133_v23, 111  ;;  %vm648_vm7 = vcmp.lt.s32.totalorder %v2133_v23, 15  ;;  %vm726_vm8 = vcmp.lt.s32.totalorder %v2133_v23, 127 }
  0x12   : > { %v2055_v7 = vpack.c.bf16 %v2047_v6, %v2041_v4  ;;  %v465_v14 = vld [vmem:[%s433_s20] sm:$0xff]  ;;  %v466_v19 = vld [vmem:[%s433_s20 + $0x8] sm:$0xff]  ;;  %s453_s16 = scalar_lea.vmem %s3083_s9, %s2031_s21  ;;  %s1955_s22 = smov 127  }
  0x13   : > { %523 = vmatpush.bf16.msra.mxu0 %v2045_v5 }
  0x14   : > { %536 = vmatpush.bf16.msra.mxu1 %v2055_v7 }
  0x15   : > { %634 = vrot.lane.b32.xlu0 %v1948_v9, %s1949_s28 }
  0x16   : > { %1739 = vmatmul.msk.bf16.vlgmr.msra.gmra.mxu0 %vm512_vm0, %v475_v8 }
  0x17   : > { %1740 = vmatmul.msk.bf16.vlgmr.msra.gmra.mxu1 %vm512_vm0, %v475_v8 }
  0x19   : > { %792 = vrot.lane.b32.xlu2 %v2037_v2, %s1950_s29  ;;  %607 = vrot.lane.b32.xlu1 %v2047_v6, %s1947_s25 }
  0x1d   : > { %605 = vrot.lane.b32.xlu0 %v2041_v4, %s1947_s25 }
  0x21   : > { %802 = vrot.lane.b32.xlu2 %v2047_v6, %s1950_s29  ;;  %800 = vrot.lane.b32.xlu1 %v2041_v4, %s1950_s29 }
  0x25   : > { %794 = vrot.lane.b32.xlu0 %v2039_v3, %s1950_s29 }
  0x29   : > { %683 = vrot.lane.b32.xlu2 %v2041_v4, %s1951_s30  ;;  %790 = vrot.lane.b32.xlu1 %v1948_v9, %s1950_s29 }
  0x2d   : > { %595 = vrot.lane.b32.xlu0 %v1948_v9, %s1947_s25 }
  0x31   : > { %556 = vrot.lane.b32.xlu2 %v2037_v2, %s1952_s12  ;;  %677 = vrot.lane.b32.xlu1 %v2039_v3, %s1951_s30 }
  0x35   : > { %675 = vrot.lane.b32.xlu0 %v2037_v2, %s1951_s30 }
  0x39   : > { %566 = vrot.lane.b32.xlu2 %v2047_v6, %s1952_s12  ;;  %564 = vrot.lane.b32.xlu1 %v2041_v4, %s1952_s12 }
  0x3d   : > { %685 = vrot.lane.b32.xlu0 %v2047_v6, %s1951_s30 }
  0x41   : > { %761 = vrot.lane.b32.xlu2 %v2041_v4, %s1953_s13  ;;  %755 = vrot.lane.b32.xlu1 %v2039_v3, %s1953_s13 }
  0x45   : > { %558 = vrot.lane.b32.xlu0 %v2039_v3, %s1952_s12 }
  0x49   : > { %831 = vrot.lane.b32.xlu2 %v2037_v2, %s1954_s14  ;;  %673 = vrot.lane.b32.xlu1 %v1948_v9, %s1951_s30 }
  0x4d   : > { %753 = vrot.lane.b32.xlu0 %v2037_v2, %s1953_s13 }
  0x51   : > { %841 = vrot.lane.b32.xlu2 %v2047_v6, %s1954_s14  ;;  %839 = vrot.lane.b32.xlu1 %v2041_v4, %s1954_s14 }
  0x55   : > { %763 = vrot.lane.b32.xlu0 %v2047_v6, %s1953_s13 }
  0x59   : > { %751 = vrot.lane.b32.xlu2 %v1948_v9, %s1953_s13  ;;  %829 = vrot.lane.b32.xlu1 %v1948_v9, %s1954_s14 }
  0x5d   : > { %833 = vrot.lane.b32.xlu0 %v2039_v3, %s1954_s14 }
  0x61   : > { %636 = vrot.lane.b32.xlu2 %v2037_v2, %s1949_s28 }
  0x65   : > { %554 = vrot.lane.b32.xlu0 %v1948_v9, %s1952_s12 }
  0x6b   : > { %v600_v11 = vpop.permute.xlu2 %599 }
  0x73   : > { %v2125_v13 = vpop.permute.xlu2 %792 }
  0x7b   : > { %v803_v28 = vpop.permute.xlu2 %802 }
  0x7f   : > { %v510_v10 = vpop.permute.xlu0 %509 }
  0x83   : > { %v598_v21 = vpop.permute.xlu1 %597  ;;  %v684_v51 = vpop.permute.xlu2 %683 }
  0x87   : > { %v2122_v12 = vpop.permute.xlu0 %634 }
  0x88   : > { %3106 = vst [vmem:[#allocation2_spill] sm:$0xff] %v2122_v12  ;;  %v663_v58 = vmul.f32 %v2206_v54, %v2122_v12 }
  0x8a   : > { %v878_v0 = vpack.c.bf16 %v663_v58, %v663_v58 }
  0x8b   : > { %v608_v43 = vpop.permute.xlu1 %607 }
  0x8c   : > { %v613_v45 = vsel %vm609_vm1, %v600_v11, %v608_v43  ;;  %v617_v46 = vsel %vm609_vm1, %v608_v43, %v600_v11  ;;  %1044 = vmatpush.bf16.msra.mxu2 %v878_v0  ;;  %v2296_v43 = vperm.slane %v2147_v27, 0 }
  0x8d   : > { %v2192_v48 = vmul.f32 %v2159_v35, %v617_v46  ;;  %v2195_v49 = vmul.f32 %v2169_v37, %v613_v45 }
  0x8f   : > { %v606_v16 = vpop.permute.xlu0 %605  ;;  %3109 = vst [vmem:[#allocation5_spill] sm:$0xff] %v2195_v49 }
  0x90   : > { %v612_v31 = vsel %vm609_vm1, %v598_v21, %v606_v16  ;;  %v616_v32 = vsel %vm609_vm1, %v606_v16, %v598_v21 }
  0x91   : > { %v2182_v44 = vmul.f32 %v2159_v35, %v616_v32  ;;  %v2189_v47 = vmul.f32 %v2169_v37, %v612_v31 }
  0x93   : > { %v525_v15 = vpop.f32.mrf.mxu0  ;;  %3108 = vst [vmem:[#allocation4_spill] sm:$0xff] %v2189_v47  ;;  %v801_v60 = vpop.permute.xlu1 %800  ;;  %v2483_v47 = vperm.slane %v2138_v25, 5 }
  0x94   : > { %v526_v18 = vadd.f32 %v525_v15, %v510_v10  ;;  %v538_v20 = vpop.f32.mrf.mxu1  ;;  %v807_v62 = vsel %vm804_vm2, %v2125_v13, %v801_v60  ;;  %v811_v63 = vsel %vm804_vm2, %v801_v60, %v2125_v13  ;;  %v557_v13 = vpop.permute.xlu2 %556 }
  0x95   : > { %v539_v22 = vadd.f32 %v538_v20, %v510_v10  ;;  %v821_v1 = vmul.f32 %v2198_v50, %v807_v62  ;;  %v2234_v8 = vmul.f32 %v2201_v52, %v811_v63  ;;  %v2261_v20 = vperm.slane %v2147_v27, 3  ;;  %3123 = vst [vmem:[#allocation19_spill] sm:$0xff] %v2483_v47 }
  0x96   : > { %v542_v24 = vsub.f32 %v465_v14, %v526_v18  ;;  %1528 = vst [vmem:[%s448_s24] sm:$0xff] %v526_v18 }
  0x97   : > { %v543_v26 = vsub.f32 %v466_v19, %v539_v22  ;;  %1529 = vst [vmem:[%s448_s24 + $0x8] sm:$0xff] %v539_v22  ;;  %v795_v40 = vpop.permute.xlu0 %794  ;;  %v2254_v19 = vperm.slane %v2138_v25, 3 }
  0x98   : > { %v2150_v29 = vmax.f32 %v542_v24, 0.0  ;;  %v546_v30 = vsub.f32 0.0, %v542_v24  ;;  %v812_v42 = vsel %vm804_vm2, %v803_v28, %v795_v40  ;;  %v808_v53 = vsel %vm804_vm2, %v795_v40, %v803_v28 }
  0x99   : > { %v2156_v33 = vmax.f32 %v543_v26, 0.0  ;;  %v547_v34 = vsub.f32 0.0, %v543_v26  ;;  %v823_v59 = vmul.f32 %v2198_v50, %v808_v53  ;;  %v2224_v61 = vmul.f32 %v2201_v52, %v812_v42 }
  0x9a   : > { %v2161_v36 = vmax.f32 %v546_v30, 0.0  ;;  %1530 = vst [vmem:[%s453_s16] sm:$0xff] %v2150_v29  ;;  %630 = vrot.lane.b32.xlu0 %v2150_v29, %s1949_s28  ;;  %708 = vrot.lane.b32.xlu1 %v2150_v29, %s1955_s22  ;;  %v2293_v42 = vperm.slane %v2138_v25, 0 }
  0x9b   : > { %v2171_v38 = vmax.f32 %v547_v34, 0.0  ;;  %1531 = vst [vmem:[%s453_s16 + $0x8] sm:$0xff] %v2156_v33  ;;  %718 = vrot.lane.b32.xlu2 %v2156_v33, %s1955_s22  ;;  %v527_v39 = vpop.f32.mrf.mxu0  ;;  %v907_v10 = vpack.c.bf16 %v823_v59, %v821_v1  ;;  %v2249_v17 = vpop.permute.xlu1 %790 }
  0x9c   : > { %1532 = vst [vmem:[%s453_s16 + $0x10] sm:$0xff] %v2161_v36  ;;  %v540_v41 = vpop.f32.mrf.mxu1  ;;  %v819_v18 = vmul.f32 %v2198_v50, %v2249_v17  ;;  %v567_v26 = vpop.permute.xlu2 %566 }
  0x9d   : > { %1533 = vst [vmem:[%s453_s16 + $0x18] sm:$0xff] %v2171_v38  ;;  %1102 = vmatpush.bf16.msrb.mxu0 %v907_v10 }
  0x9e   : > { %v905_v22 = vpack.c.bf16 %v819_v18, %v819_v18 }
  0x9f   : > { %v2218_v57 = vpop.permute.xlu0 %595 }
  0xa1   : > { %1103 = vmatpush.bf16.msrb.mxu0 %v905_v22  ;;  %v2334_v22 = vperm.slane %v2138_v25, 6 }
  0xa2   : > { %796 = vrot.lane.b32.xlu0 %v2156_v33, %s1950_s29  ;;  %601 = vrot.lane.b32.xlu1 %v2156_v33, %s1947_s25 }
  0xa3   : > { %640 = vrot.lane.b32.xlu2 %v2156_v33, %s1949_s28  ;;  %v678_v24 = vpop.permute.xlu1 %677 }
  0xa4   : > { %v762_v1 = vpop.permute.xlu2 %761 }
  0xa7   : > { %v676_v14 = vpop.permute.xlu0 %675 }
  0xa8   : > { %v690_v15 = vsel %vm687_vm3, %v676_v14, %v684_v51  ;;  %v694_v16 = vsel %vm687_vm3, %v684_v51, %v676_v14 }
  0xa9   : > { %v2266_v28 = vmul.f32 %v2254_v19, %v694_v16  ;;  %v2273_v32 = vmul.f32 %v2261_v20, %v690_v15 }
  0xaa   : > { %679 = vrot.lane.b32.xlu0 %v2156_v33, %s1951_s30  ;;  %786 = vrot.lane.b32.xlu1 %v2150_v29, %s1950_s29 }
  0xab   : > { %591 = vrot.lane.b32.xlu2 %v2150_v29, %s1947_s25  ;;  %3110 = vst [vmem:[#allocation6_spill] sm:$0xff] %v2273_v32  ;;  %v565_v53 = vpop.permute.xlu1 %564 }
  0xac   : > { %v573_v59 = vsel %vm570_vm4, %v557_v13, %v565_v53  ;;  %v577_v60 = vsel %vm570_vm4, %v565_v53, %v557_v13 }
  0xad   : > { %v2313_v63 = vmul.f32 %v2293_v42, %v577_v60  ;;  %v2316_v0 = vmul.f32 %v2296_v43, %v573_v59 }
  0xaf   : > { %v686_v21 = vpop.permute.xlu0 %685  ;;  %3112 = vst [vmem:[#allocation8_spill] sm:$0xff] %v2316_v0 }
  0xb0   : > { %v691_v30 = vsel %vm687_vm3, %v678_v24, %v686_v21  ;;  %v695_v31 = vsel %vm687_vm3, %v686_v21, %v678_v24  ;;  %v832_v21 = vpop.permute.xlu2 %831  ;;  %v2341_v24 = vperm.slane %v2147_v27, 6 }
  0xb1   : > { %v2276_v34 = vmul.f32 %v2254_v19, %v695_v31  ;;  %v2279_v39 = vmul.f32 %v2261_v20, %v691_v30 }
  0xb2   : > { %550 = vrot.lane.b32.xlu0 %v2150_v29, %s1952_s12  ;;  %669 = vrot.lane.b32.xlu1 %v2150_v29, %s1951_s30  ;;  %3113 = vst [vmem:[#allocation9_spill] sm:$0xff] %v2341_v24 }
  0xb3   : > { %560 = vrot.lane.b32.xlu2 %v2156_v33, %s1952_s12  ;;  %v756_v18 = vpop.permute.xlu1 %755 }
  0xb7   : > { %v559_v45 = vpop.permute.xlu0 %558 }
  0xb8   : > { %v574_v46 = vsel %vm570_vm4, %v559_v45, %v567_v26  ;;  %v578_v51 = vsel %vm570_vm4, %v567_v26, %v559_v45 }
  0xb9   : > { %v2303_v58 = vmul.f32 %v2293_v42, %v578_v51  ;;  %v2310_v62 = vmul.f32 %v2296_v43, %v574_v46 }
  0xba   : > { %642 = vrot.lane.b32.xlu0 %v2171_v38, %s1949_s28  ;;  %710 = vrot.lane.b32.xlu1 %v2161_v36, %s1955_s22 }
  0xbb   : > { %720 = vrot.lane.b32.xlu2 %v2171_v38, %s1955_s22  ;;  %3111 = vst [vmem:[#allocation7_spill] sm:$0xff] %v2310_v62  ;;  %v2349_v45 = vpop.permute.xlu1 %673 }
  0xbf   : > { %v754_v14 = vpop.permute.xlu0 %753 }
  0xc0   : > { %v768_v15 = vsel %vm765_vm5, %v754_v14, %v762_v1  ;;  %v772_v16 = vsel %vm765_vm5, %v762_v1, %v754_v14  ;;  %v2373_v1 = vld [vmem:[%s3081_s7 + $0x10] ss:$0 sm:$0xff]  ;;  %v2378_v14 = vld [vmem:[%s3081_s7 + $0x18] ss:$0 sm:$0xff] }
  0xc1   : > { %v2352_v46 = vmul.f32 %v2334_v22, %v768_v15  ;;  %v2358_v53 = vmul.f32 %v2341_v24, %v772_v16  ;;  %3116 = vst [vmem:[#allocation12_spill] sm:$0xff] %v2373_v1  ;;  %v842_v16 = vpop.permute.xlu2 %841 }
  0xc2   : > { %593 = vrot.lane.b32.xlu0 %v2161_v36, %s1947_s25  ;;  %632 = vrot.lane.b32.xlu1 %v2161_v36, %s1949_s28  ;;  %3117 = vst [vmem:[#allocation13_spill] sm:$0xff] %v2378_v14 }
  0xc3   : > { %603 = vrot.lane.b32.xlu2 %v2171_v38, %s1947_s25  ;;  %3114 = vst [vmem:[#allocation10_spill] sm:$0xff] %v2358_v53 }
  0xc7   : > { %v764_v26 = vpop.permute.xlu0 %763 }
  0xc8   : > { %v769_v30 = vsel %vm765_vm5, %v756_v18, %v764_v26  ;;  %v773_v31 = vsel %vm765_vm5, %v764_v26, %v756_v18 }
  0xc9   : > { %v2355_v51 = vmul.f32 %v2334_v22, %v769_v30  ;;  %v2361_v59 = vmul.f32 %v2341_v24, %v773_v31  ;;  %v840_v31 = vpop.permute.xlu1 %839 }
  0xca   : > { %562 = vrot.lane.b32.xlu0 %v2171_v38, %s1952_s12  ;;  %798 = vrot.lane.b32.xlu1 %v2171_v38, %s1950_s29  ;;  %v846_v15 = vsel %vm843_vm6, %v832_v21, %v840_v31  ;;  %v850_v41 = vsel %vm843_vm6, %v840_v31, %v832_v21 }
  0xcb   : > { %788 = vrot.lane.b32.xlu2 %v2161_v36, %s1950_s29  ;;  %3115 = vst [vmem:[#allocation11_spill] sm:$0xff] %v2361_v59  ;;  %v860_v11 = vmul.f32 %v2373_v1, %v846_v15  ;;  %v2398_v10 = vmul.f32 %v2378_v14, %v850_v41  ;;  %s2938_s29 = scalar_lea.vmem %s3076_s2, %s2031_s21 }
  0xcd   : > { %3119 = vst [vmem:[#allocation15_spill] sm:$0xff] %v2398_v10 }
  0xcf   : > { %v834_v18 = vpop.permute.xlu0 %833 }
  0xd0   : > { %v847_v26 = vsel %vm843_vm6, %v834_v18, %v842_v16  ;;  %v851_v30 = vsel %vm843_vm6, %v842_v16, %v834_v18 }
  0xd1   : > { %v862_v13 = vmul.f32 %v2373_v1, %v847_v26  ;;  %v2390_v56 = vmul.f32 %v2378_v14, %v851_v30  ;;  %v2412_v41 = vpop.permute.xlu1 %829 }
  0xd2   : > { %638 = vrot.lane.b32.xlu0 %v2039_v3, %s1949_s28  ;;  %681 = vrot.lane.b32.xlu1 %v2171_v38, %s1951_s30  ;;  %3120 = vst [vmem:[#allocation16_spill] sm:$0xff] %v2412_v41 }
  0xd3   : > { %671 = vrot.lane.b32.xlu2 %v2161_v36, %s1951_s30  ;;  %3118 = vst [vmem:[#allocation14_spill] sm:$0xff] %v2390_v56  ;;  %v913_v18 = vpack.c.bf16 %v862_v13, %v860_v11  ;;  %v2416_v11 = vpop.permute.xlu2 %751  ;;  %v858_v13 = vmul.f32 %v2373_v1, %v2412_v41 }
  0xd5   : > { %1136 = vmatpush.bf16.msrb.mxu1 %v913_v18  ;;  %v911_v21 = vpack.c.bf16 %v858_v13, %v858_v13 }
  0xd9   : > { %1137 = vmatpush.bf16.msrb.mxu1 %v911_v21 }
  0xda   : > { %747 = vrot.lane.b32.xlu0 %v2150_v29, %s1953_s13  ;;  %552 = vrot.lane.b32.xlu1 %v2161_v36, %s1952_s12 }
  0xdb   : > { %646 = vrot.lane.b32.xlu2 %v2047_v6, %s1949_s28  ;;  %v2426_v15 = vpop.permute.xlu2 %636 }
  0xe2   : > { %759 = vrot.lane.b32.xlu0 %v2171_v38, %s1953_s13  ;;  %644 = vrot.lane.b32.xlu1 %v2041_v4, %s1949_s28  ;;  %s2974_s28 = scalar_lea.vmem %s3085_s11, %s2031_s21 }
  0xe3   : > { %757 = vrot.lane.b32.xlu2 %v2156_v33, %s1953_s13 }
  0xea   : > { %835 = vrot.lane.b32.xlu0 %v2156_v33, %s1954_s14  ;;  %749 = vrot.lane.b32.xlu1 %v2161_v36, %s1953_s13  ;;  %s3009_s13 = scalar_lea.vmem %s3084_s10, %s2031_s21 }
  0xeb   : > { %827 = vrot.lane.b32.xlu2 %v2161_v36, %s1954_s14 }
  0xf2   : > { %716 = vrot.lane.b32.xlu0 %v2039_v3, %s1955_s22  ;;  %825 = vrot.lane.b32.xlu1 %v2150_v29, %s1954_s14  ;;  %v495_v3 = vld [vmem:[%s3080_s6 + $0x10] sm:$0xff] }
  0xf3   : > { %714 = vrot.lane.b32.xlu2 %v2037_v2, %s1955_s22  ;;  %v2445_v2 = vpop.permute.xlu0 %554 }
  0xf5   : > { %v719_v26 = vpop.permute.xlu2 %718 }
  0xfa   : > { %712 = vrot.lane.b32.xlu0 %v1948_v9, %s1955_s22  ;;  %837 = vrot.lane.b32.xlu1 %v2171_v38, %s1954_s14  ;;  %v500_v9 = vld [vmem:[%s3080_s6 + $0x38] sm:$0xff] }
  0xfb   : > { %724 = vrot.lane.b32.xlu2 %v2047_v6, %s1955_s22 }
  0xfd   : > { %v641_v30 = vpop.permute.xlu2 %640 }
 0x102   : > { %927 = vperm.xlu0 %1869, %v495_v3   ;;  %722 = vrot.lane.b32.xlu1 %v2041_v4, %s1955_s22 }
 0x105   : > { %v592_v6 = vpop.permute.xlu2 %591 }
 0x10a   : > { %952 = vperm.xlu0 %1869, %v500_v9  }
 0x10c   : > { %v631_v31 = vpop.permute.xlu0 %630  ;;  %v709_v18 = vpop.permute.xlu1 %708 }
 0x10d   : > { %v2454_v13 = vsel %vm648_vm7, %v631_v31, %v641_v30  ;;  %v2458_v4 = vsel %vm726_vm8, %v719_v26, %v709_v18  ;;  %v2460_v16 = vpop.permute.xlu2 %560  ;;  %v727_v49 = vsel %vm726_vm8, %v709_v18, %v719_v26  ;;  %v653_v25 = vsel %vm648_vm7, %v641_v30, %v631_v31 }
 0x10e   : > { %3121 = vst [vmem:[#allocation17_spill] sm:$0xff] %v2454_v13  ;;  %v737_v53 = vmul.f32 %v2483_v47, %v727_v49  ;;  %v702_v31 = vmul.f32 %v2254_v19, %v2349_v45 }
 0x114   : > { %v797_v21 = vpop.permute.xlu0 %796  ;;  %v602_v3 = vpop.permute.xlu1 %601 }
 0x115   : > { %v610_v9 = vsel %vm609_vm1, %v592_v6, %v602_v3  ;;  %v2468_v0 = vpop.permute.xlu2 %720 }
 0x11c   : > { %v680_v60 = vpop.permute.xlu0 %679  ;;  %v787_v40 = vpop.permute.xlu1 %786 }
 0x11d   : > { %v2466_v55 = vsel %vm804_vm2, %v797_v21, %v787_v40  ;;  %v604_v41 = vpop.permute.xlu2 %603 }
 0x124   : > { %v2470_v62 = vpop.permute.xlu0 %550  ;;  %v670_v10 = vpop.permute.xlu1 %669 }
 0x125   : > { %v2476_v56 = vsel %vm570_vm4, %v2470_v62, %v2460_v16  ;;  %v2480_v14 = vsel %vm687_vm3, %v670_v10, %v680_v60 }
 0x126   : > { %3122 = vst [vmem:[#allocation18_spill] sm:$0xff] %v2480_v14  ;;  %v2496_v14 = vpop.permute.xlu2 %788 }
 0x12c   : > { %v2487_v13 = vpop.permute.xlu0 %642  ;;  %v711_v1 = vpop.permute.xlu1 %710 }
 0x12d   : > { %v728_v12 = vsel %vm726_vm8, %v711_v1, %v2468_v0 }
 0x12e   : > { %v739_v59 = vmul.f32 %v2483_v47, %v728_v12  ;;  %v659_v12 = vmul.f32 %v2206_v54, %v653_v25  ;;  %v1956_v47 = vmov 0.0|0.0   ;;  %v805_v25 = vsel %vm804_vm2, %v787_v40, %v797_v21  ;;  %v2533_v40 = vpop.permute.xlu2 %671 }
 0x130   : > { %v891_v24 = vpack.c.bf16 %v739_v59, %v737_v53 }
 0x132   : > { %1073 = vmatpush.bf16.msra.mxu3 %v891_v24  ;;  %v2508_v24 = vmul.f32 %v2169_v37, %v610_v9  ;;  %v624_v9 = vmul.f32 %v2159_v35, %v2218_v57 }
 0x134   : > { %v594_v32 = vpop.permute.xlu0 %593  ;;  %v2498_v26 = vpop.permute.xlu1 %632 }
 0x135   : > { %v611_v18 = vsel %vm609_vm1, %v594_v32, %v604_v41  ;;  %v654_v49 = vsel %vm648_vm7, %v2487_v13, %v2498_v26 }
 0x136   : > { %v2511_v53 = vmul.f32 %v2169_v37, %v611_v18  ;;  %v661_v59 = vmul.f32 %v2206_v54, %v654_v49  ;;  %1074 = vmatpush.bf16.msra.mxu3 %v2045_v5  ;;  %v888_v5 = vpack.c.bf16 %v2161_v36, %v2150_v29  ;;  %v615_v49 = vsel %vm609_vm1, %v604_v41, %v594_v32 }
 0x137   : > { %v614_v29 = vsel %vm609_vm1, %v602_v3, %v592_v6  ;;  %v622_v36 = vmul.f32 %v2159_v35, %v615_v49  ;;  %v872_v32 = vpack.c.bf16 %v624_v9, %v624_v9  ;;  %v780_v9 = vmul.f32 %v2334_v22, %v2416_v11  ;;  %v2567_v49 = vpop.permute.xlu2 %646 }
 0x138   : > { %v876_v30 = vpack.c.bf16 %v661_v59, %v659_v12  ;;  %v815_v59 = vmul.f32 %v2198_v50, %v805_v25  ;;  %v620_v25 = vmul.f32 %v2159_v35, %v614_v29 }
 0x13a   : > { %1045 = vmatpush.bf16.msra.mxu2 %v876_v30  ;;  %1075 = vmatpush.bf16.msra.mxu3 %v1956_v47  ;;  %v3124_v30 = vpack.c.bf16 %v2192_v48, %v2182_v44  ;;  %v692_v44 = vsel %vm687_vm3, %v680_v60, %v670_v10  ;;  %v870_v3 = vpack.c.bf16 %v622_v36, %v620_v25 }
 0x13b   : > { %v3126_v10 = vpack.c.bf16 %v2355_v51, %v2352_v46  ;;  %v585_v60 = vmul.f32 %v2293_v42, %v2445_v2  ;;  %v575_v46 = vsel %vm570_vm4, %v2460_v16, %v2470_v62  ;;  %v2592_v36 = vmul.f32 %v2296_v43, %v2476_v56 }
 0x13c   : > { %v563_v18 = vpop.permute.xlu0 %562  ;;  %v2522_v37 = vpop.permute.xlu1 %798 }
 0x13d   : > { %v806_v12 = vsel %vm804_vm2, %v2496_v14, %v2522_v37  ;;  %v866_v29 = vpack.c.bf16 %v585_v60, %v585_v60 }
 0x13e   : > { %v817_v21 = vmul.f32 %v2198_v50, %v806_v12  ;;  %1046 = vmatpush.bf16.msra.mxu2 %v3124_v30  ;;  %1076 = vmatpush.bf16.msra.mxu3 %v888_v5  ;;  %v3125_v50 = vpack.c.bf16 %v2276_v34, %v2266_v28  ;;  %v884_v5 = vpack.c.bf16 %v702_v31, %v702_v31 }
 0x13f   : > { %v698_v28 = vmul.f32 %v2254_v19, %v692_v44  ;;  %v732_v31 = vsel %vm726_vm8, %v2468_v0, %v711_v1  ;;  %v581_v1 = vmul.f32 %v2293_v42, %v575_v46  ;;  %v758_v44 = vpop.permute.xlu2 %757 }
 0x140   : > { %v903_v41 = vpack.c.bf16 %v817_v21, %v815_v59  ;;  %v899_v59 = vpack.c.bf16 %v780_v9, %v780_v9  ;;  %v2576_v21 = vperm.slane %v2147_v27, 5 }
 0x142   : > { %1047 = vmatpush.bf16.msra.mxu2 %v872_v32  ;;  %1077 = vmatpush.bf16.msra.mxu3 %v3125_v50  ;;  %v740_v0 = vmul.f32 %v2576_v21, %v732_v31  ;;  %v1743_v32 = vld [vmem:[%s3079_s5] sm:$0xf] }
 0x143   : > { %1104 = vmatpush.bf16.msrb.mxu0 %v903_v41  ;;  %v738_v41 = vmul.f32 %v2576_v21, %v2458_v4 }
 0x144   : > { %v2550_v48 = vpop.permute.xlu0 %638  ;;  %v2552_v6 = vpop.permute.xlu1 %681 }
 0x145   : > { %v693_v35 = vsel %vm687_vm3, %v2552_v6, %v2533_v40 }
 0x146   : > { %v700_v34 = vmul.f32 %v2254_v19, %v693_v35  ;;  %1048 = vmatpush.bf16.msra.mxu2 %v870_v3  ;;  %1078 = vmatpush.bf16.msra.mxu3 %v884_v5  ;;  %v3127_v19 = vpack.c.bf16 %v2303_v58, %v2313_v63  ;;  %v656_v3 = vsel %vm648_vm7, %v2567_v49, %v2550_v48 }
 0x147   : > { %1105 = vmatpush.bf16.msrb.mxu0 %v3126_v10  ;;  %v667_v35 = vmul.f32 %v2206_v54, %v656_v3  ;;  %v1745_v10 = vld [vmem:[%s3079_s5 + $0x10] sm:$0xf0]  ;;  %v3132_v3 = vld [vmem:[#allocation18_spill] sm:$0xff] }
 0x148   : > { %v882_v12 = vpack.c.bf16 %v700_v34, %v698_v28  ;;  %v1834_v34 = vld [vmem:[%s3079_s5 + $0x4] sm:$0xf] }
 0x14a   : > { %1049 = vmatpush.bf16.msra.mxu2 %v3127_v19  ;;  %1079 = vmatpush.bf16.msra.mxu3 %v882_v12  ;;  %v820_v12 = vmul.f32 %v2201_v52, %v2249_v17  ;;  %v2642_v19 = vpop.permute.xlu2 %827 }
 0x14b   : > { %1106 = vmatpush.bf16.msrb.mxu0 %v899_v59  ;;  %v2629_v59 = vor.u32 %v1834_v34, %v1745_v10 }
 0x14c   : > { %v2582_v51 = vpop.permute.xlu0 %747  ;;  %v553_v30 = vpop.permute.xlu1 %552 }
 0x14d   : > { %v572_v58 = vsel %vm570_vm4, %v553_v30, %v563_v18  ;;  %v576_v63 = vsel %vm570_vm4, %v563_v18, %v553_v30  ;;  %v1836_v18 = vld [vmem:[%s3079_s5 + $0xc] sm:$0xf0]  ;;  %v766_v31 = vsel %vm765_vm5, %v2582_v51, %v758_v44 }
 0x14e   : > { %v583_v62 = vmul.f32 %v2293_v42, %v576_v63  ;;  %v2596_v16 = vmul.f32 %v2296_v43, %v572_v58  ;;  %1050 = vmatpush.bf16.msra.mxu2 %v866_v29  ;;  %v892_v42 = vpack.c.bf16 %v740_v0, %v738_v41  ;;  %v2608_v50 = vor.u32 %v1836_v18, %v1743_v32 }
 0x14f   : > { %v816_v0 = vmul.f32 %v2201_v52, %v2466_v55  ;;  %v3131_v55 = vld [vmem:[#allocation9_spill] sm:$0xff] }
 0x150   : > { %v864_v25 = vpack.c.bf16 %v583_v62, %v581_v1  ;;  %v865_v56 = vpack.c.bf16 %v2596_v16, %v2592_v36  ;;  %v689_v1 = vsel %vm687_vm3, %v2533_v40, %v2552_v6  ;;  %v3129_v62 = vld [vmem:[#allocation6_spill] sm:$0xff]  ;;  %v781_v32 = vmul.f32 %v3131_v55, %v2416_v11  ;;  %v1761_v11 = vld [vmem:[%s3079_s5 + $0x30] sm:$0xf0]  ;;  %v1845_v36 = vld [vmem:[%s3079_s5 + $0x54] sm:$0xf0] }
 0x151   : > { %v701_v41 = vmul.f32 %v2261_v20, %v689_v1  ;;  %v1838_v6 = vld [vmem:[%s3079_s5 + $0x24] sm:$0xf]  ;;  %v498_v16 = vld [vmem:[%s3080_s6 + $0x28] sm:$0xff] }
 0x152   : > { %1051 = vmatpush.bf16.msra.mxu2 %v864_v25  ;;  %v900_v34 = vpack.c.bf16 %v781_v32, %v781_v32  ;;  %v3138_v32 = vld [vmem:[#allocation17_spill] sm:$0xff] }
 0x154   : > { %v645_v9 = vpop.permute.xlu1 %644  ;;  %v760_v5 = vpop.permute.xlu0 %759 }
 0x155   : > { %v655_v4 = vsel %vm648_vm7, %v645_v9, %v2426_v15  ;;  %1052 = vmatmul.bf16.vlgmr.msra.gmra.mxu2 %v2608_v50  ;;  %v651_v40 = vsel %vm648_vm7, %v2426_v15, %v645_v9  ;;  %v493_v9 = vld [vmem:[%s3080_s6] sm:$0xff] }
 0x156   : > { %1189 = vmatpush.bf16.msrb.mxu2 %v892_v42  ;;  %v665_v28 = vmul.f32 %v2206_v54, %v655_v4  ;;  %v810_v54 = vsel %vm804_vm2, %v2522_v37, %v2496_v14  ;;  %v889_v37 = vpack.c.bf16 %v2171_v38, %v2156_v33  ;;  %v906_v14 = vpack.c.bf16 %v820_v12, %v820_v12 }
 0x157   : > { %v818_v46 = vmul.f32 %v2201_v52, %v810_v54  ;;  %v703_v38 = vmul.f32 %v2261_v20, %v2349_v45  ;;  %v3130_v52 = vpack.c.bf16 %v2279_v39, %v3129_v62  ;;  %v715_v45 = vpop.permute.xlu2 %714  ;;  %v658_v42 = vperm.slane %v2147_v27, 2  ;;  %917 = vperm.xlu1 %1870, %v493_v9  }
 0x158   : > { %v880_v60 = vpack.c.bf16 %v667_v35, %v665_v28  ;;  %v699_v4 = vmul.f32 %v2261_v20, %v3132_v3  ;;  %v3133_v35 = vld [vmem:[#allocation11_spill] sm:$0xff]  ;;  %v3134_v28 = vld [vmem:[#allocation10_spill] sm:$0xff]  ;;  %v770_v27 = vsel %vm765_vm5, %v758_v44, %v2582_v51  ;;  %v2707_v12 = vor.u32 %v1838_v6, %v1761_v11 }
 0x159   : > { %v885_v25 = vpack.c.bf16 %v703_v38, %v703_v38  ;;  %v3135_v15 = vpack.c.bf16 %v3133_v35, %v3134_v28  ;;  %v666_v20 = vmul.f32 %v658_v42, %v651_v40  ;;  %v3139_v40 = vld [vmem:[#allocation19_spill] sm:$0xff] }
 0x15a   : > { %1190 = vmatpush.bf16.msrb.mxu2 %v2055_v7  ;;  %1080 = vmatpush.bf16.msra.mxu3 %v880_v60  ;;  %v3128_v7 = vpack.c.bf16 %v2224_v61, %v2234_v8  ;;  %v1759_v61 = vld [vmem:[%s3079_s5 + $0x20] sm:$0xf]  ;;  %v1840_v8 = vld [vmem:[%s3079_s5 + $0x2c] sm:$0xf0]  ;;  %v883_v60 = vpack.c.bf16 %v701_v41, %v699_v4  ;;  %v660_v41 = vmul.f32 %v658_v42, %v3138_v32 }
 0x15b   : > { %v2664_v63 = vor.u32 %v1840_v8, %v1759_v61 }
 0x15c   : > { %v750_v17 = vpop.permute.xlu1 %749  ;;  %v2660_v58 = vpop.permute.xlu0 %835 }
 0x15d   : > { %v767_v30 = vsel %vm765_vm5, %v750_v17, %v760_v5  ;;  %1081 = vmatmul.bf16.vlgmr.msra.gmra.mxu3 %v2629_v59  ;;  %v771_v39 = vsel %vm765_vm5, %v760_v5, %v750_v17  ;;  %v652_v5 = vsel %vm648_vm7, %v2550_v48, %v2567_v49  ;;  %v3136_v49 = vld [vmem:[#allocation2_spill] sm:$0xff]  ;;  %v650_v17 = vsel %vm648_vm7, %v2498_v26, %v2487_v13  ;;  %v1844_v13 = vld [vmem:[%s3079_s5 + $0x4c] sm:$0xf0]  ;;  %v1835_v26 = vld [vmem:[%s3079_s5 + $0xc] sm:$0xf] }
 0x15e   : > { %1191 = vmatpush.bf16.msrb.mxu2 %v1956_v47  ;;  %1218 = vmatpush.bf16.msrb.mxu3 %v3128_v7  ;;  %v776_v47 = vmul.f32 %v2334_v22, %v766_v31  ;;  %v778_v29 = vmul.f32 %v2334_v22, %v767_v30  ;;  %v904_v22 = vpack.c.bf16 %v818_v46, %v816_v0  ;;  %v1753_v0 = vld [vmem:[%s3079_s5 + $0x18] sm:$0xf0] }
 0x15f   : > { %v779_v10 = vmul.f32 %v3131_v55, %v771_v39  ;;  %v668_v31 = vmul.f32 %v658_v42, %v652_v5  ;;  %v777_v7 = vmul.f32 %v3131_v55, %v770_v27  ;;  %v664_v51 = vmul.f32 %v658_v42, %v3136_v49  ;;  %v725_v8 = vpop.permute.xlu2 %724  ;;  %v1837_v49 = vld [vmem:[%s3079_s5 + $0x14] sm:$0xf0] }
 0x160   : > { %v897_v33 = vpack.c.bf16 %v778_v29, %v776_v47  ;;  %v3137_v47 = vld [vmem:[#allocation12_spill] sm:$0xff]  ;;  %v662_v38 = vmul.f32 %v658_v42, %v650_v17  ;;  %v2746_v55 = vor.u32 %v1835_v26, %v1753_v0  ;;  %v496_v42 = vld [vmem:[%s3080_s6 + $0x18] sm:$0xff]  ;;  %v3146_v0 = vld [vmem:[#allocation14_spill] sm:$0xff] }
 0x161   : > { %v881_v30 = vpack.c.bf16 %v668_v31, %v666_v20  ;;  %932 = vperm.xlu1 %1870, %v496_v42   ;;  %v3142_v17 = vld [vmem:[#allocation4_spill] sm:$0xff]  ;;  %v1769_v26 = vld [vmem:[%s3079_s5 + $0x38] sm:$0xf0] }
 0x162   : > { %1192 = vmatpush.bf16.msrb.mxu2 %v889_v37  ;;  %1219 = vmatpush.bf16.msrb.mxu3 %v906_v14  ;;  %v898_v37 = vpack.c.bf16 %v779_v10, %v777_v7  ;;  %v1775_v14 = vld [vmem:[%s3079_s5 + $0x40] sm:$0xf]  ;;  %v877_v3 = vpack.c.bf16 %v662_v38, %v660_v41  ;;  %v3149_v41 = vpack.c.bf16 %v2511_v53, %v2508_v24  ;;  %v1793_v24 = vld [vmem:[%s3079_s5 + $0x70] sm:$0xf0]  ;;  %v3150_v53 = vld [vmem:[#allocation7_spill] sm:$0xff] }
 0x163   : > { %1107 = vmatpush.bf16.msrb.mxu0 %v897_v33  ;;  %v879_v33 = vpack.c.bf16 %v664_v51, %v664_v51  ;;  %v3141_v51 = vld [vmem:[#allocation5_spill] sm:$0xff]  ;;  %v499_v42 = vld [vmem:[%s3080_s6 + $0x30] sm:$0xff] }
 0x164   : > { %v2675_v18 = vpop.permute.xlu1 %825  ;;  %v717_v54 = vpop.permute.xlu0 %716 }
 0x165   : > { %1057 = vmatmul.bf16.gmra.mxu2 %v2664_v63  ;;  %v844_v48 = vsel %vm843_vm6, %v2675_v18, %v2660_v58  ;;  %v730_v1 = vsel %vm726_vm8, %v717_v54, %v725_v8  ;;  %v734_v62 = vsel %vm726_vm8, %v725_v8, %v717_v54  ;;  %v1848_v8 = vld [vmem:[%s3079_s5 + $0x6c] sm:$0xf0] }
 0x166   : > { %1193 = vmatpush.bf16.msrb.mxu2 %v3130_v52  ;;  %1220 = vmatpush.bf16.msrb.mxu3 %v904_v22  ;;  %v854_v29 = vmul.f32 %v3137_v47, %v844_v48  ;;  %v2744_v52 = vor.u32 %v1844_v13, %v1775_v14  ;;  %v745_v39 = vmul.f32 %v3139_v40, %v730_v1  ;;  %v1751_v48 = vld [vmem:[%s3079_s5 + $0x8] sm:$0xf]  ;;  %v1839_v13 = vld [vmem:[%s3079_s5 + $0x2c] sm:$0xf] }
 0x167   : > { %v746_v6 = vmul.f32 %v2576_v21, %v734_v62  ;;  %v1772_v62 = vor.u32 %v1839_v13, %v1769_v26 }
 0x16a   : > { %1194 = vmatpush.bf16.msrb.mxu2 %v885_v25  ;;  %1221 = vmatpush.bf16.msrb.mxu3 %v3135_v15  ;;  %v494_v15 = vld [vmem:[%s3080_s6 + $0x8] sm:$0xff] }
 0x16b   : > { %922 = vperm.xlu2 %1871, %v494_v15   ;;  %v1783_v15 = vld [vmem:[%s3079_s5 + $0x48] sm:$0xf] }
 0x16c   : > { %v2715_v44 = vpop.permute.xlu1 %837  ;;  %v713_v25 = vpop.permute.xlu0 %712 }
 0x16d   : > { %v845_v46 = vsel %vm843_vm6, %v2642_v19, %v2715_v44  ;;  %1086 = vmatmul.bf16.gmra.mxu3 %v2707_v12  ;;  %v741_v4 = vmul.f32 %v3139_v40, %v713_v25  ;;  %v742_v9 = vmul.f32 %v2576_v21, %v713_v25  ;;  %v586_v25 = vmul.f32 %v2296_v43, %v2445_v2 }
 0x16e   : > { %1195 = vmatpush.bf16.msrb.mxu2 %v883_v60  ;;  %1222 = vmatpush.bf16.msrb.mxu3 %v900_v34  ;;  %v856_v61 = vmul.f32 %v3137_v47, %v845_v46  ;;  %v1777_v34 = vld [vmem:[%s3079_s5 + $0x50] sm:$0xf0]  ;;  %v3140_v60 = vld [vmem:[#allocation3_spill] sm:$0xff]  ;;  %v3143_v46 = vpack.c.bf16 %v3141_v51, %v3142_v17  ;;  %v1752_v47 = vor.u32 %v1837_v49, %v1751_v48 }
 0x16f   : > { %v625_v54 = vmul.f32 %v3140_v60, %v2218_v57  ;;  %v894_v7 = vpack.c.bf16 %v742_v9, %v742_v9  ;;  %v3144_v57 = vld [vmem:[#allocation16_spill] sm:$0xff]  ;;  %v867_v2 = vpack.c.bf16 %v586_v25, %v586_v25  ;;  %v1801_v9 = vld [vmem:[%s3079_s5 + $0x78] sm:$0xf0] }
 0x170   : > { %v909_v22 = vpack.c.bf16 %v856_v61, %v854_v29  ;;  %v1791_v29 = vld [vmem:[%s3079_s5 + $0x60] sm:$0xf]  ;;  %v849_v61 = vsel %vm843_vm6, %v2715_v44, %v2642_v19  ;;  %v848_v19 = vsel %vm843_vm6, %v2660_v58, %v2675_v18  ;;  %v1846_v18 = vld [vmem:[%s3079_s5 + $0x64] sm:$0xf] }
 0x171   : > { %v1792_v1 = vor.u32 %v1848_v8, %v1791_v29  ;;  %v497_v58 = vld [vmem:[%s3080_s6 + $0x20] sm:$0xff] }
 0x172   : > { %1196 = vmatpush.bf16.msrb.mxu2 %v881_v30  ;;  %1223 = vmatpush.bf16.msrb.mxu3 %v898_v37  ;;  %v873_v30 = vpack.c.bf16 %v625_v54, %v625_v54  ;;  %v3145_v37 = vld [vmem:[#allocation13_spill] sm:$0xff] }
 0x173   : > { %1138 = vmatpush.bf16.msrb.mxu1 %v909_v22  ;;  %v859_v14 = vmul.f32 %v3145_v37, %v3144_v57  ;;  %v857_v22 = vmul.f32 %v3145_v37, %v849_v61  ;;  %v855_v32 = vmul.f32 %v3145_v37, %v848_v19  ;;  %937 = vperm.xlu1 %1870, %v497_v58  }
 0x174   : > { %v723_v11 = vpop.permute.xlu1 %722  ;;  %947 = vperm.xlu2 %1871, %v499_v42   ;;  %v2891_v26 = vpop.permute.xlu0 %927 }
 0x175   : > { %v729_v35 = vsel %vm726_vm8, %v715_v45, %v723_v11  ;;  %v733_v28 = vsel %vm726_vm8, %v723_v11, %v715_v45  ;;  %1062 = vmatmul.bf16.gmra.mxu2 %v2744_v52  ;;  %v1842_v45 = vld [vmem:[%s3079_s5 + $0x44] sm:$0xf]  ;;  %v912_v44 = vpack.c.bf16 %v859_v14, %v859_v14  ;;  %v910_v23 = vpack.c.bf16 %v857_v22, %v855_v32  ;;  %v1841_v11 = vld [vmem:[%s3079_s5 + $0x34] sm:$0xf0] }
 0x176   : > { %1805 = vmatmul.msk.bf16.vlgmr.msrb.gmra.mxu1 %vm1031_vm9, %v2746_v55  ;;  %v743_v5 = vmul.f32 %v3139_v40, %v729_v35  ;;  %v744_v27 = vmul.f32 %v2576_v21, %v733_v28  ;;  %v2776_v31 = vor.u32 %v1842_v45, %v1777_v34  ;;  %v893_v21 = vpack.c.bf16 %v741_v4, %v741_v4  ;;  %v3151_v40 = vld [vmem:[#allocation8_spill] sm:$0xff]  ;;  %v1843_v4 = vld [vmem:[%s3079_s5 + $0x4c] sm:$0xf]  ;;  %v1785_v35 = vld [vmem:[%s3079_s5 + $0x58] sm:$0xf0] }
 0x177   : > { %1160 = vmatpush.bf16.msra.mxu1 %v879_v33  ;;  %v3147_v33 = vld [vmem:[#allocation15_spill] sm:$0xff]  ;;  %v3152_v43 = vpack.c.bf16 %v3150_v53, %v3151_v40  ;;  %v1788_v28 = vor.u32 %v1843_v4, %v1785_v35  ;;  %v1849_v45 = vld [vmem:[%s3079_s5 + $0x74] sm:$0xf0] }
 0x178   : > { %v895_v20 = vpack.c.bf16 %v745_v39, %v743_v5  ;;  %v896_v10 = vpack.c.bf16 %v746_v6, %v744_v27  ;;  %v3148_v38 = vpack.c.bf16 %v3146_v0, %v3147_v33  ;;  %v1796_v39 = vor.u32 %v1846_v18, %v1793_v24  ;;  %v1767_v6 = vld [vmem:[%s3079_s5 + $0x28] sm:$0xf] }
 0x179   : > { %v1799_v27 = vld [vmem:[%s3079_s5 + $0x68] sm:$0xf] }
 0x17a   : > { %1108 = vmatpush.bf16.msrb.mxu0 %v895_v20  ;;  %1224 = vmatpush.bf16.msrb.mxu3 %v896_v10  ;;  %v1800_v34 = vor.u32 %v1849_v45, %v1799_v27 }
 0x17b   : > { %1161 = vmatpush.bf16.msra.mxu1 %v877_v3  ;;  %v1768_v3 = vor.u32 %v1841_v11, %v1767_v6 }
 0x17c   : > { %942 = vperm.xlu2 %1871, %v498_v16  }
 0x17d   : > { %1091 = vmatmul.bf16.gmra.mxu3 %v2776_v31 }
 0x17e   : > { %1109 = vmatpush.bf16.msrb.mxu0 %v893_v21  ;;  %1225 = vmatpush.bf16.msrb.mxu3 %v894_v7 }
 0x17f   : > { %1162 = vmatpush.bf16.msra.mxu1 %v3143_v46 }
 0x181   : > { %1110 = vmatmul.bf16.vlgmr.msrb.gmra.mxu0 %v1752_v47 }
 0x182   : > { %1252 = vmatpush.bf16.msra.mxu0 %v3148_v38 }
 0x183   : > { %1163 = vmatpush.bf16.msra.mxu1 %v873_v30 }
 0x185   : > { %1067 = vmatmul.bf16.gmra.mxu2 %v1792_v1 }
 0x186   : > { %1253 = vmatpush.bf16.msra.mxu0 %v912_v44  ;;  %1806 = vmatmul.msk.bf16.gmra.mxu1 %vm1031_vm9, %v1772_v62 }
 0x187   : > { %1164 = vmatpush.bf16.msra.mxu1 %v3149_v41 }
 0x18a   : > { %1254 = vmatpush.bf16.msra.mxu0 %v910_v23 }
 0x18b   : > { %1165 = vmatpush.bf16.msra.mxu1 %v3152_v43 }
 0x18d   : > { %1096 = vmatmul.bf16.gmra.mxu3 %v1796_v39 }
 0x18f   : > { %1166 = vmatpush.bf16.msra.mxu1 %v867_v2 }
 0x191   : > { %1115 = vmatmul.bf16.gmra.mxu0 %v1768_v3 }
 0x193   : > { %1167 = vmatpush.bf16.msra.mxu1 %v865_v56  ;;  %v1784_v56 = vor.u32 %v1845_v36, %v1783_v15 }
 0x195   : > { %1197 = vmatmul.bf16.vlgmr.msrb.gmra.mxu2 %v2629_v59  ;;  %v1847_v59 = vld [vmem:[%s3079_s5 + $0x6c] sm:$0xf] }
 0x196   : > { %1807 = vmatmul.msk.bf16.gmra.mxu1 %vm1031_vm9, %v1788_v28  ;;  %v1804_v5 = vor.u32 %v1847_v59, %v1801_v9 }
 0x19d   : > { %1226 = vmatmul.bf16.vlgmr.msrb.gmra.mxu3 %v1752_v47 }
 0x1a1   : > { %1120 = vmatmul.bf16.gmra.mxu0 %v1784_v56 }
 0x1a5   : > { %1202 = vmatmul.bf16.gmra.mxu2 %v2707_v12 }
 0x1a6   : > { %1808 = vmatmul.msk.bf16.gmra.mxu1 %vm1031_vm9, %v1804_v5 }
 0x1ad   : > { %1231 = vmatmul.bf16.gmra.mxu3 %v1768_v3 }
 0x1b1   : > { %1125 = vmatmul.bf16.gmra.mxu0 %v1800_v34 }
 0x1b5   : > { %1207 = vmatmul.bf16.gmra.mxu2 %v2776_v31 }
 0x1b6   : > { %1168 = vmatmul.bf16.vlgmr.msra.gmra.mxu1 %v2608_v50 }
 0x1bd   : > { %1236 = vmatmul.bf16.gmra.mxu3 %v1784_v56 }
 0x1c1   : > { %1809 = vmatmul.msk.bf16.vlgmr.msra.gmra.mxu0 %vm1031_vm9, %v2746_v55 }
 0x1c5   : > { %1212 = vmatmul.bf16.gmra.mxu2 %v1796_v39 }
 0x1c6   : > { %1173 = vmatmul.bf16.gmra.mxu1 %v2664_v63 }
 0x1c9   : > { %v2885_v31 = vpop.permute.xlu1 %917 }
 0x1cd   : > { %1241 = vmatmul.bf16.gmra.mxu3 %v1800_v34 }
 0x1d1   : > { %1810 = vmatmul.msk.bf16.gmra.mxu0 %vm1031_vm9, %v1772_v62 }
 0x1d3   : > { %v2894_v44 = vpop.permute.xlu1 %932 }
 0x1d6   : > { %1178 = vmatmul.bf16.gmra.mxu1 %v2744_v52  ;;  %v2888_v52 = vpop.permute.xlu2 %922 }
 0x1d8   : > { %v1053_v12 = vpop.f32.mrf.mxu2 }
 0x1d9   : > { %v1054_v63 = vadd.f32 %v1053_v12, %v2885_v31 }
 0x1de   : > { %v2900_v40 = vpop.permute.xlu2 %947 }
 0x1e0   : > { %v1082_v20 = vpop.f32.mrf.mxu3  ;;  %v1055_v50 = vpop.f32.mrf.mxu2 }
 0x1e1   : > { %1811 = vmatmul.msk.bf16.gmra.mxu0 %vm1031_vm9, %v1788_v28  ;;  %v1083_v48 = vadd.f32 %v1082_v20, %v1054_v63  ;;  %v1056_v46 = vadd.f32 %v1055_v50, %v2888_v52 }
 0x1e5   : > { %v2902_v43 = vpop.permute.xlu1 %937 }
 0x1e6   : > { %1183 = vmatmul.bf16.gmra.mxu1 %v1792_v1 }
 0x1e8   : > { %v1084_v10 = vpop.f32.mrf.mxu3  ;;  %v1058_v60 = vpop.f32.mrf.mxu2 }
 0x1e9   : > { %v1085_v47 = vadd.f32 %v1084_v10, %v1056_v46  ;;  %v1059_v38 = vadd.f32 %v1058_v60, %v2891_v26 }
 0x1f0   : > { %v1087_v55 = vpop.f32.mrf.mxu3  ;;  %v1060_v21 = vpop.f32.mrf.mxu2 }
 0x1f1   : > { %1812 = vmatmul.msk.bf16.gmra.mxu0 %vm1031_vm9, %v1804_v5  ;;  %v1088_v22 = vadd.f32 %v1087_v55, %v1059_v38  ;;  %v1061_v25 = vadd.f32 %v1060_v21, %v2894_v44  ;;  %v2912_v5 = vpop.permute.xlu2 %942 }
 0x1f3   : > { %v1140_v54 = vpop.f32.mrf.mxu1 }
 0x1f8   : > { %v1089_v49 = vpop.f32.mrf.mxu3  ;;  %v1063_v14 = vpop.f32.mrf.mxu2 }
 0x1f9   : > { %v1090_v39 = vadd.f32 %v1089_v49, %v1061_v25  ;;  %v1064_v3 = vadd.f32 %v1063_v14, %v2902_v43 }
 0x1fb   : > { %v1142_v7 = vpop.f32.mrf.mxu1 }
 0x1fe   : > { %v1111_v51 = vpop.f32.mrf.mxu0 }
 0x1ff   : > { %v1112_v17 = vadd.f32 %v1111_v51, %v1083_v48 }
 0x200   : > { %v1092_v8 = vpop.f32.mrf.mxu3  ;;  %v1065_v62 = vpop.f32.mrf.mxu2 }
 0x201   : > { %v1141_v30 = vadd.f32 %v1140_v54, %v1112_v17  ;;  %v1093_v56 = vadd.f32 %v1092_v8, %v1064_v3  ;;  %v1066_v20 = vadd.f32 %v1065_v62, %v2912_v5 }
 0x203   : > { %v1145_v57 = vpop.f32.mrf.mxu1  ;;  %v1813_v37 = vmul.f32 -1.442695, %v1141_v30 }
 0x205   : > { %1874 = vpow2.f32 %v1813_v37 }
 0x206   : > { %v1113_v29 = vpop.f32.mrf.mxu0 }
 0x207   : > { %v1114_v61 = vadd.f32 %v1113_v29, %v1085_v47 }
 0x208   : > { %v1094_v58 = vpop.f32.mrf.mxu3  ;;  %v1068_v35 = vpop.f32.mrf.mxu2 }
 0x209   : > { %v1143_v13 = vadd.f32 %v1142_v7, %v1114_v61  ;;  %v1095_v49 = vadd.f32 %v1094_v58, %v1066_v20  ;;  %v1069_v17 = vadd.f32 %v1068_v35, %v2900_v40  ;;  %v471_v58 = vld [vmem:[%s2938_s29] sm:$0xff] }
 0x20b   : > { %v1147_v0 = vpop.f32.mrf.mxu1  ;;  %v1875_v33 = vpop.eup %1874  ;;  %v1815_v19 = vmul.f32 -1.442695, %v1143_v13 }
 0x20c   : > { %v2896_v1 = vadd.f32 1.0, %v1875_v33 }
 0x20d   : > { %1876 = vpow2.f32 %v1815_v19 }
 0x20e   : > { %v1116_v32 = vpop.f32.mrf.mxu0  ;;  %1878 = vrcp.f32 %v2896_v1  ;;  %v1301_v29 = vand.u32 2147483647, %v2896_v1  ;;  %v1303_v61 = vand.u32 2147483648, %v2896_v1  ;;  %vm1297_vm12 = vweird.f32 %v2896_v1 }
 0x20f   : > { %v1117_v41 = vadd.f32 %v1116_v32, %v1088_v22 }
 0x210   : > { %v1097_v9 = vpop.f32.mrf.mxu3  ;;  %v2919_v60 = vpop.f32.mrf.mxu2  ;;  %vm1302_vm0 = vcmp.eq.f32.partialorder %v1301_v29, 8.507059e+37 }
 0x211   : > { %v1146_v23 = vadd.f32 %v1145_v57, %v1117_v41 }
 0x213   : > { %v1150_v18 = vpop.f32.mrf.mxu1  ;;  %v1877_v24 = vpop.eup %1876  ;;  %v1817_v53 = vmul.f32 -1.442695, %v1146_v23 }
 0x214   : > { %v2904_v2 = vadd.f32 1.0, %v1877_v24  ;;  %v2907_v4 = vpop.eup %1878 }
 0x215   : > { %1880 = vpow2.f32 %v1817_v53  ;;  %v1293_v36 = vmul.f32 %v2907_v4, %v2896_v1  ;;  %vm1298_vm10 = vweird.f32 %v2907_v4  ;;  %v1098_v1 = vadd.f32 %v1097_v9, %v1069_v17 }
 0x216   : > { %v1118_v6 = vpop.f32.mrf.mxu0  ;;  %1882 = vrcp.f32 %v2904_v2  ;;  %vm2941_vm13 = vmor %vm1297_vm12, %vm1298_vm10  ;;  %vm1327_vm1 = vweird.f32 %v2904_v2  ;;  %v1331_v9 = vand.u32 2147483647, %v2904_v2 }
 0x217   : > { %v1119_v11 = vadd.f32 %v1118_v6, %v1090_v39  ;;  %v1294_v34 = vsub.f32 1.0, %v1293_v36 }
 0x218   : > { %v2928_v46 = vpop.f32.mrf.mxu3  ;;  %v2948_v22 = vpop.f32.mrf.mxu2  ;;  %vm1332_vm8 = vcmp.eq.f32.partialorder %v1331_v9, 8.507059e+37 }
 0x219   : > { %v1148_v28 = vadd.f32 %v1147_v0, %v1119_v11  ;;  %v1295_v63 = vmul.f32 %v2907_v4, %v1294_v34 }
 0x21b   : > { %v1152_v42 = vpop.f32.mrf.mxu1  ;;  %v1881_v15 = vpop.eup %1880  ;;  %v1819_v16 = vmul.f32 -1.442695, %v1148_v28  ;;  %v1296_v37 = vadd.f32 %v2907_v4, %v1295_v63 }
 0x21c   : > { %v1364_v59 = vadd.f32 1.0, %v1881_v15  ;;  %v2914_v45 = vpop.eup %1882  ;;  %v473_v15 = vld [vmem:[%s2938_s29 + $0x10] sm:$0xff] }
 0x21d   : > { %1884 = vpow2.f32 %v1819_v16  ;;  %v1323_v10 = vmul.f32 %v2914_v45, %v2904_v2  ;;  %v1300_v32 = vsel %vm2941_vm13, %v2907_v4, %v1296_v37  ;;  %vm1328_vm3 = vweird.f32 %v2914_v45  ;;  %v2961_v16 = vld [vmem:[%s2938_s29 + $0x8] sm:$0xff] }
 0x21e   : > { %1886 = vrcp.f32 %v1364_v59  ;;  %v1121_v27 = vpop.f32.mrf.mxu0  ;;  %v1379_v47 = vand.u32 2147483648, %v1364_v59  ;;  %v1377_v13 = vand.u32 2147483647, %v1364_v59  ;;  %vm1373_vm14 = vweird.f32 %v1364_v59  ;;  %vm2982_vm5 = vmor %vm1327_vm1, %vm1328_vm3 }
 0x21f   : > { %v1122_v12 = vadd.f32 %v1121_v27, %v1093_v56  ;;  %v1324_v51 = vsub.f32 1.0, %v1323_v10  ;;  %v2964_v56 = vld [vmem:[%s2938_s29 + $0x18] sm:$0xff]  ;;  %v1333_v27 = vand.u32 2147483648, %v2904_v2 }
 0x220   : > { %v1380_v23 = vor.u32 1.1754944e-38, %v1379_v47  ;;  %vm1378_vm2 = vcmp.eq.f32.partialorder %v1377_v13, 8.507059e+37  ;;  %v1227_v4 = vpop.f32.mrf.mxu3 }
 0x221   : > { %v1151_v50 = vadd.f32 %v1150_v18, %v1122_v12  ;;  %v1325_v38 = vmul.f32 %v2914_v45, %v1324_v51  ;;  %v1304_v18 = vor.u32 1.1754944e-38, %v1303_v61  ;;  %v2976_v12 = vpop.permute.xlu0 %952 }
 0x222   : > { %v1071_v63 = vadd.f32 %v2919_v60, %v2976_v12 }
 0x223   : > { %v2921_v54 = vpop.f32.mrf.mxu1  ;;  %v1885_v55 = vpop.eup %1884  ;;  %1888 = vtanh.f32 %v1151_v50  ;;  %v1305_v39 = vsel %vm1302_vm0, %v1304_v18, %v1300_v32  ;;  %v1326_v11 = vadd.f32 %v2914_v45, %v1325_v38 }
 0x224   : > { %v1887_v21 = vpop.eup %1886  ;;  %v2924_v7 = vadd.f32 1.0, %v1885_v55  ;;  %v1100_v60 = vadd.f32 %v2928_v46, %v1071_v63 }
 0x225   : > { %v1369_v48 = vmul.f32 %v1887_v21, %v1364_v59  ;;  %vm1374_vm11 = vweird.f32 %v1887_v21 }
 0x226   : > { %1890 = vrcp.f32 %v2924_v7  ;;  %v1123_v30 = vpop.f32.mrf.mxu0  ;;  %vm1375_vm15 = vmor %vm1373_vm14, %vm1374_vm11  ;;  %v1409_v59 = vand.u32 2147483648, %v2924_v7  ;;  %v1407_v34 = vand.u32 2147483647, %v2924_v7  ;;  %vm1403_vm6 = vweird.f32 %v2924_v7 }
 0x227   : > { %v1370_v57 = vsub.f32 1.0, %v1369_v48  ;;  %v1124_v14 = vadd.f32 %v1123_v30, %v1095_v49 }
 0x228   : > { %v1410_v30 = vor.u32 1.1754944e-38, %v1409_v59  ;;  %vm1408_vm9 = vcmp.eq.f32.partialorder %v1407_v34, 8.507059e+37 }
 0x229   : > { %v1371_v8 = vmul.f32 %v1887_v21, %v1370_v57  ;;  %v1153_v33 = vadd.f32 %v1152_v42, %v1124_v14  ;;  %v1889_v62 = vpop.eup %1888  ;;  %v1200_v57 = vpop.f32.mrf.mxu2 }
 0x22a   : > { %v1512_v42 = vmul.f32 %v1889_v62, %v1305_v39 }
 0x22b   : > { %v2946_v19 = vpop.f32.mrf.mxu1  ;;  %v1372_v41 = vadd.f32 %v1887_v21, %v1371_v8  ;;  %1892 = vtanh.f32 %v1153_v33  ;;  %v1229_v8 = vpop.f32.mrf.mxu3 }
 0x22c   : > { %v1891_v25 = vpop.eup %1890 }
 0x22d   : > { %v1399_v24 = vmul.f32 %v1891_v25, %v2924_v7  ;;  %v1376_v53 = vsel %vm1375_vm15, %v1887_v21, %v1372_v41  ;;  %vm1404_vm4 = vweird.f32 %v1891_v25  ;;  %v1330_v21 = vsel %vm2982_vm5, %v2914_v45, %v1326_v11 }
 0x22e   : > { %v1381_v6 = vsel %vm1378_vm2, %v1380_v23, %v1376_v53  ;;  %v1126_v3 = vpop.f32.mrf.mxu0  ;;  %vm1405_vm7 = vmor %vm1403_vm6, %vm1404_vm4 }
 0x22f   : > { %v1400_v35 = vsub.f32 1.0, %v1399_v24  ;;  %v1508_v28 = vmul.f32 %v1381_v6, %v471_v58  ;;  %v1127_v36 = vadd.f32 %v1126_v3, %v1098_v1 }
 0x231   : > { %v1401_v20 = vmul.f32 %v1891_v25, %v1400_v35  ;;  %v1516_v50 = vadd.f32 %v1512_v42, %v1508_v28  ;;  %v1156_v55 = vadd.f32 %v2921_v54, %v1127_v36  ;;  %v1893_v17 = vpop.eup %1892  ;;  %v1334_v54 = vor.u32 1.1754944e-38, %v1333_v27 }
 0x233   : > { %v1169_v48 = vpop.f32.mrf.mxu1  ;;  %v1402_v49 = vadd.f32 %v1891_v25, %v1401_v20  ;;  %v1821_v51 = vmul.f32 -1.442695, %v1156_v55  ;;  %1538 = vst [vmem:[%s2974_s28] sm:$0xff] %v1516_v50  ;;  %v1335_v45 = vsel %vm1332_vm8, %v1334_v54, %v1330_v21  ;;  %v1232_v24 = vpop.f32.mrf.mxu3 }
 0x234   : > { %v1170_v2 = vadd.f32 %v1169_v48, %v2885_v31  ;;  %v1514_v29 = vmul.f32 %v1893_v17, %v1335_v45 }
 0x235   : > { %v1406_v37 = vsel %vm1405_vm7, %v1891_v25, %v1402_v49  ;;  %1894 = vpow2.f32 %v1821_v51  ;;  %v1203_v25 = vpop.f32.mrf.mxu2 }
 0x236   : > { %v1411_v14 = vsel %vm1408_vm9, %v1410_v30, %v1406_v37  ;;  %v1128_v7 = vpop.f32.mrf.mxu0  ;;  %v1199_v31 = vadd.f32 %v2948_v22, %v1170_v2 }
 0x237   : > { %v1510_v47 = vmul.f32 %v1411_v14, %v473_v15  ;;  %v1129_v61 = vadd.f32 %v1128_v7, %v1100_v60 }
 0x238   : > { %v1228_v62 = vadd.f32 %v1227_v4, %v1199_v31 }
 0x239   : > { %v1518_v13 = vadd.f32 %v1514_v29, %v1510_v47  ;;  %v1158_v0 = vadd.f32 %v2946_v19, %v1129_v61 }
 0x23b   : > { %v1171_v33 = vpop.f32.mrf.mxu1  ;;  %v1895_v38 = vpop.eup %1894  ;;  %v1823_v46 = vmul.f32 -1.442695, %v1158_v0  ;;  %1540 = vst [vmem:[%s2974_s28 + $0x10] sm:$0xff] %v1518_v13 }
 0x23c   : > { %v1444_v32 = vadd.f32 1.0, %v1895_v38  ;;  %v1172_v41 = vadd.f32 %v1171_v33, %v2888_v52  ;;  %v1234_v63 = vpop.f32.mrf.mxu3 }
 0x23d   : > { %1896 = vpow2.f32 %v1823_v46  ;;  %v1205_v36 = vpop.f32.mrf.mxu2 }
 0x23e   : > { %1898 = vrcp.f32 %v1444_v32  ;;  %v1256_v1 = vpop.f32.mrf.mxu0  ;;  %v1201_v58 = vadd.f32 %v1200_v57, %v1172_v41  ;;  %v1457_v28 = vand.u32 2147483647, %v1444_v32  ;;  %v1459_v42 = vand.u32 2147483648, %v1444_v32 }
 0x23f   : > { %v1257_v23 = vadd.f32 %v1256_v1, %v1228_v62  ;;  %vm1453_vm11 = vweird.f32 %v1444_v32 }
 0x240   : > { %v1230_v3 = vadd.f32 %v1229_v8, %v1201_v58  ;;  %vm1458_vm13 = vcmp.eq.f32.partialorder %v1457_v28, 8.507059e+37  ;;  %v1460_v55 = vor.u32 1.1754944e-38, %v1459_v42 }
 0x241   : > { %v1814_v22 = vmul.f32 -1.442695, %v1257_v23 }
 0x243   : > { %v1174_v18 = vpop.f32.mrf.mxu1  ;;  %v1897_v53 = vpop.eup %1896  ;;  %1900 = vpow2.f32 %v1814_v22 }
 0x244   : > { %v1899_v19 = vpop.eup %1898  ;;  %v1446_v39 = vadd.f32 1.0, %v1897_v53  ;;  %v1175_v6 = vadd.f32 %v1174_v18, %v2891_v26  ;;  %v1237_v41 = vpop.f32.mrf.mxu3 }
 0x245   : > { %v1449_v11 = vmul.f32 %v1899_v19, %v1444_v32  ;;  %vm1454_vm10 = vweird.f32 %v1899_v19  ;;  %v1208_v29 = vpop.f32.mrf.mxu2 }
 0x246   : > { %1902 = vrcp.f32 %v1446_v39  ;;  %v1258_v4 = vpop.f32.mrf.mxu0  ;;  %v1204_v15 = vadd.f32 %v1203_v25, %v1175_v6  ;;  %vm1455_vm12 = vmor %vm1453_vm11, %vm1454_vm10  ;;  %v1487_v60 = vand.u32 2147483647, %v1446_v39  ;;  %v1489_v37 = vand.u32 2147483648, %v1446_v39 }
 0x247   : > { %v1450_v35 = vsub.f32 1.0, %v1449_v11  ;;  %v1259_v52 = vadd.f32 %v1258_v4, %v1230_v3  ;;  %1904 = vtanh.f32 %v1516_v50  ;;  %vm1483_vm15 = vweird.f32 %v1446_v39 }
 0x248   : > { %v1233_v50 = vadd.f32 %v1232_v24, %v1204_v15  ;;  %vm1488_vm1 = vcmp.eq.f32.partialorder %v1487_v60, 8.507059e+37 }
 0x249   : > { %v1901_v59 = vpop.eup %1900  ;;  %v1451_v9 = vmul.f32 %v1899_v19, %v1450_v35  ;;  %v1816_v27 = vmul.f32 -1.442695, %v1259_v52 }
 0x24a   : > { %v3001_v34 = vadd.f32 1.0, %v1901_v59 }
 0x24b   : > { %v1176_v20 = vpop.f32.mrf.mxu1  ;;  %v1452_v26 = vadd.f32 %v1899_v19, %v1451_v9  ;;  %1906 = vpow2.f32 %v1816_v27 }
 0x24c   : > { %v1903_v10 = vpop.eup %1902  ;;  %1908 = vrcp.f32 %v3001_v34  ;;  %v1177_v49 = vadd.f32 %v1176_v20, %v2894_v44  ;;  %v1239_v28 = vpop.f32.mrf.mxu3  ;;  %vm1312_vm3 = vweird.f32 %v3001_v34 }
 0x24d   : > { %v1456_v21 = vsel %vm1455_vm12, %v1899_v19, %v1452_v26  ;;  %v1479_v48 = vmul.f32 %v1903_v10, %v1446_v39  ;;  %v1905_v51 = vpop.eup %1904  ;;  %1910 = vtanh.f32 %v1518_v13  ;;  %vm1484_vm14 = vweird.f32 %v1903_v10  ;;  %v1210_v39 = vpop.f32.mrf.mxu2 }
 0x24e   : > { %v1461_v2 = vsel %vm1458_vm13, %v1460_v55, %v1456_v21  ;;  %v1261_v17 = vpop.f32.mrf.mxu0  ;;  %v1206_v44 = vadd.f32 %v1205_v36, %v1177_v49  ;;  %vm1485_vm0 = vmor %vm1483_vm15, %vm1484_vm14  ;;  %v1490_v13 = vor.u32 1.1754944e-38, %v1489_v37  ;;  %v1318_v26 = vand.u32 2147483648, %v3001_v34 }
 0x24f   : > { %v1524_v30 = vmul.f32 %v1905_v51, %v1461_v2  ;;  %v1480_v54 = vsub.f32 1.0, %v1479_v48  ;;  %v1262_v57 = vadd.f32 %v1261_v17, %v1233_v50  ;;  %v1316_v50 = vand.u32 2147483647, %v3001_v34 }
 0x250   : > { %v1235_v38 = vadd.f32 %v1234_v63, %v1206_v44 }
 0x251   : > { %v1907_v45 = vpop.eup %1906  ;;  %1534 = vst [vmem:[%s3009_s13] sm:$0xff] %v1524_v30  ;;  %v1481_v14 = vmul.f32 %v1903_v10, %v1480_v54  ;;  %v1818_v7 = vmul.f32 -1.442695, %v1262_v57  ;;  %v1319_v30 = vor.u32 1.1754944e-38, %v1318_v26  ;;  %vm1317_vm7 = vcmp.eq.f32.partialorder %v1316_v50, 8.507059e+37 }
 0x252   : > { %v3012_v31 = vpop.eup %1908  ;;  %v3014_v8 = vadd.f32 1.0, %v1907_v45 }
 0x253   : > { %v1179_v47 = vpop.f32.mrf.mxu1  ;;  %v1482_v61 = vadd.f32 %v1903_v10, %v1481_v14  ;;  %1912 = vpow2.f32 %v1818_v7  ;;  %v1911_v62 = vpop.eup %1910  ;;  %v1308_v32 = vmul.f32 %v3012_v31, %v3001_v34  ;;  %vm1313_vm2 = vweird.f32 %v3012_v31 }
 0x254   : > { %v1180_v0 = vadd.f32 %v1179_v47, %v2902_v43  ;;  %1914 = vrcp.f32 %v3014_v8  ;;  %vm3036_vm4 = vmor %vm1312_vm3, %vm1313_vm2  ;;  %v1242_v7 = vpop.f32.mrf.mxu3  ;;  %vm1342_vm9 = vweird.f32 %v3014_v8 }
 0x255   : > { %v1486_v33 = vsel %vm1485_vm0, %v1903_v10, %v1482_v61  ;;  %v1309_v53 = vsub.f32 1.0, %v1308_v32  ;;  %v1213_v49 = vpop.f32.mrf.mxu2 }
 0x256   : > { %v1491_v46 = vsel %vm1488_vm1, %v1490_v13, %v1486_v33  ;;  %v1263_v1 = vpop.f32.mrf.mxu0  ;;  %v1209_v23 = vadd.f32 %v1208_v29, %v1180_v0 }
 0x257   : > { %v1526_v25 = vmul.f32 %v1911_v62, %v1491_v46  ;;  %v1264_v58 = vadd.f32 %v1263_v1, %v1235_v38  ;;  %v1310_v35 = vmul.f32 %v3012_v31, %v1309_v53  ;;  %v1348_v1 = vand.u32 2147483648, %v3014_v8 }
 0x258   : > { %v1238_v19 = vadd.f32 %v1237_v41, %v1209_v23  ;;  %v1346_v41 = vand.u32 2147483647, %v3014_v8 }
 0x259   : > { %v1913_v22 = vpop.eup %1912  ;;  %1536 = vst [vmem:[%s3009_s13 + $0x10] sm:$0xff] %v1526_v25  ;;  %v1820_v43 = vmul.f32 -1.442695, %v1264_v58  ;;  %v1311_v20 = vadd.f32 %v3012_v31, %v1310_v35 }
 0x25a   : > { %v1365_v18 = vadd.f32 1.0, %v1913_v22  ;;  %v3021_v6 = vpop.eup %1914  ;;  %vm1347_vm0 = vcmp.eq.f32.partialorder %v1346_v41, 8.507059e+37 }
 0x25b   : > { %v1181_v24 = vpop.f32.mrf.mxu1  ;;  %1916 = vpow2.f32 %v1820_v43  ;;  %v1338_v52 = vmul.f32 %v3021_v6, %v3014_v8  ;;  %v1315_v17 = vsel %vm3036_vm4, %v3012_v31, %v1311_v20  ;;  %vm1343_vm11 = vweird.f32 %v3021_v6 }
 0x25c   : > { %1918 = vrcp.f32 %v1365_v18  ;;  %v1182_v11 = vadd.f32 %v1181_v24, %v2912_v5  ;;  %v1394_v63 = vand.u32 2147483648, %v1365_v18  ;;  %vm1388_vm6 = vweird.f32 %v1365_v18  ;;  %vm3058_vm13 = vmor %vm1342_vm9, %vm1343_vm11 }
 0x25d   : > { %v1339_v5 = vsub.f32 1.0, %v1338_v52  ;;  %v1320_v44 = vsel %vm1317_vm7, %v1319_v30, %v1315_v17  ;;  %v1349_v8 = vor.u32 1.1754944e-38, %v1348_v1  ;;  %v1244_v52 = vpop.f32.mrf.mxu3 }
 0x25e   : > { %v1266_v3 = vpop.f32.mrf.mxu0  ;;  %v1211_v59 = vadd.f32 %v1210_v39, %v1182_v11  ;;  %v1395_v14 = vor.u32 1.1754944e-38, %v1394_v63 }
 0x25f   : > { %v1267_v4 = vadd.f32 %v1266_v3, %v1238_v19  ;;  %v1340_v34 = vmul.f32 %v3021_v6, %v1339_v5 }
 0x260   : > { %v1240_v21 = vadd.f32 %v1239_v28, %v1211_v59 }
 0x261   : > { %v1917_v42 = vpop.eup %1916  ;;  %1920 = vtanh.f32 %v1267_v4  ;;  %v1341_v13 = vadd.f32 %v3021_v6, %v1340_v34 }
 0x262   : > { %v1919_v15 = vpop.eup %1918  ;;  %v3027_v36 = vadd.f32 1.0, %v1917_v42 }
 0x263   : > { %v1184_v9 = vpop.f32.mrf.mxu1  ;;  %v1384_v27 = vmul.f32 %v1919_v15, %v1365_v18  ;;  %vm1389_vm5 = vweird.f32 %v1919_v15  ;;  %v1345_v43 = vsel %vm3058_vm13, %v3021_v6, %v1341_v13 }
 0x264   : > { %1922 = vrcp.f32 %v3027_v36  ;;  %v1185_v10 = vadd.f32 %v1184_v9, %v2900_v40  ;;  %v1392_v40 = vand.u32 2147483647, %v1365_v18  ;;  %vm1390_vm8 = vmor %vm1388_vm6, %vm1389_vm5  ;;  %v1424_v32 = vand.u32 2147483648, %v3027_v36  ;;  %v1215_v18 = vpop.f32.mrf.mxu2 }
 0x265   : > { %v1385_v55 = vsub.f32 1.0, %v1384_v27  ;;  %v1422_v25 = vand.u32 2147483647, %v3027_v36  ;;  %vm1418_vm14 = vweird.f32 %v3027_v36  ;;  %v1350_v4 = vsel %vm1347_vm0, %v1349_v8, %v1345_v43 }
 0x266   : > { %v1268_v51 = vpop.f32.mrf.mxu0  ;;  %v1214_v54 = vadd.f32 %v1213_v49, %v1185_v10  ;;  %vm1393_vm10 = vcmp.eq.f32.partialorder %v1392_v40, 8.507059e+37  ;;  %v1425_v11 = vor.u32 1.1754944e-38, %v1424_v32 }
 0x267   : > { %v1386_v2 = vmul.f32 %v1919_v15, %v1385_v55  ;;  %v1269_v57 = vadd.f32 %v1268_v51, %v1240_v21  ;;  %v1921_v60 = vpop.eup %1920  ;;  %vm1423_vm1 = vcmp.eq.f32.partialorder %v1422_v25, 8.507059e+37 }
 0x268   : > { %v1243_v0 = vadd.f32 %v1242_v7, %v1214_v54  ;;  %v1513_v62 = vmul.f32 %v1921_v60, %v1320_v44 }
 0x269   : > { %v1387_v37 = vadd.f32 %v1919_v15, %v1386_v2  ;;  %1924 = vtanh.f32 %v1269_v57 }
 0x26a   : > { %v1923_v45 = vpop.eup %1922 }
 0x26b   : > { %v1186_v47 = vpop.f32.mrf.mxu1  ;;  %v1414_v29 = vmul.f32 %v1923_v45, %v3027_v36  ;;  %v1391_v31 = vsel %vm1390_vm8, %v1919_v15, %v1387_v37  ;;  %vm1419_vm12 = vweird.f32 %v1923_v45 }
 0x26c   : > { %v1396_v61 = vsel %vm1393_vm10, %v1395_v14, %v1391_v31  ;;  %v1187_v46 = vadd.f32 %v1186_v47, %v2976_v12  ;;  %vm1420_vm15 = vmor %vm1418_vm14, %vm1419_vm12 }
 0x26d   : > { %v1415_v33 = vsub.f32 1.0, %v1414_v29  ;;  %v1509_v38 = vmul.f32 %v1396_v61, %v2961_v16 }
 0x26e   : > { %v1271_v23 = vpop.f32.mrf.mxu0  ;;  %v1216_v53 = vadd.f32 %v1215_v18, %v1187_v46 }
 0x26f   : > { %v1416_v58 = vmul.f32 %v1923_v45, %v1415_v33  ;;  %v1517_v22 = vadd.f32 %v1513_v62, %v1509_v38  ;;  %v1272_v12 = vadd.f32 %v1271_v23, %v1243_v0  ;;  %v1925_v39 = vpop.eup %1924 }
 0x270   : > { %v1515_v28 = vmul.f32 %v1925_v39, %v1350_v4  ;;  %v1245_v42 = vadd.f32 %v1244_v52, %v1216_v53 }
 0x271   : > { %v1417_v24 = vadd.f32 %v1923_v45, %v1416_v58  ;;  %1539 = vst [vmem:[%s2974_s28 + $0x8] sm:$0xff] %v1517_v22  ;;  %v1822_v19 = vmul.f32 -1.442695, %v1272_v12 }
 0x273   : > { %v1421_v3 = vsel %vm1420_vm15, %v1923_v45, %v1417_v24  ;;  %1926 = vpow2.f32 %v1822_v19 }
 0x274   : > { %v1426_v35 = vsel %vm1423_vm1, %v1425_v11, %v1421_v3 }
 0x275   : > { %v1511_v6 = vmul.f32 %v1426_v35, %v2964_v56 }
 0x276   : > { %v1273_v15 = vpop.f32.mrf.mxu0 }
 0x277   : > { %v1519_v36 = vadd.f32 %v1515_v28, %v1511_v6  ;;  %v1274_v59 = vadd.f32 %v1273_v15, %v1245_v42 }
 0x279   : > { %v1927_v9 = vpop.eup %1926  ;;  %1541 = vst [vmem:[%s2974_s28 + $0x18] sm:$0xff] %v1519_v36  ;;  %v1824_v27 = vmul.f32 -1.442695, %v1274_v59 }
 0x27a   : > { %v1445_v20 = vadd.f32 1.0, %v1927_v9 }
 0x27b   : > { %1928 = vpow2.f32 %v1824_v27 }
 0x27c   : > { %1930 = vrcp.f32 %v1445_v20  ;;  %v1474_v63 = vand.u32 2147483648, %v1445_v20  ;;  %v1472_v21 = vand.u32 2147483647, %v1445_v20  ;;  %vm1468_vm3 = vweird.f32 %v1445_v20 }
 0x27e   : > { %v1475_v51 = vor.u32 1.1754944e-38, %v1474_v63  ;;  %vm1473_vm5 = vcmp.eq.f32.partialorder %v1472_v21, 8.507059e+37 }
 0x281   : > { %v1929_v5 = vpop.eup %1928 }
 0x282   : > { %v1931_v26 = vpop.eup %1930  ;;  %v1447_v10 = vadd.f32 1.0, %v1929_v5 }
 0x283   : > { %v1464_v55 = vmul.f32 %v1931_v26, %v1445_v20  ;;  %vm1469_vm2 = vweird.f32 %v1931_v26 }
 0x284   : > { %1932 = vrcp.f32 %v1447_v10  ;;  %vm1470_vm4 = vmor %vm1468_vm3, %vm1469_vm2  ;;  %v1504_v34 = vand.u32 2147483648, %v1447_v10  ;;  %v1502_v37 = vand.u32 2147483647, %v1447_v10  ;;  %vm1498_vm7 = vweird.f32 %v1447_v10 }
 0x285   : > { %v1465_v50 = vsub.f32 1.0, %v1464_v55  ;;  %1934 = vtanh.f32 %v1517_v22 }
 0x286   : > { %1936 = vtanh.f32 %v1519_v36  ;;  %v1505_v14 = vor.u32 1.1754944e-38, %v1504_v34  ;;  %vm1503_vm9 = vcmp.eq.f32.partialorder %v1502_v37, 8.507059e+37 }
 0x287   : > { %v1466_v56 = vmul.f32 %v1931_v26, %v1465_v50 }
 0x289   : > { %v1467_v48 = vadd.f32 %v1931_v26, %v1466_v56 }
 0x28a   : > { %v1933_v49 = vpop.eup %1932 }
 0x28b   : > { %v1471_v2 = vsel %vm1470_vm4, %v1931_v26, %v1467_v48  ;;  %v1494_v17 = vmul.f32 %v1933_v49, %v1447_v10  ;;  %v1935_v40 = vpop.eup %1934  ;;  %vm1499_vm6 = vweird.f32 %v1933_v49 }
 0x28c   : > { %v1476_v30 = vsel %vm1473_vm5, %v1475_v51, %v1471_v2  ;;  %vm1500_vm8 = vmor %vm1498_vm7, %vm1499_vm6  ;;  %v1937_v7 = vpop.eup %1936 }
 0x28d   : > { %v1525_v54 = vmul.f32 %v1935_v40, %v1476_v30  ;;  %v1495_v57 = vsub.f32 1.0, %v1494_v17 }
 0x28f   : > { %1535 = vst [vmem:[%s3009_s13 + $0x8] sm:$0xff] %v1525_v54  ;;  %v1496_v60 = vmul.f32 %v1933_v49, %v1495_v57 }
 0x291   : > { %v1497_v45 = vadd.f32 %v1933_v49, %v1496_v60 }
 0x293   : > { %v1501_v44 = vsel %vm1500_vm8, %v1933_v49, %v1497_v45 }
 0x294   : > { %v1506_v47 = vsel %vm1503_vm9, %v1505_v14, %v1501_v44 }
 0x295   : > { %v1527_v29 = vmul.f32 %v1937_v7, %v1506_v47 }
 0x297   : > { %1537 = vst [vmem:[%s3009_s13 + $0x18] sm:$0xff] %v1527_v29 }
 0x298 PF: > { %s22_s17 = sadd.s32 1, %s1944_s17  }
 0x299   : > { %p19_p4 = scmp.ge.s32.totalorder %s22_s17, 4  }
 0x29b   :  { %21 = sbr.rel (!%p19_p4) target bundleno = 1 (0x1), region = 124 }

// kernel: closed_call.24
= control target key start
LH: loop header
LB: loop body
LE: loop exit
PB: predicated region body
PF: predicated region fallthrough
CT: control target
= control target key end

     0   :  { %s10566_s0 = inlined_call_operand.vmem [shape: f32[2,4,1024], index: 0, kind: input, shape index: {}]   ;;  %s10567_s1 = inlined_call_operand.vmem [shape: f32[2,16,1024], index: 1, kind: input, shape index: {}]   ;;  %s10568_s2 = inlined_call_operand.vmem [shape: f32[2,16,1024], index: 2, kind: input, shape index: {}, may-alias: {2,13}]   ;;  %s10569_s3 = inlined_call_operand.vmem [shape: f32[2,16,1024], index: 3, kind: input, shape index: {}, may-alias: {3,14}]   ;;  %s10570_s4 = inlined_call_operand.vmem [shape: bf16[4,16], index: 4, kind: input, shape index: {}]   ;;  %s10571_s5 = inlined_call_operand.vmem [shape: f32[4,1], index: 5, kind: input, shape index: {}]   ;;  %s10572_s6 = inlined_call_operand.vmem [shape: bf16[16,16], index: 6, kind: input, shape index: {}]   ;;  %s10573_s7 = inlined_call_operand.vmem [shape: f32[16,1], index: 7, kind: input, shape index: {}]   ;;  %s10574_s8 = inlined_call_operand.vmem [shape: bf16[64,360], index: 8, kind: input, shape index: {}]   ;;  %s10575_s9 = inlined_call_operand.vmem [shape: f32[64,1], index: 9, kind: input, shape index: {}]   ;;  %s10576_s10 = inlined_call_operand.vmem [shape: f32[9,1024], index: 10, kind: input, shape index: {}]   ;;  %s10577_s11 = inlined_call_operand.hbm [shape: f32[2,4,1024], index: 11, kind: output, shape index: {0}]   ;;  %s10578_s12 = inlined_call_operand.vmem [shape: f32[2,8,1024], index: 12, kind: output, shape index: {1}]   ;;  %s10579_s13 = inlined_call_operand.vmem [shape: f32[2,16,1024], index: 13, kind: output, shape index: {2}, may-alias: {2,13}]   ;;  %s10580_s14 = inlined_call_operand.vmem [shape: f32[2,16,1024], index: 14, kind: output, shape index: {3}, may-alias: {3,14}]  }
   0x1   :  { %10906 = sst [smem:[#allocation159_spill]] %s10566_s0 }
   0x2   :  { %10907 = sst [smem:[#allocation160_spill]] %s10567_s1 }
   0x3   :  { %10908 = sst [smem:[#allocation161_spill]] %s10568_s2 }
   0x4   :  { %10909 = sst [smem:[#allocation162_spill]] %s10570_s4 }
   0x5   :  { %10910 = sst [smem:[#allocation163_spill]] %s10571_s5 }
   0x6   :  { %10911 = sst [smem:[#allocation164_spill]] %s10572_s6 }
   0x7   :  { %20 = vsyncpa [#allocation3], 0 }
   0x8   :  { %22 = vsyncpa [#allocation3 + $0x1], 0  ;;  %s5348_s29 = smov 0   ;;  %s5350_s30 = smov 0  }
   0x9   :  { %s5352_s15 = smov 0   ;;  %s5354_s16 = smov 0  }
   0xa LB: > { %10912 = sst [smem:[#allocation5_spill]] %s5258_s15  ;;  %s5369_s17 = sadd.s32 4294967295, %s5262_s16   ;;  %s5262_s16 = sphi %s5354_s16, %s11749_s16   ;;  %s5258_s15 = sphi %s5352_s15, %s11746_s15   ;;  %s5254_s30 = sphi %s5350_s30, %s11748_s30   ;;  %s5250_s29 = sphi %s5348_s29, %s11747_s29  }
   0xb   : > { %s4655_s18 = sadd.s32 4294967294, %s5262_s16   ;;  %s5373_s19 = sadd.s32 1, %s5262_s16  }
   0xc   : > { %s286_s20 = sadd.s32 1, %s5258_s15  ;;  %s283_s21 = ssub.s32 %s5262_s16, %s5373_s19 }
   0xd   : > { %p296_p0 = scmp.ne.s32.totalorder %s5258_s15, %s5254_s30  ;;  %p284_p1 = scmp.eq.s32.totalorder %s283_s21, 0 }
   0xe   : > { %p297_p2 = scmp.eq.s32.totalorder %s5369_s17, 1  ;;  %p302_p3 = scmp.ne.s32.totalorder %s5254_s30, %s5250_s29 }
   0xf   : > { %p303_p4 = scmp.eq.s32.totalorder %s4655_s18, 1  ;;  %p4658_p7 = scmp.ge.s32.totalorder %s5262_s16, 1 }
  0x10   : > { %s5384_s22 = scalar_select %p284_p1, %s5258_s15, %s286_s20  }
  0x11   : > { %p5386_p5 = por %p297_p2, %p296_p0  ;;  %p5390_p6 = por %p303_p4, %p302_p3 }
  0x12   : > { %10913 = sst [smem:[#allocation6_spill]] %s5384_s22  ;;  %p452_p8 = scmp.lt.s32.totalorder %s5262_s16, 3 }
  0x14   : > { %p453_p9 = pnand %p4658_p7, %p452_p8 }
  0x16   : > { %456 = sbr.rel (%p453_p9) target bundleno = 1356 (0x54c), region = 64 }
  0x1b   : > { %v590_v0 = vld [vmem:[%s10573_s7] sm:$0xff]  ;;  %p528_p10 = scmp.lt.s32.totalorder %s5369_s17, 1  ;;  %v5264_v1 = vmov 0   ;;  %s10916_s5 = sld [smem:[#allocation163_spill]]  ;;  %v591_v7 = vld [vmem:[%s10573_s7 + $0x8] sm:$0xff]  ;;  %vm607_vm0 = vcmask 130048  }
  0x1c   : > { %4896 = vset.pattern.permute.xlu0 %v5264_v1  ;;  %4897 = vset.pattern.permute.xlu1 %v5264_v1  ;;  %s10917_s1 = sld [smem:[#allocation160_spill]]  ;;  %s5265_s25 = smov 33   ;;  %vm933_vm1 = vcmask 1043456   ;;  %vm2659_vm10 = vcmask 850944  }
  0x1d   : > { %594 = vperm.xlu0 %4896, %v590_v0   ;;  %s5401_s27 = scalar_select %p528_p10, %s5369_s17, 1  ;;  %4898 = vset.pattern.permute.xlu2 %v5264_v1 }
  0x1e   : > { %s10918_s2 = sld [smem:[#allocation161_spill]]  ;;  %s10582_s21 = smov 32  }
  0x1f   : > { %s5407_s20 = sshll.u32 %s5401_s27, 7  ;;  %s10919_s6 = sld [smem:[#allocation164_spill]] }
  0x20   : > { %s10920_s4 = sld [smem:[#allocation162_spill]]  ;;  %s10584_s15 = sand.u32 1, %s5254_s30  }
  0x21   : > { %v760_v2 = vld [vmem:[%s10916_s5] sm:$0xf]  ;;  %s4827_s22 = sshll.u32 %s5401_s27, 5  ;;  %s10931_s0 = sld [smem:[#allocation159_spill]] }
  0x22   : > { %811 = vperm.xlu1 %4897, %v760_v2   ;;  %s5413_s26 = scalar_lea.vmem %s10917_s1, %s5407_s20  ;;  %s11129_s18 = smov 1  }
  0x23   : > { %v566_v3 = vld [vmem:[%s5413_s26] sm:$0xff]  ;;  %v567_v10 = vld [vmem:[%s5413_s26 + $0x8] sm:$0xff]  ;;  %v568_v12 = vld [vmem:[%s5413_s26 + $0x10] sm:$0xff] }
  0x24   : > { %s5419_s28 = scalar_lea.vmem %s10918_s2, %s5407_s20  ;;  %v574_v4 = vld [vmem:[%s5413_s26 + $0x40] sm:$0xff]  ;;  %v575_v11 = vld [vmem:[%s5413_s26 + $0x48] sm:$0xff]  ;;  %v576_v17 = vld [vmem:[%s5413_s26 + $0x50] sm:$0xff]  ;;  %s11164_s2 = smov 127  }
  0x25   : > { %v582_v5 = vpack.c.bf16 %v574_v4, %v566_v3  ;;  %v5424_v6 = vld [vmem:[%s5419_s28 + $0x8] sm:$0xff]  ;;  %v5432_v8 = vld [vmem:[%s10919_s6] sm:$0xff]  ;;  %599 = vperm.xlu0 %4896, %v591_v7   ;;  %v5450_v14 = vld [vmem:[%s5419_s28 + $0x10] sm:$0xff]  ;;  %v583_v16 = vpack.c.bf16 %v575_v11, %v567_v10  ;;  %v584_v20 = vpack.c.bf16 %v576_v17, %v568_v12  ;;  %s11187_s6 = smov 95  }
  0x26   : > { %1037 = vrot.lane.b32.xlu2 %v5424_v6, %s5265_s25  ;;  %v5437_v9 = vld [vmem:[%s5419_s28 + $0x40] sm:$0xff]  ;;  %v5453_v15 = vld [vmem:[%s5419_s28 + $0x50] sm:$0xff]  ;;  %v569_v18 = vld [vmem:[%s5413_s26 + $0x18] sm:$0xff] }
  0x27   : > { %618 = vmatpush.bf16.msra.mxu0 %v582_v5  ;;  %v5447_v13 = vld [vmem:[%s5419_s28] sm:$0xff]  ;;  %v577_v19 = vld [vmem:[%s5413_s26 + $0x58] sm:$0xff]  ;;  %v571_v24 = vld [vmem:[%s5413_s26 + $0x28] sm:$0xff]  ;;  %632 = vmatpush.bf16.msra.mxu1 %v583_v16  ;;  %v803_v39 = vpack.c.bf16 %v5453_v15, %v5450_v14  ;;  %s5684_s1 = scalar_lea.vmem %s10931_s0, %s4827_s22  ;;  %s4831_s22 = sshll.u32 %s5401_s27, 6 }
  0x28   : > { %v585_v21 = vpack.c.bf16 %v577_v19, %v569_v18  ;;  %v570_v22 = vld [vmem:[%s5413_s26 + $0x20] sm:$0xff]  ;;  %v579_v26 = vld [vmem:[%s5413_s26 + $0x68] sm:$0xff]  ;;  %v572_v27 = vld [vmem:[%s5413_s26 + $0x30] sm:$0xff]  ;;  %646 = vmatpush.bf16.msra.mxu2 %v584_v20  ;;  %v801_v36 = vpack.c.bf16 %v5437_v9, %v5447_v13  ;;  %s5753_s0 = scalar_lea.vmem %s10578_s12, %s4831_s22  ;;  %s10764_s27 = smov 1  }
  0x29   : > { %v578_v23 = vld [vmem:[%s5413_s26 + $0x60] sm:$0xff]  ;;  %v580_v28 = vld [vmem:[%s5413_s26 + $0x70] sm:$0xff]  ;;  %v5465_v29 = vld [vmem:[%s5419_s28 + $0x58] sm:$0xff]  ;;  %v587_v30 = vpack.c.bf16 %v579_v26, %v571_v24  ;;  %s10762_s22 = smov 127  }
  0x2a   : > { %4678 = vmatmul.msk.bf16.vlgmr.msra.gmra.mxu0 %vm607_vm0, %v5432_v8  ;;  %1029 = vrot.lane.b32.xlu1 %v5437_v9, %s5265_s25  ;;  %v586_v25 = vpack.c.bf16 %v578_v23, %v570_v22  ;;  %v588_v31 = vpack.c.bf16 %v580_v28, %v572_v27  ;;  %v573_v32 = vld [vmem:[%s5413_s26 + $0x38] sm:$0xff]  ;;  %v5470_v34 = vld [vmem:[%s5419_s28 + $0x48] sm:$0xff]  ;;  %v5494_v41 = vld [vmem:[%s5419_s28 + $0x20] sm:$0xff] }
  0x2b   : > { %660 = vmatpush.bf16.msra.mxu3 %v585_v21  ;;  %v581_v33 = vld [vmem:[%s5413_s26 + $0x78] sm:$0xff]  ;;  %4679 = vmatmul.msk.bf16.vlgmr.msra.gmra.mxu1 %vm607_vm0, %v5432_v8  ;;  %v802_v38 = vpack.c.bf16 %v5470_v34, %v5424_v6  ;;  %v5499_v42 = vld [vmem:[%s5419_s28 + $0x60] sm:$0xff]  ;;  %v5510_v44 = vld [vmem:[%s5419_s28 + $0x28] sm:$0xff]  ;;  %s4659_s26 = sshll.u32 %s10584_s15, 5  ;;  %s10934_s15 = smov 32  }
  0x2c   : > { %674 = vmatpush.bf16.msrb.mxu0 %v586_v25  ;;  %v589_v35 = vpack.c.bf16 %v581_v33, %v573_v32  ;;  %v5477_v37 = vld [vmem:[%s5419_s28 + $0x18] sm:$0xff]  ;;  %4680 = vmatmul.msk.bf16.vlgmr.msra.gmra.mxu2 %vm607_vm0, %v5432_v8  ;;  %v805_v43 = vpack.c.bf16 %v5499_v42, %v5494_v41  ;;  %v5513_v45 = vld [vmem:[%s5419_s28 + $0x68] sm:$0xff]  ;;  %v5516_v46 = vld [vmem:[%s5419_s28 + $0x70] sm:$0xff] }
  0x2d   : > { %1027 = vrot.lane.b32.xlu0 %v5447_v13, %s5265_s25  ;;  %v804_v40 = vpack.c.bf16 %v5465_v29, %v5477_v37  ;;  %688 = vmatpush.bf16.msrb.mxu1 %v587_v30  ;;  %v5519_v47 = vld [vmem:[%s5419_s28 + $0x38] sm:$0xff]  ;;  %v5525_v49 = vld [vmem:[%s5419_s28 + $0x30] sm:$0xff]  ;;  %v806_v50 = vpack.c.bf16 %v5513_v45, %v5510_v44  ;;  %v759_v53 = vld [vmem:[%s10920_s4] sm:$0x3]  ;;  %s5220_s4 = scalar_lea.hbm %s10577_s11, 64 }
  0x2e   : > { %1049 = vrot.lane.b32.xlu2 %v5453_v15, %s5265_s25  ;;  %4681 = vmatmul.msk.bf16.vlgmr.msra.gmra.mxu3 %vm607_vm0, %v5432_v8  ;;  %v5522_v48 = vld [vmem:[%s5419_s28 + $0x78] sm:$0xff]  ;;  %v807_v51 = vpack.c.bf16 %v5516_v46, %v5525_v49 }
  0x2f   : > { %702 = vmatpush.bf16.msrb.mxu2 %v588_v31  ;;  %716 = vmatpush.bf16.msrb.mxu3 %v589_v35  ;;  %v808_v52 = vpack.c.bf16 %v5522_v48, %v5519_v47 }
  0x30   : > { %824 = vmatpush.bf16.msra.mxu0 %v801_v36 }
  0x31   : > { %837 = vmatpush.bf16.msra.mxu1 %v802_v38 }
  0x32   : > { %1047 = vrot.lane.b32.xlu1 %v5450_v14, %s5265_s25 }
  0x33   : > { %850 = vmatpush.bf16.msra.mxu2 %v803_v39  ;;  %863 = vmatpush.bf16.msra.mxu3 %v804_v40  ;;  %v723_v40 = vld [vmem:[%s5684_s1] sm:$0xff] }
  0x35   : > { %1039 = vrot.lane.b32.xlu0 %v5470_v34, %s5265_s25 }
  0x36   : > { %1067 = vrot.lane.b32.xlu2 %v5494_v41, %s5265_s25 }
  0x3a   : > { %4682 = vmatmul.msk.bf16.vlgmr.msrb.gmra.mxu0 %vm607_vm0, %v5432_v8  ;;  %1059 = vrot.lane.b32.xlu1 %v5465_v29, %s5265_s25 }
  0x3b   : > { %876 = vmatpush.bf16.msrb.mxu0 %v805_v43  ;;  %4683 = vmatmul.msk.bf16.vlgmr.msrb.gmra.mxu1 %vm607_vm0, %v5432_v8 }
  0x3c   : > { %4684 = vmatmul.msk.bf16.vlgmr.msrb.gmra.mxu2 %vm607_vm0, %v5432_v8  ;;  %889 = vmatpush.bf16.msrb.mxu1 %v806_v50 }
  0x3d   : > { %1057 = vrot.lane.b32.xlu0 %v5477_v37, %s5265_s25  ;;  %902 = vmatpush.bf16.msrb.mxu2 %v807_v51 }
  0x3e   : > { %1079 = vrot.lane.b32.xlu2 %v5513_v45, %s5265_s25  ;;  %4685 = vmatmul.msk.bf16.vlgmr.msrb.gmra.mxu3 %vm607_vm0, %v5432_v8 }
  0x3f   : > { %915 = vmatpush.bf16.msrb.mxu3 %v808_v52 }
  0x42   : > { %1077 = vrot.lane.b32.xlu1 %v5510_v44, %s5265_s25 }
  0x45   : > { %1069 = vrot.lane.b32.xlu0 %v5499_v42, %s5265_s25 }
  0x46   : > { %1097 = vrot.lane.b32.xlu2 %v5519_v47, %s5265_s25 }
  0x4a   : > { %4686 = vmatmul.msk.bf16.vlgmr.msra.gmra.mxu0 %vm607_vm0, %v759_v53  ;;  %1089 = vrot.lane.b32.xlu1 %v5516_v46, %s5265_s25 }
  0x4b   : > { %4687 = vmatmul.msk.bf16.vlgmr.msra.gmra.mxu1 %vm607_vm0, %v759_v53 }
  0x4c   : > { %4688 = vmatmul.msk.bf16.vlgmr.msra.gmra.mxu2 %vm607_vm0, %v759_v53 }
  0x4d   : > { %1087 = vrot.lane.b32.xlu0 %v5525_v49, %s5265_s25 }
  0x4e   : > { %1200 = vrot.lane.b32.xlu2 %v5437_v9, %s10582_s21  ;;  %4689 = vmatmul.msk.bf16.vlgmr.msra.gmra.mxu3 %vm607_vm0, %v759_v53 }
  0x52   : > { %1198 = vrot.lane.b32.xlu1 %v5447_v13, %s10582_s21 }
  0x55   : > { %1099 = vrot.lane.b32.xlu0 %v5522_v48, %s5265_s25 }
  0x56   : > { %1218 = vrot.lane.b32.xlu2 %v5450_v14, %s10582_s21 }
  0x5a   : > { %4690 = vmatmul.msk.bf16.vlgmr.msrb.gmra.mxu0 %vm607_vm0, %v759_v53  ;;  %1210 = vrot.lane.b32.xlu1 %v5470_v34, %s10582_s21 }
  0x5b   : > { %4691 = vmatmul.msk.bf16.vlgmr.msrb.gmra.mxu1 %vm607_vm0, %v759_v53 }
  0x5c   : > { %4692 = vmatmul.msk.bf16.vlgmr.msrb.gmra.mxu2 %vm607_vm0, %v759_v53 }
  0x5d   : > { %1208 = vrot.lane.b32.xlu0 %v5424_v6, %s10582_s21 }
  0x5e   : > { %1230 = vrot.lane.b32.xlu2 %v5465_v29, %s10582_s21  ;;  %4693 = vmatmul.msk.bf16.vlgmr.msrb.gmra.mxu3 %vm607_vm0, %v759_v53 }
  0x62   : > { %1228 = vrot.lane.b32.xlu1 %v5477_v37, %s10582_s21 }
  0x65   : > { %1220 = vrot.lane.b32.xlu0 %v5453_v15, %s10582_s21 }
  0x66   : > { %1248 = vrot.lane.b32.xlu2 %v5510_v44, %s10582_s21 }
  0x6a   : > { %1240 = vrot.lane.b32.xlu1 %v5499_v42, %s10582_s21 }
  0x6d   : > { %1238 = vrot.lane.b32.xlu0 %v5494_v41, %s10582_s21 }
  0x6e   : > { %1260 = vrot.lane.b32.xlu2 %v5516_v46, %s10582_s21 }
  0x72   : > { %1258 = vrot.lane.b32.xlu1 %v5525_v49, %s10582_s21 }
  0x75   : > { %1250 = vrot.lane.b32.xlu0 %v5513_v45, %s10582_s21 }
  0x80   : > { %v5596_v54 = vpop.permute.xlu2 %1037 }
  0x88   : > { %v5605_v58 = vpop.permute.xlu2 %1049 }
  0x89   : > { %10922 = vst [vmem:[#allocation8_spill] sm:$0xff] %v5605_v58 }
  0x8f   : > { %v5598_v55 = vpop.permute.xlu0 %594 }
  0x90   : > { %v5618_v2 = vpop.permute.xlu2 %1067 }
  0x91   : > { %10924 = vst [vmem:[#allocation10_spill] sm:$0xff] %v5618_v2 }
  0x94   : > { %v5616_v62 = vpop.permute.xlu1 %811 }
  0x97   : > { %v5626_v5 = vpop.permute.xlu0 %599 }
  0x98   : > { %v5646_v19 = vpop.permute.xlu2 %1079 }
  0x99   : > { %10927 = vst [vmem:[#allocation13_spill] sm:$0xff] %v5646_v19 }
  0x9c   : > { %v5642_v17 = vpop.permute.xlu1 %1029 }
  0x9f   : > { %v5652_v20 = vpop.permute.xlu0 %1027 }
  0xa0   : > { %v5667_v27 = vpop.permute.xlu2 %1097 }
  0xa1   : > { %10930 = vst [vmem:[#allocation16_spill] sm:$0xff] %v5667_v27 }
  0xa4   : > { %v5665_v26 = vpop.permute.xlu1 %1047 }
  0xa5   : > { %10929 = vst [vmem:[#allocation15_spill] sm:$0xff] %v5665_v26 }
  0xa7   : > { %v620_v56 = vpop.f32.mrf.mxu0  ;;  %v5673_v28 = vpop.permute.xlu0 %1039 }
  0xa8   : > { %v5601_v57 = vadd.f32 %v620_v56, %v5598_v55  ;;  %v634_v59 = vpop.f32.mrf.mxu1  ;;  %v5699_v50 = vpop.permute.xlu2 %1200 }
  0xa9   : > { %v5608_v60 = vadd.f32 %v634_v59, %v5598_v55 }
  0xaa   : > { %10921 = vst [vmem:[#allocation7_spill] sm:$0xff] %v5601_v57  ;;  %1023 = vrot.lane.b32.xlu2 %v5601_v57, %s5265_s25 }
  0xab   : > { %10923 = vst [vmem:[#allocation9_spill] sm:$0xff] %v5608_v60  ;;  %1204 = vrot.lane.b32.xlu1 %v5608_v60, %s10582_s21  ;;  %1033 = vrot.lane.b32.xlu0 %v5608_v60, %s5265_s25 }
  0xac   : > { %v5707_v53 = vpop.permute.xlu1 %1059 }
  0xad   : > { %10935 = vst [vmem:[#allocation19_spill] sm:$0xff] %v5707_v53 }
  0xaf   : > { %v622_v61 = vpop.f32.mrf.mxu0  ;;  %v648_v63 = vpop.f32.mrf.mxu2 }
  0xb0   : > { %v636_v1 = vpop.f32.mrf.mxu1  ;;  %v5621_v3 = vadd.f32 %v648_v63, %v5598_v55  ;;  %v5637_v12 = vadd.f32 %v622_v61, %v5626_v5 }
  0xb1   : > { %v662_v0 = vpop.f32.mrf.mxu3  ;;  %v5640_v16 = vadd.f32 %v636_v1, %v5626_v5  ;;  %v5710_v1 = vpop.permute.xlu0 %1057 }
  0xb2   : > { %1194 = vrot.lane.b32.xlu2 %v5601_v57, %s10582_s21  ;;  %10925 = vst [vmem:[#allocation11_spill] sm:$0xff] %v5621_v3  ;;  %v5624_v4 = vadd.f32 %v662_v0, %v5598_v55 }
  0xb3   : > { %1214 = vrot.lane.b32.xlu0 %v5621_v3, %s10582_s21  ;;  %10926 = vst [vmem:[#allocation12_spill] sm:$0xff] %v5640_v16 }
  0xb4   : > { %1053 = vrot.lane.b32.xlu1 %v5624_v4, %s5265_s25  ;;  %10936 = vst [vmem:[#allocation20_spill] sm:$0xff] %v5710_v1 }
  0xb7   : > { %v676_v7 = vpop.f32.mrf.mxu0  ;;  %v650_v8 = vpop.f32.mrf.mxu2 }
  0xb8   : > { %v5634_v11 = vpop.f32.mrf.mxu1  ;;  %v5659_v24 = vadd.f32 %v650_v8, %v5626_v5  ;;  %v5690_v35 = vadd.f32 %v676_v7, %v5598_v55 }
  0xb9   : > { %v664_v10 = vpop.f32.mrf.mxu3 }
  0xba   : > { %1043 = vrot.lane.b32.xlu2 %v5621_v3, %s5265_s25  ;;  %10928 = vst [vmem:[#allocation14_spill] sm:$0xff] %v5659_v24  ;;  %v5687_v33 = vadd.f32 %v664_v10, %v5626_v5  ;;  %v724_v10 = vld [vmem:[%s5684_s1 + $0x8] sm:$0xff] }
  0xbb   : > { %1196 = vrot.lane.b32.xlu0 %v5637_v12, %s10582_s21  ;;  %10933 = vst [vmem:[#allocation18_spill] sm:$0xff] %v5690_v35 }
  0xbc   : > { %1035 = vrot.lane.b32.xlu1 %v5640_v16, %s5265_s25  ;;  %10932 = vst [vmem:[#allocation17_spill] sm:$0xff] %v5687_v33 }
  0xbf   : > { %v5644_v18 = vpop.f32.mrf.mxu0  ;;  %v704_v21 = vpop.f32.mrf.mxu2 }
  0xc0   : > { %v5656_v23 = vpop.f32.mrf.mxu1  ;;  %v5713_v7 = vadd.f32 %v704_v21, %v5598_v55  ;;  %v5725_v21 = vpop.permute.xlu2 %1218 }
  0xc1   : > { %v718_v22 = vpop.f32.mrf.mxu3  ;;  %10938 = vst [vmem:[#allocation22_spill] sm:$0xff] %v5725_v21 }
  0xc2   : > { %1224 = vrot.lane.b32.xlu2 %v5624_v4, %s10582_s21  ;;  %10937 = vst [vmem:[#allocation21_spill] sm:$0xff] %v5713_v7 }
  0xc3   : > { %1045 = vrot.lane.b32.xlu0 %v5659_v24, %s5265_s25 }
  0xc4   : > { %1216 = vrot.lane.b32.xlu1 %v5659_v24, %s10582_s21  ;;  %s5704_s21 = scalar_lea.vmem [#allocation2], %s4659_s26  ;;  %s10766_s26 = smov 96  }
  0xc7   : > { %v826_v25 = vpop.f32.mrf.mxu0  ;;  %v5675_v30 = vpop.f32.mrf.mxu2 }
  0xc8   : > { %v839_v32 = vpop.f32.mrf.mxu1  ;;  %v827_v39 = vadd.f32 %v826_v25, %v5616_v62 }
  0xc9   : > { %v5677_v31 = vpop.f32.mrf.mxu3  ;;  %v840_v36 = vadd.f32 %v839_v32, %v5616_v62 }
  0xca   : > { %1025 = vrot.lane.b32.xlu2 %v5637_v12, %s5265_s25 }
  0xcb   : > { %v929_v43 = vrot.slane %v840_v36, 4  ;;  %1226 = vrot.lane.b32.xlu0 %v5687_v33, %s10934_s15 }
  0xcc   : > { %1234 = vrot.lane.b32.xlu1 %v5690_v35, %s10934_s15 }
  0xcd   : > { %v934_v51 = vsel %vm933_vm1, %v827_v39, %v929_v43 }
  0xce   : > { %v942_v52 = vsub.f32 %v723_v40, %v934_v51  ;;  %4400 = vst [vmem:[%s5704_s21] sm:$0xff] %v934_v51 }
  0xcf   : > { %v828_v38 = vpop.f32.mrf.mxu0  ;;  %v852_v56 = vpop.f32.mrf.mxu2 }
  0xd0   : > { %v946_v61 = vmax.f32 %v942_v52, 0.0  ;;  %v841_v0 = vpop.f32.mrf.mxu1  ;;  %v853_v8 = vadd.f32 %v852_v56, %v5616_v62  ;;  %v950_v36 = vsub.f32 0.0, %v942_v52  ;;  %v5732_v52 = vadd.f32 %v718_v22, %v5598_v55 }
  0xd1   : > { %v865_v59 = vpop.f32.mrf.mxu3 }
  0xd2   : > { %1206 = vrot.lane.b32.xlu2 %v5640_v16, %s10934_s15  ;;  %v866_v63 = vadd.f32 %v865_v59, %v5616_v62  ;;  %962 = vst [vmem:[#allocation1] ss:$2 sm:$0xff] %v946_v61  ;;  %v954_v56 = vmax.f32 %v950_v36, 0.0  ;;  %v5729_v61 = vadd.f32 %v5634_v11, %v5598_v55 }
  0xd3   : > { %1063 = vrot.lane.b32.xlu0 %v5690_v35, %s5265_s25  ;;  %10940 = vst [vmem:[#allocation24_spill] sm:$0xff] %v5732_v52 }
  0xd4   : > { %v930_v25 = vrot.slane %v866_v63, 4  ;;  %1083 = vrot.lane.b32.xlu1 %v5713_v7, %s5265_s25  ;;  %10939 = vst [vmem:[#allocation23_spill] sm:$0xff] %v5729_v61 }
  0xd6   : > { %v935_v38 = vsel %vm933_vm1, %v853_v8, %v930_v25  ;;  %v5734_v8 = vpop.permute.xlu1 %1077 }
  0xd7   : > { %v878_v32 = vpop.f32.mrf.mxu0  ;;  %v943_v39 = vsub.f32 %v724_v10, %v935_v38  ;;  %4401 = vst [vmem:[%s5704_s21 + $0x8] sm:$0xff] %v935_v38  ;;  %v854_v43 = vpop.f32.mrf.mxu2 }
  0xd8   : > { %v891_v59 = vpop.f32.mrf.mxu1  ;;  %10941 = vst [vmem:[#allocation25_spill] sm:$0xff] %v5734_v8  ;;  %v5737_v38 = vpop.permute.xlu0 %1069  ;;  %v879_v36 = vadd.f32 %v878_v32, %v5616_v62  ;;  %v725_v43 = vld [vmem:[%s5684_s1 + $0x10] sm:$0xff] }
  0xd9   : > { %v947_v40 = vmax.f32 %v943_v39, 0.0  ;;  %v867_v51 = vpop.f32.mrf.mxu3  ;;  %v969_v63 = vld.sshfl [vmem:[#allocation1] sm:$0xff pattern:$0x75316420]  ;;  %v892_v10 = vadd.f32 %v891_v59, %v5616_v62  ;;  %10942 = vst [vmem:[#allocation26_spill] sm:$0xff] %v5737_v38 }
  0xda   : > { %1055 = vrot.lane.b32.xlu2 %v5687_v33, %s5265_s25  ;;  %v970_v0 = vld.sshfl [vmem:[#allocation1 + $0x8] sm:$0xff pattern:$0x75316420]  ;;  %v951_v51 = vsub.f32 0.0, %v943_v39 }
  0xdb   : > { %990 = vst [vmem:[#allocation1 + $0x1] ss:$2 sm:$0xff] %v954_v56  ;;  %v931_v11 = vrot.slane %v892_v10, 4  ;;  %1244 = vrot.lane.b32.xlu0 %v5729_v61, %s10934_s15 }
  0xdc   : > { %964 = vst [vmem:[#allocation1 + $0x10] ss:$2 sm:$0xff] %v947_v40  ;;  %1264 = vrot.lane.b32.xlu1 %v5732_v52, %s10934_s15 }
  0xdd   : > { %v936_v55 = vsel %vm933_vm1, %v879_v36, %v931_v11 }
  0xde   : > { %v944_v22 = vsub.f32 %v725_v43, %v936_v55  ;;  %4402 = vst [vmem:[%s5704_s21 + $0x10] sm:$0xff] %v936_v55  ;;  %v5760_v43 = vpop.permute.xlu2 %1230  ;;  %v5772_v38 = vpop.permute.xlu1 %1089 }
  0xdf   : > { %v880_v25 = vpop.f32.mrf.mxu0  ;;  %v904_v40 = vpop.f32.mrf.mxu2  ;;  %10944 = vst [vmem:[#allocation28_spill] sm:$0xff] %v5760_v43 }
  0xe0   : > { %v948_v32 = vmax.f32 %v944_v22, 0.0  ;;  %v893_v10 = vpop.f32.mrf.mxu1  ;;  %v5758_v25 = vadd.f32 %v5644_v18, %v5626_v5  ;;  %v905_v18 = vadd.f32 %v904_v40, %v5616_v62  ;;  %10945 = vst [vmem:[#allocation29_spill] sm:$0xff] %v5772_v38 }
  0xe1   : > { %v917_v56 = vpop.f32.mrf.mxu3  ;;  %v726_v10 = vld [vmem:[%s5684_s1 + $0x18] sm:$0xff]  ;;  %s5267_s1 = smov 31  }
  0xe2   : > { %1073 = vrot.lane.b32.xlu2 %v5729_v61, %s5265_s25  ;;  %v918_v59 = vadd.f32 %v917_v56, %v5616_v62  ;;  %10943 = vst [vmem:[#allocation27_spill] sm:$0xff] %v5758_v25  ;;  %v997_v36 = vld.sshfl [vmem:[#allocation1] sm:$0xff pattern:$0x75316420]  ;;  %v955_v56 = vmax.f32 %v951_v51, 0.0 }
  0xe3   : > { %v998_v39 = vld.sshfl [vmem:[#allocation1 + $0x8] sm:$0xff pattern:$0x75316420]  ;;  %v5763_v11 = vsel %vm933_vm1, %v969_v63, %v997_v36  ;;  %v971_v8 = vld.sshfl [vmem:[#allocation1 + $0x10] sm:$0xff pattern:$0x75316420]  ;;  %1093 = vrot.lane.b32.xlu0 %v5732_v52, %s5265_s25  ;;  %v5780_v63 = vpop.permute.xlu0 %1087  ;;  %v5788_v36 = vadd.f32 %v5656_v23, %v5626_v5 }
  0xe4   : > { %v5766_v55 = vsel %vm933_vm1, %v970_v0, %v998_v39  ;;  %v972_v19 = vld.sshfl [vmem:[#allocation1 + $0x18] sm:$0xff pattern:$0x75316420]  ;;  %4404 = vst [vmem:[%s5753_s0] sm:$0xff] %v5763_v11  ;;  %v932_v2 = vrot.slane %v918_v59, 4  ;;  %1065 = vrot.lane.b32.xlu1 %v5758_v25, %s5265_s25  ;;  %v952_v39 = vsub.f32 0.0, %v944_v22 }
  0xe5   : > { %4405 = vst [vmem:[%s5753_s0 + $0x8] sm:$0xff] %v5766_v55 }
  0xe6   : > { %10946 = vst [vmem:[#allocation30_spill] sm:$0xff] %v5780_v63  ;;  %v937_v0 = vsel %vm933_vm1, %v905_v18, %v932_v2  ;;  %v5794_v2 = vpop.permute.xlu2 %1248 }
  0xe7   : > { %992 = vst [vmem:[#allocation1 + $0x11] ss:$2 sm:$0xff] %v955_v56  ;;  %v945_v62 = vsub.f32 %v726_v10, %v937_v0  ;;  %v906_v40 = vpop.f32.mrf.mxu2 }
  0xe8   : > { %966 = vst [vmem:[#allocation1 + $0x20] ss:$2 sm:$0xff] %v948_v32 }
  0xe9   : > { %4403 = vst [vmem:[%s5704_s21 + $0x18] sm:$0xff] %v937_v0  ;;  %v919_v51 = vpop.f32.mrf.mxu3  ;;  %v949_v59 = vmax.f32 %v945_v62, 0.0  ;;  %v953_v56 = vsub.f32 0.0, %v945_v62  ;;  %v956_v62 = vmax.f32 %v952_v39, 0.0 }
  0xea   : > { %1254 = vrot.lane.b32.xlu2 %v5713_v7, %s10934_s15  ;;  %10947 = vst [vmem:[#allocation31_spill] sm:$0xff] %v5788_v36  ;;  %v5802_v51 = vpop.permute.xlu1 %1198 }
  0xeb   : > { %968 = vst [vmem:[#allocation1 + $0x30] ss:$2 sm:$0xff] %v949_v59  ;;  %1075 = vrot.lane.b32.xlu0 %v5788_v36, %s5265_s25  ;;  %v5808_v40 = vpop.permute.xlu0 %1099  ;;  %v5818_v59 = vadd.f32 %v5677_v31, %v5626_v5 }
  0xec   : > { %1246 = vrot.lane.b32.xlu1 %v5788_v36, %s10934_s15  ;;  %10948 = vst [vmem:[#allocation32_spill] sm:$0xff] %v5794_v2 }
  0xed   : > { %10950 = vst [vmem:[#allocation34_spill] sm:$0xff] %v5808_v40 }
  0xee   : > { %v999_v32 = vld.sshfl [vmem:[#allocation1 + $0x10] sm:$0xff pattern:$0x75316420]  ;;  %v1000_v18 = vld.sshfl [vmem:[#allocation1 + $0x18] sm:$0xff pattern:$0x75316420] }
  0xef   : > { %v5797_v10 = vsel %vm933_vm1, %v971_v8, %v999_v32  ;;  %v5800_v23 = vsel %vm933_vm1, %v972_v19, %v1000_v18  ;;  %v973_v22 = vld.sshfl [vmem:[#allocation1 + $0x20] sm:$0xff pattern:$0x75316420]  ;;  %v974_v0 = vld.sshfl [vmem:[#allocation1 + $0x28] sm:$0xff pattern:$0x75316420]  ;;  %v5814_v19 = vadd.f32 %v5675_v30, %v5626_v5  ;;  %v5826_v30 = vpop.permute.xlu2 %1260 }
  0xf0   : > { %10949 = vst [vmem:[#allocation33_spill] sm:$0xff] %v5800_v23  ;;  %v957_v8 = vmax.f32 %v953_v56, 0.0 }
  0xf1   : > { %4406 = vst [vmem:[%s5753_s0 + $0x10] sm:$0xff] %v5797_v10 }
  0xf2   : > { %1236 = vrot.lane.b32.xlu2 %v5758_v25, %s10934_s15  ;;  %4407 = vst [vmem:[%s5753_s0 + $0x18] sm:$0xff] %v5800_v23  ;;  %v975_v32 = vld.sshfl [vmem:[#allocation1 + $0x30] sm:$0xff pattern:$0x75316420]  ;;  %v5828_v31 = vpop.permute.xlu1 %1210 }
  0xf3   : > { %994 = vst [vmem:[#allocation1 + $0x21] ss:$2 sm:$0xff] %v956_v62  ;;  %v976_v18 = vld.sshfl [vmem:[#allocation1 + $0x38] sm:$0xff pattern:$0x75316420]  ;;  %1256 = vrot.lane.b32.xlu0 %v5814_v19, %s10934_s15  ;;  %v5830_v56 = vpop.permute.xlu0 %1208 }
  0xf4   : > { %10951 = vst [vmem:[#allocation35_spill] sm:$0xff] %v5814_v19  ;;  %1095 = vrot.lane.b32.xlu1 %v5818_v59, %s5265_s25 }
  0xf5   : > { %10952 = vst [vmem:[#allocation36_spill] sm:$0xff] %v5818_v59 }
  0xf6   : > { %996 = vst [vmem:[#allocation1 + $0x31] ss:$2 sm:$0xff] %v957_v8 }
  0xf7   : > { %10953 = vst [vmem:[#allocation37_spill] sm:$0xff] %v5826_v30 }
  0xfa   : > { %1085 = vrot.lane.b32.xlu2 %v5814_v19, %s5265_s25  ;;  %v1001_v39 = vld.sshfl [vmem:[#allocation1 + $0x20] sm:$0xff pattern:$0x75316420]  ;;  %v1002_v5 = vld.sshfl [vmem:[#allocation1 + $0x28] sm:$0xff pattern:$0x75316420] }
  0xfb   : > { %v5833_v62 = vsel %vm933_vm1, %v973_v22, %v1001_v39  ;;  %v5836_v8 = vsel %vm933_vm1, %v974_v0, %v1002_v5  ;;  %1268 = vrot.lane.b32.xlu0 %v5519_v47, %s10934_s15  ;;  %v5862_v0 = vpop.permute.xlu0 %1220 }
  0xfc   : > { %10954 = vst [vmem:[#allocation38_spill] sm:$0xff] %v5833_v62  ;;  %1270 = vrot.lane.b32.xlu1 %v5522_v48, %s10934_s15 }
  0xfd   : > { %4408 = vst [vmem:[%s5753_s0 + $0x20] sm:$0xff] %v5833_v62  ;;  %v1003_v63 = vld.sshfl [vmem:[#allocation1 + $0x30] sm:$0xff pattern:$0x75316420] }
  0xfe   : > { %4409 = vst [vmem:[%s5753_s0 + $0x28] sm:$0xff] %v5836_v8  ;;  %v1004_v38 = vld.sshfl [vmem:[#allocation1 + $0x38] sm:$0xff pattern:$0x75316420]  ;;  %v5843_v30 = vsel %vm933_vm1, %v975_v32, %v1003_v63  ;;  %v5860_v63 = vpop.permute.xlu1 %1228 }
  0xff   : > { %v5846_v2 = vsel %vm933_vm1, %v976_v18, %v1004_v38  ;;  %4410 = vst [vmem:[%s5753_s0 + $0x30] sm:$0xff] %v5843_v30 }
 0x100   : > { %4411 = vst [vmem:[%s5753_s0 + $0x38] sm:$0xff] %v5846_v2 }
 0x101   : > { %10955 = vst [vmem:[#allocation39_spill] sm:$0xff] %v5860_v63 }
 0x102   : > { %1266 = vrot.lane.b32.xlu2 %v5818_v59, %s10934_s15  ;;  %10956 = vst [vmem:[#allocation40_spill] sm:$0xff] %v5862_v0 }
 0x103   : > { %1202 = vrot.lane.b32.xlu0 %v5766_v55, %s10934_s15  ;;  %v5874_v18 = vpop.permute.xlu0 %1238 }
 0x104   : > { %v5858_v22 = vpop.permute.xlu2 %1023  ;;  %1021 = vrot.lane.b32.xlu1 %v5763_v11, %s5265_s25  ;;  %10958 = vst [vmem:[#allocation42_spill] sm:$0xff] %v5874_v18 }
 0x106   : > { %v5872_v32 = vpop.permute.xlu1 %1240 }
 0x107   : > { %10957 = vst [vmem:[#allocation41_spill] sm:$0xff] %v5872_v32 }
 0x10a   : > { %1031 = vrot.lane.b32.xlu2 %v5766_v55, %s5265_s25 }
 0x10b   : > { %1051 = vrot.lane.b32.xlu0 %v5800_v23, %s5265_s25  ;;  %v5890_v18 = vpop.permute.xlu0 %1250 }
 0x10c   : > { %v5870_v38 = vpop.permute.xlu2 %1194  ;;  %1192 = vrot.lane.b32.xlu1 %v5763_v11, %s10934_s15  ;;  %10961 = vst [vmem:[#allocation45_spill] sm:$0xff] %v5890_v18 }
 0x10e   : > { %v5888_v5 = vpop.permute.xlu1 %1258 }
 0x10f   : > { %10960 = vst [vmem:[#allocation44_spill] sm:$0xff] %v5888_v5 }
 0x112   : > { %1361 = vrot.lane.b32.xlu2 %v5763_v11, %s5267_s1 }
 0x113   : > { %1232 = vrot.lane.b32.xlu0 %v5833_v62, %s10934_s15 }
 0x114   : > { %v5882_v39 = vpop.permute.xlu2 %1043  ;;  %1041 = vrot.lane.b32.xlu1 %v5797_v10, %s5265_s25 }
 0x115   : > { %10959 = vst [vmem:[#allocation43_spill] sm:$0xff] %v5882_v39 }
 0x11a   : > { %1212 = vrot.lane.b32.xlu2 %v5797_v10, %s10934_s15 }
 0x11b   : > { %1081 = vrot.lane.b32.xlu0 %v5843_v30, %s5265_s25 }
 0x11c   : > { %v5894_v32 = vpop.permute.xlu2 %1224  ;;  %1222 = vrot.lane.b32.xlu1 %v5800_v23, %s10934_s15 }
 0x11d   : > { %10962 = vst [vmem:[#allocation46_spill] sm:$0xff] %v5894_v32  ;;  %v5900_v1 = vpop.permute.xlu1 %1204  ;;  %v5902_v53 = vpop.permute.xlu0 %1033 }
 0x122   : > { %1061 = vrot.lane.b32.xlu2 %v5833_v62, %s5265_s25 }
 0x123   : > { %1262 = vrot.lane.b32.xlu0 %v5846_v2, %s10934_s15 }
 0x124   : > { %v5906_v5 = vpop.permute.xlu2 %1025  ;;  %1071 = vrot.lane.b32.xlu1 %v5836_v8, %s5265_s25 }
 0x125   : > { %v5914_v32 = vpop.permute.xlu0 %1214 }
 0x126   : > { %v5912_v18 = vpop.permute.xlu1 %1053  ;;  %10964 = vst [vmem:[#allocation48_spill] sm:$0xff] %v5914_v32 }
 0x127   : > { %10963 = vst [vmem:[#allocation47_spill] sm:$0xff] %v5912_v18 }
 0x12a   : > { %1242 = vrot.lane.b32.xlu2 %v5836_v8, %s10934_s15 }
 0x12b   : > { %1363 = vrot.lane.b32.xlu0 %v5601_v57, %s5267_s1 }
 0x12c   : > { %v5918_v43 = vpop.permute.xlu2 %1206  ;;  %1252 = vrot.lane.b32.xlu1 %v5843_v30, %s10934_s15  ;;  %s10760_s15 = smov 95  }
 0x12d   : > { %v5926_v39 = vpop.permute.xlu0 %1196 }
 0x12e   : > { %v5924_v63 = vpop.permute.xlu1 %1035 }
 0x132   : > { %1091 = vrot.lane.b32.xlu2 %v5846_v2, %s5265_s25  ;;  %s10768_s25 = smov 97  }
 0x133   : > { %1369 = vrot.lane.b32.xlu0 %v5437_v9, %s5267_s1 }
 0x134   : > { %v5930_v18 = vpop.permute.xlu2 %1055  ;;  %1365 = vrot.lane.b32.xlu1 %v5637_v12, %s5267_s1 }
 0x135   : > { %10965 = vst [vmem:[#allocation49_spill] sm:$0xff] %v5930_v18  ;;  %v5938_v58 = vpop.permute.xlu0 %1045 }
 0x136   : > { %v5936_v26 = vpop.permute.xlu1 %1216  ;;  %10967 = vst [vmem:[#allocation51_spill] sm:$0xff] %v5938_v58 }
 0x137   : > { %10966 = vst [vmem:[#allocation50_spill] sm:$0xff] %v5936_v26 }
 0x13a   : > { %1367 = vrot.lane.b32.xlu2 %v5447_v13, %s5267_s1 }
 0x13b   : > { %1375 = vrot.lane.b32.xlu0 %v5640_v16, %s5267_s1 }
 0x13c   : > { %v5942_v32 = vpop.permute.xlu2 %1073  ;;  %1371 = vrot.lane.b32.xlu1 %v5766_v55, %s5267_s1 }
 0x13d   : > { %10968 = vst [vmem:[#allocation52_spill] sm:$0xff] %v5942_v32  ;;  %v5950_v0 = vpop.permute.xlu0 %1226 }
 0x13e   : > { %v5948_v18 = vpop.permute.xlu1 %1234  ;;  %10970 = vst [vmem:[#allocation54_spill] sm:$0xff] %v5950_v0 }
 0x13f   : > { %10969 = vst [vmem:[#allocation53_spill] sm:$0xff] %v5948_v18 }
 0x142   : > { %1373 = vrot.lane.b32.xlu2 %v5608_v60, %s5267_s1 }
 0x143   : > { %1381 = vrot.lane.b32.xlu0 %v5797_v10, %s5267_s1 }
 0x144   : > { %v5954_v26 = vpop.permute.xlu2 %1254  ;;  %1377 = vrot.lane.b32.xlu1 %v5424_v6, %s5267_s1 }
 0x145   : > { %10971 = vst [vmem:[#allocation55_spill] sm:$0xff] %v5954_v26  ;;  %v5962_v58 = vpop.permute.xlu0 %1063 }
 0x146   : > { %v5960_v32 = vpop.permute.xlu1 %1083  ;;  %10973 = vst [vmem:[#allocation57_spill] sm:$0xff] %v5962_v58 }
 0x147   : > { %10972 = vst [vmem:[#allocation56_spill] sm:$0xff] %v5960_v32 }
 0x14a   : > { %1379 = vrot.lane.b32.xlu2 %v5470_v34, %s5267_s1 }
 0x14b   : > { %1387 = vrot.lane.b32.xlu0 %v5450_v14, %s5267_s1 }
 0x14c   : > { %v5966_v18 = vpop.permute.xlu2 %1236  ;;  %1383 = vrot.lane.b32.xlu1 %v5621_v3, %s5267_s1 }
 0x14d   : > { %10974 = vst [vmem:[#allocation58_spill] sm:$0xff] %v5966_v18  ;;  %v5974_v0 = vpop.permute.xlu0 %1244 }
 0x14e   : > { %v5972_v26 = vpop.permute.xlu1 %1264  ;;  %10976 = vst [vmem:[#allocation60_spill] sm:$0xff] %v5974_v0 }
 0x14f   : > { %10975 = vst [vmem:[#allocation59_spill] sm:$0xff] %v5972_v26 }
 0x152   : > { %1385 = vrot.lane.b32.xlu2 %v5659_v24, %s5267_s1 }
 0x153   : > { %1393 = vrot.lane.b32.xlu0 %v5624_v4, %s5267_s1 }
 0x154   : > { %v5978_v32 = vpop.permute.xlu2 %1085  ;;  %1389 = vrot.lane.b32.xlu1 %v5453_v15, %s5267_s1 }
 0x155   : > { %10977 = vst [vmem:[#allocation61_spill] sm:$0xff] %v5978_v32  ;;  %v5986_v14 = vpop.permute.xlu0 %1093 }
 0x156   : > { %v5984_v58 = vpop.permute.xlu1 %1065  ;;  %10979 = vst [vmem:[#allocation63_spill] sm:$0xff] %v5986_v14 }
 0x157   : > { %10978 = vst [vmem:[#allocation62_spill] sm:$0xff] %v5984_v58 }
 0x15a   : > { %1391 = vrot.lane.b32.xlu2 %v5800_v23, %s5267_s1 }
 0x15b   : > { %1399 = vrot.lane.b32.xlu0 %v5465_v29, %s5267_s1 }
 0x15c   : > { %v5990_v18 = vpop.permute.xlu2 %1266  ;;  %1395 = vrot.lane.b32.xlu1 %v5687_v33, %s5267_s1 }
 0x15d   : > { %10980 = vst [vmem:[#allocation64_spill] sm:$0xff] %v5990_v18  ;;  %v5998_v0 = vpop.permute.xlu0 %1075 }
 0x15e   : > { %v5996_v32 = vpop.permute.xlu1 %1246  ;;  %10982 = vst [vmem:[#allocation66_spill] sm:$0xff] %v5998_v0 }
 0x15f   : > { %10981 = vst [vmem:[#allocation65_spill] sm:$0xff] %v5996_v32 }
 0x162   : > { %1397 = vrot.lane.b32.xlu2 %v5477_v37, %s5267_s1 }
 0x163   : > { %1405 = vrot.lane.b32.xlu0 %v5758_v25, %s5267_s1 }
 0x164   : > { %v6002_v15 = vpop.permute.xlu2 %1031  ;;  %1401 = vrot.lane.b32.xlu1 %v5833_v62, %s5267_s1 }
 0x165   : > { %v6010_v29 = vpop.permute.xlu0 %1256 }
 0x166   : > { %v6008_v58 = vpop.permute.xlu1 %1095  ;;  %10984 = vst [vmem:[#allocation68_spill] sm:$0xff] %v6010_v29 }
 0x167   : > { %10983 = vst [vmem:[#allocation67_spill] sm:$0xff] %v6008_v58 }
 0x16a   : > { %1403 = vrot.lane.b32.xlu2 %v5690_v35, %s5267_s1 }
 0x16b   : > { %1411 = vrot.lane.b32.xlu0 %v5836_v8, %s5267_s1 }
 0x16c   : > { %v6014_v32 = vpop.permute.xlu2 %1361  ;;  %1407 = vrot.lane.b32.xlu1 %v5494_v41, %s5267_s1 }
 0x16d   : > { %v6022_v0 = vpop.permute.xlu0 %1268 }
 0x16e   : > { %v6020_v37 = vpop.permute.xlu1 %1270  ;;  %10986 = vst [vmem:[#allocation70_spill] sm:$0xff] %v6022_v0 }
 0x16f   : > { %10985 = vst [vmem:[#allocation69_spill] sm:$0xff] %v6020_v37 }
 0x172   : > { %1409 = vrot.lane.b32.xlu2 %v5499_v42, %s5267_s1 }
 0x173   : > { %1417 = vrot.lane.b32.xlu0 %v5510_v44, %s5267_s1 }
 0x174   : > { %v6026_v21 = vpop.permute.xlu2 %1212  ;;  %1413 = vrot.lane.b32.xlu1 %v5729_v61, %s5267_s1 }
 0x175   : > { %10987 = vst [vmem:[#allocation71_spill] sm:$0xff] %v6026_v21  ;;  %v6032_v29 = vpop.permute.xlu0 %1202 }
 0x176   : > { %v6034_v8 = vpop.permute.xlu1 %1021 }
 0x17a   : > { %1415 = vrot.lane.b32.xlu2 %v5788_v36, %s5267_s1 }
 0x17b   : > { %1423 = vrot.lane.b32.xlu0 %v5713_v7, %s5267_s1 }
 0x17c   : > { %v6038_v41 = vpop.permute.xlu2 %1061  ;;  %1419 = vrot.lane.b32.xlu1 %v5513_v45, %s5267_s1 }
 0x17d   : > { %10988 = vst [vmem:[#allocation72_spill] sm:$0xff] %v6038_v41  ;;  %v6044_v42 = vpop.permute.xlu0 %1051 }
 0x17e   : > { %10989 = vst [vmem:[#allocation73_spill] sm:$0xff] %v6044_v42  ;;  %v6046_v44 = vpop.permute.xlu1 %1192 }
 0x182   : > { %1421 = vrot.lane.b32.xlu2 %v5843_v30, %s5267_s1 }
 0x183   : > { %1429 = vrot.lane.b32.xlu0 %v5516_v46, %s5267_s1 }
 0x184   : > { %v6050_v61 = vpop.permute.xlu2 %1242  ;;  %1425 = vrot.lane.b32.xlu1 %v5814_v19, %s5267_s1 }
 0x185   : > { %10990 = vst [vmem:[#allocation74_spill] sm:$0xff] %v6050_v61  ;;  %v6056_v41 = vpop.permute.xlu0 %1232 }
 0x186   : > { %10991 = vst [vmem:[#allocation75_spill] sm:$0xff] %v6056_v41  ;;  %v6058_v7 = vpop.permute.xlu1 %1041 }
 0x187   : > { %10992 = vst [vmem:[#allocation76_spill] sm:$0xff] %v6058_v7 }
 0x18a   : > { %1427 = vrot.lane.b32.xlu2 %v5525_v49, %s5267_s1 }
 0x18b   : > { %1435 = vrot.lane.b32.xlu0 %v5818_v59, %s5267_s1 }
 0x18c   : > { %v6062_v45 = vpop.permute.xlu2 %1091  ;;  %1431 = vrot.lane.b32.xlu1 %v5846_v2, %s5267_s1 }
 0x18d   : > { %10993 = vst [vmem:[#allocation77_spill] sm:$0xff] %v6062_v45  ;;  %v6068_v30 = vpop.permute.xlu0 %1081 }
 0x18e   : > { %10994 = vst [vmem:[#allocation78_spill] sm:$0xff] %v6068_v30  ;;  %v6070_v46 = vpop.permute.xlu1 %1222 }
 0x18f   : > { %10995 = vst [vmem:[#allocation79_spill] sm:$0xff] %v6070_v46 }
 0x192   : > { %1433 = vrot.lane.b32.xlu2 %v5732_v52, %s5267_s1 }
 0x193   : > { %1530 = vrot.lane.b32.xlu0 %v5763_v11, %s10764_s27 }
 0x194   : > { %v6074_v61 = vpop.permute.xlu2 %1367  ;;  %1437 = vrot.lane.b32.xlu1 %v5519_v47, %s5267_s1 }
 0x195   : > { %v6080_v49 = vpop.permute.xlu0 %1262 }
 0x196   : > { %10996 = vst [vmem:[#allocation80_spill] sm:$0xff] %v6080_v49  ;;  %v6082_v41 = vpop.permute.xlu1 %1071 }
 0x197   : > { %10997 = vst [vmem:[#allocation81_spill] sm:$0xff] %v6082_v41 }
 0x19a   : > { %1439 = vrot.lane.b32.xlu2 %v5522_v48, %s5267_s1  ;;  %s9658_s1 = scalar_lea.vmem %s10579_s13, %s5407_s20 }
 0x19b   : > { %1536 = vrot.lane.b32.xlu0 %v5447_v13, %s10764_s27 }
 0x19c   : > { %v6086_v30 = vpop.permute.xlu2 %1373  ;;  %1532 = vrot.lane.b32.xlu1 %v5601_v57, %s10764_s27 }
 0x19d   : > { %10998 = vst [vmem:[#allocation82_spill] sm:$0xff] %v6086_v30  ;;  %v6092_v19 = vpop.permute.xlu0 %1363 }
 0x19e   : > { %v6094_v42 = vpop.permute.xlu1 %1252 }
 0x19f   : > { %10999 = vst [vmem:[#allocation83_spill] sm:$0xff] %v6094_v42 }
 0x1a2   : > { %1534 = vrot.lane.b32.xlu2 %v5637_v12, %s10764_s27 }
 0x1a3   : > { %1542 = vrot.lane.b32.xlu0 %v5608_v60, %s10764_s27 }
 0x1a4   : > { %v6098_v46 = vpop.permute.xlu2 %1379  ;;  %1538 = vrot.lane.b32.xlu1 %v5437_v9, %s10764_s27 }
 0x1a5   : > { %11000 = vst [vmem:[#allocation84_spill] sm:$0xff] %v6098_v46  ;;  %v6104_v41 = vpop.permute.xlu0 %1369 }
 0x1a6   : > { %v6106_v36 = vpop.permute.xlu1 %1365 }
 0x1aa   : > { %1540 = vrot.lane.b32.xlu2 %v5766_v55, %s10764_s27 }
 0x1ab   : > { %1548 = vrot.lane.b32.xlu0 %v5470_v34, %s10764_s27 }
 0x1ac   : > { %v6110_v7 = vpop.permute.xlu2 %1385  ;;  %1544 = vrot.lane.b32.xlu1 %v5640_v16, %s10764_s27 }
 0x1ad   : > { %11001 = vst [vmem:[#allocation85_spill] sm:$0xff] %v6110_v7  ;;  %v6116_v42 = vpop.permute.xlu0 %1375 }
 0x1ae   : > { %v6118_v21 = vpop.permute.xlu1 %1371 }
 0x1af   : > { %11002 = vst [vmem:[#allocation86_spill] sm:$0xff] %v6118_v21 }
 0x1b2   : > { %1546 = vrot.lane.b32.xlu2 %v5424_v6, %s10764_s27 }
 0x1b3   : > { %1600 = vrot.lane.b32.xlu0 %v5846_v2, %s10764_s27 }
 0x1b4   : > { %v6122_v25 = vpop.permute.xlu2 %1391  ;;  %1550 = vrot.lane.b32.xlu1 %v5797_v10, %s10764_s27 }
 0x1b5   : > { %11003 = vst [vmem:[#allocation87_spill] sm:$0xff] %v6122_v25  ;;  %v6128_v7 = vpop.permute.xlu0 %1381 }
 0x1b6   : > { %11004 = vst [vmem:[#allocation88_spill] sm:$0xff] %v6128_v7  ;;  %v6130_v35 = vpop.permute.xlu1 %1377 }
 0x1b7   : > { %11005 = vst [vmem:[#allocation89_spill] sm:$0xff] %v6130_v35 }
 0x1ba   : > { %1552 = vrot.lane.b32.xlu2 %v5621_v3, %s10764_s27 }
 0x1bb   : > { %1868 = vrot.lane.b32.xlu0 %v5763_v11, %s10768_s25 }
 0x1bc   : > { %v6134_v62 = vpop.permute.xlu2 %1397  ;;  %2214 = vrot.lane.b32.xlu1 %v5437_v9, %s10760_s15 }
 0x1bd   : > { %11006 = vst [vmem:[#allocation90_spill] sm:$0xff] %v6134_v62  ;;  %v6140_v2 = vpop.permute.xlu0 %1387 }
 0x1be   : > { %11007 = vst [vmem:[#allocation91_spill] sm:$0xff] %v6140_v2  ;;  %v6142_v25 = vpop.permute.xlu1 %1383 }
 0x1bf   : > { %11008 = vst [vmem:[#allocation92_spill] sm:$0xff] %v6142_v25 }
 0x1c2   : > { %2224 = vrot.lane.b32.xlu2 %v5470_v34, %s10760_s15 }
 0x1c3   : > { %1880 = vrot.lane.b32.xlu0 %v5608_v60, %s10768_s25 }
 0x1c4   : > { %v6146_v7 = vpop.permute.xlu2 %1403  ;;  %1870 = vrot.lane.b32.xlu1 %v5601_v57, %s10768_s25 }
 0x1c5   : > { %11009 = vst [vmem:[#allocation93_spill] sm:$0xff] %v6146_v7  ;;  %v6152_v62 = vpop.permute.xlu0 %1393 }
 0x1c6   : > { %11010 = vst [vmem:[#allocation94_spill] sm:$0xff] %v6152_v62  ;;  %v6154_v24 = vpop.permute.xlu1 %1389 }
 0x1c7   : > { %11011 = vst [vmem:[#allocation95_spill] sm:$0xff] %v6154_v24 }
 0x1ca   : > { %1878 = vrot.lane.b32.xlu2 %v5766_v55, %s10768_s25 }
 0x1cb   : > { %1715 = vrot.lane.b32.xlu0 %v5424_v6, %s10762_s22 }
 0x1cc   : > { %v6158_v2 = vpop.permute.xlu2 %1409  ;;  %1705 = vrot.lane.b32.xlu1 %v5447_v13, %s10762_s22 }
 0x1cd   : > { %11012 = vst [vmem:[#allocation96_spill] sm:$0xff] %v6158_v2  ;;  %v6164_v7 = vpop.permute.xlu0 %1399 }
 0x1ce   : > { %11013 = vst [vmem:[#allocation97_spill] sm:$0xff] %v6164_v7  ;;  %v6166_v25 = vpop.permute.xlu1 %1395 }
 0x1cf   : > { %11014 = vst [vmem:[#allocation98_spill] sm:$0xff] %v6166_v25 }
 0x1d2   : > { %1707 = vrot.lane.b32.xlu2 %v5437_v9, %s10762_s22 }
 0x1d3   : > { %2212 = vrot.lane.b32.xlu0 %v5447_v13, %s10760_s15 }
 0x1d4   : > { %v6170_v62 = vpop.permute.xlu2 %1415  ;;  %1717 = vrot.lane.b32.xlu1 %v5470_v34, %s10762_s22 }
 0x1d5   : > { %11015 = vst [vmem:[#allocation99_spill] sm:$0xff] %v6170_v62  ;;  %v6176_v2 = vpop.permute.xlu0 %1405 }
 0x1d6   : > { %11016 = vst [vmem:[#allocation100_spill] sm:$0xff] %v6176_v2  ;;  %v6178_v24 = vpop.permute.xlu1 %1401 }
 0x1d7   : > { %11017 = vst [vmem:[#allocation101_spill] sm:$0xff] %v6178_v24 }
 0x1da   : > { %2210 = vrot.lane.b32.xlu2 %v5637_v12, %s10760_s15 }
 0x1db   : > { %1701 = vrot.lane.b32.xlu0 %v5601_v57, %s10762_s22 }
 0x1dc   : > { %v6182_v7 = vpop.permute.xlu2 %1421  ;;  %2220 = vrot.lane.b32.xlu1 %v5640_v16, %s10760_s15 }
 0x1dd   : > { %11018 = vst [vmem:[#allocation102_spill] sm:$0xff] %v6182_v7  ;;  %v6188_v62 = vpop.permute.xlu0 %1411 }
 0x1de   : > { %11019 = vst [vmem:[#allocation103_spill] sm:$0xff] %v6188_v62  ;;  %v6190_v25 = vpop.permute.xlu1 %1407 }
 0x1df   : > { %11020 = vst [vmem:[#allocation104_spill] sm:$0xff] %v6190_v25 }
 0x1e2   : > { %2222 = vrot.lane.b32.xlu2 %v5424_v6, %s10760_s15 }
 0x1e3   : > { %1713 = vrot.lane.b32.xlu0 %v5640_v16, %s10762_s22 }
 0x1e4   : > { %v6194_v2 = vpop.permute.xlu2 %1427  ;;  %1703 = vrot.lane.b32.xlu1 %v5637_v12, %s10762_s22 }
 0x1e5   : > { %11021 = vst [vmem:[#allocation105_spill] sm:$0xff] %v6194_v2  ;;  %v6200_v7 = vpop.permute.xlu0 %1417 }
 0x1e6   : > { %11022 = vst [vmem:[#allocation106_spill] sm:$0xff] %v6200_v7  ;;  %v6202_v24 = vpop.permute.xlu1 %1413 }
 0x1e7   : > { %11023 = vst [vmem:[#allocation107_spill] sm:$0xff] %v6202_v24 }
 0x1ea   : > { %1711 = vrot.lane.b32.xlu2 %v5608_v60, %s10762_s22 }
 0x1eb   : > { %2216 = vrot.lane.b32.xlu0 %v5766_v55, %s10760_s15 }
 0x1ec   : > { %v6206_v62 = vpop.permute.xlu2 %1433  ;;  %2206 = vrot.lane.b32.xlu1 %v5763_v11, %s10760_s15 }
 0x1ed   : > { %11024 = vst [vmem:[#allocation108_spill] sm:$0xff] %v6206_v62  ;;  %v6212_v2 = vpop.permute.xlu0 %1423 }
 0x1ee   : > { %11025 = vst [vmem:[#allocation109_spill] sm:$0xff] %v6212_v2  ;;  %v6214_v25 = vpop.permute.xlu1 %1419 }
 0x1ef   : > { %11026 = vst [vmem:[#allocation110_spill] sm:$0xff] %v6214_v25  ;;  %v1101_v25 = vlaneseq }
 0x1f2   : > { %2208 = vrot.lane.b32.xlu2 %v5601_v57, %s10760_s15 }
 0x1f3   : > { %1709 = vrot.lane.b32.xlu0 %v5766_v55, %s10762_s22 }
 0x1f4   : > { %v6218_v7 = vpop.permute.xlu2 %1439  ;;  %2218 = vrot.lane.b32.xlu1 %v5608_v60, %s10760_s15 }
 0x1f5   : > { %11027 = vst [vmem:[#allocation111_spill] sm:$0xff] %v6218_v7  ;;  %v6224_v24 = vpop.permute.xlu0 %1429 }
 0x1f6   : > { %11028 = vst [vmem:[#allocation112_spill] sm:$0xff] %v6224_v24  ;;  %v6226_v33 = vpop.permute.xlu1 %1425  ;;  %v6244_v24 = vand.u32 127, %v1101_v25 }
 0x1f7   : > { %11029 = vst [vmem:[#allocation113_spill] sm:$0xff] %v6226_v33 }
 0x1f8   : > { %vm1441_vm2 = vcmp.lt.s32.totalorder %v6244_v24, 31  ;;  %vm1610_vm3 = vcmp.lt.s32.totalorder %v6244_v24, 1  ;;  %vm1272_vm4 = vcmp.lt.s32.totalorder %v6244_v24, 32  ;;  %vm1103_vm5 = vcmp.lt.s32.totalorder %v6244_v24, 33 }
 0x1f9   : > { %vm2286_vm6 = vcmp.lt.s32.totalorder %v6244_v24, 95  ;;  %vm1948_vm7 = vcmp.lt.s32.totalorder %v6244_v24, 97  ;;  %vm1779_vm8 = vcmp.lt.s32.totalorder %v6244_v24, 127  ;;  %vm2117_vm9 = vcmp.lt.s32.totalorder %v6244_v24, 96 }
 0x1fa   : > { %1699 = vrot.lane.b32.xlu2 %v5763_v11, %s10762_s22 }
 0x1fb   : > { %2053 = vrot.lane.b32.xlu0 %v5424_v6, %s10766_s26 }
 0x1fc   : > { %v6230_v2 = vpop.permute.xlu2 %1534  ;;  %2043 = vrot.lane.b32.xlu1 %v5447_v13, %s10766_s26 }
 0x1fd   : > { %11030 = vst [vmem:[#allocation114_spill] sm:$0xff] %v6230_v2  ;;  %v6236_v14 = vpop.permute.xlu0 %1435  ;;  %v6249_v2 = vld [vmem:[%s10576_s10 + $0x8] sm:$0xff] }
 0x1fe   : > { %11031 = vst [vmem:[#allocation115_spill] sm:$0xff] %v6236_v14  ;;  %v6238_v45 = vpop.permute.xlu1 %1431  ;;  %v6258_v6 = vperm.slane %v6249_v2, 3  ;;  %v1483_v13 = vperm.slane %v6249_v2, 2 }
 0x1ff   : > { %11032 = vst [vmem:[#allocation116_spill] sm:$0xff] %v6238_v45 }
 0x200   : > { %11034 = vst [vmem:[#allocation118_spill] sm:$0xff] %v6258_v6 }
 0x202   : > { %2045 = vrot.lane.b32.xlu2 %v5437_v9, %s10766_s26  ;;  %v1476_v9 = vsel %vm1441_vm2, %v6104_v41, %v6098_v46 }
 0x203   : > { %2041 = vrot.lane.b32.xlu0 %v5637_v12, %s10766_s26  ;;  %v1523_v58 = vmul.f32 %v1483_v13, %v1476_v9  ;;  %v6292_v9 = vld [vmem:[%s5419_s28 + $0x40] sm:$0xff] }
 0x204   : > { %v6242_v33 = vpop.permute.xlu2 %1540  ;;  %2055 = vrot.lane.b32.xlu1 %v5470_v34, %s10766_s26  ;;  %v1475_v34 = vsel %vm1441_vm2, %v6074_v61, %v6130_v35  ;;  %v1472_v35 = vsel %vm1441_vm2, %v6014_v32, %v6118_v21 }
 0x205   : > { %11033 = vst [vmem:[#allocation117_spill] sm:$0xff] %v6242_v33  ;;  %v6265_v25 = vpop.permute.xlu0 %1530  ;;  %v1515_v23 = vmul.f32 %v1483_v13, %v1475_v34 }
 0x206   : > { %v6267_v27 = vpop.permute.xlu1 %1437  ;;  %v1641_v46 = vsel %vm1610_vm3, %v6265_v25, %v6242_v33 }
 0x207   : > { %11035 = vst [vmem:[#allocation119_spill] sm:$0xff] %v6267_v27  ;;  %v1660_v40 = vmul.f32 %v6258_v6, %v1641_v46  ;;  %v1473_v46 = vsel %vm1441_vm2, %v6092_v19, %v6086_v30 }
 0x209   : > { %v2432_v3 = vpack.c.bf16 %v1660_v40, %v1523_v58  ;;  %v1314_v58 = vperm.slane %v6249_v2, 1  ;;  %v1491_v40 = vmul.f32 %v1483_v13, %v1472_v35  ;;  %v1499_v35 = vmul.f32 %v1483_v13, %v1473_v46 }
 0x20a   : > { %2039 = vrot.lane.b32.xlu2 %v5601_v57, %s10766_s26  ;;  %v1474_v57 = vsel %vm1441_vm2, %v6106_v36, %v6116_v42 }
 0x20b   : > { %v1507_v33 = vmul.f32 %v1483_v13, %v1474_v57  ;;  %1876 = vrot.lane.b32.xlu0 %v6292_v9, %s10768_s25  ;;  %2783 = vmatpush.bf16.msra.mxu3 %v2432_v3  ;;  %v1307_v3 = vsel %vm1272_vm4, %v5699_v50, %v5828_v31  ;;  %v1304_v13 = vsel %vm1272_vm4, %v5870_v38, %v5900_v1 }
 0x20c   : > { %v6280_v49 = vpop.permute.xlu2 %1546  ;;  %2049 = vrot.lane.b32.xlu1 %v5608_v60, %s10766_s26  ;;  %v1306_v60 = vsel %vm1272_vm4, %v5802_v51, %v5830_v56  ;;  %v1354_v21 = vmul.f32 %v1314_v58, %v1307_v3 }
 0x20d   : > { %11036 = vst [vmem:[#allocation120_spill] sm:$0xff] %v6280_v49  ;;  %v6303_v34 = vpop.permute.xlu0 %1536  ;;  %v2424_v6 = vpack.c.bf16 %v1515_v23, %v1507_v33  ;;  %v1346_v30 = vmul.f32 %v1314_v58, %v1306_v60  ;;  %v2416_v33 = vpack.c.bf16 %v1499_v35, %v1491_v40  ;;  %v1305_v23 = vsel %vm1272_vm4, %v5926_v39, %v5918_v43 }
 0x20e   : > { %v6305_v57 = vpop.permute.xlu1 %1532  ;;  %v1338_v60 = vmul.f32 %v1314_v58, %v1305_v23  ;;  %v1330_v35 = vmul.f32 %v1314_v58, %v1304_v13  ;;  %v1138_v23 = vsel %vm1103_vm5, %v5642_v17, %v5673_v28  ;;  %v1137_v13 = vsel %vm1103_vm5, %v5652_v20, %v5596_v54 }
 0x20f   : > { %2784 = vmatpush.bf16.msra.mxu3 %v2424_v6  ;;  %v6330_v6 = vld [vmem:[%s5419_s28 + $0x48] sm:$0xff]  ;;  %v2408_v3 = vpack.c.bf16 %v1354_v21, %v1346_v30  ;;  %v1145_v21 = vperm.slane %v6249_v2, 0 }
 0x210   : > { %11038 = vst [vmem:[#allocation122_spill] sm:$0xff] %v6330_v6 }
 0x212   : > { %2051 = vrot.lane.b32.xlu2 %v5640_v16, %s10766_s26 }
 0x213   : > { %2047 = vrot.lane.b32.xlu0 %v5766_v55, %s10766_s26  ;;  %2785 = vmatpush.bf16.msra.mxu3 %v2416_v33  ;;  %v1303_v55 = vsel %vm1272_vm4, %v6046_v44, %v6032_v29 }
 0x214   : > { %v6317_v49 = vpop.permute.xlu2 %1552  ;;  %1886 = vrot.lane.b32.xlu1 %v6330_v6, %s10768_s25  ;;  %v1322_v30 = vmul.f32 %v1314_v58, %v1303_v55  ;;  %v1185_v6 = vmul.f32 %v1145_v21, %v1138_v23 }
 0x215   : > { %11037 = vst [vmem:[#allocation121_spill] sm:$0xff] %v6317_v49  ;;  %v6334_v46 = vpop.permute.xlu0 %1542  ;;  %v2400_v49 = vpack.c.bf16 %v1338_v60, %v1330_v35  ;;  %v1177_v35 = vmul.f32 %v1145_v21, %v1137_v13 }
 0x216   : > { %11039 = vst [vmem:[#allocation123_spill] sm:$0xff] %v6334_v46  ;;  %v6336_v40 = vpop.permute.xlu1 %1538  ;;  %v1136_v46 = vsel %vm1103_vm5, %v5906_v5, %v5924_v63  ;;  %v2392_v55 = vpack.c.bf16 %v1322_v30, %v1185_v6 }
 0x217   : > { %2786 = vmatpush.bf16.msra.mxu3 %v2408_v3  ;;  %v1169_v58 = vmul.f32 %v1145_v21, %v1136_v46 }
 0x219   : > { %v2384_v6 = vpack.c.bf16 %v1177_v35, %v1169_v58  ;;  %v1481_v58 = vsel %vm1441_vm2, %v6218_v7, %v6104_v41  ;;  %v1480_v41 = vsel %vm1441_vm2, %v6267_v27, %v6074_v61  ;;  %v1477_v61 = vsel %vm1441_vm2, %v6238_v45, %v6014_v32 }
 0x21a   : > { %2037 = vrot.lane.b32.xlu2 %v5763_v11, %s10766_s26 }
 0x21b   : > { %1872 = vrot.lane.b32.xlu0 %v5637_v12, %s10768_s25  ;;  %2787 = vmatpush.bf16.msra.mxu3 %v2400_v49  ;;  %v1134_v49 = vsel %vm1103_vm5, %v6034_v8, %v6002_v15 }
 0x21c   : > { %v6345_v33 = vpop.permute.xlu2 %2224  ;;  %1606 = vrot.lane.b32.xlu1 %v5519_v47, %s10764_s27  ;;  %v1135_v47 = vsel %vm1103_vm5, %v5858_v22, %v5902_v53  ;;  %v1153_v46 = vmul.f32 %v1145_v21, %v1134_v49 }
 0x21d   : > { %v6364_v60 = vpop.permute.xlu0 %1548  ;;  %v1161_v30 = vmul.f32 %v1145_v21, %v1135_v47 }
 0x21e   : > { %11040 = vst [vmem:[#allocation124_spill] sm:$0xff] %v6364_v60  ;;  %v6366_v3 = vpop.permute.xlu1 %1544 }
 0x21f   : > { %11041 = vst [vmem:[#allocation125_spill] sm:$0xff] %v6366_v3  ;;  %2788 = vmatpush.bf16.msra.mxu3 %v2392_v55  ;;  %v6386_v3 = vld [vmem:[%s5419_s28 + $0x8] sm:$0xff]  ;;  %v6398_v55 = vld [vmem:[%s5419_s28] sm:$0xff]  ;;  %v2376_v47 = vpack.c.bf16 %v1161_v30, %v1153_v46  ;;  %v1479_v46 = vsel %vm1441_vm2, %v6236_v14, %v6106_v36 }
 0x220   : > { %11042 = vst [vmem:[#allocation126_spill] sm:$0xff] %v6386_v3  ;;  %v11054_v14 = vld [vmem:[#allocation67_spill] sm:$0xff] }
 0x222   : > { %1608 = vrot.lane.b32.xlu2 %v5522_v48, %s10764_s27  ;;  %v6383_v48 = vld [vmem:[%s10576_s10] sm:$0xff] }
 0x223   : > { %1884 = vrot.lane.b32.xlu0 %v6386_v3, %s10768_s25  ;;  %2789 = vmatpush.bf16.msra.mxu3 %v2384_v6  ;;  %v6391_v13 = vperm.slane %v6383_v48, 3  ;;  %v1482_v21 = vperm.slane %v6383_v48, 2 }
 0x224   : > { %v6374_v23 = vpop.permute.xlu2 %1878  ;;  %1874 = vrot.lane.b32.xlu1 %v6398_v55, %s10768_s25 }
 0x225   : > { %v6403_v49 = vpop.permute.xlu0 %1600  ;;  %v1522_v7 = vmul.f32 %v1482_v21, %v1481_v58  ;;  %v1514_v30 = vmul.f32 %v1482_v21, %v1480_v41  ;;  %v1506_v27 = vmul.f32 %v1482_v21, %v1479_v46  ;;  %v1490_v36 = vmul.f32 %v1482_v21, %v1477_v61 }
 0x226   : > { %11043 = vst [vmem:[#allocation127_spill] sm:$0xff] %v6403_v49  ;;  %v6405_v35 = vpop.permute.xlu1 %1550  ;;  %v1646_v6 = vsel %vm1610_vm3, %v6403_v49, %v6265_v25  ;;  %v6434_v25 = vld [vmem:[%s10576_s10 + $0x40] ss:$0 sm:$0xff] }
 0x227   : > { %11044 = vst [vmem:[#allocation128_spill] sm:$0xff] %v6405_v35  ;;  %v1659_v60 = vmul.f32 %v6391_v13, %v1646_v6  ;;  %2790 = vmatpush.bf16.msra.mxu3 %v2376_v47  ;;  %v2423_v58 = vpack.c.bf16 %v1514_v30, %v1506_v27  ;;  %v1313_v47 = vperm.slane %v6383_v48, 1 }
 0x22a   : > { %1882 = vrot.lane.b32.xlu2 %v5640_v16, %s10768_s25  ;;  %v2431_v16 = vpack.c.bf16 %v1659_v60, %v1522_v7  ;;  %v1478_v7 = vsel %vm1441_vm2, %v6206_v62, %v6092_v19  ;;  %v1311_v19 = vsel %vm1272_vm4, %v6022_v0, %v5802_v51  ;;  %v1310_v51 = vsel %vm1272_vm4, %v5990_v18, %v5926_v39  ;;  %v11049_v39 = vld [vmem:[#allocation11_spill] sm:$0xff]  ;;  %v6513_v18 = vld [vmem:[%s5419_s28 + $0x18] sm:$0xff] }
 0x22b   : > { %1888 = vrot.lane.b32.xlu0 %v5797_v10, %s10768_s25  ;;  %v1498_v41 = vmul.f32 %v1482_v21, %v1478_v7  ;;  %v1345_v30 = vmul.f32 %v1313_v47, %v1311_v19  ;;  %v6470_v0 = vperm.slane %v6383_v48, 6  ;;  %v1309_v7 = vsel %vm1272_vm4, %v5972_v26, %v5870_v38  ;;  %v11052_v38 = vld [vmem:[#allocation80_spill] sm:$0xff] }
 0x22c   : > { %v6418_v3 = vpop.permute.xlu2 %1707  ;;  %2696 = vmatpush.bf16.msra.mxu0 %v2431_v16  ;;  %1602 = vrot.lane.b32.xlu1 %v5732_v52, %s10764_s27  ;;  %v1312_v16 = vsel %vm1272_vm4, %v6020_v37, %v5699_v50 }
 0x22d   : > { %11045 = vst [vmem:[#allocation129_spill] sm:$0xff] %v6418_v3  ;;  %v6446_v32 = vpop.permute.xlu0 %1868  ;;  %v1353_v46 = vmul.f32 %v1313_v47, %v1312_v16  ;;  %v2415_v62 = vpack.c.bf16 %v1498_v41, %v1490_v36  ;;  %v1337_v36 = vmul.f32 %v1313_v47, %v1310_v51  ;;  %v1308_v41 = vsel %vm1272_vm4, %v11052_v38, %v6046_v44 }
 0x22e   : > { %11046 = vst [vmem:[#allocation130_spill] sm:$0xff] %v6446_v32  ;;  %v6448_v60 = vpop.permute.xlu1 %2214  ;;  %v1979_v16 = vsel %vm1948_vm7, %v6446_v32, %v6374_v23  ;;  %v1329_v51 = vmul.f32 %v1313_v47, %v1309_v7  ;;  %v1321_v38 = vmul.f32 %v1313_v47, %v1308_v41  ;;  %v1141_v7 = vsel %vm1103_vm5, %v11054_v14, %v5906_v5  ;;  %v6522_v47 = vld [vmem:[%s5419_s28 + $0x10] sm:$0xff] }
 0x22f   : > { %11047 = vst [vmem:[#allocation131_spill] sm:$0xff] %v6448_v60  ;;  %v2321_v50 = vsel %vm2286_vm6, %v6448_v60, %v6345_v33  ;;  %v2407_v19 = vpack.c.bf16 %v1353_v46, %v1345_v30  ;;  %v1997_v46 = vmul.f32 %v6470_v0, %v1979_v16  ;;  %v11053_v60 = vld [vmem:[#allocation34_spill] sm:$0xff]  ;;  %v1820_v14 = vperm.slane %v6383_v48, 5 }
 0x230   : > { %v2367_v6 = vmul.f32 %v6434_v25, %v2321_v50  ;;  %2697 = vmatpush.bf16.msra.mxu0 %v2423_v58  ;;  %v11051_v50 = vld [vmem:[#allocation33_spill] sm:$0xff]  ;;  %v1143_v44 = vsel %vm1103_vm5, %v11053_v60, %v5642_v17  ;;  %v2399_v45 = vpack.c.bf16 %v1337_v36, %v1329_v51  ;;  %v6531_v51 = vld [vmem:[%s5419_s28 + $0x50] sm:$0xff] }
 0x231   : > { %11056 = vst [vmem:[#allocation33_spill] sm:$0xff] %v6522_v47 }
 0x232   : > { %1604 = vrot.lane.b32.xlu2 %v5818_v59, %s10764_s27  ;;  %v2551_v61 = vpack.c.bf16 %v2367_v6, %v2367_v6  ;;  %v11097_v59 = vld [vmem:[#allocation84_spill] sm:$0xff] }
 0x233   : > { %1900 = vrot.lane.b32.xlu0 %v5624_v4, %s10768_s25 }
 0x234   : > { %v6462_v27 = vpop.permute.xlu2 %2210  ;;  %2698 = vmatpush.bf16.msra.mxu0 %v2415_v62  ;;  %v2673_v21 = vsel %vm933_vm1, %v2551_v61, 0  ;;  %1890 = vrot.lane.b32.xlu1 %v11049_v39, %s10768_s25  ;;  %v1144_v61 = vperm.slane %v6383_v48, 0 }
 0x235   : > { %11048 = vst [vmem:[#allocation132_spill] sm:$0xff] %v6462_v27  ;;  %2755 = vmatpush.bf16.msra.mxu2 %v2673_v21  ;;  %v6485_v58 = vpop.permute.xlu0 %1880 }
 0x236   : > { %v6487_v62 = vpop.permute.xlu1 %1870  ;;  %v1184_v16 = vmul.f32 %v1144_v61, %v1143_v44  ;;  %v1168_v36 = vmul.f32 %v1144_v61, %v1141_v7 }
 0x237   : > { %11050 = vst [vmem:[#allocation133_spill] sm:$0xff] %v6487_v62  ;;  %v1980_v6 = vsel %vm1948_vm7, %v6487_v62, %v6485_v58  ;;  %v11093_v62 = vld [vmem:[#allocation117_spill] sm:$0xff] }
 0x238   : > { %v2005_v30 = vmul.f32 %v6470_v0, %v1980_v6  ;;  %2699 = vmatpush.bf16.msra.mxu0 %v2407_v19  ;;  %v11055_v19 = vld [vmem:[#allocation16_spill] sm:$0xff]  ;;  %v2391_v6 = vpack.c.bf16 %v1321_v38, %v1184_v16 }
 0x239   : > { %v1142_v17 = vsel %vm1103_vm5, %v11055_v19, %v5652_v20  ;;  %v11058_v20 = vld [vmem:[#allocation77_spill] sm:$0xff] }
 0x23a   : > { %1898 = vrot.lane.b32.xlu2 %v11051_v50, %s10768_s25  ;;  %v2495_v37 = vpack.c.bf16 %v2005_v30, %v1997_v46  ;;  %v1176_v46 = vmul.f32 %v1144_v61, %v1142_v17  ;;  %v11059_v30 = vld [vmem:[#allocation63_spill] sm:$0xff]  ;;  %v6554_v17 = vld [vmem:[%s5419_s28 + $0x58] sm:$0xff] }
 0x23b   : > { %1735 = vrot.lane.b32.xlu0 %v6513_v18, %s10762_s22  ;;  %v1140_v38 = vsel %vm1103_vm5, %v11059_v30, %v5858_v22 }
 0x23c   : > { %v6502_v21 = vpop.permute.xlu2 %2222  ;;  %2700 = vmatpush.bf16.msra.mxu0 %v2399_v45  ;;  %1725 = vrot.lane.b32.xlu1 %v6522_v47, %s10762_s22  ;;  %v1139_v45 = vsel %vm1103_vm5, %v11058_v20, %v6034_v8  ;;  %v2383_v7 = vpack.c.bf16 %v1176_v46, %v1168_v36  ;;  %v1160_v16 = vmul.f32 %v1144_v61, %v1140_v38  ;;  %v11062_v20 = vld [vmem:[#allocation17_spill] sm:$0xff] }
 0x23d   : > { %2725 = vmatpush.bf16.msra.mxu1 %v2495_v37  ;;  %v6526_v5 = vpop.permute.xlu0 %1715  ;;  %v1152_v44 = vmul.f32 %v1144_v61, %v1139_v45 }
 0x23e   : > { %v6528_v41 = vpop.permute.xlu1 %1705 }
 0x23f   : > { %11057 = vst [vmem:[#allocation134_spill] sm:$0xff] %v6528_v41  ;;  %v1813_v8 = vsel %vm1779_vm8, %v6528_v41, %v6526_v5  ;;  %v2375_v61 = vpack.c.bf16 %v1160_v16, %v1152_v44  ;;  %v11063_v16 = vld [vmem:[#allocation14_spill] sm:$0xff] }
 0x240   : > { %2701 = vmatpush.bf16.msra.mxu0 %v2391_v6  ;;  %v1852_v45 = vmul.f32 %v1820_v14, %v1813_v8 }
 0x242   : > { %1727 = vrot.lane.b32.xlu2 %v6531_v51, %s10762_s22 }
 0x243   : > { %1721 = vrot.lane.b32.xlu0 %v11049_v39, %s10762_s22 }
 0x244   : > { %v6539_v37 = vpop.permute.xlu2 %1711  ;;  %2702 = vmatpush.bf16.msra.mxu0 %v2383_v7  ;;  %1737 = vrot.lane.b32.xlu1 %v6554_v17, %s10762_s22 }
 0x245   : > { %v6558_v22 = vpop.permute.xlu0 %2212 }
 0x246   : > { %11060 = vst [vmem:[#allocation135_spill] sm:$0xff] %v6558_v22  ;;  %v6560_v36 = vpop.permute.xlu1 %1717  ;;  %v2320_v44 = vsel %vm2286_vm6, %v6558_v22, %v6502_v21 }
 0x247   : > { %v1814_v6 = vsel %vm1779_vm8, %v6418_v3, %v6560_v36 }
 0x248   : > { %v1860_v46 = vmul.f32 %v1820_v14, %v1814_v6  ;;  %2703 = vmatpush.bf16.msra.mxu0 %v2375_v61  ;;  %v2359_v6 = vmul.f32 %v6434_v25, %v2320_v44 }
 0x24a   : > { %2234 = vrot.lane.b32.xlu2 %v6531_v51, %s10760_s15  ;;  %v2487_v7 = vpack.c.bf16 %v1860_v46, %v1852_v45 }
 0x24b   : > { %1733 = vrot.lane.b32.xlu0 %v11062_v20, %s10762_s22 }
 0x24c   : > { %v6568_v38 = vpop.permute.xlu2 %2208  ;;  %2726 = vmatpush.bf16.msra.mxu1 %v2487_v7  ;;  %1723 = vrot.lane.b32.xlu1 %v11063_v16, %s10762_s22 }
 0x24d   : > { %11061 = vst [vmem:[#allocation136_spill] sm:$0xff] %v6568_v38  ;;  %v6578_v30 = vpop.permute.xlu0 %1701 }
 0x24e   : > { %11064 = vst [vmem:[#allocation17_spill] sm:$0xff] %v6578_v30  ;;  %v6580_v8 = vpop.permute.xlu1 %2220  ;;  %v1811_v22 = vsel %vm1779_vm8, %v6578_v30, %v6539_v37 }
 0x24f   : > { %v2319_v61 = vsel %vm2286_vm6, %v6462_v27, %v6580_v8 }
 0x250   : > { %v2351_v45 = vmul.f32 %v6434_v25, %v2319_v61 }
 0x252   : > { %1731 = vrot.lane.b32.xlu2 %v5624_v4, %s10762_s22  ;;  %v2543_v7 = vpack.c.bf16 %v2359_v6, %v2351_v45  ;;  %v1836_v6 = vmul.f32 %v1820_v14, %v1811_v22 }
 0x253   : > { %1719 = vrot.lane.b32.xlu0 %v5797_v10, %s10762_s22 }
 0x254   : > { %v6590_v46 = vpop.permute.xlu2 %1699  ;;  %2756 = vmatpush.bf16.msra.mxu2 %v2543_v7  ;;  %2230 = vrot.lane.b32.xlu1 %v11063_v16, %s10760_s15 }
 0x255   : > { %11065 = vst [vmem:[#allocation137_spill] sm:$0xff] %v6590_v46  ;;  %v6600_v27 = vpop.permute.xlu0 %1713 }
 0x256   : > { %v6602_v44 = vpop.permute.xlu1 %1703 }
 0x257   : > { %11066 = vst [vmem:[#allocation138_spill] sm:$0xff] %v6602_v44  ;;  %v1812_v61 = vsel %vm1779_vm8, %v6602_v44, %v6600_v27 }
 0x258   : > { %v1844_v45 = vmul.f32 %v1820_v14, %v1812_v61 }
 0x25a   : > { %2232 = vrot.lane.b32.xlu2 %v6522_v47, %s10760_s15  ;;  %v2479_v26 = vpack.c.bf16 %v1844_v45, %v1836_v6 }
 0x25b   : > { %2228 = vrot.lane.b32.xlu0 %v11049_v39, %s10760_s15 }
 0x25c   : > { %v6610_v7 = vpop.permute.xlu2 %2045  ;;  %2727 = vmatpush.bf16.msra.mxu1 %v2479_v26  ;;  %1729 = vrot.lane.b32.xlu1 %v11051_v50, %s10762_s22 }
 0x25d   : > { %11067 = vst [vmem:[#allocation139_spill] sm:$0xff] %v6610_v7  ;;  %v6616_v49 = vpop.permute.xlu0 %2216 }
 0x25e   : > { %v6618_v60 = vpop.permute.xlu1 %2206 }
 0x25f   : > { %11068 = vst [vmem:[#allocation140_spill] sm:$0xff] %v6618_v60  ;;  %v2317_v26 = vsel %vm2286_vm6, %v6618_v60, %v6616_v49 }
 0x260   : > { %v2335_v60 = vmul.f32 %v6434_v25, %v2317_v26 }
 0x262   : > { %2226 = vrot.lane.b32.xlu2 %v5797_v10, %s10760_s15 }
 0x263   : > { %2059 = vrot.lane.b32.xlu0 %v11049_v39, %s10766_s26 }
 0x264   : > { %v6622_v19 = vpop.permute.xlu2 %2039  ;;  %2063 = vrot.lane.b32.xlu1 %v6522_v47, %s10766_s26 }
 0x265   : > { %11069 = vst [vmem:[#allocation141_spill] sm:$0xff] %v6622_v19  ;;  %v6632_v22 = vpop.permute.xlu0 %1709 }
 0x266   : > { %v6634_v61 = vpop.permute.xlu1 %2218  ;;  %v1810_v6 = vsel %vm1779_vm8, %v6590_v46, %v6632_v22 }
 0x267   : > { %v2318_v45 = vsel %vm2286_vm6, %v6568_v38, %v6634_v61  ;;  %v1828_v30 = vmul.f32 %v1820_v14, %v1810_v6  ;;  %v2463_v14 = vpack.c.bf16 %v6398_v55, %v5637_v12 }
 0x268   : > { %v2343_v44 = vmul.f32 %v6434_v25, %v2318_v45 }
 0x269   : > { %v2471_v3 = vpack.c.bf16 %v1828_v30, %v6292_v9 }
 0x26a   : > { %2065 = vrot.lane.b32.xlu2 %v6531_v51, %s10766_s26  ;;  %v2535_v32 = vpack.c.bf16 %v2343_v44, %v2335_v60 }
 0x26b   : > { %1558 = vrot.lane.b32.xlu0 %v6531_v51, %s10764_s27  ;;  %2728 = vmatpush.bf16.msra.mxu1 %v2471_v3  ;;  %v11074_v3 = vld [vmem:[#allocation7_spill] sm:$0xff] }
 0x26c   : > { %v6648_v41 = vpop.permute.xlu2 %2051  ;;  %2061 = vrot.lane.b32.xlu1 %v11063_v16, %s10766_s26  ;;  %2757 = vmatpush.bf16.msra.mxu2 %v2535_v32  ;;  %v2455_v25 = vpack.c.bf16 %v11074_v3, %v5763_v11  ;;  %v2158_v32 = vperm.slane %v6383_v48, 7 }
 0x26d   : > { %11070 = vst [vmem:[#allocation142_spill] sm:$0xff] %v6648_v41  ;;  %v6655_v46 = vpop.permute.xlu0 %2053 }
 0x26e   : > { %11071 = vst [vmem:[#allocation143_spill] sm:$0xff] %v6655_v46  ;;  %v6657_v38 = vpop.permute.xlu1 %2043 }
 0x26f   : > { %11072 = vst [vmem:[#allocation144_spill] sm:$0xff] %v6657_v38  ;;  %2729 = vmatpush.bf16.msra.mxu1 %v2463_v14  ;;  %v2151_v12 = vsel %vm2117_vm9, %v6657_v38, %v6655_v46 }
 0x270   : > { %v2190_v48 = vmul.f32 %v2158_v32, %v2151_v12 }
 0x272   : > { %1556 = vrot.lane.b32.xlu2 %v6522_v47, %s10764_s27 }
 0x273   : > { %1554 = vrot.lane.b32.xlu0 %v11063_v16, %s10764_s27  ;;  %2730 = vmatpush.bf16.msra.mxu1 %v2455_v25 }
 0x274   : > { %v6663_v9 = vpop.permute.xlu2 %2037  ;;  %1896 = vrot.lane.b32.xlu1 %v6531_v51, %s10768_s25 }
 0x275   : > { %11073 = vst [vmem:[#allocation145_spill] sm:$0xff] %v6663_v9  ;;  %v6677_v55 = vpop.permute.xlu0 %2041 }
 0x276   : > { %11075 = vst [vmem:[#allocation7_spill] sm:$0xff] %v6677_v55  ;;  %v6679_v60 = vpop.permute.xlu1 %2055 }
 0x277   : > { %11076 = vst [vmem:[#allocation146_spill] sm:$0xff] %v6679_v60  ;;  %v2152_v11 = vsel %vm2117_vm9, %v6610_v7, %v6679_v60  ;;  %v11085_v7 = vld [vmem:[#allocation18_spill] sm:$0xff] }
 0x278   : > { %v2198_v30 = vmul.f32 %v2158_v32, %v2152_v11  ;;  %v11081_v11 = vld [vmem:[#allocation38_spill] sm:$0xff] }
 0x27a   : > { %2057 = vrot.lane.b32.xlu2 %v5797_v10, %s10766_s26  ;;  %v2527_v26 = vpack.c.bf16 %v2198_v30, %v2190_v48  ;;  %v2150_v10 = vsel %vm2117_vm9, %v6677_v55, %v6648_v41  ;;  %v6716_v30 = vld [vmem:[%s5419_s28 + $0x60] sm:$0xff] }
 0x27b   : > { %1560 = vrot.lane.b32.xlu0 %v11051_v50, %s10764_s27  ;;  %v2182_v3 = vmul.f32 %v2158_v32, %v2150_v10  ;;  %s9885_s27 = scalar_lea.vmem %s10580_s14, %s5407_s20 }
 0x27c   : > { %v6687_v44 = vpop.permute.xlu2 %1608  ;;  %2758 = vmatpush.bf16.msra.mxu2 %v2527_v26  ;;  %1892 = vrot.lane.b32.xlu1 %v11063_v16, %s10768_s25  ;;  %v6837_v16 = vld [vmem:[%s5753_s0 + $0x20] sm:$0xff] }
 0x27d   : > { %11077 = vst [vmem:[#allocation147_spill] sm:$0xff] %v6687_v44  ;;  %v6697_v6 = vpop.permute.xlu0 %1876 }
 0x27e   : > { %11078 = vst [vmem:[#allocation148_spill] sm:$0xff] %v6697_v6  ;;  %v6701_v45 = vpop.permute.xlu1 %2049 }
 0x27f   : > { %11079 = vst [vmem:[#allocation149_spill] sm:$0xff] %v6701_v45  ;;  %v2149_v50 = vsel %vm2117_vm9, %v6622_v19, %v6701_v45  ;;  %v11089_v19 = vld [vmem:[#allocation27_spill] sm:$0xff]  ;;  %v11102_v45 = vld [vmem:[#allocation85_spill] sm:$0xff] }
 0x280   : > { %v2174_v25 = vmul.f32 %v2158_v32, %v2149_v50  ;;  %v1469_v39 = vsel %vm1441_vm2, %v6116_v42, %v11102_v45  ;;  %v6852_v42 = vld [vmem:[%s5753_s0 + $0x18] sm:$0xff] }
 0x282   : > { %1894 = vrot.lane.b32.xlu2 %v6522_v47, %s10768_s25  ;;  %v2519_v12 = vpack.c.bf16 %v2182_v3, %v2174_v25 }
 0x283   : > { %1908 = vrot.lane.b32.xlu0 %v11081_v11, %s10768_s25 }
 0x284   : > { %v6707_v14 = vpop.permute.xlu2 %1882  ;;  %2244 = vrot.lane.b32.xlu1 %v6554_v17, %s10760_s15  ;;  %2759 = vmatpush.bf16.msra.mxu2 %v2519_v12 }
 0x285   : > { %11080 = vst [vmem:[#allocation150_spill] sm:$0xff] %v6707_v14  ;;  %v6713_v48 = vpop.permute.xlu0 %2047 }
 0x286   : > { %11082 = vst [vmem:[#allocation38_spill] sm:$0xff] %v6713_v48  ;;  %v2148_v26 = vsel %vm2117_vm9, %v6663_v9, %v6713_v48  ;;  %v6724_v10 = vpop.permute.xlu1 %1886  ;;  %v11101_v48 = vld [vmem:[#allocation89_spill] sm:$0xff] }
 0x287   : > { %11083 = vst [vmem:[#allocation151_spill] sm:$0xff] %v6724_v10  ;;  %v2166_v50 = vmul.f32 %v2158_v32, %v2148_v26  ;;  %v1983_v3 = vsel %vm1948_vm7, %v6697_v6, %v6724_v10  ;;  %v1650_v32 = vsel %vm1610_vm3, %v6687_v44, %v6336_v40  ;;  %v6744_v6 = vld [vmem:[%s5419_s28 + $0x20] sm:$0xff]  ;;  %v11100_v10 = vld [vmem:[#allocation91_spill] sm:$0xff] }
 0x288   : > { %v2029_v12 = vmul.f32 %v6470_v0, %v1983_v3  ;;  %v1470_v41 = vsel %vm1441_vm2, %v11101_v48, %v11100_v10 }
 0x28a   : > { %2254 = vrot.lane.b32.xlu2 %v6716_v30, %s10760_s15  ;;  %v2511_v11 = vpack.c.bf16 %v2166_v50, %v2029_v12 }
 0x28b   : > { %1747 = vrot.lane.b32.xlu0 %v6716_v30, %s10762_s22 }
 0x28c   : > { %v6730_v25 = vpop.permute.xlu2 %1604  ;;  %1910 = vrot.lane.b32.xlu1 %v11085_v7, %s10768_s25  ;;  %2760 = vmatpush.bf16.msra.mxu2 %v2511_v11  ;;  %v1691_v11 = vmul.f32 %v6391_v13, %v1650_v32  ;;  %s9558_s25 = scalar_lea.vmem %s10569_s3, %s5407_s20  ;;  %s4847_s20 = sshll.u32 %s5369_s17, 5 }
 0x28d   : > { %11084 = vst [vmem:[#allocation152_spill] sm:$0xff] %v6730_v25  ;;  %v6741_v26 = vpop.permute.xlu0 %1872  ;;  %s11715_s17 = sand.u32 1, %s5254_s30  }
 0x28e   : > { %11086 = vst [vmem:[#allocation153_spill] sm:$0xff] %v6741_v26  ;;  %v6748_v50 = vpop.permute.xlu1 %1606  ;;  %v1981_v38 = vsel %vm1948_vm7, %v6741_v26, %v6707_v14  ;;  %v6785_v26 = vld [vmem:[%s10576_s10 + $0x10] sm:$0xff] }
 0x28f   : > { %11087 = vst [vmem:[#allocation154_spill] sm:$0xff] %v6748_v50  ;;  %v1649_v3 = vsel %vm1610_vm3, %v6748_v50, %v6303_v34  ;;  %v1484_v14 = vperm.slane %v6785_v26, 2 }
 0x290   : > { %v1683_v55 = vmul.f32 %v6391_v13, %v1649_v3  ;;  %11092 = vst [vmem:[#allocation158_spill] sm:$0xff] %v6785_v26 }
 0x291   : > { %v1516_v48 = vmul.f32 %v1484_v14, %v1470_v41  ;;  %v1508_v41 = vmul.f32 %v1484_v14, %v1469_v39 }
 0x292   : > { %1745 = vrot.lane.b32.xlu2 %v6744_v6, %s10762_s22  ;;  %v2447_v9 = vpack.c.bf16 %v1691_v11, %v1683_v55 }
 0x293   : > { %2250 = vrot.lane.b32.xlu0 %v11089_v19, %s10760_s15 }
 0x294   : > { %v6754_v12 = vpop.permute.xlu2 %1898  ;;  %2240 = vrot.lane.b32.xlu1 %v11062_v20, %s10760_s15  ;;  %2731 = vmatpush.bf16.msra.mxu1 %v2447_v9  ;;  %v2013_v9 = vmul.f32 %v6470_v0, %v1981_v38  ;;  %v11095_v38 = vld [vmem:[#allocation114_spill] sm:$0xff] }
 0x295   : > { %11088 = vst [vmem:[#allocation155_spill] sm:$0xff] %v6754_v12  ;;  %v6766_v44 = vpop.permute.xlu0 %1884 }
 0x296   : > { %11090 = vst [vmem:[#allocation156_spill] sm:$0xff] %v6766_v44  ;;  %v6770_v32 = vpop.permute.xlu1 %1874 }
 0x297   : > { %11091 = vst [vmem:[#allocation157_spill] sm:$0xff] %v6770_v32  ;;  %v1982_v55 = vsel %vm1948_vm7, %v6770_v32, %v6766_v44  ;;  %v1636_v32 = vsel %vm1610_vm3, %v11093_v62, %v6405_v35  ;;  %v6805_v62 = vld [vmem:[%s10576_s10 + $0x48] ss:$0 sm:$0xff] }
 0x298   : > { %v2021_v11 = vmul.f32 %v6470_v0, %v1982_v55  ;;  %v6794_v0 = vperm.slane %v6785_v26, 3  ;;  %v1648_v55 = vsel %vm1610_vm3, %v6730_v25, %v11095_v38 }
 0x29a   : > { %2242 = vrot.lane.b32.xlu2 %v6513_v18, %s10760_s15  ;;  %v2503_v50 = vpack.c.bf16 %v2021_v11, %v2013_v9  ;;  %11094 = vst [vmem:[#allocation117_spill] sm:$0xff] %v6794_v0  ;;  %v11096_v11 = vld [vmem:[#allocation95_spill] sm:$0xff]  ;;  %v1661_v25 = vmul.f32 %v6794_v0, %v1636_v32 }
 0x29b   : > { %1743 = vrot.lane.b32.xlu0 %v11089_v19, %s10762_s22 }
 0x29c   : > { %v6776_v3 = vpop.permute.xlu2 %1727  ;;  %2252 = vrot.lane.b32.xlu1 %v6744_v6, %s10760_s15  ;;  %2761 = vmatpush.bf16.msra.mxu2 %v2503_v50  ;;  %v1471_v50 = vsel %vm1441_vm2, %v11097_v59, %v11096_v11  ;;  %v1675_v59 = vmul.f32 %v6391_v13, %v1648_v55  ;;  %v11104_v55 = vld [vmem:[#allocation82_spill] sm:$0xff] }
 0x29d   : > { %v1889_v9 = vpop.permute.xlu0 %1888  ;;  %v1524_v0 = vmul.f32 %v1484_v14, %v1471_v50  ;;  %v6846_v50 = vperm.slane %v6249_v2, 6 }
 0x29e   : > { %v6811_v52 = vpop.permute.xlu1 %1602 }
 0x29f   : > { %11098 = vst [vmem:[#allocation114_spill] sm:$0xff] %v6811_v52  ;;  %v1647_v35 = vsel %vm1610_vm3, %v6811_v52, %v6305_v57  ;;  %v2433_v10 = vpack.c.bf16 %v1661_v25, %v1524_v0  ;;  %v1974_v25 = vsel %vm1948_vm7, %v6374_v23, %v1889_v9 }
 0x2a0   : > { %v1667_v11 = vmul.f32 %v6391_v13, %v1647_v35  ;;  %v11103_v35 = vld [vmem:[#allocation92_spill] sm:$0xff] }
 0x2a2   : > { %1741 = vrot.lane.b32.xlu2 %v11085_v7, %s10762_s22  ;;  %v2439_v47 = vpack.c.bf16 %v1675_v59, %v1667_v11  ;;  %v1315_v59 = vperm.slane %v6785_v26, 1 }
 0x2a3   : > { %2246 = vrot.lane.b32.xlu0 %v6837_v16, %s10760_s15 }
 0x2a4   : > { %v6819_v44 = vpop.permute.xlu2 %2234  ;;  %2236 = vrot.lane.b32.xlu1 %v6852_v42, %s10760_s15  ;;  %2732 = vmatpush.bf16.msra.mxu1 %v2439_v47  ;;  %v11107_v47 = vld [vmem:[#allocation22_spill] sm:$0xff] }
 0x2a5   : > { %11099 = vst [vmem:[#allocation84_spill] sm:$0xff] %v6819_v44  ;;  %v2316_v32 = vsel %vm2286_vm6, %v6345_v33, %v6819_v44  ;;  %v1468_v33 = vsel %vm1441_vm2, %v11104_v55, %v11103_v35  ;;  %v6862_v0 = vpop.permute.xlu0 %1900  ;;  %v1301_v39 = vsel %vm1272_vm4, %v5830_v56, %v11107_v47  ;;  %v11108_v55 = vld [vmem:[#allocation40_spill] sm:$0xff]  ;;  %v2425_v47 = vpack.c.bf16 %v1516_v48, %v1508_v41 }
 0x2a6   : > { %v2368_v52 = vmul.f32 %v6805_v62, %v2316_v32  ;;  %v6849_v32 = vperm.slane %v6785_v26, 6  ;;  %11106 = vst [vmem:[#allocation82_spill] sm:$0xff] %v6862_v0  ;;  %v1302_v23 = vsel %vm1272_vm4, %v5828_v31, %v11108_v55  ;;  %v1891_v44 = vpop.permute.xlu1 %1890  ;;  %v1998_v31 = vmul.f32 %v6846_v50, %v1974_v25 }
 0x2a7   : > { %v1970_v35 = vsel %vm1948_vm7, %v1891_v44, %v6862_v0  ;;  %v1975_v56 = vsel %vm1948_vm7, %v6485_v58, %v1891_v44  ;;  %v1347_v0 = vmul.f32 %v1315_v59, %v1301_v39  ;;  %v1355_v60 = vmul.f32 %v1315_v59, %v1302_v23  ;;  %v11111_v44 = vld [vmem:[#allocation50_spill] sm:$0xff] }
 0x2a8   : > { %v2552_v13 = vpack.c.bf16 %v2368_v52, %v2368_v52  ;;  %11105 = vst [vmem:[#allocation89_spill] sm:$0xff] %v6849_v32  ;;  %v1969_v52 = vsel %vm1948_vm7, %v1889_v9, %v6754_v12  ;;  %2870 = vmatpush.bf16.msrb.mxu1 %v2433_v10  ;;  %v11109_v10 = vld [vmem:[#allocation88_spill] sm:$0xff]  ;;  %v11110_v9 = vld [vmem:[#allocation86_spill] sm:$0xff]  ;;  %v1300_v48 = vsel %vm1272_vm4, %v5918_v43, %v11111_v44  ;;  %v6899_v41 = vperm.slane %v6249_v2, 5 }
 0x2a9   : > { %v1467_v12 = vsel %vm1441_vm2, %v11110_v9, %v11109_v10  ;;  %v1999_v55 = vmul.f32 %v6849_v32, %v1969_v52  ;;  %v2006_v9 = vmul.f32 %v6846_v50, %v1975_v56  ;;  %v1339_v25 = vmul.f32 %v1315_v59, %v1300_v48 }
 0x2aa   : > { %2238 = vrot.lane.b32.xlu2 %v5624_v4, %s10760_s15  ;;  %v2676_v11 = vsel %vm933_vm1, %v2552_v13, 0  ;;  %v1500_v13 = vmul.f32 %v1484_v14, %v1468_v33  ;;  %v1492_v33 = vmul.f32 %v1484_v14, %v1467_v12  ;;  %v1809_v14 = vsel %vm1779_vm8, %v6560_v36, %v6776_v3 }
 0x2ab   : > { %2842 = vmatpush.bf16.msrb.mxu0 %v2676_v11  ;;  %v2007_v11 = vmul.f32 %v6849_v32, %v1970_v35  ;;  %v2496_v10 = vpack.c.bf16 %v2006_v9, %v1998_v31  ;;  %2073 = vrot.lane.b32.xlu0 %v6513_v18, %s10766_s26  ;;  %v11112_v35 = vld [vmem:[#allocation48_spill] sm:$0xff]  ;;  %v2409_v39 = vpack.c.bf16 %v1355_v60, %v1347_v0  ;;  %v1146_v31 = vperm.slane %v6785_v26, 0  ;;  %v11174_v32 = vld [vmem:[#allocation98_spill] sm:$0xff] }
 0x2ac   : > { %v6886_v45 = vpop.permute.xlu2 %1731  ;;  %2871 = vmatpush.bf16.msrb.mxu1 %v2425_v47  ;;  %v2417_v58 = vpack.c.bf16 %v1500_v13, %v1492_v33  ;;  %2248 = vrot.lane.b32.xlu1 %v11085_v7, %s10760_s15  ;;  %v1299_v43 = vsel %vm1272_vm4, %v5900_v1, %v11112_v35  ;;  %v1861_v23 = vmul.f32 %v6899_v41, %v1809_v14  ;;  %v11115_v13 = vld [vmem:[#allocation8_spill] sm:$0xff]  ;;  %v11116_v33 = vld [vmem:[#allocation51_spill] sm:$0xff]  ;;  %v6948_v48 = vperm.slane %v6785_v26, 5  ;;  %s11124_s15 = smov 97  }
 0x2ad   : > { %v2497_v46 = vpack.c.bf16 %v2007_v11, %v1999_v55  ;;  %2812 = vmatpush.bf16.msrb.mxu2 %v2496_v10  ;;  %v6907_v12 = vpop.permute.xlu0 %1735  ;;  %v4704_v10 = vld [vmem:[%s10574_s8 + $0x8] sm:$0xf]  ;;  %v1331_v60 = vmul.f32 %v1315_v59, %v1299_v43 }
 0x2ae   : > { %v1726_v52 = vpop.permute.xlu1 %1725  ;;  %v11117_v43 = vld [vmem:[#allocation15_spill] sm:$0xff] }
 0x2af   : > { %2899 = vmatpush.bf16.msrb.mxu3 %v2497_v46  ;;  %v1808_v47 = vsel %vm1779_vm8, %v6526_v5, %v1726_v52  ;;  %v11113_v46 = vld [vmem:[#allocation71_spill] sm:$0xff]  ;;  %v4837_v5 = vld [vmem:[%s10574_s8 + $0x10] sm:$0xf0]  ;;  %v2401_v11 = vpack.c.bf16 %v1339_v25, %v1331_v60  ;;  %v1132_v25 = vsel %vm1103_vm5, %v5596_v54, %v11117_v43 }
 0x2b0   : > { %2872 = vmatpush.bf16.msrb.mxu1 %v2417_v58  ;;  %v1298_v55 = vsel %vm1272_vm4, %v6032_v29, %v11113_v46  ;;  %v1853_v1 = vmul.f32 %v6899_v41, %v1808_v47  ;;  %v6932_v0 = vor.u32 %v4837_v5, %v4704_v10  ;;  %v1133_v29 = vsel %vm1103_vm5, %v5673_v28, %v11115_v13  ;;  %v4696_v5 = vld [vmem:[%s10574_s8] sm:$0xf] }
 0x2b1   : > { %v1323_v9 = vmul.f32 %v1315_v59, %v1298_v55  ;;  %v1131_v58 = vsel %vm1103_vm5, %v5924_v63, %v11116_v33  ;;  %v1186_v28 = vmul.f32 %v1146_v31, %v1133_v29  ;;  %v1803_v59 = vsel %vm1779_vm8, %v1726_v52, %v6907_v12 }
 0x2b2   : > { %1739 = vrot.lane.b32.xlu2 %v6837_v16, %s10762_s22  ;;  %11114 = vst [vmem:[#allocation86_spill] sm:$0xff] %v6932_v0  ;;  %v2488_v56 = vpack.c.bf16 %v1861_v23, %v1853_v1  ;;  %4742 = vmatmul.msk.bf16.vlgmr.msra.gmra.mxu2 %vm2659_vm10, %v6932_v0  ;;  %v1170_v47 = vmul.f32 %v1146_v31, %v1131_v58  ;;  %v11118_v23 = vld [vmem:[#allocation76_spill] sm:$0xff]  ;;  %s11125_s22 = smov 96  }
 0x2b3   : > { %2085 = vrot.lane.b32.xlu0 %v6716_v30, %s10766_s26  ;;  %v2393_v55 = vpack.c.bf16 %v1323_v9, %v1186_v28  ;;  %v1129_v1 = vsel %vm1103_vm5, %v6002_v15, %v11118_v23  ;;  %v1854_v54 = vmul.f32 %v6948_v48, %v1803_v59  ;;  %v1178_v60 = vmul.f32 %v1146_v31, %v1132_v25 }
 0x2b4   : > { %v6918_v36 = vpop.permute.xlu2 %2232  ;;  %2873 = vmatpush.bf16.msrb.mxu1 %v2409_v39  ;;  %2075 = vrot.lane.b32.xlu1 %v6554_v17, %s10766_s26 }
 0x2b5   : > { %2813 = vmatpush.bf16.msrb.mxu2 %v2488_v56  ;;  %v1722_v14 = vpop.permute.xlu0 %1721  ;;  %v11120_v56 = vld [vmem:[#allocation43_spill] sm:$0xff]  ;;  %v2385_v58 = vpack.c.bf16 %v1178_v60, %v1170_v47 }
 0x2b6   : > { %v6959_v63 = vpop.permute.xlu1 %1737  ;;  %v1130_v15 = vsel %vm1103_vm5, %v5902_v53, %v11120_v56  ;;  %v1801_v59 = vsel %vm1779_vm8, %v1722_v14, %v6886_v45  ;;  %v1806_v53 = vsel %vm1779_vm8, %v6539_v37, %v1722_v14 }
 0x2b7   : > { %v1804_v39 = vsel %vm1779_vm8, %v6776_v3, %v6959_v63  ;;  %v4836_v3 = vld [vmem:[%s10574_s8 + $0x8] sm:$0xf0]  ;;  %v1162_v28 = vmul.f32 %v1146_v31, %v1130_v15  ;;  %v1837_v37 = vmul.f32 %v6899_v41, %v1806_v53  ;;  %v1838_v14 = vmul.f32 %v6948_v48, %v1801_v59 }
 0x2b8   : > { %2874 = vmatpush.bf16.msrb.mxu1 %v2401_v11  ;;  %v1862_v10 = vmul.f32 %v6948_v48, %v1804_v39  ;;  %v6981_v29 = vor.u32 %v4836_v3, %v4696_v5  ;;  %v1154_v11 = vmul.f32 %v1146_v31, %v1129_v1  ;;  %v4835_v5 = vld [vmem:[%s10574_s8 + $0x4] sm:$0xf]  ;;  %v4698_v3 = vld [vmem:[%s10574_s8 + $0xc] sm:$0xf0]  ;;  %v4840_v15 = vld [vmem:[%s10574_s8 + $0x28] sm:$0xf0] }
 0x2b9   : > { %v7024_v60 = vor.u32 %v4835_v5, %v4698_v3 }
 0x2ba   : > { %2083 = vrot.lane.b32.xlu2 %v6744_v6, %s10766_s26  ;;  %11119 = vst [vmem:[#allocation50_spill] sm:$0xff] %v6981_v29  ;;  %v2489_v9 = vpack.c.bf16 %v1862_v10, %v1854_v54  ;;  %2791 = vmatmul.bf16.vlgmr.msra.gmra.mxu3 %v6981_v29 }
 0x2bb   : > { %2079 = vrot.lane.b32.xlu0 %v11085_v7, %s10766_s26  ;;  %2704 = vmatmul.bf16.vlgmr.msra.gmra.mxu0 %v6981_v29  ;;  %11122 = vst [vmem:[#allocation71_spill] sm:$0xff] %v7024_v60 }
 0x2bc   : > { %v6967_v52 = vpop.permute.xlu2 %2226  ;;  %2875 = vmatpush.bf16.msrb.mxu1 %v2393_v55  ;;  %2069 = vrot.lane.b32.xlu1 %v5624_v4, %s10766_s26  ;;  %v2377_v55 = vpack.c.bf16 %v1162_v28, %v1154_v11  ;;  %v2315_v28 = vsel %vm2286_vm6, %v6502_v21, %v6918_v36 }
 0x2bd   : > { %2900 = vmatpush.bf16.msrb.mxu3 %v2489_v9  ;;  %v6998_v25 = vpop.permute.xlu0 %1733  ;;  %2733 = vmatmul.bf16.vlgmr.msra.gmra.mxu1 %v7024_v60 }
 0x2be   : > { %v1724_v47 = vpop.permute.xlu1 %1723 }
 0x2bf   : > { %v1802_v31 = vsel %vm1779_vm8, %v1724_v47, %v6998_v25  ;;  %v1807_v39 = vsel %vm1779_vm8, %v6600_v27, %v1724_v47  ;;  %v4716_v27 = vld [vmem:[%s10574_s8 + $0x20] sm:$0xf] }
 0x2c0   : > { %2876 = vmatpush.bf16.msrb.mxu1 %v2385_v58  ;;  %v1845_v54 = vmul.f32 %v6899_v41, %v1807_v39  ;;  %v1846_v10 = vmul.f32 %v6948_v48, %v1802_v31  ;;  %v7029_v58 = vor.u32 %v4840_v15, %v4716_v27  ;;  %v11130_v27 = vld [vmem:[#allocation12_spill] sm:$0xff]  ;;  %v11131_v15 = vld [vmem:[#allocation126_spill] sm:$0xff] }
 0x2c2   : > { %2071 = vrot.lane.b32.xlu2 %v11062_v20, %s10766_s26  ;;  %v2480_v9 = vpack.c.bf16 %v1845_v54, %v1837_v37  ;;  %v2481_v11 = vpack.c.bf16 %v1846_v10, %v1838_v14  ;;  %11123 = vst [vmem:[#allocation8_spill] sm:$0xff] %v7029_v58  ;;  %4743 = vmatmul.msk.bf16.gmra.mxu2 %vm2659_vm10, %v7029_v58  ;;  %v4839_v14 = vld [vmem:[%s10574_s8 + $0x20] sm:$0xf0] }
 0x2c3   : > { %1916 = vrot.lane.b32.xlu0 %v6716_v30, %s11124_s15 }
 0x2c4   : > { %v7009_v1 = vpop.permute.xlu2 %2065  ;;  %2877 = vmatpush.bf16.msrb.mxu1 %v2377_v55  ;;  %2081 = vrot.lane.b32.xlu1 %v11089_v19, %s11125_s22  ;;  %v2360_v55 = vmul.f32 %v6805_v62, %v2315_v28 }
 0x2c5   : > { %11121 = vst [vmem:[#allocation48_spill] sm:$0xff] %v7009_v1  ;;  %2814 = vmatpush.bf16.msrb.mxu2 %v2480_v9  ;;  %2901 = vmatpush.bf16.msrb.mxu3 %v2481_v11  ;;  %v1720_v59 = vpop.permute.xlu0 %1719  ;;  %v2464_v9 = vpack.c.bf16 %v11131_v15, %v11130_v27  ;;  %v11132_v11 = vld [vmem:[#allocation124_spill] sm:$0xff]  ;;  %v4710_v27 = vld [vmem:[%s10574_s8 + $0x24] sm:$0xf0]  ;;  %v11137_v15 = vld [vmem:[#allocation125_spill] sm:$0xff] }
 0x2c6   : > { %v1805_v53 = vsel %vm1779_vm8, %v6632_v22, %v1720_v59  ;;  %v7045_v47 = vpop.permute.xlu1 %2230  ;;  %v4708_v22 = vld [vmem:[%s10574_s8 + $0x18] sm:$0xf]  ;;  %v1645_v28 = vsel %vm1610_vm3, %v6336_v40, %v11132_v11 }
 0x2c7   : > { %v1829_v31 = vmul.f32 %v6899_v41, %v1805_v53  ;;  %v2314_v21 = vsel %vm2286_vm6, %v6580_v8, %v7045_v47  ;;  %v11127_v41 = vld [vmem:[#allocation122_spill] sm:$0xff]  ;;  %v7065_v10 = vor.u32 %v4839_v14, %v4708_v22  ;;  %v2312_v8 = vsel %vm2286_vm6, %v6616_v49, %v6967_v52 }
 0x2c8   : > { %v2352_v37 = vmul.f32 %v6805_v62, %v2314_v21  ;;  %v11135_v14 = vld [vmem:[#allocation118_spill] sm:$0xff] }
 0x2c9   : > { %v2472_v54 = vpack.c.bf16 %v1829_v31, %v11127_v41  ;;  %11128 = vst [vmem:[#allocation15_spill] sm:$0xff] %v7065_v10  ;;  %v2336_v31 = vmul.f32 %v6805_v62, %v2312_v8  ;;  %v1692_v41 = vmul.f32 %v11135_v14, %v1645_v28  ;;  %v4728_v28 = vld [vmem:[%s10574_s8 + $0x38] sm:$0xf] }
 0x2ca   : > { %1906 = vrot.lane.b32.xlu2 %v6554_v17, %s11124_s15  ;;  %v2544_v5 = vpack.c.bf16 %v2360_v55, %v2352_v37  ;;  %2796 = vmatmul.bf16.gmra.mxu3 %v7065_v10  ;;  %v11134_v37 = vld [vmem:[#allocation120_spill] sm:$0xff] }
 0x2cb   : > { %1566 = vrot.lane.b32.xlu0 %v6513_v18, %s11129_s18  ;;  %2815 = vmatpush.bf16.msrb.mxu2 %v2472_v54  ;;  %v5175_v54 = vld [vmem:[%s5753_s0 + $0x8] sm:$0xff] }
 0x2cc   : > { %v7054_v39 = vpop.permute.xlu2 %1556  ;;  %2067 = vrot.lane.b32.xlu1 %v6852_v42, %s11125_s22  ;;  %2843 = vmatpush.bf16.msrb.mxu0 %v2544_v5  ;;  %v11136_v5 = vld [vmem:[#allocation9_spill] sm:$0xff] }
 0x2cd   : > { %11126 = vst [vmem:[#allocation51_spill] sm:$0xff] %v7054_v39  ;;  %v7075_v3 = vpop.permute.xlu0 %2228  ;;  %2709 = vmatmul.bf16.gmra.mxu0 %v7065_v10  ;;  %v2456_v8 = vpack.c.bf16 %v11136_v5, %v5175_v54 }
 0x2ce   : > { %v2313_v49 = vsel %vm2286_vm6, %v6634_v61, %v7075_v3  ;;  %v7089_v53 = vpop.permute.xlu1 %1729  ;;  %v1644_v61 = vsel %vm1610_vm3, %v6303_v34, %v11134_v37  ;;  %v1643_v34 = vsel %vm1610_vm3, %v11095_v38, %v11137_v15  ;;  %v11140_v38 = vld [vmem:[#allocation123_spill] sm:$0xff] }
 0x2cf   : > { %v2344_v21 = vmul.f32 %v6805_v62, %v2313_v49  ;;  %v1800_v55 = vsel %vm1779_vm8, %v1720_v59, %v7089_v53  ;;  %2816 = vmatpush.bf16.msrb.mxu2 %v2464_v9  ;;  %v4838_v59 = vld [vmem:[%s10574_s8 + $0x1c] sm:$0xf]  ;;  %v4843_v49 = vld [vmem:[%s10574_s8 + $0x40] sm:$0xf0] }
 0x2d0   : > { %v1830_v22 = vmul.f32 %v6948_v48, %v1800_v55  ;;  %v7119_v9 = vor.u32 %v4838_v59, %v4710_v27  ;;  %v7137_v55 = vperm.slane %v6249_v2, 7 }
 0x2d1   : > { %v2536_v62 = vpack.c.bf16 %v2344_v21, %v2336_v31  ;;  %v1684_v31 = vmul.f32 %v11135_v14, %v1644_v61  ;;  %v7130_v21 = vor.u32 %v4843_v49, %v4728_v28  ;;  %v1676_v61 = vmul.f32 %v11135_v14, %v1643_v34 }
 0x2d2   : > { %2077 = vrot.lane.b32.xlu2 %v6837_v16, %s11125_s22  ;;  %v2473_v48 = vpack.c.bf16 %v1830_v22, %v6531_v51  ;;  %11138 = vst [vmem:[#allocation43_spill] sm:$0xff] %v7119_v9  ;;  %v1642_v51 = vsel %vm1610_vm3, %v6305_v57, %v11140_v38  ;;  %v11141_v22 = vld [vmem:[#allocation146_spill] sm:$0xff]  ;;  %2738 = vmatmul.bf16.gmra.mxu1 %v7119_v9 }
 0x2d3   : > { %1904 = vrot.lane.b32.xlu0 %v6513_v18, %s11124_s15  ;;  %2817 = vmatpush.bf16.msrb.mxu2 %v2456_v8  ;;  %11139 = vst [vmem:[#allocation122_spill] sm:$0xff] %v7130_v21  ;;  %v2147_v18 = vsel %vm2117_vm9, %v11141_v22, %v7009_v1  ;;  %v2448_v5 = vpack.c.bf16 %v1692_v41, %v1684_v31  ;;  %v11145_v41 = vld [vmem:[#allocation14_spill] sm:$0xff]  ;;  %v4842_v31 = vld [vmem:[%s10574_s8 + $0x38] sm:$0xf0]  ;;  %v11148_v22 = vld [vmem:[#allocation11_spill] sm:$0xff] }
 0x2d4   : > { %v7098_v40 = vpop.permute.xlu2 %2057  ;;  %1568 = vrot.lane.b32.xlu1 %v6554_v17, %s11129_s18  ;;  %2844 = vmatpush.bf16.msrb.mxu0 %v2536_v62  ;;  %v1668_v2 = vmul.f32 %v11135_v14, %v1642_v51  ;;  %v11144_v17 = vld [vmem:[#allocation143_spill] sm:$0xff]  ;;  %v11146_v62 = vld [vmem:[#allocation33_spill] sm:$0xff]  ;;  %v2199_v34 = vmul.f32 %v7137_v55, %v2147_v18  ;;  %v4720_v14 = vld [vmem:[%s10574_s8 + $0x30] sm:$0xf] }
 0x2d5   : > { %11133 = vst [vmem:[#allocation76_spill] sm:$0xff] %v7098_v40  ;;  %2902 = vmatpush.bf16.msrb.mxu3 %v2473_v48  ;;  %v7146_v54 = vpop.permute.xlu0 %2059  ;;  %4744 = vmatmul.msk.bf16.gmra.mxu2 %vm2659_vm10, %v7130_v21  ;;  %v2465_v59 = vpack.c.bf16 %v11146_v62, %v11145_v41  ;;  %v5176_v51 = vld [vmem:[%s5753_s0 + $0x10] sm:$0xff]  ;;  %v11153_v62 = vld [vmem:[#allocation117_spill] sm:$0xff]  ;;  %v11189_v21 = vld [vmem:[#allocation54_spill] sm:$0xff] }
 0x2d6   : > { %11142 = vst [vmem:[#allocation12_spill] sm:$0xff] %v7146_v54  ;;  %v7149_v57 = vpop.permute.xlu1 %2063  ;;  %v2440_v28 = vpack.c.bf16 %v1676_v61, %v1668_v2  ;;  %v2457_v18 = vpack.c.bf16 %v11148_v22, %v5176_v51  ;;  %v1639_v61 = vsel %vm1610_vm3, %v11134_v37, %v7054_v39  ;;  %v11150_v2 = vld [vmem:[#allocation149_spill] sm:$0xff]  ;;  %v4841_v22 = vld [vmem:[%s10574_s8 + $0x34] sm:$0xf] }
 0x2d7   : > { %11143 = vst [vmem:[#allocation126_spill] sm:$0xff] %v7149_v57  ;;  %v2146_v8 = vsel %vm2117_vm9, %v11144_v17, %v7149_v57  ;;  %2818 = vmatpush.bf16.msrb.mxu2 %v2448_v5  ;;  %v7176_v5 = vor.u32 %v4842_v31, %v4720_v14  ;;  %v2144_v17 = vsel %vm2117_vm9, %v11150_v2, %v7146_v54  ;;  %v7220_v2 = vld [vmem:[%s5753_s0 + $0x28] sm:$0xff] }
 0x2d8   : > { %v2191_v48 = vmul.f32 %v7137_v55, %v2146_v8  ;;  %v7340_v54 = vld [vmem:[%s5419_s28 + $0x68] sm:$0xff] }
 0x2d9   : > { %2903 = vmatpush.bf16.msrb.mxu3 %v2465_v59  ;;  %11149 = vst [vmem:[#allocation120_spill] sm:$0xff] %v7176_v5  ;;  %v1685_v59 = vmul.f32 %v11153_v62, %v1639_v61  ;;  %v4740_v61 = vld [vmem:[%s10574_s8 + $0x50] sm:$0xf] }
 0x2da   : > { %1902 = vrot.lane.b32.xlu2 %v11062_v20, %s11124_s15  ;;  %v2528_v49 = vpack.c.bf16 %v2199_v34, %v2191_v48  ;;  %2801 = vmatmul.bf16.gmra.mxu3 %v7176_v5  ;;  %v11154_v48 = vld [vmem:[#allocation142_spill] sm:$0xff] }
 0x2db   : > { %1562 = vrot.lane.b32.xlu0 %v5624_v4, %s11129_s18  ;;  %2819 = vmatpush.bf16.msrb.mxu2 %v2440_v28 }
 0x2dc   : > { %v7162_v27 = vpop.permute.xlu2 %1894  ;;  %1912 = vrot.lane.b32.xlu1 %v11089_v19, %s11124_s15  ;;  %2845 = vmatpush.bf16.msrb.mxu0 %v2528_v49 }
 0x2dd   : > { %11147 = vst [vmem:[#allocation124_spill] sm:$0xff] %v7162_v27  ;;  %2904 = vmatpush.bf16.msrb.mxu3 %v2457_v18  ;;  %v7188_v8 = vpop.permute.xlu0 %1558  ;;  %2714 = vmatmul.bf16.gmra.mxu0 %v7176_v5  ;;  %v4722_v18 = vld [vmem:[%s10574_s8 + $0x3c] sm:$0xf0] }
 0x2de   : > { %11151 = vst [vmem:[#allocation118_spill] sm:$0xff] %v7188_v8  ;;  %v1640_v37 = vsel %vm1610_vm3, %v11132_v11, %v7188_v8  ;;  %v7195_v41 = vpop.permute.xlu1 %2061  ;;  %v2175_v11 = vmul.f32 %v7137_v55, %v2144_v17  ;;  %v7224_v17 = vor.u32 %v4841_v22, %v4722_v18  ;;  %v11162_v18 = vld [vmem:[#allocation151_spill] sm:$0xff] }
 0x2df   : > { %11152 = vst [vmem:[#allocation9_spill] sm:$0xff] %v7195_v41  ;;  %v1693_v34 = vmul.f32 %v11153_v62, %v1640_v37  ;;  %v2145_v28 = vsel %vm2117_vm9, %v11154_v48, %v7195_v41  ;;  %v4846_v37 = vld [vmem:[%s10574_s8 + $0x58] sm:$0xf0]  ;;  %v11186_v41 = vld [vmem:[#allocation88_spill] sm:$0xff] }
 0x2e0   : > { %v2183_v14 = vmul.f32 %v7137_v55, %v2145_v28  ;;  %11156 = vst [vmem:[#allocation123_spill] sm:$0xff] %v7224_v17  ;;  %v7235_v48 = vor.u32 %v4846_v37, %v4740_v61  ;;  %v11159_v28 = vld [vmem:[#allocation38_spill] sm:$0xff] }
 0x2e1   : > { %v2449_v31 = vpack.c.bf16 %v1693_v34, %v1685_v59  ;;  %v11157_v59 = vld [vmem:[#allocation121_spill] sm:$0xff] }
 0x2e2   : > { %1914 = vrot.lane.b32.xlu2 %v6744_v6, %s11124_s15  ;;  %v2520_v51 = vpack.c.bf16 %v2183_v14, %v2175_v11  ;;  %v1637_v34 = vsel %vm1610_vm3, %v11140_v38, %v11157_v59  ;;  %11158 = vst [vmem:[#allocation146_spill] sm:$0xff] %v7235_v48  ;;  %v2143_v11 = vsel %vm2117_vm9, %v11159_v28, %v7098_v40  ;;  %v11167_v59 = vld [vmem:[#allocation95_spill] sm:$0xff] }
 0x2e3   : > { %1580 = vrot.lane.b32.xlu0 %v7220_v2, %s11129_s18  ;;  %2905 = vmatpush.bf16.msrb.mxu3 %v2449_v31 }
 0x2e4   : > { %v7206_v49 = vpop.permute.xlu2 %2254  ;;  %1564 = vrot.lane.b32.xlu1 %v11062_v20, %s11129_s18  ;;  %2846 = vmatpush.bf16.msrb.mxu0 %v2520_v51  ;;  %v1669_v51 = vmul.f32 %v11153_v62, %v1637_v34  ;;  %v4845_v34 = vld [vmem:[%s10574_s8 + $0x50] sm:$0xf0] }
 0x2e5   : > { %11155 = vst [vmem:[#allocation125_spill] sm:$0xff] %v7206_v49  ;;  %v7241_v14 = vpop.permute.xlu0 %1554  ;;  %2743 = vmatmul.bf16.gmra.mxu1 %v7224_v17  ;;  %4745 = vmatmul.msk.bf16.gmra.mxu2 %vm2659_vm10, %v7235_v48 }
 0x2e6   : > { %11160 = vst [vmem:[#allocation143_spill] sm:$0xff] %v7241_v14  ;;  %v1638_v38 = vsel %vm1610_vm3, %v11137_v15, %v7241_v14  ;;  %v7248_v31 = vpop.permute.xlu1 %1896  ;;  %v2167_v15 = vmul.f32 %v7137_v55, %v2143_v11  ;;  %v7278_v55 = vld [vmem:[%s5419_s28 + $0x28] sm:$0xff] }
 0x2e7   : > { %11161 = vst [vmem:[#allocation14_spill] sm:$0xff] %v7248_v31  ;;  %v1677_v22 = vmul.f32 %v11153_v62, %v1638_v38  ;;  %v1978_v61 = vsel %vm1948_vm7, %v11162_v18, %v7248_v31  ;;  %v7273_v38 = vld [vmem:[%s10576_s10 + $0x18] sm:$0xff] }
 0x2e8   : > { %v2030_v28 = vmul.f32 %v6846_v50, %v1978_v61  ;;  %v7283_v11 = vperm.slane %v7273_v38, 3  ;;  %v11166_v61 = vld [vmem:[#allocation97_spill] sm:$0xff] }
 0x2e9   : > { %v2441_v62 = vpack.c.bf16 %v1677_v22, %v1669_v51  ;;  %v1466_v51 = vsel %vm1441_vm2, %v11167_v59, %v11166_v61  ;;  %v1485_v22 = vperm.slane %v7273_v38, 2 }
 0x2ea   : > { %1570 = vrot.lane.b32.xlu2 %v6837_v16, %s11129_s18  ;;  %v4732_v16 = vld [vmem:[%s10574_s8 + $0x48] sm:$0xf]  ;;  %v2512_v18 = vpack.c.bf16 %v2167_v15, %v2030_v28  ;;  %11165 = vst [vmem:[#allocation11_spill] sm:$0xff] %v7283_v11  ;;  %v11168_v15 = vld [vmem:[#allocation156_spill] sm:$0xff] }
 0x2eb   : > { %v7275_v14 = vor.u32 %v4845_v34, %v4732_v16  ;;  %1755 = vrot.lane.b32.xlu0 %v7278_v55, %s11164_s2  ;;  %2906 = vmatpush.bf16.msrb.mxu3 %v2441_v62  ;;  %v1977_v28 = vsel %vm1948_vm7, %v11168_v15, %v7162_v27  ;;  %v11170_v34 = vld [vmem:[#allocation128_spill] sm:$0xff]  ;;  %v1525_v8 = vmul.f32 %v1485_v22, %v1466_v51  ;;  %v11173_v27 = vld [vmem:[#allocation150_spill] sm:$0xff]  ;;  %v4844_v51 = vld [vmem:[%s10574_s8 + $0x4c] sm:$0xf] }
 0x2ec   : > { %v7260_v37 = vpop.permute.xlu2 %1745  ;;  %1918 = vrot.lane.b32.xlu1 %v7220_v2, %s11124_s15  ;;  %2847 = vmatpush.bf16.msrb.mxu0 %v2512_v18  ;;  %v11172_v18 = vld [vmem:[#allocation23_spill] sm:$0xff]  ;;  %v2022_v40 = vmul.f32 %v6846_v50, %v1977_v28 }
 0x2ed   : > { %11163 = vst [vmem:[#allocation33_spill] sm:$0xff] %v7275_v14  ;;  %v7296_v16 = vpop.permute.xlu0 %1560  ;;  %2719 = vmatmul.bf16.gmra.mxu0 %v7275_v14  ;;  %2806 = vmatmul.bf16.gmra.mxu3 %v7275_v14  ;;  %v11178_v14 = vld [vmem:[#allocation91_spill] sm:$0xff] }
 0x2ee   : > { %11169 = vst [vmem:[#allocation149_spill] sm:$0xff] %v7296_v16  ;;  %v1631_v59 = vsel %vm1610_vm3, %v11170_v34, %v7296_v16  ;;  %v7303_v62 = vpop.permute.xlu1 %1892  ;;  %v11175_v34 = vld [vmem:[#allocation85_spill] sm:$0xff] }
 0x2ef   : > { %11171 = vst [vmem:[#allocation117_spill] sm:$0xff] %v7303_v62  ;;  %v1662_v15 = vmul.f32 %v7283_v11, %v1631_v59  ;;  %v1976_v39 = vsel %vm1948_vm7, %v11173_v27, %v7303_v62  ;;  %v1464_v16 = vsel %vm1441_vm2, %v11175_v34, %v11174_v32  ;;  %v4734_v59 = vld [vmem:[%s10574_s8 + $0x54] sm:$0xf0]  ;;  %v11177_v62 = vld [vmem:[#allocation90_spill] sm:$0xff] }
 0x2f0   : > { %v2014_v31 = vmul.f32 %v6846_v50, %v1976_v39  ;;  %v7327_v11 = vor.u32 %v4844_v51, %v4734_v59  ;;  %v1465_v34 = vsel %vm1441_vm2, %v11178_v14, %v11177_v62  ;;  %v1509_v28 = vmul.f32 %v1485_v22, %v1464_v16  ;;  %v11179_v50 = vld [vmem:[#allocation94_spill] sm:$0xff]  ;;  %v11180_v39 = vld [vmem:[#allocation92_spill] sm:$0xff]  ;;  %v11185_v62 = vld [vmem:[#allocation87_spill] sm:$0xff] }
 0x2f1   : > { %v2434_v27 = vpack.c.bf16 %v1662_v15, %v1525_v8  ;;  %v1463_v48 = vsel %vm1441_vm2, %v11180_v39, %v11179_v50  ;;  %v7347_v8 = vld [vmem:[%s10576_s10 + $0x50] ss:$0 sm:$0xff]  ;;  %v1517_v14 = vmul.f32 %v1485_v22, %v1465_v34  ;;  %v1316_v16 = vperm.slane %v7273_v38, 1  ;;  %v11181_v15 = vld [vmem:[#allocation39_spill] sm:$0xff] }
 0x2f2   : > { %1920 = vrot.lane.b32.xlu2 %v11172_v18, %s11124_s15  ;;  %11176 = vst [vmem:[#allocation142_spill] sm:$0xff] %v7327_v11  ;;  %v2504_v32 = vpack.c.bf16 %v2022_v40, %v2014_v31  ;;  %v7352_v40 = vld [vmem:[%s10576_s10 + $0x58] ss:$0 sm:$0xff]  ;;  %v11183_v59 = vld [vmem:[#allocation28_spill] sm:$0xff]  ;;  %v1501_v1 = vmul.f32 %v1485_v22, %v1463_v48 }
 0x2f3   : > { %1751 = vrot.lane.b32.xlu0 %v11172_v18, %s11164_s2  ;;  %v11184_v39 = vld [vmem:[#allocation40_spill] sm:$0xff] }
 0x2f4   : > { %v7313_v61 = vpop.permute.xlu2 %2242  ;;  %1757 = vrot.lane.b32.xlu1 %v7340_v54, %s11164_s2  ;;  %2848 = vmatpush.bf16.msrb.mxu0 %v2504_v32  ;;  %v11182_v32 = vld [vmem:[#allocation22_spill] sm:$0xff]  ;;  %v1297_v50 = vsel %vm1272_vm4, %v11184_v39, %v11183_v59  ;;  %v2426_v59 = vpack.c.bf16 %v1517_v14, %v1509_v28  ;;  %v1295_v28 = vsel %vm1272_vm4, %v11111_v44, %v11189_v21  ;;  %v7390_v14 = vperm.slane %v7273_v38, 6 }
 0x2f5   : > { %v7354_v31 = vpop.permute.xlu0 %1908  ;;  %2748 = vmatmul.bf16.gmra.mxu1 %v7327_v11  ;;  %v1296_v51 = vsel %vm1272_vm4, %v11182_v32, %v11181_v15  ;;  %2820 = vmatmul.bf16.vlgmr.msrb.gmra.mxu2 %v7024_v60  ;;  %v11188_v15 = vld [vmem:[#allocation84_spill] sm:$0xff]  ;;  %v1356_v19 = vmul.f32 %v1316_v16, %v1297_v50  ;;  %v11193_v44 = vld [vmem:[#allocation46_spill] sm:$0xff] }
 0x2f6   : > { %v2245_v34 = vpop.permute.xlu1 %2244  ;;  %v1348_v57 = vmul.f32 %v1316_v16, %v1296_v51  ;;  %v1294_v51 = vsel %vm1272_vm4, %v11112_v35, %v11193_v44 }
 0x2f7   : > { %v2306_v32 = vsel %vm2286_vm6, %v2245_v34, %v7206_v49  ;;  %v2311_v39 = vsel %vm2286_vm6, %v11188_v15, %v2245_v34  ;;  %v11190_v15 = vld [vmem:[#allocation31_spill] sm:$0xff]  ;;  %v11194_v34 = vld [vmem:[#allocation82_spill] sm:$0xff] }
 0x2f8   : > { %2957 = vmatpush.bf16.msra.mxu0 %v2434_v27  ;;  %v1462_v27 = vsel %vm1441_vm2, %v11186_v41, %v11185_v62  ;;  %v2369_v41 = vmul.f32 %v7347_v8, %v2311_v39  ;;  %v2370_v62 = vmul.f32 %v7352_v40, %v2306_v32 }
 0x2f9   : > { %v1493_v5 = vmul.f32 %v1485_v22, %v1462_v27  ;;  %v2410_v27 = vpack.c.bf16 %v1356_v19, %v1348_v57  ;;  %v11195_v19 = vld [vmem:[#allocation79_spill] sm:$0xff]  ;;  %v1823_v57 = vperm.slane %v7273_v38, 5 }
 0x2fa   : > { %2264 = vrot.lane.b32.xlu2 %v7340_v54, %s11187_s6  ;;  %v2553_v48 = vpack.c.bf16 %v2369_v41, %v2369_v41  ;;  %v2554_v26 = vpack.c.bf16 %v2370_v62, %v2370_v62  ;;  %v11191_v62 = vld [vmem:[#allocation155_spill] sm:$0xff]  ;;  %v1293_v35 = vsel %vm1272_vm4, %v11113_v46, %v11195_v19 }
 0x2fb   : > { %2262 = vrot.lane.b32.xlu0 %v7278_v55, %s11187_s6  ;;  %v2418_v49 = vpack.c.bf16 %v1501_v1, %v1493_v5  ;;  %v1964_v1 = vsel %vm1948_vm7, %v11191_v62, %v7354_v31 }
 0x2fc   : > { %v7379_v11 = vpop.permute.xlu2 %1741  ;;  %2958 = vmatpush.bf16.msra.mxu0 %v2426_v59  ;;  %1753 = vrot.lane.b32.xlu1 %v11190_v15, %s11164_s2  ;;  %v2679_v22 = vsel %vm933_vm1, %v2553_v48, 0  ;;  %v2682_v50 = vsel %vm933_vm1, %v2554_v26, 0  ;;  %v1340_v26 = vmul.f32 %v1316_v16, %v1295_v28  ;;  %v1147_v48 = vperm.slane %v7273_v38, 0 }
 0x2fd   : > { %2929 = vmatpush.bf16.msra.mxu2 %v2679_v22  ;;  %v7400_v5 = vpop.permute.xlu0 %1747  ;;  %3016 = vmatpush.bf16.msra.mxu3 %v2682_v50  ;;  %v1332_v28 = vmul.f32 %v1316_v16, %v1294_v51  ;;  %v1798_v22 = vsel %vm1779_vm8, %v6907_v12, %v7260_v37  ;;  %v11196_v50 = vld [vmem:[#allocation19_spill] sm:$0xff] }
 0x2fe   : > { %11192 = vst [vmem:[#allocation38_spill] sm:$0xff] %v7400_v5  ;;  %v7406_v59 = vpop.permute.xlu1 %1910  ;;  %2907 = vmatmul.bf16.vlgmr.msrb.gmra.mxu3 %v7024_v60  ;;  %4746 = vmatmul.msk.bf16.vlgmr.msrb.gmra.mxu0 %vm2659_vm10, %v6932_v0  ;;  %v1128_v46 = vsel %vm1103_vm5, %v11115_v13, %v11196_v50  ;;  %v1855_v60 = vmul.f32 %v1823_v57, %v1798_v22 }
 0x2ff   : > { %v1965_v32 = vsel %vm1948_vm7, %v11194_v34, %v7406_v59  ;;  %v1187_v12 = vmul.f32 %v1147_v48, %v1128_v46  ;;  %v2310_v13 = vsel %vm2286_vm6, %v6918_v36, %v7313_v61 }
 0x300   : > { %2959 = vmatpush.bf16.msra.mxu0 %v2418_v49  ;;  %v1799_v49 = vsel %vm1779_vm8, %v6959_v63, %v7400_v5  ;;  %v2000_v63 = vmul.f32 %v7390_v14, %v1964_v1  ;;  %v2008_v41 = vmul.f32 %v7390_v14, %v1965_v32  ;;  %v1324_v5 = vmul.f32 %v1316_v16, %v1293_v35  ;;  %v11197_v32 = vld [vmem:[#allocation49_spill] sm:$0xff] }
 0x301   : > { %v1863_v62 = vmul.f32 %v1823_v57, %v1799_v49  ;;  %v2402_v1 = vpack.c.bf16 %v1340_v26, %v1332_v28  ;;  %v1126_v51 = vsel %vm1103_vm5, %v11116_v33, %v11197_v32 }
 0x302   : > { %2260 = vrot.lane.b32.xlu2 %v11190_v15, %s11187_s6  ;;  %v2498_v34 = vpack.c.bf16 %v2008_v41, %v2000_v63  ;;  %v1171_v35 = vmul.f32 %v1147_v48, %v1126_v51  ;;  %v11199_v63 = vld [vmem:[#allocation73_spill] sm:$0xff]  ;;  %v2394_v28 = vpack.c.bf16 %v1324_v5, %v1187_v12  ;;  %v1796_v51 = vsel %vm1779_vm8, %v6886_v45, %v7379_v11 }
 0x303   : > { %2258 = vrot.lane.b32.xlu0 %v11172_v18, %s11187_s6  ;;  %v2490_v49 = vpack.c.bf16 %v1863_v62, %v1855_v60  ;;  %v1124_v36 = vsel %vm1103_vm5, %v11118_v23, %v11199_v63  ;;  %v11201_v62 = vld [vmem:[#allocation47_spill] sm:$0xff] }
 0x304   : > { %v7418_v39 = vpop.permute.xlu2 %2238  ;;  %2960 = vmatpush.bf16.msra.mxu0 %v2410_v27  ;;  %1749 = vrot.lane.b32.xlu1 %v7220_v2, %s11164_s2  ;;  %v11198_v27 = vld [vmem:[#allocation20_spill] sm:$0xff]  ;;  %v1155_v23 = vmul.f32 %v1147_v48, %v1124_v36 }
 0x305   : > { %2986 = vmatpush.bf16.msra.mxu1 %v2498_v34  ;;  %v7451_v16 = vpop.permute.xlu0 %2250  ;;  %v1127_v33 = vsel %vm1103_vm5, %v11117_v43, %v11198_v27  ;;  %2825 = vmatmul.bf16.gmra.mxu2 %v7119_v9  ;;  %v2361_v43 = vmul.f32 %v7347_v8, %v2310_v13  ;;  %v1125_v34 = vsel %vm1103_vm5, %v11120_v56, %v11201_v62 }
 0x306   : > { %2878 = vmatmul.bf16.vlgmr.msrb.gmra.mxu1 %v6981_v29  ;;  %v2241_v26 = vpop.permute.xlu1 %2240  ;;  %v1179_v46 = vmul.f32 %v1147_v48, %v1127_v33  ;;  %v1163_v5 = vmul.f32 %v1147_v48, %v1125_v34 }
 0x307   : > { %v2309_v41 = vsel %vm2286_vm6, %v7045_v47, %v2241_v26  ;;  %v2304_v56 = vsel %vm2286_vm6, %v2241_v26, %v7451_v16  ;;  %v1839_v26 = vmul.f32 %v1823_v57, %v1796_v51 }
 0x308   : > { %2961 = vmatpush.bf16.msra.mxu0 %v2402_v1  ;;  %v2353_v60 = vmul.f32 %v7347_v8, %v2309_v41  ;;  %v2386_v47 = vpack.c.bf16 %v1179_v46, %v1171_v35  ;;  %v2378_v33 = vpack.c.bf16 %v1163_v5, %v1155_v23 }
 0x309   : > { %2987 = vmatpush.bf16.msra.mxu1 %v2490_v49 }
 0x30a   : > { %2256 = vrot.lane.b32.xlu2 %v7220_v2, %s11187_s6  ;;  %v2545_v1 = vpack.c.bf16 %v2361_v43, %v2353_v60 }
 0x30b   : > { %2089 = vrot.lane.b32.xlu0 %v11172_v18, %s11125_s22  ;;  %v11252_v18 = vld [vmem:[#allocation98_spill] sm:$0xff] }
 0x30c   : > { %v7470_v22 = vpop.permute.xlu2 %1739  ;;  %2962 = vmatpush.bf16.msra.mxu0 %v2394_v28  ;;  %2093 = vrot.lane.b32.xlu1 %v7278_v55, %s11125_s22 }
 0x30d   : > { %11200 = vst [vmem:[#allocation151_spill] sm:$0xff] %v7470_v22  ;;  %2930 = vmatpush.bf16.msra.mxu2 %v2545_v1  ;;  %v7487_v12 = vpop.permute.xlu0 %1743  ;;  %v1795_v45 = vsel %vm1779_vm8, %v7089_v53, %v7470_v22 }
 0x30e   : > { %v1797_v48 = vsel %vm1779_vm8, %v6998_v25, %v7487_v12  ;;  %v7497_v13 = vpop.permute.xlu1 %2252  ;;  %2912 = vmatmul.bf16.gmra.mxu3 %v7119_v9  ;;  %4747 = vmatmul.msk.bf16.gmra.mxu0 %vm2659_vm10, %v7029_v58  ;;  %v2354_v25 = vmul.f32 %v7352_v40, %v2304_v56  ;;  %v1831_v41 = vmul.f32 %v1823_v57, %v1795_v45  ;;  %v11266_v9 = vld [vmem:[#allocation125_spill] sm:$0xff] }
 0x30f   : > { %v1847_v49 = vmul.f32 %v1823_v57, %v1797_v48  ;;  %v2305_v35 = vsel %vm2286_vm6, %v7313_v61, %v7497_v13  ;;  %v2308_v61 = vsel %vm2286_vm6, %v7075_v3, %v7418_v39  ;;  %v5180_v57 = vld [vmem:[%s5419_s28 + $0x58] sm:$0xff] }
 0x310   : > { %2963 = vmatpush.bf16.msra.mxu0 %v2386_v47  ;;  %v2362_v53 = vmul.f32 %v7352_v40, %v2305_v35  ;;  %v2474_v46 = vpack.c.bf16 %v1831_v41, %v5180_v57  ;;  %v2345_v23 = vmul.f32 %v7347_v8, %v2308_v61  ;;  %v5181_v47 = vld [vmem:[%s5419_s28 + $0x18] sm:$0xff]  ;;  %v11208_v35 = vld [vmem:[#allocation126_spill] sm:$0xff]  ;;  %v11210_v41 = vld [vmem:[#allocation120_spill] sm:$0xff] }
 0x311   : > { %v2482_v28 = vpack.c.bf16 %v1847_v49, %v1839_v26  ;;  %v2466_v5 = vpack.c.bf16 %v5181_v47, %v11062_v20  ;;  %v11207_v49 = vld [vmem:[#allocation27_spill] sm:$0xff]  ;;  %v11212_v61 = vld [vmem:[#allocation48_spill] sm:$0xff] }
 0x312   : > { %2095 = vrot.lane.b32.xlu2 %v7340_v54, %s11125_s22  ;;  %v2546_v43 = vpack.c.bf16 %v2362_v53, %v2354_v25 }
 0x313   : > { %1578 = vrot.lane.b32.xlu0 %v6716_v30, %s11129_s18  ;;  %2988 = vmatpush.bf16.msra.mxu1 %v2482_v28  ;;  %v11211_v28 = vld [vmem:[#allocation142_spill] sm:$0xff] }
 0x314   : > { %v7510_v36 = vpop.permute.xlu2 %2083  ;;  %2964 = vmatpush.bf16.msra.mxu0 %v2378_v33  ;;  %2091 = vrot.lane.b32.xlu1 %v11190_v15, %s11125_s22 }
 0x315   : > { %11202 = vst [vmem:[#allocation95_spill] sm:$0xff] %v7510_v36  ;;  %3017 = vmatpush.bf16.msra.mxu3 %v2546_v43  ;;  %v7520_v60 = vpop.permute.xlu0 %2246  ;;  %2830 = vmatmul.bf16.gmra.mxu2 %v7224_v17 }
 0x316   : > { %11203 = vst [vmem:[#allocation156_spill] sm:$0xff] %v7520_v60  ;;  %2883 = vmatmul.bf16.gmra.mxu1 %v7065_v10  ;;  %v2237_v34 = vpop.permute.xlu1 %2236 }
 0x317   : > { %v2307_v30 = vsel %vm2286_vm6, %v6967_v52, %v2237_v34  ;;  %2989 = vmatpush.bf16.msra.mxu1 %v2474_v46 }
 0x318   : > { %v2337_v3 = vmul.f32 %v7347_v8, %v2307_v30  ;;  %v2458_v8 = vpack.c.bf16 %v5624_v4, %v6852_v42  ;;  %v11205_v4 = vld [vmem:[#allocation122_spill] sm:$0xff] }
 0x31a   : > { %1576 = vrot.lane.b32.xlu2 %v6744_v6, %s11129_s18  ;;  %v2537_v51 = vpack.c.bf16 %v2345_v23, %v2337_v3  ;;  %v2302_v6 = vsel %vm2286_vm6, %v2237_v34, %v7520_v60 }
 0x31b   : > { %1572 = vrot.lane.b32.xlu0 %v11085_v7, %s11129_s18  ;;  %2990 = vmatpush.bf16.msra.mxu1 %v2466_v5  ;;  %v2338_v48 = vmul.f32 %v7352_v40, %v2302_v6  ;;  %v7600_v6 = vld [vmem:[%s5753_s0 + $0x30] sm:$0xff]  ;;  %v11236_v7 = vld [vmem:[#allocation149_spill] sm:$0xff] }
 0x31c   : > { %v7532_v1 = vpop.permute.xlu2 %2071  ;;  %1926 = vrot.lane.b32.xlu1 %v7340_v54, %s11124_s15  ;;  %2931 = vmatpush.bf16.msra.mxu2 %v2537_v51  ;;  %v7595_v51 = vld [vmem:[%s5753_s0 + $0x38] sm:$0xff] }
 0x31d   : > { %v2074_v52 = vpop.permute.xlu0 %2073  ;;  %11214 = vst [vmem:[#allocation91_spill] sm:$0xff] %v7595_v51 }
 0x31e   : > { %v7545_v56 = vpop.permute.xlu1 %2248  ;;  %2917 = vmatmul.bf16.gmra.mxu3 %v7224_v17  ;;  %4748 = vmatmul.msk.bf16.gmra.mxu0 %vm2659_vm10, %v11205_v4  ;;  %v2141_v25 = vsel %vm2117_vm9, %v11208_v35, %v2074_v52 }
 0x31f   : > { %11204 = vst [vmem:[#allocation128_spill] sm:$0xff] %v7545_v56  ;;  %v2303_v20 = vsel %vm2286_vm6, %v7418_v39, %v7545_v56  ;;  %2991 = vmatpush.bf16.msra.mxu1 %v2458_v8  ;;  %v7566_v39 = vperm.slane %v7273_v38, 7 }
 0x320   : > { %v2346_v45 = vmul.f32 %v7352_v40, %v2303_v20  ;;  %v2136_v40 = vsel %vm2117_vm9, %v2074_v52, %v7510_v36  ;;  %v11215_v52 = vld [vmem:[#allocation9_spill] sm:$0xff] }
 0x321   : > { %v2193_v34 = vmul.f32 %v7566_v39, %v2136_v40  ;;  %v2140_v8 = vsel %vm2117_vm9, %v11215_v52, %v7532_v1 }
 0x322   : > { %2087 = vrot.lane.b32.xlu2 %v7220_v2, %s11125_s22  ;;  %v2538_v42 = vpack.c.bf16 %v2346_v45, %v2338_v48  ;;  %v11206_v2 = vld [vmem:[#allocation158_spill] sm:$0xff]  ;;  %v11217_v45 = vld [vmem:[#allocation21_spill] sm:$0xff] }
 0x323   : > { %1924 = vrot.lane.b32.xlu0 %v7278_v55, %s11124_s15  ;;  %v7563_v26 = vperm.slane %v11206_v2, 7 }
 0x324   : > { %v7556_v33 = vpop.permute.xlu2 %1906  ;;  %1574 = vrot.lane.b32.xlu1 %v11207_v49, %s11129_s18  ;;  %3018 = vmatpush.bf16.msra.mxu3 %v2538_v42  ;;  %v11218_v42 = vld [vmem:[#allocation12_spill] sm:$0xff] }
 0x325   : > { %v7576_v53 = vpop.permute.xlu0 %2085  ;;  %2835 = vmatmul.bf16.gmra.mxu2 %v11211_v28  ;;  %v2192_v46 = vmul.f32 %v7563_v26, %v2141_v25  ;;  %v2184_v40 = vmul.f32 %v7563_v26, %v2140_v8 }
 0x326   : > { %11209 = vst [vmem:[#allocation150_spill] sm:$0xff] %v7576_v53  ;;  %2888 = vmatmul.bf16.gmra.mxu1 %v11210_v41  ;;  %v2076_v38 = vpop.permute.xlu1 %2075 }
 0x327   : > { %v2137_v43 = vsel %vm2117_vm9, %v2076_v38, %v7576_v53  ;;  %v2142_v57 = vsel %vm2117_vm9, %v11212_v61, %v2076_v38  ;;  %v11219_v38 = vld [vmem:[#allocation146_spill] sm:$0xff]  ;;  %v7623_v61 = vld [vmem:[%s5419_s28 + $0x30] sm:$0xff] }
 0x328   : > { %v2200_v30 = vmul.f32 %v7563_v26, %v2142_v57  ;;  %v2201_v23 = vmul.f32 %v7566_v39, %v2137_v43  ;;  %v11220_v57 = vld [vmem:[#allocation24_spill] sm:$0xff] }
 0x329   : > { %v11251_v53 = vld [vmem:[#allocation100_spill] sm:$0xff] }
 0x32a   : > { %1922 = vrot.lane.b32.xlu2 %v11190_v15, %s11124_s15  ;;  %v2529_v47 = vpack.c.bf16 %v2200_v30, %v2192_v46  ;;  %v2530_v5 = vpack.c.bf16 %v2201_v23, %v2193_v34  ;;  %v11222_v30 = vld [vmem:[#allocation33_spill] sm:$0xff] }
 0x32b   : > { %1938 = vrot.lane.b32.xlu0 %v7595_v51, %s11124_s15 }
 0x32c   : > { %v7592_v3 = vpop.permute.xlu2 %2077  ;;  %1928 = vrot.lane.b32.xlu1 %v7600_v6, %s11124_s15  ;;  %2932 = vmatpush.bf16.msra.mxu2 %v2529_v47 }
 0x32d   : > { %11213 = vst [vmem:[#allocation85_spill] sm:$0xff] %v7592_v3  ;;  %3019 = vmatpush.bf16.msra.mxu3 %v2530_v5  ;;  %v7608_v20 = vpop.permute.xlu0 %2079 }
 0x32e   : > { %11216 = vst [vmem:[#allocation92_spill] sm:$0xff] %v7608_v20  ;;  %v2070_v48 = vpop.permute.xlu1 %2069  ;;  %2922 = vmatmul.bf16.gmra.mxu3 %v11211_v28  ;;  %4749 = vmatmul.msk.bf16.gmra.mxu0 %vm2659_vm10, %v11219_v38  ;;  %v11233_v28 = vld [vmem:[#allocation89_spill] sm:$0xff] }
 0x32f   : > { %v2139_v2 = vsel %vm2117_vm9, %v11218_v42, %v2070_v48  ;;  %v2134_v46 = vsel %vm2117_vm9, %v2070_v48, %v7608_v20 }
 0x330   : > { %v2176_v35 = vmul.f32 %v7563_v26, %v2139_v2  ;;  %v2177_v52 = vmul.f32 %v7566_v39, %v2134_v46  ;;  %v7650_v2 = vld [vmem:[%s5419_s28 + $0x78] sm:$0xff] }
 0x331   : > { %11226 = vst [vmem:[#allocation54_spill] sm:$0xff] %v7650_v2 }
 0x332   : > { %1930 = vrot.lane.b32.xlu2 %v11217_v45, %s11124_s15  ;;  %v2521_v43 = vpack.c.bf16 %v2184_v40, %v2176_v35  ;;  %v7657_v35 = vld [vmem:[%s5419_s28 + $0x70] sm:$0xff] }
 0x333   : > { %1765 = vrot.lane.b32.xlu0 %v7623_v61, %s11164_s2 }
 0x334   : > { %v7618_v25 = vpop.permute.xlu2 %1902  ;;  %1940 = vrot.lane.b32.xlu1 %v11220_v57, %s11124_s15  ;;  %2933 = vmatpush.bf16.msra.mxu2 %v2521_v43 }
 0x335   : > { %v7632_v34 = vpop.permute.xlu0 %1916  ;;  %v7639_v47 = vpop.f32.mrf.mxu2 }
 0x336   : > { %11221 = vst [vmem:[#allocation22_spill] sm:$0xff] %v7632_v34  ;;  %2893 = vmatmul.bf16.gmra.mxu1 %v11222_v30  ;;  %v7635_v23 = vpop.permute.xlu1 %2081  ;;  %v1968_v46 = vsel %vm1948_vm7, %v7556_v33, %v7632_v34 }
 0x337   : > { %11223 = vst [vmem:[#allocation40_spill] sm:$0xff] %v7635_v23  ;;  %v2135_v5 = vsel %vm2117_vm9, %v7532_v1, %v7635_v23  ;;  %v11228_v1 = vld [vmem:[#allocation14_spill] sm:$0xff] }
 0x338   : > { %11224 = vst [vmem:[#allocation88_spill] sm:$0xff] %v7639_v47  ;;  %v2185_v8 = vmul.f32 %v7566_v39, %v2135_v5  ;;  %v7654_v40 = vpop.f32.mrf.mxu0  ;;  %v1973_v43 = vsel %vm1948_vm7, %v11228_v1, %v7556_v33  ;;  %v11232_v1 = vld [vmem:[#allocation76_spill] sm:$0xff]  ;;  %v7687_v33 = vld [vmem:[%s10576_s10 + $0x20] sm:$0xff] }
 0x339   : > { %11227 = vst [vmem:[#allocation155_spill] sm:$0xff] %v7654_v40  ;;  %v2031_v34 = vmul.f32 %v11233_v28, %v1973_v43 }
 0x33a   : > { %1590 = vrot.lane.b32.xlu2 %v7600_v6, %s11129_s18  ;;  %v2522_v42 = vpack.c.bf16 %v2185_v8, %v2177_v52  ;;  %v7672_v8 = vld [vmem:[%s5419_s28 + $0x38] sm:$0xff] }
 0x33b   : > { %1777 = vrot.lane.b32.xlu0 %v7650_v2, %s11164_s2  ;;  %11230 = vst [vmem:[#allocation82_spill] sm:$0xff] %v7672_v8  ;;  %v2032_v2 = vmul.f32 %v7390_v14, %v1968_v46  ;;  %v11240_v46 = vld [vmem:[#allocation97_spill] sm:$0xff] }
 0x33c   : > { %v7647_v48 = vpop.permute.xlu2 %1914  ;;  %1767 = vrot.lane.b32.xlu1 %v7657_v35, %s11164_s2  ;;  %3020 = vmatpush.bf16.msra.mxu3 %v2522_v42 }
 0x33d   : > { %11225 = vst [vmem:[#allocation84_spill] sm:$0xff] %v7647_v48  ;;  %v7669_v5 = vpop.permute.xlu0 %1566  ;;  %v7676_v47 = vpop.f32.mrf.mxu2 }
 0x33e   : > { %11229 = vst [vmem:[#allocation46_spill] sm:$0xff] %v7669_v5  ;;  %v2068_v52 = vpop.permute.xlu1 %2067  ;;  %2965 = vmatmul.bf16.vlgmr.msra.gmra.mxu0 %v6981_v29 }
 0x33f   : > { %11231 = vst [vmem:[#allocation79_spill] sm:$0xff] %v7676_v47  ;;  %v2133_v42 = vsel %vm2117_vm9, %v2068_v52, %v7592_v3  ;;  %v2138_v40 = vsel %vm2117_vm9, %v11232_v1, %v2068_v52  ;;  %v7695_v3 = vpop.f32.mrf.mxu1  ;;  %v7699_v52 = vperm.slane %v7687_v33, 3 }
 0x340   : > { %v2169_v47 = vmul.f32 %v7566_v39, %v2133_v42  ;;  %11234 = vst [vmem:[#allocation19_spill] sm:$0xff] %v7695_v3  ;;  %v7707_v39 = vpop.f32.mrf.mxu0  ;;  %v11241_v3 = vld [vmem:[#allocation117_spill] sm:$0xff] }
 0x341   : > { %11235 = vst [vmem:[#allocation49_spill] sm:$0xff] %v7699_v52 }
 0x342   : > { %1775 = vrot.lane.b32.xlu2 %v7672_v8, %s11164_s2  ;;  %v2168_v8 = vmul.f32 %v7563_v26, %v2138_v40  ;;  %v2514_v20 = vpack.c.bf16 %v2169_v47, %v2032_v2  ;;  %v11237_v26 = vld [vmem:[#allocation35_spill] sm:$0xff]  ;;  %11238 = vst [vmem:[#allocation20_spill] sm:$0xff] %v7707_v39  ;;  %v11239_v40 = vld [vmem:[#allocation96_spill] sm:$0xff] }
 0x343   : > { %1763 = vrot.lane.b32.xlu0 %v11237_v26, %s11164_s2  ;;  %v1461_v42 = vsel %vm1441_vm2, %v11240_v46, %v11239_v40  ;;  %v11242_v47 = vld [vmem:[#allocation51_spill] sm:$0xff]  ;;  %v11243_v39 = vld [vmem:[#allocation124_spill] sm:$0xff] }
 0x344   : > { %v7693_v23 = vpop.permute.xlu2 %1570  ;;  %v2513_v1 = vpack.c.bf16 %v2168_v8, %v2031_v34  ;;  %v1971_v34 = vsel %vm1948_vm7, %v11241_v3, %v7618_v25  ;;  %2274 = vrot.lane.b32.xlu1 %v7657_v35, %s11187_s6  ;;  %v1634_v2 = vsel %vm1610_vm3, %v11242_v47, %v7669_v5  ;;  %3021 = vmatpush.bf16.msra.mxu3 %v2514_v20  ;;  %v11245_v47 = vld [vmem:[#allocation118_spill] sm:$0xff]  ;;  %v11248_v5 = vld [vmem:[#allocation11_spill] sm:$0xff] }
 0x345   : > { %v1626_v43 = vsel %vm1610_vm3, %v11236_v7, %v7693_v23  ;;  %v1486_v7 = vperm.slane %v7687_v33, 2  ;;  %v1905_v8 = vpop.permute.xlu0 %1904  ;;  %v2015_v17 = vmul.f32 %v11233_v28, %v1971_v34  ;;  %v1686_v15 = vmul.f32 %v11248_v5, %v1634_v2  ;;  %v11254_v2 = vld [vmem:[#allocation101_spill] sm:$0xff] }
 0x346   : > { %2934 = vmatpush.bf16.msra.mxu2 %v2513_v1  ;;  %v1663_v46 = vmul.f32 %v7699_v52, %v1626_v43  ;;  %v1972_v29 = vsel %vm1948_vm7, %v11243_v39, %v1905_v8  ;;  %v7728_v3 = vpop.permute.xlu1 %1568  ;;  %v11246_v43 = vld [vmem:[#allocation104_spill] sm:$0xff]  ;;  %v11247_v52 = vld [vmem:[#allocation90_spill] sm:$0xff] }
 0x347   : > { %11244 = vst [vmem:[#allocation73_spill] sm:$0xff] %v7728_v3  ;;  %v1526_v1 = vmul.f32 %v1486_v7, %v1461_v42  ;;  %v2023_v36 = vmul.f32 %v11233_v28, %v1972_v29  ;;  %v1635_v20 = vsel %vm1610_vm3, %v11245_v47, %v7728_v3  ;;  %v1460_v39 = vsel %vm1441_vm2, %v11247_v52, %v11246_v43  ;;  %v7746_v42 = vpop.f32.mrf.mxu2  ;;  %v7748_v28 = vpop.f32.mrf.mxu1 }
 0x348   : > { %v1694_v49 = vmul.f32 %v11248_v5, %v1635_v20  ;;  %11249 = vst [vmem:[#allocation47_spill] sm:$0xff] %v7746_v42  ;;  %v1459_v47 = vsel %vm1441_vm2, %v11252_v18, %v11251_v53  ;;  %v1518_v22 = vmul.f32 %v1486_v7, %v1460_v39  ;;  %v11255_v20 = vld [vmem:[#allocation87_spill] sm:$0xff]  ;;  %v11261_v42 = vld [vmem:[#allocation93_spill] sm:$0xff] }
 0x349   : > { %v2435_v34 = vpack.c.bf16 %v1663_v46, %v1526_v1  ;;  %v2505_v29 = vpack.c.bf16 %v2023_v36, %v2015_v17  ;;  %11250 = vst [vmem:[#allocation122_spill] sm:$0xff] %v7748_v28  ;;  %v1457_v17 = vsel %vm1441_vm2, %v11255_v20, %v11254_v2  ;;  %v7765_v36 = vperm.slane %v7687_v33, 1  ;;  %v11257_v46 = vld [vmem:[#allocation41_spill] sm:$0xff]  ;;  %v11258_v1 = vld [vmem:[#allocation28_spill] sm:$0xff]  ;;  %v11260_v20 = vld [vmem:[#allocation39_spill] sm:$0xff] }
 0x34a   : > { %1761 = vrot.lane.b32.xlu2 %v11217_v45, %s11164_s2  ;;  %v2450_v3 = vpack.c.bf16 %v1694_v49, %v1686_v15  ;;  %v7756_v52 = vpop.f32.mrf.mxu0  ;;  %v1510_v18 = vmul.f32 %v1486_v7, %v1459_v47  ;;  %v1967_v15 = vsel %vm1948_vm7, %v1905_v8, %v7647_v48  ;;  %v1292_v39 = vsel %vm1272_vm4, %v11258_v1, %v11257_v46  ;;  %v11263_v8 = vld [vmem:[#allocation36_spill] sm:$0xff] }
 0x34b   : > { %2270 = vrot.lane.b32.xlu0 %v11237_v26, %s11187_s6  ;;  %2935 = vmatpush.bf16.msra.mxu2 %v2505_v29  ;;  %11253 = vst [vmem:[#allocation158_spill] sm:$0xff] %v7756_v52  ;;  %v11259_v29 = vld [vmem:[#allocation42_spill] sm:$0xff]  ;;  %v1494_v1 = vmul.f32 %v1486_v7, %v1457_v17 }
 0x34c   : > { %v7744_v38 = vpop.permute.xlu2 %1920  ;;  %1771 = vrot.lane.b32.xlu1 %v11220_v57, %s11164_s2  ;;  %2992 = vmatpush.bf16.msra.mxu1 %v2450_v3  ;;  %v1291_v3 = vsel %vm1272_vm4, %v11260_v20, %v11259_v29  ;;  %v11262_v52 = vld [vmem:[#allocation94_spill] sm:$0xff]  ;;  %v2024_v57 = vmul.f32 %v7390_v14, %v1967_v15 }
 0x34d   : > { %v7770_v49 = vpop.permute.xlu0 %1562  ;;  %v1458_v47 = vsel %vm1441_vm2, %v11262_v52, %v11261_v42  ;;  %v2427_v52 = vpack.c.bf16 %v1518_v22, %v1510_v18  ;;  %v1349_v17 = vmul.f32 %v7765_v36, %v1291_v3 }
 0x34e   : > { %11256 = vst [vmem:[#allocation126_spill] sm:$0xff] %v7770_v49  ;;  %v7784_v28 = vpop.permute.xlu1 %1912  ;;  %4750 = vmatmul.msk.bf16.vlgmr.msra.gmra.mxu2 %vm2659_vm10, %v6932_v0  ;;  %2970 = vmatmul.bf16.gmra.mxu0 %v7065_v10  ;;  %v1502_v30 = vmul.f32 %v1486_v7, %v1458_v47  ;;  %v11280_v10 = vld [vmem:[#allocation26_spill] sm:$0xff] }
 0x34f   : > { %3044 = vmatpush.bf16.msrb.mxu2 %v2435_v34  ;;  %v7793_v34 = vld [vmem:[%s10576_s10 + $0x60] ss:$0 sm:$0xff]  ;;  %v1966_v20 = vsel %vm1948_vm7, %v7618_v25, %v7784_v28  ;;  %v7803_v60 = vpop.f32.mrf.mxu2  ;;  %v7818_v15 = vpop.f32.mrf.mxu1 }
 0x350   : > { %v2016_v48 = vmul.f32 %v7390_v14, %v1966_v20  ;;  %11265 = vst [vmem:[#allocation9_spill] sm:$0xff] %v7803_v60  ;;  %v7815_v14 = vld [vmem:[%s10576_s10 + $0x28] sm:$0xff]  ;;  %v2419_v3 = vpack.c.bf16 %v1502_v30, %v1494_v1  ;;  %v11271_v20 = vld [vmem:[#allocation53_spill] sm:$0xff]  ;;  %v11274_v60 = vld [vmem:[#allocation106_spill] sm:$0xff] }
 0x351   : > { %11267 = vst [vmem:[#allocation12_spill] sm:$0xff] %v7818_v15  ;;  %v11273_v30 = vld [vmem:[#allocation121_spill] sm:$0xff] }
 0x352   : > { %1773 = vrot.lane.b32.xlu2 %v11263_v8, %s11164_s2  ;;  %v1357_v8 = vmul.f32 %v7765_v36, %v1292_v39  ;;  %v2506_v25 = vpack.c.bf16 %v2024_v57, %v2016_v48  ;;  %v11268_v39 = vld [vmem:[#allocation58_spill] sm:$0xff]  ;;  %v7829_v47 = vpop.f32.mrf.mxu0  ;;  %v1289_v57 = vsel %vm1272_vm4, %v11193_v44, %v11271_v20  ;;  %v1632_v1 = vsel %vm1610_vm3, %v11273_v30, %v7770_v49  ;;  %v11278_v30 = vld [vmem:[#allocation99_spill] sm:$0xff] }
 0x353   : > { %3045 = vmatpush.bf16.msrb.mxu2 %v2427_v52  ;;  %v1290_v7 = vsel %vm1272_vm4, %v11189_v21, %v11268_v39  ;;  %1769 = vrot.lane.b32.xlu0 %v7595_v51, %s11164_s2  ;;  %11270 = vst [vmem:[#allocation76_spill] sm:$0xff] %v7829_v47  ;;  %v11272_v48 = vld [vmem:[#allocation110_spill] sm:$0xff]  ;;  %v1487_v21 = vperm.slane %v7815_v14, 2 }
 0x354   : > { %v7801_v56 = vpop.permute.xlu2 %2264  ;;  %v1456_v52 = vsel %vm1441_vm2, %v11239_v40, %v11272_v48  ;;  %2272 = vrot.lane.b32.xlu1 %v7623_v61, %s11187_s6  ;;  %3022 = vmatpush.bf16.msra.mxu3 %v2506_v25  ;;  %v2411_v44 = vpack.c.bf16 %v1357_v8, %v1349_v17  ;;  %v1341_v15 = vmul.f32 %v7765_v36, %v1290_v7  ;;  %v11284_v51 = vld [vmem:[#allocation62_spill] sm:$0xff] }
 0x355   : > { %11264 = vst [vmem:[#allocation48_spill] sm:$0xff] %v7801_v56  ;;  %v2301_v22 = vsel %vm2286_vm6, %v11266_v9, %v7801_v56  ;;  %v7827_v9 = vperm.slane %v7815_v14, 3  ;;  %v1455_v40 = vsel %vm1441_vm2, %v11246_v43, %v11274_v60  ;;  %v1333_v8 = vmul.f32 %v7765_v36, %v1289_v57 }
 0x356   : > { %v2371_v18 = vmul.f32 %v7793_v34, %v2301_v22  ;;  %v7846_v22 = vpop.permute.xlu0 %1580  ;;  %v7857_v56 = vpop.permute.xlu1 %1564  ;;  %v1527_v17 = vmul.f32 %v1487_v21, %v1456_v52  ;;  %v1454_v57 = vsel %vm1441_vm2, %v11251_v53, %v11278_v30  ;;  %v1670_v52 = vmul.f32 %v11248_v5, %v1632_v1  ;;  %v11282_v1 = vld [vmem:[#allocation107_spill] sm:$0xff] }
 0x357   : > { %11269 = vst [vmem:[#allocation14_spill] sm:$0xff] %v7827_v9  ;;  %3046 = vmatpush.bf16.msrb.mxu2 %v2419_v3  ;;  %v1621_v25 = vsel %vm1610_vm3, %v7693_v23, %v7846_v22  ;;  %v11276_v3 = vld [vmem:[#allocation143_spill] sm:$0xff]  ;;  %4754 = vmatmul.msk.bf16.vlgmr.msra.gmra.mxu3 %vm2659_vm10, %v6932_v0  ;;  %v7884_v0 = vperm.slane %v7687_v33, 0  ;;  %v1519_v60 = vmul.f32 %v1487_v21, %v1455_v40  ;;  %v7897_v49 = vpop.f32.mrf.mxu1 }
 0x358   : > { %v2555_v47 = vpack.c.bf16 %v2371_v18, %v2371_v18  ;;  %11275 = vst [vmem:[#allocation89_spill] sm:$0xff] %v7857_v56  ;;  %v1664_v7 = vmul.f32 %v7827_v9, %v1621_v25  ;;  %v1633_v43 = vsel %vm1610_vm3, %v11276_v3, %v7857_v56  ;;  %v11277_v23 = vld [vmem:[#allocation75_spill] sm:$0xff]  ;;  %v7879_v9 = vpop.f32.mrf.mxu3  ;;  %v7890_v53 = vpop.f32.mrf.mxu2  ;;  %v1511_v40 = vmul.f32 %v1487_v21, %v1454_v57  ;;  %v11288_v57 = vld [vmem:[#allocation32_spill] sm:$0xff] }
 0x359   : > { %v1288_v18 = vsel %vm1272_vm4, %v11195_v19, %v11277_v23  ;;  %v1678_v25 = vmul.f32 %v11248_v5, %v1633_v43  ;;  %11279 = vst [vmem:[#allocation149_spill] sm:$0xff] %v7879_v9  ;;  %v1123_v19 = vsel %vm1103_vm5, %v11196_v50, %v11280_v10  ;;  %v1453_v5 = vsel %vm1441_vm2, %v11261_v42, %v11282_v1  ;;  %v11286_v42 = vld [vmem:[#allocation10_spill] sm:$0xff] }
 0x35a   : > { %1759 = vrot.lane.b32.xlu2 %v7600_v6, %s11164_s2  ;;  %v2436_v56 = vpack.c.bf16 %v1664_v7, %v1527_v17  ;;  %11281 = vst [vmem:[#allocation35_spill] sm:$0xff] %v7890_v53  ;;  %v2403_v9 = vpack.c.bf16 %v1341_v15, %v1333_v8  ;;  %v2685_v30 = vsel %vm933_vm1, %v2555_v47, 0  ;;  %v1121_v50 = vsel %vm1103_vm5, %v11197_v32, %v11284_v51  ;;  %v7906_v17 = vpop.f32.mrf.mxu0  ;;  %v11287_v8 = vld [vmem:[#allocation103_spill] sm:$0xff]  ;;  %s4473_s2 = sshll.u32 %s5704_s21, 4  ;;  %s4445_s21 = scalar_lea.sflag [#allocation3], %s11715_s17  ;;  %s4474_s2 = int_to_ptr.vmem [resolvable:$true] %s4473_s2 }
 0x35b   : > { %3047 = vmatpush.bf16.msrb.mxu2 %v2411_v44  ;;  %v2442_v43 = vpack.c.bf16 %v1678_v25, %v1670_v52  ;;  %11283 = vst [vmem:[#allocation96_spill] sm:$0xff] %v7897_v49  ;;  %v1325_v44 = vmul.f32 %v7765_v36, %v1288_v18  ;;  %2103 = vrot.lane.b32.xlu0 %v7623_v61, %s11125_s22  ;;  %v7918_v36 = vperm.slane %v7687_v33, 6  ;;  %v11289_v25 = vld [vmem:[#allocation45_spill] sm:$0xff] }
 0x35c   : > { %v7881_v3 = vpop.permute.xlu2 %2260  ;;  %3131 = vmatpush.bf16.msrb.mxu3 %v2436_v56  ;;  %11285 = vst [vmem:[#allocation97_spill] sm:$0xff] %v7906_v17  ;;  %v1122_v15 = vsel %vm1103_vm5, %v11198_v27, %v11286_v42  ;;  %v1188_v47 = vmul.f32 %v7884_v0, %v1123_v19  ;;  %v1452_v32 = vsel %vm1441_vm2, %v11254_v2, %v11287_v8  ;;  %v1318_v2 = vperm.slane %v7815_v14, 1 }
 0x35d   : > { %2266 = vrot.lane.b32.xlu1 %v7600_v6, %s11187_s6  ;;  %2993 = vmatpush.bf16.msra.mxu1 %v2442_v43  ;;  %v1503_v56 = vmul.f32 %v1487_v21, %v1453_v5  ;;  %v1960_v27 = vsel %vm1948_vm7, %v7406_v59, %v7744_v38  ;;  %v2428_v18 = vpack.c.bf16 %v1519_v60, %v1511_v40 }
 0x35e   : > { %v7926_v7 = vpop.permute.xlu0 %1755  ;;  %v1286_v52 = vsel %vm1272_vm4, %v11259_v29, %v11288_v57  ;;  %v1287_v19 = vsel %vm1272_vm4, %v11257_v46, %v11289_v25  ;;  %v1172_v5 = vmul.f32 %v7884_v0, %v1121_v50  ;;  %v7938_v59 = vpop.permute.xlu1 %1918  ;;  %4751 = vmatmul.msk.bf16.gmra.mxu2 %vm2659_vm10, %v7029_v58  ;;  %v1495_v60 = vmul.f32 %v1487_v21, %v1452_v32 }
 0x35f   : > { %3048 = vmatpush.bf16.msrb.mxu2 %v2403_v9  ;;  %v1959_v29 = vsel %vm1948_vm7, %v7354_v31, %v7938_v59  ;;  %v11290_v9 = vld [vmem:[#allocation71_spill] sm:$0xff]  ;;  %v2395_v46 = vpack.c.bf16 %v1325_v44, %v1188_v47  ;;  %v2009_v50 = vmul.f32 %v7918_v36, %v1960_v27  ;;  %2975 = vmatmul.bf16.gmra.mxu0 %v11210_v41  ;;  %v11292_v44 = vld [vmem:[#allocation57_spill] sm:$0xff] }
 0x360   : > { %2994 = vmatmul.bf16.vlgmr.msra.gmra.mxu1 %v11290_v9  ;;  %3132 = vmatpush.bf16.msrb.mxu3 %v2428_v18  ;;  %v2001_v40 = vmul.f32 %v7918_v36, %v1959_v29  ;;  %v1180_v21 = vmul.f32 %v7884_v0, %v1122_v15  ;;  %v2420_v31 = vpack.c.bf16 %v1503_v56, %v1495_v60  ;;  %v7963_v17 = vpop.f32.mrf.mxu3  ;;  %v7968_v15 = vpop.f32.mrf.mxu2 }
 0x361   : > { %3103 = vmatpush.bf16.msrb.mxu1 %v2685_v30  ;;  %v11291_v30 = vld [vmem:[#allocation72_spill] sm:$0xff]  ;;  %v1350_v32 = vmul.f32 %v1318_v2, %v1286_v52  ;;  %v1358_v18 = vmul.f32 %v1318_v2, %v1287_v19  ;;  %v1120_v47 = vsel %vm1103_vm5, %v11201_v62, %v11292_v44  ;;  %11293 = vst [vmem:[#allocation117_spill] sm:$0xff] %v7963_v17  ;;  %v11296_v52 = vld [vmem:[#allocation65_spill] sm:$0xff]  ;;  %v7977_v62 = vperm.slane %v7687_v33, 5 }
 0x362   : > { %2268 = vrot.lane.b32.xlu2 %v11217_v45, %s11187_s6  ;;  %v1119_v43 = vsel %vm1103_vm5, %v11199_v63, %v11291_v30  ;;  %v2499_v63 = vpack.c.bf16 %v2009_v50, %v2001_v40  ;;  %v2387_v29 = vpack.c.bf16 %v1180_v21, %v1172_v5  ;;  %11294 = vst [vmem:[#allocation51_spill] sm:$0xff] %v7968_v15  ;;  %v7970_v56 = vpop.f32.mrf.mxu0  ;;  %v7981_v60 = vpop.f32.mrf.mxu1  ;;  %v11302_v15 = vld [vmem:[#allocation13_spill] sm:$0xff] }
 0x363   : > { %3049 = vmatpush.bf16.msrb.mxu2 %v2395_v46  ;;  %v1156_v27 = vmul.f32 %v7884_v0, %v1119_v43  ;;  %2101 = vrot.lane.b32.xlu0 %v11237_v26, %s11125_s22  ;;  %11295 = vst [vmem:[#allocation124_spill] sm:$0xff] %v7970_v56  ;;  %v1285_v19 = vsel %vm1272_vm4, %v11268_v39, %v11296_v52  ;;  %v11298_v39 = vld [vmem:[#allocation60_spill] sm:$0xff]  ;;  %v11303_v56 = vld [vmem:[#allocation66_spill] sm:$0xff] }
 0x364   : > { %v7955_v53 = vpop.permute.xlu2 %2256  ;;  %3133 = vmatpush.bf16.msrb.mxu3 %v2420_v31  ;;  %3073 = vmatpush.bf16.msrb.mxu0 %v2499_v63  ;;  %11297 = vst [vmem:[#allocation118_spill] sm:$0xff] %v7981_v60  ;;  %v1164_v5 = vmul.f32 %v7884_v0, %v1120_v47  ;;  %v1793_v46 = vsel %vm1779_vm8, %v7260_v37, %v7926_v7  ;;  %v11299_v31 = vld [vmem:[#allocation38_spill] sm:$0xff] }
 0x365   : > { %2105 = vrot.lane.b32.xlu1 %v7657_v35, %s11125_s22  ;;  %v1284_v50 = vsel %vm1272_vm4, %v11271_v20, %v11298_v39  ;;  %v2412_v21 = vpack.c.bf16 %v1358_v18, %v1350_v32  ;;  %v1342_v0 = vmul.f32 %v1318_v2, %v1285_v19  ;;  %v11300_v63 = vld [vmem:[#allocation74_spill] sm:$0xff]  ;;  %v1856_v32 = vmul.f32 %v7977_v62, %v1793_v46 }
 0x366   : > { %v7988_v43 = vpop.permute.xlu0 %1751  ;;  %v7994_v40 = vpop.permute.xlu1 %1757  ;;  %v2379_v47 = vpack.c.bf16 %v1164_v5, %v1156_v27  ;;  %v1283_v20 = vsel %vm1272_vm4, %v11277_v23, %v11300_v63  ;;  %v1334_v19 = vmul.f32 %v1318_v2, %v1284_v50  ;;  %v1149_v5 = vperm.slane %v7815_v14, 0 }
 0x367   : > { %3050 = vmatpush.bf16.msrb.mxu2 %v2387_v29  ;;  %v1794_v37 = vsel %vm1779_vm8, %v11299_v31, %v7994_v40  ;;  %4755 = vmatmul.msk.bf16.gmra.mxu3 %vm2659_vm10, %v7029_v58  ;;  %v1118_v31 = vsel %vm1103_vm5, %v11280_v10, %v11302_v15  ;;  %v1116_v23 = vsel %vm1103_vm5, %v11284_v51, %v11303_v56 }
 0x368   : > { %v1864_v18 = vmul.f32 %v7977_v62, %v1794_v37  ;;  %3134 = vmatpush.bf16.msrb.mxu3 %v2412_v21  ;;  %v1326_v46 = vmul.f32 %v1318_v2, %v1283_v20  ;;  %v2404_v21 = vpack.c.bf16 %v1342_v0, %v1334_v19  ;;  %v2299_v10 = vsel %vm2286_vm6, %v7451_v16, %v7881_v3  ;;  %v8029_v37 = vpop.f32.mrf.mxu3  ;;  %v8039_v0 = vpop.f32.mrf.mxu2  ;;  %v11307_v20 = vld [vmem:[#allocation25_spill] sm:$0xff] }
 0x369   : > { %11305 = vst [vmem:[#allocation11_spill] sm:$0xff] %v8029_v37  ;;  %v1791_v51 = vsel %vm1779_vm8, %v7379_v11, %v7988_v43  ;;  %v1117_v16 = vsel %vm1103_vm5, %v11286_v42, %v11307_v20  ;;  %v2355_v19 = vmul.f32 %v7793_v34, %v2299_v10 }
 0x36a   : > { %2099 = vrot.lane.b32.xlu2 %v11217_v45, %s11125_s22  ;;  %v2491_v27 = vpack.c.bf16 %v1864_v18, %v1856_v32  ;;  %v8023_v50 = vpop.f32.mrf.mxu0  ;;  %11306 = vst [vmem:[#allocation100_spill] sm:$0xff] %v8039_v0  ;;  %v1173_v32 = vmul.f32 %v1149_v5, %v1116_v23  ;;  %v8055_v11 = vpop.f32.mrf.mxu1  ;;  %v11310_v23 = vld [vmem:[#allocation81_spill] sm:$0xff]  ;;  %v1181_v37 = vmul.f32 %v1149_v5, %v1117_v16 }
 0x36b   : > { %3051 = vmatpush.bf16.msrb.mxu2 %v2379_v47  ;;  %1596 = vrot.lane.b32.xlu0 %v7623_v61, %s11129_s18  ;;  %11304 = vst [vmem:[#allocation90_spill] sm:$0xff] %v8023_v50  ;;  %v1189_v47 = vmul.f32 %v1149_v5, %v1118_v31 }
 0x36c   : > { %v8010_v29 = vpop.permute.xlu2 %2095  ;;  %3074 = vmatpush.bf16.msrb.mxu0 %v2491_v27  ;;  %3135 = vmatpush.bf16.msrb.mxu3 %v2404_v21  ;;  %11308 = vst [vmem:[#allocation98_spill] sm:$0xff] %v8055_v11  ;;  %v1114_v21 = vsel %vm1103_vm5, %v11291_v30, %v11310_v23  ;;  %v2388_v30 = vpack.c.bf16 %v1181_v37, %v1173_v32 }
 0x36d   : > { %11301 = vst [vmem:[#allocation104_spill] sm:$0xff] %v8010_v29  ;;  %1586 = vrot.lane.b32.xlu1 %v7278_v55, %s11129_s18  ;;  %v2396_v27 = vpack.c.bf16 %v1326_v46, %v1189_v47  ;;  %v1157_v50 = vmul.f32 %v1149_v5, %v1114_v21 }
 0x36e   : > { %v8037_v2 = vpop.permute.xlu0 %2262  ;;  %v8049_v18 = vpop.permute.xlu1 %1753  ;;  %4752 = vmatmul.msk.bf16.gmra.mxu2 %vm2659_vm10, %v11205_v4 }
 0x36f   : > { %v2300_v55 = vsel %vm2286_vm6, %v7497_v13, %v8037_v2  ;;  %v1792_v31 = vsel %vm1779_vm8, %v7487_v12, %v8049_v18  ;;  %v11309_v13 = vld [vmem:[#allocation43_spill] sm:$0xff]  ;;  %v11313_v12 = vld [vmem:[#allocation52_spill] sm:$0xff] }
 0x370   : > { %v2363_v42 = vmul.f32 %v7793_v34, %v2300_v55  ;;  %2999 = vmatmul.bf16.gmra.mxu1 %v11309_v13  ;;  %v1848_v11 = vmul.f32 %v7977_v62, %v1792_v31  ;;  %v11312_v55 = vld [vmem:[#allocation33_spill] sm:$0xff]  ;;  %3136 = vmatpush.bf16.msrb.mxu3 %v2396_v27  ;;  %v1115_v46 = vsel %vm1103_vm5, %v11292_v44, %v11313_v12  ;;  %v11315_v31 = vld [vmem:[#allocation156_spill] sm:$0xff] }
 0x371   : > { %2980 = vmatmul.bf16.gmra.mxu0 %v11312_v55  ;;  %v2297_v16 = vsel %vm2286_vm6, %v11315_v31, %v7955_v53 }
 0x372   : > { %1588 = vrot.lane.b32.xlu2 %v7340_v54, %s11129_s18  ;;  %v1840_v54 = vmul.f32 %v7977_v62, %v1791_v51  ;;  %v2547_v0 = vpack.c.bf16 %v2363_v42, %v2355_v19  ;;  %v8079_v51 = vpop.f32.mrf.mxu0  ;;  %v1165_v19 = vmul.f32 %v1149_v5, %v1115_v46  ;;  %v2339_v32 = vmul.f32 %v7793_v34, %v2297_v16  ;;  %v11318_v42 = vld [vmem:[#allocation151_spill] sm:$0xff] }
 0x373   : > { %2097 = vrot.lane.b32.xlu0 %v7600_v6, %s11125_s22  ;;  %11314 = vst [vmem:[#allocation87_spill] sm:$0xff] %v8079_v51  ;;  %v11317_v6 = vld [vmem:[#allocation128_spill] sm:$0xff]  ;;  %v2162_v16 = vperm.slane %v7687_v33, 7  ;;  %v5189_v33 = vld [vmem:[%s5419_s28 + $0x20] sm:$0xff] }
 0x374   : > { %v8070_v10 = vpop.permute.xlu2 %1576  ;;  %v2483_v47 = vpack.c.bf16 %v1848_v11, %v1840_v54  ;;  %3104 = vmatpush.bf16.msrb.mxu1 %v2547_v0  ;;  %3137 = vmatpush.bf16.msrb.mxu3 %v2388_v30  ;;  %v8089_v11 = vpop.f32.mrf.mxu3  ;;  %v2380_v21 = vpack.c.bf16 %v1165_v19, %v1157_v50  ;;  %v5188_v30 = vld [vmem:[%s5419_s28 + $0x60] sm:$0xff]  ;;  %v11322_v50 = vld [vmem:[#allocation23_spill] sm:$0xff] }
 0x375   : > { %11311 = vst [vmem:[#allocation101_spill] sm:$0xff] %v8070_v10  ;;  %1598 = vrot.lane.b32.xlu1 %v7657_v35, %s11129_s18  ;;  %v8107_v54 = vpop.f32.mrf.mxu2  ;;  %v11324_v19 = vld [vmem:[#allocation150_spill] sm:$0xff] }
 0x376   : > { %3075 = vmatpush.bf16.msrb.mxu0 %v2483_v47  ;;  %v8087_v44 = vpop.permute.xlu0 %2258  ;;  %11316 = vst [vmem:[#allocation41_spill] sm:$0xff] %v8089_v11  ;;  %v8095_v0 = vpop.permute.xlu1 %1749 }
 0x377   : > { %v2298_v37 = vsel %vm2286_vm6, %v11317_v6, %v8087_v44  ;;  %v1790_v27 = vsel %vm1779_vm8, %v11318_v42, %v8095_v0  ;;  %4756 = vmatmul.msk.bf16.gmra.mxu3 %vm2659_vm10, %v11205_v4  ;;  %11319 = vst [vmem:[#allocation28_spill] sm:$0xff] %v8107_v54  ;;  %v2132_v6 = vsel %vm2117_vm9, %v11324_v19, %v8010_v29  ;;  %v11328_v42 = vld [vmem:[#allocation27_spill] sm:$0xff] }
 0x378   : > { %v2347_v5 = vmul.f32 %v7793_v34, %v2298_v37  ;;  %v1832_v46 = vmul.f32 %v7977_v62, %v1790_v27  ;;  %3138 = vmatpush.bf16.msrb.mxu3 %v2380_v21  ;;  %v2467_v27 = vpack.c.bf16 %v5189_v33, %v11328_v42  ;;  %v11329_v21 = vld [vmem:[#allocation31_spill] sm:$0xff]  ;;  %v5190_v33 = vld [vmem:[%s5753_s0 + $0x20] sm:$0xff] }
 0x379   : > { %v11335_v42 = vld [vmem:[#allocation18_spill] sm:$0xff] }
 0x37a   : > { %1936 = vrot.lane.b32.xlu2 %v7657_v35, %s11124_s15  ;;  %v8112_v35 = vpop.f32.mrf.mxu1  ;;  %v2539_v34 = vpack.c.bf16 %v2347_v5, %v2339_v32  ;;  %v2475_v31 = vpack.c.bf16 %v1832_v46, %v5188_v30  ;;  %v11327_v5 = vld [vmem:[#allocation146_spill] sm:$0xff]  ;;  %v11330_v46 = vld [vmem:[#allocation95_spill] sm:$0xff]  ;;  %v2459_v60 = vpack.c.bf16 %v11335_v42, %v5190_v33 }
 0x37b   : > { %11321 = vst [vmem:[#allocation39_spill] sm:$0xff] %v8112_v35  ;;  %1592 = vrot.lane.b32.xlu0 %v11217_v45, %s11129_s18  ;;  %v8120_v62 = vpop.f32.mrf.mxu0  ;;  %v11331_v30 = vld [vmem:[#allocation123_spill] sm:$0xff] }
 0x37c   : > { %v8110_v47 = vpop.permute.xlu2 %2087  ;;  %3105 = vmatpush.bf16.msrb.mxu1 %v2539_v34  ;;  %3076 = vmatpush.bf16.msrb.mxu0 %v2475_v31  ;;  %11323 = vst [vmem:[#allocation93_spill] sm:$0xff] %v8120_v62  ;;  %v2202_v31 = vmul.f32 %v2162_v16, %v2132_v6  ;;  %v8141_v19 = vpop.f32.mrf.mxu3 }
 0x37d   : > { %11320 = vst [vmem:[#allocation42_spill] sm:$0xff] %v8110_v47  ;;  %1582 = vrot.lane.b32.xlu1 %v11322_v50, %s11129_s18  ;;  %v8145_v35 = vpop.f32.mrf.mxu2 }
 0x37e   : > { %v8126_v37 = vpop.permute.xlu0 %2089  ;;  %v8128_v32 = vpop.permute.xlu1 %2093  ;;  %4753 = vmatmul.msk.bf16.gmra.mxu2 %vm2659_vm10, %v11327_v5  ;;  %11332 = vst [vmem:[#allocation58_spill] sm:$0xff] %v8141_v19 }
 0x37f   : > { %11325 = vst [vmem:[#allocation94_spill] sm:$0xff] %v8126_v37  ;;  %v2131_v34 = vsel %vm2117_vm9, %v11330_v46, %v8128_v32  ;;  %v11337_v46 = vld [vmem:[#allocation46_spill] sm:$0xff] }
 0x380   : > { %11326 = vst [vmem:[#allocation125_spill] sm:$0xff] %v8128_v32  ;;  %3004 = vmatmul.bf16.gmra.mxu1 %v11331_v30  ;;  %v2194_v54 = vmul.f32 %v2162_v16, %v2131_v34  ;;  %3077 = vmatpush.bf16.msrb.mxu0 %v2467_v27  ;;  %v1629_v6 = vsel %vm1610_vm3, %v11337_v46, %v8070_v10  ;;  %v11338_v27 = vld [vmem:[#allocation92_spill] sm:$0xff]  ;;  %v11348_v10 = vld [vmem:[#allocation54_spill] sm:$0xff] }
 0x381   : > { %11334 = vst [vmem:[#allocation110_spill] sm:$0xff] %v8145_v35  ;;  %v2129_v34 = vsel %vm2117_vm9, %v11338_v27, %v8126_v37 }
 0x382   : > { %1584 = vrot.lane.b32.xlu2 %v11329_v21, %s11129_s18  ;;  %v2531_v17 = vpack.c.bf16 %v2202_v31, %v2194_v54  ;;  %v8149_v49 = vpop.f32.mrf.mxu1  ;;  %v11340_v31 = vld [vmem:[#allocation73_spill] sm:$0xff] }
 0x383   : > { %11336 = vst [vmem:[#allocation121_spill] sm:$0xff] %v8149_v49  ;;  %1934 = vrot.lane.b32.xlu0 %v7623_v61, %s11124_s15  ;;  %v8173_v42 = vpop.f32.mrf.mxu0 }
 0x384   : > { %v8143_v51 = vpop.permute.xlu2 %1922  ;;  %3078 = vmatpush.bf16.msrb.mxu0 %v2459_v60  ;;  %3106 = vmatpush.bf16.msrb.mxu1 %v2531_v17  ;;  %11342 = vst [vmem:[#allocation26_spill] sm:$0xff] %v8173_v42  ;;  %v11343_v60 = vld [vmem:[#allocation49_spill] sm:$0xff]  ;;  %v11344_v17 = vld [vmem:[#allocation40_spill] sm:$0xff]  ;;  %v8185_v35 = vpop.f32.mrf.mxu3 }
 0x385   : > { %11333 = vst [vmem:[#allocation53_spill] sm:$0xff] %v8143_v51  ;;  %1594 = vrot.lane.b32.xlu1 %v11237_v26, %s11129_s18  ;;  %v1687_v46 = vmul.f32 %v11343_v60, %v1629_v6  ;;  %v11346_v6 = vld [vmem:[#allocation82_spill] sm:$0xff]  ;;  %s4471_s18 = scalar_lea.hbm %s10577_s11, %s4847_s20 }
 0x386   : > { %v8163_v54 = vpop.permute.xlu0 %1578  ;;  %v8169_v33 = vpop.permute.xlu1 %2091  ;;  %11345 = vst [vmem:[#allocation107_spill] sm:$0xff] %v8185_v35  ;;  %v11356_v35 = vld [vmem:[#allocation142_spill] sm:$0xff] }
 0x387   : > { %11339 = vst [vmem:[#allocation143_spill] sm:$0xff] %v8163_v54  ;;  %v1630_v61 = vsel %vm1610_vm3, %v11340_v31, %v8163_v54  ;;  %v2130_v27 = vsel %vm2117_vm9, %v11344_v17, %v8169_v33  ;;  %4757 = vmatmul.msk.bf16.gmra.mxu3 %vm2659_vm10, %v11327_v5  ;;  %v2178_v31 = vmul.f32 %v2162_v16, %v2129_v34  ;;  %v11350_v34 = vld [vmem:[#allocation85_spill] sm:$0xff]  ;;  %v11375_v5 = vld [vmem:[#allocation106_spill] sm:$0xff] }
 0x388   : > { %11341 = vst [vmem:[#allocation75_spill] sm:$0xff] %v8169_v33  ;;  %v1695_v49 = vmul.f32 %v11343_v60, %v1630_v61  ;;  %v2186_v19 = vmul.f32 %v2162_v16, %v2130_v27  ;;  %v8189_v61 = vpop.f32.mrf.mxu2  ;;  %v11353_v27 = vld [vmem:[#allocation50_spill] sm:$0xff] }
 0x389   : > { %11347 = vst [vmem:[#allocation62_spill] sm:$0xff] %v8189_v61 }
 0x38a   : > { %1932 = vrot.lane.b32.xlu2 %v11237_v26, %s11124_s15  ;;  %v2451_v62 = vpack.c.bf16 %v1695_v49, %v1687_v46  ;;  %v2523_v42 = vpack.c.bf16 %v2186_v19, %v2178_v31  ;;  %v8193_v17 = vpop.f32.mrf.mxu1  ;;  %v2128_v49 = vsel %vm2117_vm9, %v11350_v34, %v8110_v47  ;;  %v11355_v31 = vld [vmem:[#allocation22_spill] sm:$0xff]  ;;  %v8214_v34 = vld [vmem:[%s10576_s10 + $0x30] sm:$0xff] }
 0x38b   : > { %2282 = vrot.lane.b32.xlu0 %v11346_v6, %s11187_s6  ;;  %11349 = vst [vmem:[#allocation10_spill] sm:$0xff] %v8193_v17  ;;  %v2170_v61 = vmul.f32 %v2162_v16, %v2128_v49  ;;  %v8219_v54 = vpop.f32.mrf.mxu0  ;;  %v8222_v37 = vperm.slane %v8214_v34, 3  ;;  %v1961_v49 = vsel %vm1948_vm7, %v7784_v28, %v8143_v51  ;;  %v11367_v28 = vld [vmem:[#allocation84_spill] sm:$0xff] }
 0x38c   : > { %v8183_v11 = vpop.permute.xlu2 %1930  ;;  %3079 = vmatpush.bf16.msrb.mxu0 %v2451_v62  ;;  %3107 = vmatpush.bf16.msrb.mxu1 %v2523_v42  ;;  %v11354_v62 = vld [vmem:[#allocation36_spill] sm:$0xff]  ;;  %11357 = vst [vmem:[#allocation45_spill] sm:$0xff] %v8214_v34 }
 0x38d   : > { %2284 = vrot.lane.b32.xlu1 %v11348_v10, %s11187_s6  ;;  %11359 = vst [vmem:[#allocation72_spill] sm:$0xff] %v8219_v54 }
 0x38e   : > { %v8199_v46 = vpop.permute.xlu0 %1572  ;;  %v8201_v19 = vpop.permute.xlu1 %1926  ;;  %3052 = vmatmul.bf16.vlgmr.msrb.gmra.mxu2 %v11353_v27  ;;  %11360 = vst [vmem:[#allocation57_spill] sm:$0xff] %v8222_v37 }
 0x38f   : > { %11351 = vst [vmem:[#allocation103_spill] sm:$0xff] %v8199_v46  ;;  %v1963_v42 = vsel %vm1948_vm7, %v11355_v31, %v8201_v19 }
 0x390   : > { %11352 = vst [vmem:[#allocation32_spill] sm:$0xff] %v8201_v19  ;;  %3009 = vmatmul.bf16.gmra.mxu1 %v11356_v35  ;;  %v2033_v17 = vmul.f32 %v7918_v36, %v1963_v42  ;;  %v11361_v19 = vld [vmem:[#allocation112_spill] sm:$0xff]  ;;  %v8238_v42 = vpop.f32.mrf.mxu3 }
 0x391   : > { %v1451_v16 = vsel %vm1441_vm2, %v11272_v48, %v11361_v19  ;;  %11362 = vst [vmem:[#allocation65_spill] sm:$0xff] %v8238_v42  ;;  %v8250_v19 = vpop.f32.mrf.mxu2 }
 0x392   : > { %2280 = vrot.lane.b32.xlu2 %v11354_v62, %s11187_s6  ;;  %v2515_v29 = vpack.c.bf16 %v2170_v61, %v2033_v17  ;;  %v11363_v61 = vld [vmem:[#allocation91_spill] sm:$0xff]  ;;  %v11364_v17 = vld [vmem:[#allocation126_spill] sm:$0xff]  ;;  %11366 = vst [vmem:[#allocation38_spill] sm:$0xff] %v8250_v19  ;;  %v8260_v33 = vpop.f32.mrf.mxu1 }
 0x393   : > { %2113 = vrot.lane.b32.xlu0 %v11346_v6, %s11125_s22  ;;  %v1627_v54 = vsel %vm1610_vm3, %v11364_v17, %v8199_v46  ;;  %11370 = vst [vmem:[#allocation13_spill] sm:$0xff] %v8260_v33  ;;  %v2017_v17 = vmul.f32 %v7918_v36, %v1961_v49 }
 0x394   : > { %v8217_v47 = vpop.permute.xlu2 %1590  ;;  %3108 = vmatpush.bf16.msrb.mxu1 %v2515_v29  ;;  %v11369_v29 = vld [vmem:[#allocation24_spill] sm:$0xff]  ;;  %v1671_v45 = vmul.f32 %v11343_v60, %v1627_v54 }
 0x395   : > { %11358 = vst [vmem:[#allocation71_spill] sm:$0xff] %v8217_v47  ;;  %v1616_v31 = vsel %vm1610_vm3, %v7846_v22, %v8217_v47  ;;  %2276 = vrot.lane.b32.xlu1 %v11363_v61, %s11187_s6  ;;  %v1488_v22 = vperm.slane %v8214_v34, 2 }
 0x396   : > { %v8247_v47 = vpop.permute.xlu0 %1924  ;;  %v1665_v48 = vmul.f32 %v8222_v37, %v1616_v31  ;;  %v8256_v51 = vpop.permute.xlu1 %1574  ;;  %v11371_v31 = vld [vmem:[#allocation89_spill] sm:$0xff] }
 0x397   : > { %11365 = vst [vmem:[#allocation60_spill] sm:$0xff] %v8247_v47  ;;  %v1962_v42 = vsel %vm1948_vm7, %v11367_v28, %v8247_v47  ;;  %v1528_v32 = vmul.f32 %v1488_v22, %v1451_v16  ;;  %v1628_v19 = vsel %vm1610_vm3, %v11371_v31, %v8256_v51  ;;  %3139 = vmatmul.bf16.vlgmr.msrb.gmra.mxu3 %v11353_v27  ;;  %v11372_v28 = vld [vmem:[#allocation113_spill] sm:$0xff]  ;;  %v11373_v47 = vld [vmem:[#allocation99_spill] sm:$0xff]  ;;  %v8281_v27 = vpop.f32.mrf.mxu0 }
 0x398   : > { %11368 = vst [vmem:[#allocation74_spill] sm:$0xff] %v8256_v51  ;;  %v2025_v46 = vmul.f32 %v7918_v36, %v1962_v42  ;;  %v1449_v37 = vsel %vm1441_vm2, %v11373_v47, %v11372_v28  ;;  %v1679_v16 = vmul.f32 %v11343_v60, %v1628_v19  ;;  %v11374_v42 = vld [vmem:[#allocation105_spill] sm:$0xff]  ;;  %v11378_v60 = vld [vmem:[#allocation102_spill] sm:$0xff] }
 0x399   : > { %v2437_v49 = vpack.c.bf16 %v1665_v48, %v1528_v32  ;;  %v1450_v31 = vsel %vm1441_vm2, %v11375_v5, %v11374_v42  ;;  %11376 = vst [vmem:[#allocation66_spill] sm:$0xff] %v8281_v27  ;;  %v1512_v35 = vmul.f32 %v1488_v22, %v1449_v37  ;;  %v11377_v47 = vld [vmem:[#allocation109_spill] sm:$0xff]  ;;  %v8290_v32 = vperm.slane %v7815_v14, 6  ;;  %v11380_v48 = vld [vmem:[#allocation15_spill] sm:$0xff] }
 0x39a   : > { %2278 = vrot.lane.b32.xlu2 %v11369_v29, %s11187_s6  ;;  %v2507_v36 = vpack.c.bf16 %v2025_v46, %v2017_v17  ;;  %v2443_v51 = vpack.c.bf16 %v1679_v16, %v1671_v45  ;;  %v1448_v54 = vsel %vm1441_vm2, %v11282_v1, %v11377_v47  ;;  %v1520_v45 = vmul.f32 %v1488_v22, %v1450_v31  ;;  %v8304_v46 = vpop.f32.mrf.mxu3  ;;  %v11381_v16 = vld [vmem:[#allocation86_spill] sm:$0xff] }
 0x39b   : > { %2111 = vrot.lane.b32.xlu0 %v11354_v62, %s11125_s22  ;;  %v1955_v37 = vsel %vm1948_vm7, %v7744_v38, %v8183_v11  ;;  %v1447_v1 = vsel %vm1441_vm2, %v11287_v8, %v11378_v60  ;;  %11379 = vst [vmem:[#allocation25_spill] sm:$0xff] %v8304_v46  ;;  %v1504_v17 = vmul.f32 %v1488_v22, %v1448_v54  ;;  %v11384_v46 = vld [vmem:[#allocation37_spill] sm:$0xff] }
 0x39c   : > { %v8275_v33 = vpop.permute.xlu2 %1775  ;;  %3109 = vmatpush.bf16.msrb.mxu1 %v2507_v36  ;;  %3080 = vmatpush.bf16.msrb.mxu0 %v2443_v51  ;;  %v1319_v51 = vperm.slane %v8214_v34, 1  ;;  %v2429_v8 = vpack.c.bf16 %v1520_v45, %v1512_v35  ;;  %v11383_v36 = vld [vmem:[#allocation44_spill] sm:$0xff]  ;;  %v1282_v54 = vsel %vm1272_vm4, %v11289_v25, %v11384_v46  ;;  %v1496_v35 = vmul.f32 %v1488_v22, %v1447_v1 }
 0x39d   : > { %2115 = vrot.lane.b32.xlu1 %v11348_v10, %s11125_s22  ;;  %v1281_v31 = vsel %vm1272_vm4, %v11288_v57, %v11383_v36  ;;  %v11386_v36 = vld [vmem:[#allocation68_spill] sm:$0xff] }
 0x39e   : > { %v8298_v5 = vpop.permute.xlu0 %1938  ;;  %v1929_v19 = vpop.permute.xlu1 %1928  ;;  %3057 = vmatmul.bf16.gmra.mxu2 %v11380_v48  ;;  %v1359_v60 = vmul.f32 %v1319_v51, %v1282_v54  ;;  %v2421_v57 = vpack.c.bf16 %v1504_v17, %v1496_v35  ;;  %v1280_v25 = vsel %vm1272_vm4, %v11296_v52, %v11386_v36  ;;  %v11389_v17 = vld [vmem:[#allocation55_spill] sm:$0xff] }
 0x39f   : > { %v1954_v38 = vsel %vm1948_vm7, %v7938_v59, %v1929_v19  ;;  %3081 = vmatmul.bf16.vlgmr.msrb.gmra.mxu0 %v11290_v9  ;;  %v2010_v59 = vmul.f32 %v8290_v32, %v1955_v37  ;;  %v8339_v37 = vperm.slane %v8214_v34, 6  ;;  %v8343_v22 = vpop.f32.mrf.mxu0  ;;  %v1279_v52 = vsel %vm1272_vm4, %v11298_v39, %v11389_v17 }
 0x3a0   : > { %3218 = vmatpush.bf16.msra.mxu1 %v2437_v49  ;;  %v8316_v49 = vpop.f32.mrf.mxu2  ;;  %v2002_v27 = vmul.f32 %v8290_v32, %v1954_v38  ;;  %11388 = vst [vmem:[#allocation156_spill] sm:$0xff] %v8343_v22 }
 0x3a1   : > { %4758 = vmatmul.msk.bf16.vlgmr.msrb.gmra.mxu1 %vm2659_vm10, %v11381_v16  ;;  %11382 = vst [vmem:[#allocation81_spill] sm:$0xff] %v8316_v49  ;;  %v8330_v16 = vpop.f32.mrf.mxu1  ;;  %v1351_v49 = vmul.f32 %v1319_v51, %v1281_v31 }
 0x3a2   : > { %2109 = vrot.lane.b32.xlu2 %v11369_v29, %s11125_s22  ;;  %11385 = vst [vmem:[#allocation33_spill] sm:$0xff] %v8330_v16  ;;  %v2500_v45 = vpack.c.bf16 %v2010_v59, %v2002_v27  ;;  %v1949_v27 = vsel %vm1948_vm7, %v1929_v19, %v8298_v5  ;;  %v11390_v19 = vld [vmem:[#allocation83_spill] sm:$0xff]  ;;  %v8362_v59 = vpop.f32.mrf.mxu3 }
 0x3a3   : > { %1942 = vrot.lane.b32.xlu0 %v11354_v62, %s11124_s15  ;;  %11387 = vst [vmem:[#allocation52_spill] sm:$0xff] %v8339_v37  ;;  %v2413_v31 = vpack.c.bf16 %v1359_v60, %v1351_v49  ;;  %v1278_v54 = vsel %vm1272_vm4, %v11300_v63, %v11390_v19  ;;  %v2003_v39 = vmul.f32 %v8339_v37, %v1949_v27 }
 0x3a4   : > { %v8328_v47 = vpop.permute.xlu2 %1761  ;;  %3219 = vmatpush.bf16.msra.mxu1 %v2429_v8  ;;  %3160 = vmatpush.bf16.msra.mxu2 %v2500_v45  ;;  %v1343_v8 = vmul.f32 %v1319_v51, %v1280_v25  ;;  %11391 = vst [vmem:[#allocation128_spill] sm:$0xff] %v8362_v59  ;;  %v1335_v60 = vmul.f32 %v1319_v51, %v1279_v52  ;;  %v777_v52 = vld [vmem:[%s10575_s9] sm:$0xff] }
 0x3a5   : > { %1946 = vrot.lane.b32.xlu1 %v11348_v10, %s11124_s15  ;;  %v1327_v22 = vmul.f32 %v1319_v51, %v1278_v54 }
 0x3a6   : > { %v1766_v1 = vpop.permute.xlu0 %1765  ;;  %v1941_v38 = vpop.permute.xlu1 %1940 }
 0x3a7   : > { %v1950_v10 = vsel %vm1948_vm7, %v8183_v11, %v1941_v38  ;;  %3144 = vmatmul.bf16.gmra.mxu3 %v11380_v48  ;;  %v1150_v11 = vperm.slane %v8214_v34, 0  ;;  %v1788_v54 = vsel %vm1779_vm8, %v7926_v7, %v1766_v1 }
 0x3a8   : > { %3220 = vmatpush.bf16.msra.mxu1 %v2421_v57  ;;  %v2011_v35 = vmul.f32 %v8339_v37, %v1950_v10  ;;  %v8372_v49 = vpop.f32.mrf.mxu2  ;;  %v11393_v57 = vld [vmem:[#allocation29_spill] sm:$0xff]  ;;  %v2405_v37 = vpack.c.bf16 %v1343_v8, %v1335_v60  ;;  %v1783_v8 = vsel %vm1779_vm8, %v1766_v1, %v8275_v33 }
 0x3a9   : > { %11392 = vst [vmem:[#allocation151_spill] sm:$0xff] %v8372_v49  ;;  %v1113_v63 = vsel %vm1103_vm5, %v11302_v15, %v11393_v57  ;;  %v8378_v27 = vpop.f32.mrf.mxu1  ;;  %v11395_v10 = vld [vmem:[#allocation61_spill] sm:$0xff]  ;;  %v8391_v15 = vperm.slane %v8214_v34, 5  ;;  %v8414_v49 = vpop.f32.mrf.mxu0  ;;  %v11401_v34 = vld [vmem:[#allocation130_spill] sm:$0xff] }
 0x3aa   : > { %2107 = vrot.lane.b32.xlu2 %v11363_v61, %s11125_s22  ;;  %v778_v61 = vld [vmem:[%s10575_s9 + $0x8] sm:$0xff]  ;;  %v2501_v25 = vpack.c.bf16 %v2011_v35, %v2003_v39  ;;  %11394 = vst [vmem:[#allocation23_spill] sm:$0xff] %v8378_v27  ;;  %v1111_v16 = vsel %vm1103_vm5, %v11303_v56, %v11395_v10  ;;  %v11396_v39 = vld [vmem:[#allocation30_spill] sm:$0xff]  ;;  %v1190_v51 = vmul.f32 %v1150_v11, %v1113_v63  ;;  %s4475_s22 = sshll.u32 %s4471_s18, 4  ;;  %s4476_s22 = int_to_ptr.hbm [resolvable:$true] %s4475_s22 }
 0x3ab   : > { %2566 = vperm.xlu0 %4896, %v778_v61   ;;  %v1112_v56 = vsel %vm1103_vm5, %v11307_v20, %v11396_v39  ;;  %v11397_v61 = vld [vmem:[#allocation56_spill] sm:$0xff]  ;;  %v1174_v60 = vmul.f32 %v1150_v11, %v1111_v16  ;;  %11399 = vst [vmem:[#allocation150_spill] sm:$0xff] %v8414_v49  ;;  %v1858_v16 = vmul.f32 %v8391_v15, %v1783_v8  ;;  %s5214_s6 = sshra.s32 %s4476_s22, 4  ;;  %s5215_s6 = int_to_ptr.hbm [resolvable:$true] %s5214_s6 }
 0x3ac   : > { %v8369_v45 = vpop.permute.xlu2 %1773  ;;  %3221 = vmatpush.bf16.msra.mxu1 %v2413_v31  ;;  %v8388_v31 = vperm.slane %v7815_v14, 5  ;;  %3247 = vmatpush.bf16.msra.mxu3 %v2501_v25  ;;  %v11398_v25 = vld [vmem:[#allocation78_spill] sm:$0xff]  ;;  %v783_v49 = vld [vmem:[%s10575_s9 + $0x30] sm:$0xff]  ;;  %p5221_p0 = scmp.lt.s32.totalorder %s5215_s6, %s10577_s11 }
 0x3ad   : > { %1944 = vrot.lane.b32.xlu1 %v11346_v6, %s11124_s15  ;;  %v1110_v6 = vsel %vm1103_vm5, %v11313_v12, %v11397_v61  ;;  %v1109_v20 = vsel %vm1103_vm5, %v11310_v23, %v11398_v25  ;;  %v2397_v12 = vpack.c.bf16 %v1327_v22, %v1190_v51  ;;  %v1182_v22 = vmul.f32 %v1150_v11, %v1112_v56 }
 0x3ae   : > { %v1778_v35 = vpop.permute.xlu0 %1777  ;;  %v1768_v63 = vpop.permute.xlu1 %1767  ;;  %3062 = vmatmul.bf16.gmra.mxu2 %v11210_v41  ;;  %v1857_v23 = vmul.f32 %v8388_v31, %v1788_v54  ;;  %v1158_v51 = vmul.f32 %v1150_v11, %v1109_v20  ;;  %v11400_v54 = vld [vmem:[#allocation133_spill] sm:$0xff]  ;;  %v1984_v56 = vsel %vm1948_vm7, %v8298_v5, %v11401_v34  ;;  %v8466_v34 = vld [vmem:[%s10576_s10 + $0x68] ss:$0 sm:$0xff] }
 0x3af   : > { %v1784_v7 = vsel %vm1779_vm8, %v1768_v63, %v1778_v35  ;;  %3086 = vmatmul.bf16.gmra.mxu0 %v11309_v13  ;;  %v1985_v8 = vsel %vm1948_vm7, %v1941_v38, %v11400_v54  ;;  %v1166_v13 = vmul.f32 %v1150_v11, %v1110_v6  ;;  %v2389_v38 = vpack.c.bf16 %v1182_v22, %v1174_v60 }
 0x3b0   : > { %3222 = vmatpush.bf16.msra.mxu1 %v2405_v37  ;;  %v1789_v37 = vsel %vm1779_vm8, %v7994_v40, %v1768_v63  ;;  %v8436_v40 = vld [vmem:[%s10576_s10 + $0x38] sm:$0xff]  ;;  %v779_v63 = vld [vmem:[%s10575_s9 + $0x10] sm:$0xff]  ;;  %v8453_v20 = vpop.f32.mrf.mxu2 }
 0x3b1   : > { %4759 = vmatmul.msk.bf16.gmra.mxu1 %vm2659_vm10, %v7029_v58  ;;  %v1865_v1 = vmul.f32 %v8388_v31, %v1789_v37  ;;  %v8447_v37 = vpop.f32.mrf.mxu3  ;;  %11402 = vst [vmem:[#allocation27_spill] sm:$0xff] %v8453_v20  ;;  %v8468_v5 = vpop.f32.mrf.mxu1  ;;  %v11430_v20 = vld [vmem:[#allocation101_spill] sm:$0xff] }
 0x3b2   : > { %2561 = vperm.xlu2 %4898, %v777_v52   ;;  %v1866_v52 = vmul.f32 %v8391_v15, %v1784_v7  ;;  %v8445_v7 = vperm.slane %v8436_v40, 6  ;;  %11403 = vst [vmem:[#allocation31_spill] sm:$0xff] %v8468_v5 }
 0x3b3   : > { %v2492_v58 = vpack.c.bf16 %v1865_v1, %v1857_v23  ;;  %2591 = vperm.xlu0 %4896, %v783_v49   ;;  %v1786_v23 = vsel %vm1779_vm8, %v7988_v43, %v8328_v47  ;;  %v11404_v49 = vld [vmem:[#allocation129_spill] sm:$0xff]  ;;  %v8475_v1 = vperm.slane %v8436_v40, 5 }
 0x3b4   : > { %v8431_v27 = vpop.permute.xlu2 %1759  ;;  %3223 = vmatpush.bf16.msra.mxu1 %v2397_v12  ;;  %v2493_v59 = vpack.c.bf16 %v1866_v52, %v1858_v16  ;;  %v780_v12 = vld [vmem:[%s10575_s9 + $0x18] sm:$0xff]  ;;  %v2012_v11 = vmul.f32 %v8445_v7, %v1985_v8  ;;  %v1819_v6 = vsel %vm1779_vm8, %v1778_v35, %v11404_v49  ;;  %v2381_v16 = vpack.c.bf16 %v1166_v13, %v1158_v51  ;;  %v11406_v51 = vld [vmem:[#allocation48_spill] sm:$0xff] }
 0x3b5   : > { %2571 = vperm.xlu1 %4897, %v779_v63   ;;  %3161 = vmatpush.bf16.msra.mxu2 %v2492_v58  ;;  %v2004_v43 = vmul.f32 %v8445_v7, %v1984_v56  ;;  %v11405_v58 = vld [vmem:[#allocation134_spill] sm:$0xff]  ;;  %v1785_v35 = vsel %vm1779_vm8, %v8095_v0, %v8431_v27  ;;  %v1867_v8 = vmul.f32 %v8475_v1, %v1819_v6  ;;  %v782_v56 = vld [vmem:[%s10575_s9 + $0x28] sm:$0xff]  ;;  %v784_v0 = vld [vmem:[%s10575_s9 + $0x38] sm:$0xff] }
 0x3b6   : > { %3248 = vmatpush.bf16.msra.mxu3 %v2493_v59  ;;  %v1764_v60 = vpop.permute.xlu0 %1763  ;;  %v1818_v52 = vsel %vm1779_vm8, %v8275_v33, %v11405_v58  ;;  %v8484_v54 = vpop.permute.xlu1 %2274  ;;  %v1841_v59 = vmul.f32 %v8388_v31, %v1786_v23  ;;  %v1833_v49 = vmul.f32 %v8388_v31, %v1785_v35  ;;  %v11409_v58 = vld [vmem:[#allocation138_spill] sm:$0xff] }
 0x3b7   : > { %v1787_v22 = vsel %vm1779_vm8, %v8049_v18, %v1764_v60  ;;  %v2296_v33 = vsel %vm2286_vm6, %v11406_v51, %v8484_v54  ;;  %3149 = vmatmul.bf16.gmra.mxu3 %v11210_v41  ;;  %v2502_v18 = vpack.c.bf16 %v2012_v11, %v2004_v43  ;;  %v1859_v11 = vmul.f32 %v8475_v1, %v1818_v52  ;;  %v781_v35 = vld [vmem:[%s10575_s9 + $0x20] sm:$0xff] }
 0x3b8   : > { %3224 = vmatpush.bf16.msra.mxu1 %v2389_v38  ;;  %v1849_v13 = vmul.f32 %v8388_v31, %v1787_v22  ;;  %v2372_v63 = vmul.f32 %v8466_v34, %v2296_v33  ;;  %v1782_v31 = vsel %vm1779_vm8, %v1764_v60, %v8369_v45  ;;  %v5191_v33 = vld [vmem:[%s5419_s28 + $0x68] sm:$0xff] }
 0x3b9   : > { %v8511_v43 = vpop.f32.mrf.mxu3 }
 0x3ba   : > { %2576 = vperm.xlu2 %4898, %v780_v12   ;;  %v8504_v12 = vpop.f32.mrf.mxu0  ;;  %v2484_v23 = vpack.c.bf16 %v1849_v13, %v1841_v59  ;;  %v2556_v6 = vpack.c.bf16 %v2372_v63, %v2372_v63  ;;  %11408 = vst [vmem:[#allocation123_spill] sm:$0xff] %v8511_v43  ;;  %v2494_v59 = vpack.c.bf16 %v1867_v8, %v1859_v11  ;;  %v8523_v13 = vpop.f32.mrf.mxu2  ;;  %v11412_v63 = vld [vmem:[#allocation17_spill] sm:$0xff] }
 0x3bb   : > { %11407 = vst [vmem:[#allocation95_spill] sm:$0xff] %v8504_v12  ;;  %2586 = vperm.xlu0 %4896, %v782_v56   ;;  %v8530_v8 = vpop.f32.mrf.mxu1 }
 0x3bc   : > { %v8502_v38 = vpop.permute.xlu2 %2268  ;;  %3225 = vmatpush.bf16.msra.mxu1 %v2381_v16  ;;  %3162 = vmatpush.bf16.msra.mxu2 %v2484_v23  ;;  %v1817_v16 = vsel %vm1779_vm8, %v8369_v45, %v11409_v58  ;;  %v2688_v22 = vsel %vm933_vm1, %v2556_v6, 0  ;;  %11410 = vst [vmem:[#allocation18_spill] sm:$0xff] %v8523_v13  ;;  %v11441_v13 = vld [vmem:[#allocation147_spill] sm:$0xff] }
 0x3bd   : > { %2596 = vperm.xlu1 %4897, %v784_v0   ;;  %3190 = vmatpush.bf16.msra.mxu0 %v2688_v22  ;;  %11411 = vst [vmem:[#allocation46_spill] sm:$0xff] %v8530_v8  ;;  %v1851_v45 = vmul.f32 %v8475_v1, %v1817_v16  ;;  %v1850_v0 = vmul.f32 %v8391_v15, %v1782_v31 }
 0x3be   : > { %v8521_v52 = vpop.permute.xlu0 %2270  ;;  %v1772_v51 = vpop.permute.xlu1 %1771  ;;  %3067 = vmatmul.bf16.gmra.mxu2 %v11312_v55 }
 0x3bf   : > { %v1781_v60 = vsel %vm1779_vm8, %v8328_v47, %v1772_v51  ;;  %v1816_v56 = vsel %vm1779_vm8, %v1772_v51, %v11412_v63  ;;  %3091 = vmatmul.bf16.gmra.mxu0 %v11331_v30  ;;  %v5192_v47 = vld [vmem:[%s5419_s28 + $0x28] sm:$0xff]  ;;  %v11414_v51 = vld [vmem:[#allocation137_spill] sm:$0xff] }
 0x3c0   : > { %3334 = vmatpush.bf16.msrb.mxu1 %v2502_v18  ;;  %v2476_v18 = vpack.c.bf16 %v1833_v49, %v5191_v33  ;;  %v1842_v23 = vmul.f32 %v8391_v15, %v1781_v60  ;;  %v1843_v11 = vmul.f32 %v8475_v1, %v1816_v56  ;;  %v2468_v6 = vpack.c.bf16 %v5192_v47, %v11329_v21  ;;  %v5195_v47 = vld [vmem:[%s5419_s28 + $0x78] sm:$0xff] }
 0x3c1   : > { %4760 = vmatmul.msk.bf16.gmra.mxu1 %vm2659_vm10, %v11205_v4  ;;  %v8565_v60 = vpop.f32.mrf.mxu3 }
 0x3c2   : > { %3163 = vmatpush.bf16.msra.mxu2 %v2476_v18  ;;  %2581 = vperm.xlu2 %4898, %v781_v35   ;;  %v2485_v58 = vpack.c.bf16 %v1850_v0, %v1842_v23  ;;  %v2486_v16 = vpack.c.bf16 %v1851_v45, %v1843_v11  ;;  %v8549_v22 = vpop.f32.mrf.mxu0  ;;  %v5193_v18 = vld [vmem:[%s5753_s0 + $0x28] sm:$0xff]  ;;  %v8574_v56 = vpop.f32.mrf.mxu2 }
 0x3c3   : > { %11413 = vst [vmem:[#allocation92_spill] sm:$0xff] %v8549_v22  ;;  %v2460_v45 = vpack.c.bf16 %v11322_v50, %v5193_v18  ;;  %v8578_v50 = vpop.f32.mrf.mxu1 }
 0x3c4   : > { %3335 = vmatpush.bf16.msrb.mxu1 %v2494_v59  ;;  %v8545_v49 = vpop.permute.xlu2 %2099  ;;  %3249 = vmatpush.bf16.msra.mxu3 %v2485_v58  ;;  %v2294_v59 = vsel %vm2286_vm6, %v7881_v3, %v8521_v52  ;;  %11415 = vst [vmem:[#allocation73_spill] sm:$0xff] %v8574_v56 }
 0x3c5   : > { %v2356_v0 = vmul.f32 %v8466_v34, %v2294_v59  ;;  %11416 = vst [vmem:[#allocation49_spill] sm:$0xff] %v8578_v50  ;;  %v11442_v50 = vld [vmem:[#allocation57_spill] sm:$0xff] }
 0x3c6   : > { %3164 = vmatpush.bf16.msra.mxu2 %v2468_v6  ;;  %v1770_v31 = vpop.permute.xlu0 %1769  ;;  %v8561_v33 = vpop.permute.xlu1 %2272 }
 0x3c7   : > { %v1780_v35 = vsel %vm1779_vm8, %v8431_v27, %v1770_v31  ;;  %v1815_v21 = vsel %vm1779_vm8, %v1770_v31, %v11414_v51  ;;  %v2295_v27 = vsel %vm2286_vm6, %v8037_v2, %v8561_v33  ;;  %3154 = vmatmul.bf16.gmra.mxu3 %v11312_v55 }
 0x3c8   : > { %3336 = vmatpush.bf16.msrb.mxu1 %v2486_v16  ;;  %v1834_v3 = vmul.f32 %v8391_v15, %v1780_v35  ;;  %v1835_v63 = vmul.f32 %v8475_v1, %v1815_v21  ;;  %v2364_v23 = vmul.f32 %v8466_v34, %v2295_v27  ;;  %v5194_v1 = vld [vmem:[%s5419_s28 + $0x70] sm:$0xff]  ;;  %v2293_v16 = vsel %vm2286_vm6, %v8087_v44, %v8502_v38  ;;  %v5197_v21 = vld [vmem:[%s5419_s28 + $0x38] sm:$0xff]  ;;  %v11418_v44 = vld [vmem:[#allocation146_spill] sm:$0xff] }
 0x3c9   : > { %v5196_v35 = vld [vmem:[%s5419_s28 + $0x30] sm:$0xff]  ;;  %v2470_v18 = vpack.c.bf16 %v5197_v21, %v11354_v62  ;;  %v8611_v62 = vpop.f32.mrf.mxu3 }
 0x3ca   : > { %3165 = vmatpush.bf16.msra.mxu2 %v2460_v45  ;;  %v2477_v11 = vpack.c.bf16 %v1834_v3, %v5194_v1  ;;  %v2478_v6 = vpack.c.bf16 %v1835_v63, %v5195_v47  ;;  %v2548_v2 = vpack.c.bf16 %v2364_v23, %v2356_v0  ;;  %v8584_v58 = vpop.f32.mrf.mxu0  ;;  %v2469_v51 = vpack.c.bf16 %v5196_v35, %v11237_v26  ;;  %v11417_v3 = vld [vmem:[#allocation142_spill] sm:$0xff]  ;;  %v5198_v1 = vld [vmem:[%s5753_s0 + $0x30] sm:$0xff] }
 0x3cb   : > { %v2348_v63 = vmul.f32 %v8466_v34, %v2293_v16  ;;  %11419 = vst [vmem:[#allocation40_spill] sm:$0xff] %v8611_v62  ;;  %v8613_v23 = vpop.f32.mrf.mxu1 }
 0x3cc   : > { %v8580_v15 = vpop.permute.xlu2 %1588  ;;  %3250 = vmatpush.bf16.msra.mxu3 %v2477_v11  ;;  %3337 = vmatpush.bf16.msrb.mxu1 %v2478_v6  ;;  %11420 = vst [vmem:[#allocation82_spill] sm:$0xff] %v8613_v23  ;;  %v11421_v11 = vld [vmem:[#allocation21_spill] sm:$0xff] }
 0x3cd   : > { %3191 = vmatpush.bf16.msra.mxu0 %v2548_v2  ;;  %v2461_v47 = vpack.c.bf16 %v11421_v11, %v5198_v1  ;;  %v5199_v6 = vld [vmem:[%s5753_s0 + $0x38] sm:$0xff] }
 0x3ce   : > { %v8590_v59 = vpop.permute.xlu0 %2103  ;;  %v2462_v2 = vpack.c.bf16 %v11369_v29, %v5199_v6 }
 0x3cf   : > { %v8592_v31 = vpop.permute.xlu1 %2266  ;;  %3096 = vmatmul.bf16.gmra.mxu0 %v11417_v3 }
 0x3d0   : > { %v2292_v45 = vsel %vm2286_vm6, %v7955_v53, %v8592_v31  ;;  %3251 = vmatpush.bf16.msra.mxu3 %v2469_v51  ;;  %3338 = vmatpush.bf16.msrb.mxu1 %v2470_v18  ;;  %v2163_v51 = vperm.slane %v7815_v14, 7  ;;  %v11426_v14 = vld [vmem:[#allocation94_spill] sm:$0xff] }
 0x3d1   : > { %4761 = vmatmul.msk.bf16.gmra.mxu1 %vm2659_vm10, %v11418_v44  ;;  %v2340_v27 = vmul.f32 %v8466_v34, %v2292_v45  ;;  %v8609_v0 = vpop.f32.mrf.mxu2  ;;  %v11422_v34 = vld [vmem:[#allocation125_spill] sm:$0xff]  ;;  %v11424_v45 = vld [vmem:[#allocation75_spill] sm:$0xff]  ;;  %v8646_v22 = vpop.f32.mrf.mxu3 }
 0x3d2   : > { %v2126_v16 = vsel %vm2117_vm9, %v11422_v34, %v8590_v59  ;;  %v8628_v18 = vpop.f32.mrf.mxu0  ;;  %11428 = vst [vmem:[#allocation36_spill] sm:$0xff] %v8646_v22 }
 0x3d3   : > { %v2540_v53 = vpack.c.bf16 %v2348_v63, %v2340_v27  ;;  %11423 = vst [vmem:[#allocation54_spill] sm:$0xff] %v8628_v18  ;;  %v11425_v63 = vld [vmem:[#allocation104_spill] sm:$0xff] }
 0x3d4   : > { %v8607_v26 = vpop.permute.xlu2 %1936  ;;  %3252 = vmatpush.bf16.msra.mxu3 %v2461_v47  ;;  %3339 = vmatpush.bf16.msrb.mxu1 %v2462_v2  ;;  %v2124_v47 = vsel %vm2117_vm9, %v11426_v14, %v8545_v49  ;;  %v11463_v18 = vld [vmem:[#allocation152_spill] sm:$0xff] }
 0x3d5   : > { %3192 = vmatpush.bf16.msra.mxu0 %v2540_v53  ;;  %v2195_v53 = vmul.f32 %v2163_v51, %v2126_v16  ;;  %v11429_v16 = vld [vmem:[#allocation143_spill] sm:$0xff] }
 0x3d6   : > { %v8623_v35 = vpop.permute.xlu0 %2101 }
 0x3d7   : > { %v8626_v21 = vpop.permute.xlu1 %2105  ;;  %v2125_v29 = vsel %vm2117_vm9, %v11424_v45, %v8623_v35  ;;  %v2179_v45 = vmul.f32 %v2163_v51, %v2124_v47 }
 0x3d8   : > { %v2127_v27 = vsel %vm2117_vm9, %v11425_v63, %v8626_v21  ;;  %v2187_v2 = vmul.f32 %v2163_v51, %v2125_v29  ;;  %v1625_v63 = vsel %vm1610_vm3, %v11429_v16, %v8580_v15  ;;  %v11431_v29 = vld [vmem:[#allocation50_spill] sm:$0xff] }
 0x3d9   : > { %v2203_v1 = vmul.f32 %v2163_v51, %v2127_v27  ;;  %v8644_v6 = vpop.f32.mrf.mxu2 }
 0x3da   : > { %11427 = vst [vmem:[#allocation85_spill] sm:$0xff] %v8644_v6  ;;  %v2524_v8 = vpack.c.bf16 %v2187_v2, %v2179_v45  ;;  %v8662_v22 = vpop.f32.mrf.mxu0  ;;  %v11436_v2 = vld [vmem:[#allocation32_spill] sm:$0xff] }
 0x3db   : > { %v2532_v34 = vpack.c.bf16 %v2203_v1, %v2195_v53  ;;  %v11432_v53 = vld [vmem:[#allocation14_spill] sm:$0xff]  ;;  %11434 = vst [vmem:[#allocation91_spill] sm:$0xff] %v8662_v22  ;;  %v1958_v45 = vsel %vm1948_vm7, %v11436_v2, %v8607_v26 }
 0x3dc   : > { %v8638_v11 = vpop.permute.xlu2 %1584  ;;  %v1696_v1 = vmul.f32 %v11432_v53, %v1625_v63 }
 0x3dd   : > { %v8648_v56 = vpop.f32.mrf.mxu1  ;;  %3193 = vmatpush.bf16.msra.mxu0 %v2532_v34 }
 0x3de   : > { %v1597_v27 = vpop.permute.xlu0 %1596 }
 0x3df   : > { %v1587_v23 = vpop.permute.xlu1 %1586 }
 0x3e0   : > { %v1624_v14 = vsel %vm1610_vm3, %v11430_v20, %v1587_v23 }
 0x3e1   : > { %3226 = vmatmul.bf16.vlgmr.msra.gmra.mxu1 %v11431_v29  ;;  %v1688_v47 = vmul.f32 %v11432_v53, %v1624_v14  ;;  %3194 = vmatpush.bf16.msra.mxu0 %v2524_v8  ;;  %v8664_v43 = vpop.f32.mrf.mxu2  ;;  %v11438_v29 = vld [vmem:[#allocation154_spill] sm:$0xff]  ;;  %v1619_v8 = vsel %vm1610_vm3, %v1587_v23, %v1597_v27 }
 0x3e2   : > { %11435 = vst [vmem:[#allocation126_spill] sm:$0xff] %v8664_v43  ;;  %v1614_v63 = vsel %vm1610_vm3, %v1597_v27, %v11438_v29  ;;  %v1658_v43 = vperm.slane %v8436_v40, 3  ;;  %v8699_v3 = vpop.f32.mrf.mxu0 }
 0x3e3   : > { %v2452_v16 = vpack.c.bf16 %v1696_v1, %v1688_v47  ;;  %v8680_v1 = vpop.f32.mrf.mxu3  ;;  %v11440_v47 = vld [vmem:[#allocation42_spill] sm:$0xff] }
 0x3e4   : > { %v8660_v34 = vpop.permute.xlu2 %1932  ;;  %11439 = vst [vmem:[#allocation24_spill] sm:$0xff] %v8680_v1  ;;  %v1690_v27 = vmul.f32 %v1658_v43, %v1614_v63  ;;  %v1689_v1 = vmul.f32 %v11442_v50, %v1619_v8 }
 0x3e5   : > { %11433 = vst [vmem:[#allocation22_spill] sm:$0xff] %v8660_v34  ;;  %v8670_v20 = vpop.f32.mrf.mxu1  ;;  %3166 = vmatpush.bf16.msra.mxu2 %v2452_v16  ;;  %v2034_v16 = vmul.f32 %v8290_v32, %v1958_v45 }
 0x3e6   : > { %11437 = vst [vmem:[#allocation84_spill] sm:$0xff] %v8670_v20  ;;  %v8677_v14 = vpop.permute.xlu0 %2097  ;;  %v11462_v20 = vld [vmem:[#allocation60_spill] sm:$0xff] }
 0x3e7   : > { %v2123_v2 = vsel %vm2117_vm9, %v11440_v47, %v8677_v14  ;;  %v1599_v22 = vpop.permute.xlu1 %1598 }
 0x3e8   : > { %v2171_v12 = vmul.f32 %v2163_v51, %v2123_v2  ;;  %v1615_v29 = vsel %vm1610_vm3, %v1599_v22, %v11441_v13  ;;  %v1620_v23 = vsel %vm1610_vm3, %v8580_v15, %v1599_v22  ;;  %v11444_v22 = vld [vmem:[#allocation74_spill] sm:$0xff] }
 0x3e9   : > { %v1697_v44 = vmul.f32 %v11442_v50, %v1620_v23  ;;  %v1698_v62 = vmul.f32 %v1658_v43, %v1615_v29  ;;  %v8697_v47 = vpop.f32.mrf.mxu2  ;;  %v1623_v15 = vsel %vm1610_vm3, %v11444_v22, %v8638_v11  ;;  %v11445_v29 = vld [vmem:[#allocation103_spill] sm:$0xff]  ;;  %v11449_v22 = vld [vmem:[#allocation34_spill] sm:$0xff] }
 0x3ea   : > { %v2516_v45 = vpack.c.bf16 %v2171_v12, %v2034_v16 }
 0x3eb   : > { %v2453_v51 = vpack.c.bf16 %v1697_v44, %v1689_v1  ;;  %v2454_v2 = vpack.c.bf16 %v1698_v62, %v1690_v27  ;;  %v8711_v44 = vpop.f32.mrf.mxu3  ;;  %v1680_v62 = vmul.f32 %v11432_v53, %v1623_v15  ;;  %v1108_v15 = vsel %vm1103_vm5, %v11393_v57, %v11449_v22  ;;  %v11454_v57 = vld [vmem:[#allocation53_spill] sm:$0xff] }
 0x3ec   : > { %v8695_v5 = vpop.permute.xlu2 %2280  ;;  %3195 = vmatpush.bf16.msra.mxu0 %v2516_v45  ;;  %11446 = vst [vmem:[#allocation113_spill] sm:$0xff] %v8711_v44  ;;  %v8720_v45 = vperm.slane %v8436_v40, 0 }
 0x3ed   : > { %v8701_v13 = vpop.f32.mrf.mxu1  ;;  %3253 = vmatpush.bf16.msra.mxu3 %v2453_v51  ;;  %3340 = vmatpush.bf16.msrb.mxu1 %v2454_v2  ;;  %v11448_v51 = vld [vmem:[#allocation16_spill] sm:$0xff] }
 0x3ee   : > { %11443 = vst [vmem:[#allocation89_spill] sm:$0xff] %v8701_v13  ;;  %v1593_v63 = vpop.permute.xlu0 %1592  ;;  %v1107_v2 = vsel %vm1103_vm5, %v11396_v39, %v11448_v51  ;;  %v1956_v51 = vsel %vm1948_vm7, %v11454_v57, %v8660_v34  ;;  %v11457_v13 = vld [vmem:[#allocation114_spill] sm:$0xff]  ;;  %v11461_v34 = vld [vmem:[#allocation119_spill] sm:$0xff] }
 0x3ef   : > { %v1583_v8 = vpop.permute.xlu1 %1582 }
 0x3f0   : > { %v1622_v12 = vsel %vm1610_vm3, %v11445_v29, %v1583_v8  ;;  %v11450_v29 = vld [vmem:[#allocation127_spill] sm:$0xff] }
 0x3f1   : > { %3231 = vmatmul.bf16.gmra.mxu1 %v11380_v48  ;;  %v1672_v1 = vmul.f32 %v11432_v53, %v1622_v12  ;;  %v8717_v23 = vpop.f32.mrf.mxu2  ;;  %v11451_v53 = vld [vmem:[#allocation71_spill] sm:$0xff] }
 0x3f2   : > { %11447 = vst [vmem:[#allocation99_spill] sm:$0xff] %v8717_v23  ;;  %v1611_v12 = vsel %vm1610_vm3, %v11451_v53, %v11450_v29  ;;  %v11453_v48 = vld [vmem:[#allocation67_spill] sm:$0xff]  ;;  %v8751_v29 = vpop.f32.mrf.mxu0  ;;  %v11456_v53 = vld [vmem:[#allocation64_spill] sm:$0xff] }
 0x3f3   : > { %v2444_v27 = vpack.c.bf16 %v1680_v62, %v1672_v1  ;;  %v8735_v62 = vperm.slane %v8436_v40, 1  ;;  %v11452_v1 = vld [vmem:[#allocation59_spill] sm:$0xff]  ;;  %v1106_v39 = vsel %vm1103_vm5, %v11395_v10, %v11453_v48  ;;  %11455 = vst [vmem:[#allocation105_spill] sm:$0xff] %v8751_v29  ;;  %v1612_v48 = vsel %vm1610_vm3, %v1593_v63, %v11457_v13  ;;  %v11460_v23 = vld [vmem:[#allocation112_spill] sm:$0xff] }
 0x3f4   : > { %v8715_v16 = vpop.permute.xlu2 %2278  ;;  %v1274_v44 = vsel %vm1272_vm4, %v11389_v17, %v11452_v1  ;;  %v1275_v17 = vsel %vm1272_vm4, %v11386_v36, %v11456_v53  ;;  %v8758_v1 = vperm.slane %v8436_v40, 2  ;;  %v1617_v10 = vsel %vm1610_vm3, %v1583_v8, %v1593_v63 }
 0x3f5   : > { %v8749_v22 = vpop.f32.mrf.mxu1  ;;  %3167 = vmatpush.bf16.msra.mxu2 %v2444_v27  ;;  %v11459_v27 = vld [vmem:[#allocation111_spill] sm:$0xff]  ;;  %v1445_v36 = vsel %vm1441_vm2, %v11374_v42, %v11461_v34  ;;  %v1666_v53 = vmul.f32 %v1658_v43, %v1611_v12  ;;  %v2018_v63 = vmul.f32 %v8290_v32, %v1956_v51  ;;  %v1674_v42 = vmul.f32 %v1658_v43, %v1612_v48 }
 0x3f6   : > { %v8765_v57 = vpop.permute.xlu0 %1934  ;;  %v1446_v29 = vsel %vm1441_vm2, %v11460_v23, %v11459_v27  ;;  %v1673_v34 = vmul.f32 %v11442_v50, %v1617_v10  ;;  %v11464_v51 = vld [vmem:[#allocation63_spill] sm:$0xff]  ;;  %v8803_v10 = vmul.f32 %v8720_v45, %v1106_v39  ;;  %v8819_v39 = vmul.f32 %v8720_v45, %v1108_v15 }
 0x3f7   : > { %11458 = vst [vmem:[#allocation106_spill] sm:$0xff] %v8765_v57  ;;  %v1957_v13 = vsel %vm1948_vm7, %v11462_v20, %v8765_v57  ;;  %v1595_v6 = vpop.permute.xlu1 %1594 }
 0x3f8   : > { %v2026_v8 = vmul.f32 %v8290_v32, %v1957_v13  ;;  %v1613_v23 = vsel %vm1610_vm3, %v1595_v6, %v11463_v18  ;;  %v1618_v27 = vsel %vm1610_vm3, %v8638_v11, %v1595_v6  ;;  %3168 = vmatmul.bf16.vlgmr.msra.gmra.mxu2 %v11290_v9  ;;  %v1105_v32 = vsel %vm1103_vm5, %v11397_v61, %v11464_v51  ;;  %v8809_v13 = vpop.f32.mrf.mxu3  ;;  %v11468_v51 = vld [vmem:[#allocation102_spill] sm:$0xff] }
 0x3f9   : > { %v1681_v20 = vmul.f32 %v11442_v50, %v1618_v27  ;;  %v1682_v12 = vmul.f32 %v1658_v43, %v1613_v23  ;;  %v8797_v18 = vmul.f32 %v8735_v62, %v1275_v17  ;;  %v1529_v11 = vmul.f32 %v8758_v1, %v1446_v29  ;;  %v8800_v6 = vpop.f32.mrf.mxu2  ;;  %v11466_v50 = vld [vmem:[#allocation115_spill] sm:$0xff] }
 0x3fa   : > { %11465 = vst [vmem:[#allocation37_spill] sm:$0xff] %v8800_v6  ;;  %v2508_v48 = vpack.c.bf16 %v2026_v8, %v2018_v63  ;;  %v1444_v43 = vsel %vm1441_vm2, %v11372_v28, %v11466_v50  ;;  %v8812_v17 = vmul.f32 %v8735_v62, %v1274_v44  ;;  %v1521_v29 = vmul.f32 %v8758_v1, %v1445_v36  ;;  %v11467_v8 = vld [vmem:[#allocation116_spill] sm:$0xff]  ;;  %v11469_v36 = vld [vmem:[#allocation69_spill] sm:$0xff] }
 0x3fb   : > { %v2445_v23 = vpack.c.bf16 %v1681_v20, %v1673_v34  ;;  %v2446_v61 = vpack.c.bf16 %v1682_v12, %v1674_v42  ;;  %v2438_v27 = vpack.c.bf16 %v1666_v53, %v1529_v11  ;;  %v8816_v63 = vmul.f32 %v8720_v45, %v1107_v2  ;;  %v11470_v20 = vld [vmem:[#allocation70_spill] sm:$0xff]  ;;  %v11471_v12 = vld [vmem:[#allocation44_spill] sm:$0xff] }
 0x3fc   : > { %v8790_v57 = vpop.permute.xlu2 %2109  ;;  %3196 = vmatpush.bf16.msra.mxu0 %v2508_v48  ;;  %v1442_v28 = vsel %vm1441_vm2, %v11468_v51, %v11467_v8  ;;  %v8828_v44 = vmul.f32 %v8720_v45, %v1105_v32  ;;  %v1277_v2 = vsel %vm1272_vm4, %v11384_v46, %v11469_v36  ;;  %v1513_v15 = vmul.f32 %v8758_v1, %v1444_v43  ;;  %v11472_v48 = vld [vmem:[#allocation80_spill] sm:$0xff]  ;;  %v11475_v8 = vld [vmem:[#allocation86_spill] sm:$0xff]  ;;  %v8857_v51 = vpop.f32.mrf.mxu0 }
 0x3fd   : > { %v8825_v34 = vpop.f32.mrf.mxu1  ;;  %3254 = vmatpush.bf16.msra.mxu3 %v2445_v23  ;;  %3341 = vmatpush.bf16.msrb.mxu1 %v2446_v61  ;;  %v1276_v11 = vsel %vm1272_vm4, %v11471_v12, %v11470_v20  ;;  %v1273_v32 = vsel %vm1272_vm4, %v11390_v19, %v11472_v48  ;;  %v11473_v50 = vld [vmem:[#allocation108_spill] sm:$0xff]  ;;  %v11474_v23 = vld [vmem:[#allocation109_spill] sm:$0xff]  ;;  %11476 = vst [vmem:[#allocation68_spill] sm:$0xff] %v8857_v51  ;;  %v11477_v12 = vld [vmem:[#allocation131_spill] sm:$0xff] }
 0x3fe   : > { %v2283_v53 = vpop.permute.xlu0 %2282  ;;  %v1443_v46 = vsel %vm1441_vm2, %v11474_v23, %v11473_v50  ;;  %v4905_v43 = vld [vmem:[%s10576_s10 + $0x70] ss:$0 sm:$0xff]  ;;  %v4906_v61 = vld [vmem:[%s10576_s10 + $0x78] ss:$0 sm:$0xff]  ;;  %v1497_v36 = vmul.f32 %v8758_v1, %v1442_v28  ;;  %v2430_v50 = vpack.c.bf16 %v1521_v29, %v1513_v15  ;;  %v1360_v23 = vmul.f32 %v8735_v62, %v1277_v2  ;;  %v11479_v2 = vld [vmem:[#allocation135_spill] sm:$0xff] }
 0x3ff   : > { %4762 = vmatmul.msk.bf16.vlgmr.msra.gmra.mxu0 %vm2659_vm10, %v11475_v8  ;;  %v2290_v42 = vsel %vm2286_vm6, %v8561_v33, %v2283_v53  ;;  %v11478_v51 = vld [vmem:[#allocation77_spill] sm:$0xff]  ;;  %v1505_v29 = vmul.f32 %v8758_v1, %v1443_v46  ;;  %v2325_v15 = vsel %vm2286_vm6, %v2283_v53, %v11479_v2  ;;  %v8886_v33 = vmul.f32 %v8735_v62, %v1273_v32 }
 0x400   : > { %3305 = vmatpush.bf16.msrb.mxu0 %v2438_v27  ;;  %v2285_v27 = vpop.permute.xlu1 %2284  ;;  %3255 = vmatmul.bf16.vlgmr.msra.gmra.mxu3 %v11290_v9  ;;  %v2288_v1 = vsel %vm2286_vm6, %v8502_v38, %v8715_v16  ;;  %v2365_v53 = vmul.f32 %v4905_v43, %v2290_v42  ;;  %v8902_v46 = vpop.f32.mrf.mxu3 }
 0x401   : > { %v2291_v20 = vsel %vm2286_vm6, %v8484_v54, %v2285_v27  ;;  %v2326_v48 = vsel %vm2286_vm6, %v2285_v27, %v11477_v12  ;;  %3236 = vmatmul.bf16.gmra.mxu1 %v11210_v41  ;;  %v1352_v54 = vmul.f32 %v8735_v62, %v1276_v11  ;;  %v1104_v27 = vsel %vm1103_vm5, %v11398_v25, %v11478_v51  ;;  %v8900_v62 = vpop.f32.mrf.mxu2  ;;  %v11481_v51 = vld [vmem:[#allocation136_spill] sm:$0xff]  ;;  %v11482_v41 = vld [vmem:[#allocation45_spill] sm:$0xff] }
 0x402   : > { %v2373_v19 = vmul.f32 %v4905_v43, %v2291_v20  ;;  %v2374_v6 = vmul.f32 %v4906_v61, %v2326_v48  ;;  %v2289_v11 = vsel %vm2286_vm6, %v8521_v52, %v8695_v5  ;;  %v11480_v48 = vld [vmem:[#allocation132_spill] sm:$0xff]  ;;  %v2422_v32 = vpack.c.bf16 %v1505_v29, %v1497_v36 }
 0x403   : > { %v2324_v25 = vsel %vm2286_vm6, %v8695_v5, %v11480_v48  ;;  %v2323_v52 = vsel %vm2286_vm6, %v8715_v16, %v11481_v51  ;;  %v8913_v38 = vmul.f32 %v8720_v45, %v1104_v27  ;;  %v2357_v42 = vmul.f32 %v4905_v43, %v2289_v11  ;;  %v11483_v27 = vld [vmem:[#allocation140_spill] sm:$0xff]  ;;  %v11487_v51 = vld [vmem:[#allocation149_spill] sm:$0xff] }
 0x404   : > { %v8874_v28 = vpop.permute.xlu2 %2107  ;;  %3306 = vmatpush.bf16.msrb.mxu0 %v2430_v50  ;;  %v2557_v20 = vpack.c.bf16 %v2373_v19, %v2373_v19  ;;  %v2558_v12 = vpack.c.bf16 %v2374_v6, %v2374_v6  ;;  %v2366_v6 = vmul.f32 %v4906_v61, %v2325_v15  ;;  %v2414_v29 = vpack.c.bf16 %v1360_v23, %v1352_v54  ;;  %v11484_v23 = vld [vmem:[#allocation43_spill] sm:$0xff] }
 0x405   : > { %v8908_v19 = vpop.f32.mrf.mxu1  ;;  %v2358_v2 = vmul.f32 %v4906_v61, %v2324_v25  ;;  %v2349_v48 = vmul.f32 %v4905_v43, %v2288_v1  ;;  %v8916_v8 = vperm.slane %v11482_v41, 7  ;;  %v2398_v15 = vpack.c.bf16 %v8886_v33, %v8819_v39  ;;  %v8931_v33 = vpop.f32.mrf.mxu0 }
 0x406   : > { %v2691_v5 = vsel %vm933_vm1, %v2557_v20, 0  ;;  %v2694_v50 = vsel %vm933_vm1, %v2558_v12, 0  ;;  %v2114_v36 = vpop.permute.xlu0 %2113  ;;  %v2350_v20 = vmul.f32 %v4906_v61, %v2323_v52  ;;  %v2549_v54 = vpack.c.bf16 %v2365_v53, %v2357_v42  ;;  %v11488_v52 = vld [vmem:[#allocation10_spill] sm:$0xff] }
 0x407   : > { %3277 = vmatpush.bf16.msrb.mxu2 %v2691_v5  ;;  %3364 = vmatpush.bf16.msrb.mxu3 %v2694_v50  ;;  %v2119_v41 = vsel %vm2117_vm9, %v8545_v49, %v8790_v57  ;;  %v2550_v39 = vpack.c.bf16 %v2366_v6, %v2358_v2  ;;  %v2121_v49 = vsel %vm2117_vm9, %v8590_v59, %v2114_v36  ;;  %v11489_v50 = vld [vmem:[#allocation144_spill] sm:$0xff] }
 0x408   : > { %3307 = vmatpush.bf16.msrb.mxu0 %v2422_v32  ;;  %v2277_v16 = vpop.permute.xlu1 %2276  ;;  %3173 = vmatmul.bf16.gmra.mxu2 %v11484_v23  ;;  %v2156_v42 = vsel %vm2117_vm9, %v2114_v36, %v11489_v50 }
 0x409   : > { %v2287_v45 = vsel %vm2286_vm6, %v8592_v31, %v2277_v16  ;;  %v2322_v11 = vsel %vm2286_vm6, %v2277_v16, %v11483_v27  ;;  %v11486_v31 = vld [vmem:[#allocation155_spill] sm:$0xff]  ;;  %v11491_v16 = vld [vmem:[#allocation110_spill] sm:$0xff]  ;;  %v11492_v27 = vld [vmem:[#allocation128_spill] sm:$0xff] }
 0x40a   : > { %v2341_v12 = vmul.f32 %v4905_v43, %v2287_v45  ;;  %v2342_v25 = vmul.f32 %v4906_v61, %v2322_v11 }
 0x40b   : > { %3278 = vmatpush.bf16.msrb.mxu2 %v2549_v54  ;;  %3365 = vmatpush.bf16.msrb.mxu3 %v2550_v39  ;;  %v2165_v54 = vperm.slane %v8436_v40, 7  ;;  %v11495_v40 = vpack.c.bf16 %v8797_v18, %v8812_v17  ;;  %v11497_v39 = vld [vmem:[#allocation93_spill] sm:$0xff] }
 0x40c   : > { %v8933_v1 = vpop.permute.xlu2 %2561  ;;  %3308 = vmatpush.bf16.msrb.mxu0 %v2414_v29  ;;  %v2541_v43 = vpack.c.bf16 %v2349_v48, %v2341_v12  ;;  %v2542_v61 = vpack.c.bf16 %v2350_v20, %v2342_v25  ;;  %v11490_v29 = vld [vmem:[#allocation19_spill] sm:$0xff]  ;;  %v8958_v48 = vmul.f32 %v8916_v8, %v2119_v41  ;;  %v2118_v20 = vsel %vm2117_vm9, %v8677_v14, %v8874_v28  ;;  %v8967_v12 = vpop.f32.mrf.mxu2  ;;  %v11496_v25 = vld [vmem:[#allocation88_spill] sm:$0xff] }
 0x40d   : > { %11485 = vst [vmem:[#allocation55_spill] sm:$0xff] %v8933_v1  ;;  %v2706_v32 = vadd.f32 %v11486_v31, %v8933_v1  ;;  %v2793_v53 = vadd.f32 %v11487_v51, %v8933_v1  ;;  %v2880_v5 = vadd.f32 %v11488_v52, %v8933_v1  ;;  %v2967_v6 = vadd.f32 %v8584_v58, %v8933_v1  ;;  %v11493_v31 = vld [vmem:[#allocation141_spill] sm:$0xff]  ;;  %v8960_v58 = vpop.f32.mrf.mxu1  ;;  %v8974_v51 = vpop.f32.mrf.mxu3 }
 0x40e   : > { %v2154_v59 = vsel %vm2117_vm9, %v8790_v57, %v11493_v31  ;;  %11494 = vst [vmem:[#allocation83_spill] sm:$0xff] %v8967_v12  ;;  %v2112_v57 = vpop.permute.xlu0 %2111  ;;  %v11498_v52 = vld [vmem:[#allocation145_spill] sm:$0xff]  ;;  %v11557_v12 = vld [vmem:[#allocation106_spill] sm:$0xff] }
 0x40f   : > { %v2735_v2 = vadd.f32 %v11490_v29, %v2706_v32  ;;  %v2822_v45 = vadd.f32 %v11491_v16, %v2793_v53  ;;  %v2909_v11 = vadd.f32 %v11492_v27, %v2880_v5  ;;  %v2996_v36 = vadd.f32 %v8648_v56, %v2967_v6  ;;  %3279 = vmatpush.bf16.msrb.mxu2 %v2541_v43  ;;  %v11499_v43 = vld [vmem:[#allocation8_spill] sm:$0xff]  ;;  %v11501_v29 = vld [vmem:[#allocation139_spill] sm:$0xff] }
 0x410   : > { %3309 = vmatpush.bf16.msrb.mxu0 %v11495_v40  ;;  %v2196_v56 = vmul.f32 %v8916_v8, %v2121_v49  ;;  %v2197_v53 = vmul.f32 %v2165_v54, %v2156_v42  ;;  %v2153_v14 = vsel %vm2117_vm9, %v8874_v28, %v11498_v52  ;;  %3366 = vmatpush.bf16.msrb.mxu3 %v2542_v61  ;;  %v2116_v5 = vpop.permute.xlu1 %2115  ;;  %v11500_v49 = vld [vmem:[#allocation7_spill] sm:$0xff] }
 0x411   : > { %v2764_v41 = vadd.f32 %v11496_v25, %v2735_v2  ;;  %v2851_v32 = vadd.f32 %v11497_v39, %v2822_v45  ;;  %4763 = vmatmul.msk.bf16.gmra.mxu0 %vm2659_vm10, %v11499_v43  ;;  %v2120_v18 = vsel %vm2117_vm9, %v8623_v35, %v2112_v57  ;;  %v2938_v17 = vadd.f32 %v8609_v0, %v2909_v11  ;;  %v11503_v45 = vld [vmem:[#allocation76_spill] sm:$0xff]  ;;  %v11505_v11 = vld [vmem:[#allocation41_spill] sm:$0xff] }
 0x412   : > { %3241 = vmatmul.bf16.gmra.mxu1 %v11312_v55  ;;  %v2155_v42 = vsel %vm2117_vm9, %v2112_v57, %v11500_v49  ;;  %v3025_v28 = vadd.f32 %v8809_v13, %v2996_v36  ;;  %v2122_v61 = vsel %vm2117_vm9, %v8626_v21, %v2116_v5  ;;  %v2157_v35 = vsel %vm2117_vm9, %v2116_v5, %v11501_v29  ;;  %v9005_v21 = vpop.f32.mrf.mxu0  ;;  %v11506_v36 = vld [vmem:[#allocation23_spill] sm:$0xff]  ;;  %v11507_v39 = vld [vmem:[#allocation96_spill] sm:$0xff]  ;;  %v11509_v5 = vld [vmem:[#allocation81_spill] sm:$0xff] }
 0x413   : > { %v4774_v6 = vmul.f32 -1.442695, %v2764_v41  ;;  %v4775_v50 = vmul.f32 -1.442695, %v2851_v32  ;;  %3260 = vmatmul.bf16.gmra.mxu3 %v11484_v23  ;;  %v2204_v2 = vmul.f32 %v8916_v8, %v2122_v61  ;;  %v2205_v16 = vmul.f32 %v2165_v54, %v2157_v35  ;;  %11504 = vst [vmem:[#allocation61_spill] sm:$0xff] %v9005_v21  ;;  %v11558_v21 = vld [vmem:[#allocation157_spill] sm:$0xff] }
 0x414   : > { %v8999_v0 = vpop.permute.xlu2 %2576  ;;  %3310 = vmatpush.bf16.msrb.mxu0 %v2398_v15  ;;  %v2188_v27 = vmul.f32 %v8916_v8, %v2120_v18  ;;  %v2189_v57 = vmul.f32 %v2165_v54, %v2155_v42  ;;  %v4776_v15 = vmul.f32 -1.442695, %v2938_v17  ;;  %v2181_v49 = vmul.f32 %v2165_v54, %v2154_v59 }
 0x415   : > { %11502 = vst [vmem:[#allocation29_spill] sm:$0xff] %v8999_v0  ;;  %4907 = vpow2.f32 %v4774_v6  ;;  %v2713_v13 = vadd.f32 %v11503_v45, %v8999_v0  ;;  %v2800_v31 = vadd.f32 %v11505_v11, %v8999_v0  ;;  %v2887_v40 = vadd.f32 %v11506_v36, %v8999_v0  ;;  %v9012_v52 = vpop.f32.mrf.mxu1  ;;  %v3053_v45 = vpop.f32.mrf.mxu2 }
 0x416   : > { %4909 = vpow2.f32 %v4775_v50  ;;  %v2533_v25 = vpack.c.bf16 %v2204_v2, %v2196_v56  ;;  %v2534_v41 = vpack.c.bf16 %v2205_v16, %v2197_v53  ;;  %11508 = vst [vmem:[#allocation30_spill] sm:$0xff] %v9012_v52  ;;  %v2974_v50 = vadd.f32 %v8699_v3, %v8999_v0  ;;  %v9018_v29 = vpop.permute.xlu0 %1942  ;;  %v11510_v56 = vld [vmem:[#allocation9_spill] sm:$0xff]  ;;  %v11512_v2 = vld [vmem:[#allocation66_spill] sm:$0xff] }
 0x417   : > { %v2742_v32 = vadd.f32 %v11507_v39, %v2713_v13  ;;  %v2829_v6 = vadd.f32 %v11509_v5, %v2800_v31  ;;  %v2916_v18 = vadd.f32 %v8565_v60, %v2887_v40  ;;  %v4777_v61 = vmul.f32 -1.442695, %v3025_v28 }
 0x418   : > { %3280 = vmatpush.bf16.msrb.mxu2 %v2533_v25  ;;  %3367 = vmatpush.bf16.msrb.mxu3 %v2534_v41  ;;  %v2382_v17 = vpack.c.bf16 %v8828_v44, %v8913_v38  ;;  %v2172_v42 = vmul.f32 %v8916_v8, %v2118_v20  ;;  %v2173_v35 = vmul.f32 %v2165_v54, %v2153_v14  ;;  %v1947_v59 = vpop.permute.xlu1 %1946  ;;  %v3031_v38 = vpop.f32.mrf.mxu3  ;;  %4911 = vpow2.f32 %v4776_v15 }
 0x419   : > { %v2771_v53 = vadd.f32 %v11510_v56, %v2742_v32  ;;  %v11511_v60 = vpack.c.bf16 %v8816_v63, %v8803_v10  ;;  %v2858_v3 = vadd.f32 %v11512_v2, %v2829_v6  ;;  %v2525_v28 = vpack.c.bf16 %v2188_v27, %v8958_v48  ;;  %3178 = vmatmul.bf16.gmra.mxu2 %v11331_v30  ;;  %v11514_v27 = vld [vmem:[#allocation52_spill] sm:$0xff]  ;;  %v11518_v56 = vld [vmem:[#allocation13_spill] sm:$0xff] }
 0x41a   : > { %v2945_v13 = vadd.f32 %v8697_v47, %v2916_v18  ;;  %v3003_v11 = vadd.f32 %v8749_v22, %v2974_v50  ;;  %v2526_v44 = vpack.c.bf16 %v2189_v57, %v2181_v49  ;;  %v3054_v63 = vadd.f32 %v3053_v45, %v8933_v1  ;;  %v11513_v22 = vld [vmem:[#allocation148_spill] sm:$0xff]  ;;  %v11517_v49 = vld [vmem:[#allocation117_spill] sm:$0xff] }
 0x41b   : > { %3311 = vmatpush.bf16.msrb.mxu0 %v11511_v60  ;;  %v4908_v16 = vpop.eup %4907  ;;  %v4798_v31 = vmul.f32 -1.442695, %v2771_v53  ;;  %v1953_v54 = vsel %vm1948_vm7, %v8607_v26, %v1947_v59  ;;  %4913 = vpow2.f32 %v4777_v61  ;;  %v1988_v20 = vsel %vm1948_vm7, %v1947_v59, %v11513_v22  ;;  %v11516_v18 = vld [vmem:[#allocation20_spill] sm:$0xff]  ;;  %v11519_v60 = vld [vmem:[#allocation122_spill] sm:$0xff] }
 0x41c   : > { %v4910_v8 = vpop.eup %4909  ;;  %v9032_v10 = vadd.f32 1.0, %v4908_v16  ;;  %v3032_v47 = vadd.f32 %v3031_v38, %v3003_v11  ;;  %3281 = vmatpush.bf16.msrb.mxu2 %v2525_v28  ;;  %3368 = vmatpush.bf16.msrb.mxu3 %v2526_v44  ;;  %v4799_v14 = vmul.f32 -1.442695, %v2858_v3  ;;  %v2035_v36 = vmul.f32 %v11514_v27, %v1953_v54  ;;  %v3082_v25 = vpop.f32.mrf.mxu0  ;;  %v11520_v28 = vld [vmem:[#allocation62_spill] sm:$0xff]  ;;  %v11521_v11 = vld [vmem:[#allocation79_spill] sm:$0xff] }
 0x41d   : > { %v9038_v48 = vadd.f32 1.0, %v4910_v8  ;;  %4915 = vpow2.f32 %v4798_v31  ;;  %v2036_v40 = vmul.f32 %v8445_v7, %v1988_v20  ;;  %v4800_v57 = vmul.f32 -1.442695, %v2945_v13  ;;  %v11524_v20 = vld [vmem:[#allocation26_spill] sm:$0xff] }
 0x41e   : > { %4917 = vrcp.f32 %v9032_v10  ;;  %v4801_v26 = vmul.f32 -1.442695, %v3032_v47  ;;  %v2517_v41 = vpack.c.bf16 %v2172_v42, %v2035_v36  ;;  %v3083_v32 = vadd.f32 %v3082_v25, %v3054_v63  ;;  %v9047_v15 = vpop.permute.xlu0 %2566  ;;  %v4912_v5 = vpop.eup %4911 }
 0x41f   : > { %3312 = vmatpush.bf16.msrb.mxu0 %v2382_v17  ;;  %v2518_v39 = vpack.c.bf16 %v2173_v35, %v2036_v40  ;;  %4919 = vrcp.f32 %v9038_v48  ;;  %11515 = vst [vmem:[#allocation56_spill] sm:$0xff] %v9047_v15  ;;  %v3111_v6 = vpop.f32.mrf.mxu1  ;;  %v2708_v50 = vadd.f32 %v11516_v18, %v9047_v15  ;;  %v2795_v61 = vadd.f32 %v11517_v49, %v9047_v15  ;;  %v9079_v40 = vpop.permute.xlu2 %2581 }
 0x420   : > { %4921 = vpow2.f32 %v4799_v14  ;;  %3282 = vmatpush.bf16.msrb.mxu2 %v2517_v41  ;;  %v2882_v53 = vadd.f32 %v11518_v56, %v9047_v15  ;;  %v3112_v42 = vadd.f32 %v3111_v6, %v3083_v32  ;;  %v9060_v3 = vadd.f32 1.0, %v4912_v5  ;;  %11525 = vst [vmem:[#allocation133_spill] sm:$0xff] %v9079_v40  ;;  %v11528_v41 = vld [vmem:[#allocation84_spill] sm:$0xff]  ;;  %v11530_v5 = vld [vmem:[#allocation142_spill] sm:$0xff] }
 0x421   : > { %3369 = vmatpush.bf16.msrb.mxu3 %v2518_v39  ;;  %v4914_v17 = vpop.eup %4913  ;;  %4923 = vpow2.f32 %v4800_v57  ;;  %4764 = vmatmul.msk.bf16.gmra.mxu0 %vm2659_vm10, %v11205_v4  ;;  %v2737_v2 = vadd.f32 %v11519_v60, %v2708_v50  ;;  %v2824_v16 = vadd.f32 %v11520_v28, %v2795_v61  ;;  %v11532_v50 = vld [vmem:[#allocation97_spill] sm:$0xff]  ;;  %vm3461_vm12 = vweird.f32 %v9032_v10 }
 0x422   : > { %3342 = vmatmul.bf16.vlgmr.msrb.gmra.mxu1 %v11290_v9  ;;  %4925 = vpow2.f32 %v4801_v26  ;;  %v4778_v59 = vmul.f32 -1.442695, %v3112_v42  ;;  %v9065_v13 = vadd.f32 1.0, %v4914_v17  ;;  %v2911_v44 = vadd.f32 %v8447_v37, %v2882_v53  ;;  %v11522_v9 = vld [vmem:[#allocation54_spill] sm:$0xff]  ;;  %v11527_v26 = vld [vmem:[#allocation85_spill] sm:$0xff] }
 0x423   : > { %v4916_v35 = vpop.eup %4915  ;;  %3265 = vmatmul.bf16.gmra.mxu3 %v11331_v30  ;;  %v2766_v31 = vadd.f32 %v11521_v11, %v2737_v2  ;;  %v2969_v8 = vadd.f32 %v11522_v9, %v9047_v15  ;;  %v2853_v14 = vadd.f32 %v11524_v20, %v2824_v16  ;;  %v2716_v49 = vadd.f32 %v11532_v50, %v9079_v40  ;;  %v11533_v53 = vld [vmem:[#allocation58_spill] sm:$0xff]  ;;  %v11534_v2 = vld [vmem:[#allocation31_spill] sm:$0xff]  ;;  %v11537_v9 = vld [vmem:[#allocation153_spill] sm:$0xff]  ;;  %v3034_v20 = vpop.f32.mrf.mxu3 }
 0x424   : > { %v9063_v45 = vpop.eup %4917  ;;  %v9073_v63 = vadd.f32 1.0, %v4916_v35  ;;  %4927 = vpow2.f32 %v4778_v59  ;;  %v2940_v25 = vadd.f32 %v11527_v26, %v2911_v44  ;;  %v2803_v17 = vadd.f32 %v11533_v53, %v9079_v40  ;;  %v11535_v16 = vld [vmem:[#allocation22_spill] sm:$0xff] }
 0x425   : > { %v9071_v38 = vpop.eup %4919  ;;  %v3457_v22 = vmul.f32 %v9063_v45, %v9032_v10  ;;  %4929 = vrcp.f32 %v9060_v3  ;;  %v4782_v36 = vmul.f32 -1.442695, %v2766_v31  ;;  %v2998_v39 = vadd.f32 %v11528_v41, %v2969_v8  ;;  %v11538_v8 = vld [vmem:[#allocation105_spill] sm:$0xff] }
 0x426   : > { %11523 = vst [vmem:[#allocation78_spill] sm:$0xff] %v9073_v63  ;;  %v4922_v54 = vpop.eup %4921  ;;  %4931 = vrcp.f32 %v9065_v13  ;;  %v3472_v6 = vmul.f32 %v9071_v38, %v9038_v48  ;;  %v4783_v56 = vmul.f32 -1.442695, %v2853_v14  ;;  %v4784_v60 = vmul.f32 -1.442695, %v2940_v25  ;;  %v11539_v14 = vld [vmem:[#allocation118_spill] sm:$0xff] }
 0x427   : > { %v4924_v47 = vpop.eup %4923  ;;  %v9082_v57 = vadd.f32 1.0, %v4922_v54  ;;  %4933 = vrcp.f32 %v9073_v63  ;;  %v3458_v42 = vsub.f32 1.0, %v3457_v22  ;;  %v3027_v35 = vadd.f32 %v8902_v46, %v2998_v39  ;;  %v11541_v39 = vld [vmem:[#allocation40_spill] sm:$0xff] }
 0x428   : > { %v4926_v37 = vpop.eup %4925  ;;  %v9086_v32 = vadd.f32 1.0, %v4924_v47  ;;  %4935 = vpow2.f32 %v4782_v36  ;;  %v2890_v59 = vadd.f32 %v11534_v2, %v9079_v40  ;;  %v1951_v11 = vsel %vm1948_vm7, %v11535_v16, %v9018_v29  ;;  %v11546_v16 = vld [vmem:[#allocation156_spill] sm:$0xff] }
 0x429   : > { %11526 = vst [vmem:[#allocation130_spill] sm:$0xff] %v9082_v57  ;;  %3183 = vmatmul.bf16.gmra.mxu2 %v11530_v5  ;;  %v9092_v18 = vadd.f32 1.0, %v4926_v37  ;;  %4937 = vrcp.f32 %v9082_v57  ;;  %v1986_v46 = vsel %vm1948_vm7, %v9018_v29, %v11537_v9  ;;  %v2977_v54 = vadd.f32 %v11538_v8, %v9079_v40  ;;  %v11540_v37 = vld [vmem:[#allocation151_spill] sm:$0xff] }
 0x42a   : > { %11529 = vst [vmem:[#allocation129_spill] sm:$0xff] %v9086_v32  ;;  %v4928_v61 = vpop.eup %4927  ;;  %4939 = vrcp.f32 %v9086_v32  ;;  %v3473_v47 = vsub.f32 1.0, %v3472_v6  ;;  %v2745_v36 = vadd.f32 %v11539_v14, %v2716_v49  ;;  %v2832_v26 = vadd.f32 %v11540_v37, %v2803_v17  ;;  %v11542_v49 = vld [vmem:[#allocation146_spill] sm:$0xff]  ;;  %v11548_v8 = vld [vmem:[#allocation99_spill] sm:$0xff] }
 0x42b   : > { %11531 = vst [vmem:[#allocation134_spill] sm:$0xff] %v9092_v18  ;;  %v9102_v28 = vpop.eup %4929  ;;  %v9109_v31 = vadd.f32 1.0, %v4928_v61  ;;  %4941 = vrcp.f32 %v9092_v18  ;;  %v3459_v25 = vmul.f32 %v9063_v45, %v3458_v42  ;;  %v4785_v41 = vmul.f32 -1.442695, %v3027_v35 }
 0x42c   : > { %v9111_v44 = vpop.eup %4931  ;;  %4943 = vpow2.f32 %v4783_v56  ;;  %v2919_v29 = vadd.f32 %v11541_v39, %v2890_v59  ;;  %v9127_v61 = vmul.f32 %v11514_v27, %v1951_v11  ;;  %v9130_v6 = vmul.f32 %v8445_v7, %v1986_v46 }
 0x42d   : > { %11536 = vst [vmem:[#allocation48_spill] sm:$0xff] %v9109_v31  ;;  %v9120_v22 = vpop.eup %4933  ;;  %4945 = vpow2.f32 %v4784_v60  ;;  %v3474_v56 = vmul.f32 %v9071_v38, %v3473_v47  ;;  %v3487_v17 = vmul.f32 %v9102_v28, %v9060_v3  ;;  %v9143_v42 = vmul.f32 %v9111_v44, %v9065_v13 }
 0x42e   : > { %v4936_v50 = vpop.eup %4935  ;;  %4947 = vrcp.f32 %v9109_v31  ;;  %v9147_v35 = vmul.f32 %v9120_v22, %v9073_v63  ;;  %v3006_v60 = vadd.f32 %v8825_v34, %v2977_v54  ;;  %v9157_v11 = vadd.f32 %v11546_v16, %v2832_v26  ;;  %v1945_v54 = vpop.permute.xlu1 %1944 }
 0x42f   : > { %v9137_v53 = vpop.eup %4937  ;;  %v3460_v9 = vadd.f32 %v9063_v45, %v3459_v25  ;;  %vm3462_vm11 = vweird.f32 %v9063_v45  ;;  %4949 = vpow2.f32 %v4785_v41  ;;  %v9164_v47 = vadd.f32 %v11548_v8, %v2919_v29 }
 0x430   : > { %11543 = vst [vmem:[#allocation138_spill] sm:$0xff] %v9137_v53  ;;  %v9151_v2 = vpop.eup %4939  ;;  %v3467_v34 = vand.u32 2147483648, %v9032_v10  ;;  %v3465_v37 = vand.u32 2147483647, %v9032_v10  ;;  %v3475_v26 = vadd.f32 %v9071_v38, %v3474_v56  ;;  %vm3477_vm13 = vweird.f32 %v9071_v38  ;;  %vm9178_vm14 = vmor %vm3461_vm12, %vm3462_vm11 }
 0x431   : > { %4765 = vmatmul.msk.bf16.gmra.mxu0 %vm2659_vm10, %v11542_v49  ;;  %11544 = vst [vmem:[#allocation17_spill] sm:$0xff] %v9151_v2  ;;  %v9161_v46 = vpop.eup %4941  ;;  %v9174_v39 = vadd.f32 %v3034_v20, %v3006_v60  ;;  %vm3476_vm15 = vweird.f32 %v9038_v48  ;;  %v9188_v56 = vmul.f32 %v9137_v53, %v9082_v57  ;;  %v3464_v20 = vsel %vm9178_vm14, %v9063_v45, %v3460_v9  ;;  %v9210_v45 = vpop.f32.mrf.mxu3  ;;  %v11609_v53 = vld [vmem:[#allocation120_spill] sm:$0xff] }
 0x432   : > { %3347 = vmatmul.bf16.gmra.mxu1 %v11484_v23  ;;  %v11545_v23 = vld [vmem:[#allocation35_spill] sm:$0xff]  ;;  %11547 = vst [vmem:[#allocation137_spill] sm:$0xff] %v9161_v46  ;;  %v4944_v14 = vpop.eup %4943  ;;  %v3480_v60 = vand.u32 2147483647, %v9038_v48  ;;  %v9196_v16 = vmul.f32 %v9151_v2, %v9086_v32  ;;  %v9200_v8 = vmul.f32 %v9161_v46, %v9092_v18  ;;  %v3468_v1 = vor.u32 1.1754944e-38, %v3467_v34  ;;  %vm9206_vm0 = vmor %vm3476_vm15, %vm3477_vm13  ;;  %v11571_v18 = vld [vmem:[#allocation50_spill] sm:$0xff] }
 0x433   : > { %3270 = vmatmul.bf16.gmra.mxu3 %v11530_v5  ;;  %v9154_v59 = vadd.f32 %v11545_v23, %v2745_v36  ;;  %v9168_v36 = vadd.f32 1.0, %v4936_v50  ;;  %v4946_v25 = vpop.eup %4945  ;;  %v3482_v50 = vand.u32 2147483648, %v9038_v48  ;;  %v3488_v23 = vsub.f32 1.0, %v3487_v17 }
 0x434   : > { %v9184_v10 = vpop.eup %4947  ;;  %11552 = vst [vmem:[#allocation125_spill] sm:$0xff] %v9196_v16  ;;  %v9202_v41 = vadd.f32 1.0, %v4944_v14  ;;  %v9212_v48 = vadd.f32 1.0, %v4946_v25  ;;  %vm3466_vm1 = vcmp.eq.f32.partialorder %v3465_v37, 8.507059e+37  ;;  %v3479_v17 = vsel %vm9206_vm0, %v9071_v38, %v3475_v26 }
 0x435   : > { %11551 = vst [vmem:[#allocation21_spill] sm:$0xff] %v9184_v10  ;;  %4951 = vrcp.f32 %v9168_v36  ;;  %v4950_v9 = vpop.eup %4949  ;;  %v9220_v34 = vmul.f32 %v9184_v10, %v9109_v31  ;;  %v9222_v14 = vsel %vm3466_vm1, %v3468_v1, %v3464_v20  ;;  %v3483_v29 = vor.u32 1.1754944e-38, %v3482_v50  ;;  %v9237_v50 = vpop.permute.xlu0 %2591 }
 0x436   : > { %11553 = vst [vmem:[#allocation75_spill] sm:$0xff] %v9200_v8  ;;  %v1952_v25 = vsel %vm1948_vm7, %v11557_v12, %v1945_v54  ;;  %vm3481_vm2 = vcmp.eq.f32.partialorder %v3480_v60, 8.507059e+37  ;;  %v3489_v37 = vmul.f32 %v9102_v28, %v3488_v23  ;;  %v1987_v38 = vsel %vm1948_vm7, %v1945_v54, %v11558_v21  ;;  %v3055_v12 = vpop.f32.mrf.mxu2  ;;  %v3084_v21 = vpop.f32.mrf.mxu0 }
 0x437   : > { %11556 = vst [vmem:[#allocation104_spill] sm:$0xff] %v9220_v34  ;;  %4953 = vrcp.f32 %v9202_v41  ;;  %v9235_v1 = vsel %vm3481_vm2, %v3483_v29, %v3479_v17  ;;  %v9239_v20 = vadd.f32 1.0, %v4950_v9  ;;  %v2027_v24 = vmul.f32 %v11514_v27, %v1952_v25  ;;  %v9248_v29 = vpop.permute.xlu1 %2571  ;;  %v11561_v25 = vld [vmem:[#allocation90_spill] sm:$0xff] }
 0x438   : > { %11559 = vst [vmem:[#allocation94_spill] sm:$0xff] %v9237_v50  ;;  %4955 = vrcp.f32 %v9212_v48  ;;  %v3503_v23 = vsub.f32 1.0, %v9143_v42  ;;  %v2028_v26 = vmul.f32 %v8445_v7, %v1987_v38  ;;  %v3056_v17 = vadd.f32 %v3055_v12, %v9047_v15  ;;  %v11562_v42 = vld [vmem:[#allocation65_spill] sm:$0xff]  ;;  %v11565_v15 = vld [vmem:[#allocation18_spill] sm:$0xff] }
 0x439   : > { %11560 = vst [vmem:[#allocation143_spill] sm:$0xff] %v9248_v29  ;;  %v9253_v9 = vadd.f32 %v9102_v28, %v3489_v37  ;;  %vm3492_vm3 = vweird.f32 %v9102_v28  ;;  %v2509_v27 = vpack.c.bf16 %v2027_v24, %v9127_v61  ;;  %v2721_v54 = vadd.f32 %v11561_v25, %v9237_v50  ;;  %v11563_v12 = vld [vmem:[#allocation49_spill] sm:$0xff]  ;;  %v3113_v61 = vpop.f32.mrf.mxu1  ;;  %v11564_v24 = vld [vmem:[#allocation39_spill] sm:$0xff] }
 0x43a   : > { %v2808_v52 = vadd.f32 %v11562_v42, %v9237_v50  ;;  %v3085_v7 = vadd.f32 %v3084_v21, %v3056_v17  ;;  %v2510_v38 = vpack.c.bf16 %v2028_v26, %v9130_v6  ;;  %v2895_v60 = vadd.f32 %v11563_v12, %v9237_v50  ;;  %v11566_v21 = vld [vmem:[#allocation158_spill] sm:$0xff] }
 0x43b   : > { %v9250_v40 = vpop.eup %4951  ;;  %v2982_v37 = vadd.f32 %v8931_v33, %v9237_v50  ;;  %4957 = vrcp.f32 %v9239_v20  ;;  %vm3491_vm4 = vweird.f32 %v9060_v3  ;;  %3283 = vmatpush.bf16.msrb.mxu2 %v2509_v27  ;;  %v2750_v25 = vadd.f32 %v11564_v24, %v2721_v54  ;;  %v11567_v33 = vld [vmem:[#allocation24_spill] sm:$0xff]  ;;  %v3039_v27 = vpop.f32.mrf.mxu3 }
 0x43c   : > { %v2837_v31 = vadd.f32 %v11565_v15, %v2808_v52  ;;  %v2711_v17 = vadd.f32 %v11566_v21, %v9248_v29  ;;  %v3504_v26 = vmul.f32 %v9111_v44, %v3503_v23  ;;  %v3114_v42 = vadd.f32 %v3113_v61, %v3085_v7  ;;  %3370 = vmatpush.bf16.msrb.mxu3 %v2510_v38  ;;  %v11568_v54 = vld [vmem:[#allocation100_spill] sm:$0xff]  ;;  %v11569_v15 = vld [vmem:[#allocation95_spill] sm:$0xff]  ;;  %vm9317_vm6 = vmor %vm3491_vm4, %vm3492_vm3 }
 0x43d   : > { %v9272_v6 = vpop.eup %4953  ;;  %v2924_v12 = vadd.f32 %v11567_v33, %v2895_v60  ;;  %v3011_v50 = vadd.f32 %v8960_v58, %v2982_v37  ;;  %4959 = vtanh.f32 %v9154_v59  ;;  %v2779_v52 = vadd.f32 %v11568_v54, %v2750_v25  ;;  %v11570_v21 = vld [vmem:[#allocation12_spill] sm:$0xff]  ;;  %v11572_v58 = vld [vmem:[#allocation86_spill] sm:$0xff]  ;;  %v11573_v37 = vld [vmem:[#allocation47_spill] sm:$0xff] }
 0x43e   : > { %v9277_v10 = vpop.eup %4955  ;;  %v2866_v24 = vadd.f32 %v11569_v15, %v2837_v31  ;;  %v2740_v34 = vadd.f32 %v11570_v21, %v2711_v17  ;;  %4961 = vtanh.f32 %v9157_v11  ;;  %v4786_v23 = vmul.f32 -1.442695, %v3114_v42  ;;  %4766 = vmatmul.msk.bf16.vlgmr.msrb.gmra.mxu2 %vm2659_vm10, %v11572_v58  ;;  %v11574_v31 = vld [vmem:[#allocation11_spill] sm:$0xff]  ;;  %v11576_v42 = vld [vmem:[#allocation38_spill] sm:$0xff]  ;;  %v11579_v21 = vld [vmem:[#allocation72_spill] sm:$0xff] }
 0x43f   : > { %v2953_v60 = vadd.f32 %v8900_v62, %v2924_v12  ;;  %v3040_v7 = vadd.f32 %v3039_v27, %v3011_v50  ;;  %v4806_v59 = vmul.f32 -1.442695, %v2779_v52  ;;  %v2798_v25 = vadd.f32 %v11574_v31, %v9248_v29  ;;  %v11575_v62 = vld [vmem:[#allocation33_spill] sm:$0xff]  ;;  %v11578_v54 = vld [vmem:[#allocation123_spill] sm:$0xff] }
 0x440   : > { %v4807_v38 = vmul.f32 -1.442695, %v2866_v24  ;;  %v2769_v61 = vadd.f32 %v11573_v37, %v2740_v34  ;;  %4963 = vpow2.f32 %v4786_v23  ;;  %v2885_v50 = vadd.f32 %v11575_v62, %v9248_v29  ;;  %v11577_v34 = vld [vmem:[#allocation91_spill] sm:$0xff]  ;;  %v11583_v31 = vld [vmem:[#allocation89_spill] sm:$0xff]  ;;  %v9329_v62 = vpop.permute.xlu0 %2586 }
 0x441   : > { %3313 = vmatmul.bf16.vlgmr.msrb.gmra.mxu0 %v11571_v18  ;;  %v4808_v18 = vmul.f32 -1.442695, %v2953_v60  ;;  %v4809_v11 = vmul.f32 -1.442695, %v3040_v7  ;;  %v9296_v17 = vpop.eup %4957  ;;  %4965 = vpow2.f32 %v4806_v59  ;;  %v2827_v33 = vadd.f32 %v11576_v42, %v2798_v25 }
 0x442   : > { %3352 = vmatmul.bf16.gmra.mxu1 %v11331_v30  ;;  %v3497_v30 = vand.u32 2147483648, %v9060_v3  ;;  %v2972_v12 = vadd.f32 %v11577_v34, %v9248_v29  ;;  %vm3507_vm5 = vweird.f32 %v9111_v44  ;;  %v3512_v27 = vand.u32 2147483648, %v9065_v13 }
 0x443   : > { %4770 = vmatmul.msk.bf16.vlgmr.msrb.gmra.mxu3 %vm2659_vm10, %v11572_v58  ;;  %4967 = vpow2.f32 %v4807_v38  ;;  %v2914_v52 = vadd.f32 %v11578_v54, %v2885_v50  ;;  %v9305_v15 = vpop.eup %4959  ;;  %v3505_v24 = vadd.f32 %v9111_v44, %v3504_v26  ;;  %v2856_v23 = vadd.f32 %v11579_v21, %v2827_v33  ;;  %v3058_v26 = vpop.f32.mrf.mxu2  ;;  %v11582_v38 = vld [vmem:[#allocation126_spill] sm:$0xff]  ;;  %v11586_v21 = vld [vmem:[#allocation124_spill] sm:$0xff] }
 0x444   : > { %4969 = vpow2.f32 %v4808_v18  ;;  %v4790_v60 = vmul.f32 -1.442695, %v2769_v61  ;;  %v4962_v7 = vpop.eup %4961  ;;  %v9311_v58 = vmul.f32 %v9250_v40, %v9168_v36  ;;  %vm3506_vm7 = vweird.f32 %v9065_v13 }
 0x445   : > { %4971 = vpow2.f32 %v4809_v11  ;;  %v2943_v37 = vadd.f32 %v11582_v38, %v2914_v52  ;;  %v3494_v61 = vsel %vm9317_vm6, %v9102_v28, %v9253_v9  ;;  %v3001_v25 = vadd.f32 %v11583_v31, %v2972_v12  ;;  %vm9333_vm8 = vmor %vm3506_vm7, %vm3507_vm5  ;;  %v3087_v9 = vpop.f32.mrf.mxu0 }
 0x446   : > { %4973 = vtanh.f32 %v9164_v47  ;;  %v4791_v18 = vmul.f32 -1.442695, %v2856_v23  ;;  %v4964_v50 = vpop.eup %4963  ;;  %v3498_v42 = vor.u32 1.1754944e-38, %v3497_v30  ;;  %v3510_v33 = vand.u32 2147483647, %v9065_v13 }
 0x447   : > { %4975 = vtanh.f32 %v9174_v39  ;;  %v4792_v28 = vmul.f32 -1.442695, %v2943_v37  ;;  %v4966_v47 = vpop.eup %4965  ;;  %v3509_v34 = vsel %vm9333_vm8, %v9111_v44, %v3505_v24  ;;  %v3513_v12 = vor.u32 1.1754944e-38, %v3512_v27  ;;  %v11587_v39 = vld [vmem:[#allocation107_spill] sm:$0xff] }
 0x448   : > { %4977 = vpow2.f32 %v4790_v60  ;;  %v3059_v30 = vadd.f32 %v3058_v26, %v9248_v29  ;;  %v9343_v52 = vadd.f32 1.0, %v4966_v47  ;;  %v2718_v13 = vadd.f32 %v11586_v21, %v9329_v62 }
 0x449   : > { %v4968_v54 = vpop.eup %4967  ;;  %4979 = vpow2.f32 %v4791_v18  ;;  %v2805_v23 = vadd.f32 %v11587_v39, %v9329_v62  ;;  %v3030_v37 = vadd.f32 %v8974_v51, %v3001_v25  ;;  %v11588_v24 = vand.u32 2147483647, %v9060_v3  ;;  %v3116_v25 = vpop.f32.mrf.mxu1  ;;  %v11590_v3 = vld [vmem:[#allocation98_spill] sm:$0xff] }
 0x44a   : > { %v4970_v59 = vpop.eup %4969  ;;  %v9349_v38 = vadd.f32 1.0, %v4968_v54  ;;  %4981 = vpow2.f32 %v4792_v28  ;;  %v3088_v44 = vadd.f32 %v3087_v9, %v3059_v30  ;;  %vm3511_vm11 = vcmp.eq.f32.partialorder %v3510_v33, 8.507059e+37  ;;  %v11591_v33 = vld [vmem:[#allocation27_spill] sm:$0xff] }
 0x44b   : > { %v4972_v27 = vpop.eup %4971  ;;  %vm3496_vm9 = vcmp.eq.f32.partialorder %v11588_v24, 8.507059e+37  ;;  %v9354_v60 = vadd.f32 1.0, %v4970_v59  ;;  %4983 = vrcp.f32 %v9343_v52  ;;  %v3514_v18 = vsel %vm3511_vm11, %v3513_v12, %v3509_v34  ;;  %v11596_v24 = vld [vmem:[#allocation51_spill] sm:$0xff] }
 0x44c   : > { %v4974_v26 = vpop.eup %4973  ;;  %v3499_v31 = vsel %vm3496_vm9, %v3498_v42, %v3494_v61  ;;  %v9357_v11 = vadd.f32 1.0, %v4972_v27  ;;  %4985 = vrcp.f32 %v9349_v38  ;;  %v9360_v51 = vadd.f32 1.0, %v4964_v50  ;;  %v11592_v50 = vld [vmem:[#allocation15_spill] sm:$0xff] }
 0x44d   : > { %v4976_v47 = vpop.eup %4975  ;;  %4987 = vrcp.f32 %v9354_v60  ;;  %v2747_v28 = vadd.f32 %v11590_v3, %v2718_v13  ;;  %v2834_v9 = vadd.f32 %v11591_v33, %v2805_v23  ;;  %v9367_v54 = vmul.f32 %v9272_v6, %v9202_v41  ;;  %v3060_v23 = vpop.f32.mrf.mxu2 }
 0x44e   : > { %11589 = vst [vmem:[#allocation101_spill] sm:$0xff] %v9360_v51  ;;  %v4978_v30 = vpop.eup %4977  ;;  %v9371_v61 = vmul.f32 %v9277_v10, %v9212_v48  ;;  %v4793_v42 = vmul.f32 -1.442695, %v3030_v37  ;;  %v3117_v34 = vadd.f32 %v3116_v25, %v3088_v44  ;;  %v9376_v21 = vmul.f32 %v9296_v17, %v9239_v20  ;;  %4767 = vmatmul.msk.bf16.gmra.mxu2 %vm2659_vm10, %v11499_v43 }
 0x44f   : > { %v4980_v12 = vpop.eup %4979  ;;  %v9380_v13 = vmul.f32 %v9305_v15, %v9222_v14  ;;  %v9383_v39 = vmul.f32 %v4962_v7, %v9235_v1  ;;  %4989 = vrcp.f32 %v9357_v11  ;;  %v9389_v37 = vmul.f32 %v4974_v26, %v3499_v31  ;;  %v11594_v14 = vld [vmem:[#allocation46_spill] sm:$0xff]  ;;  %v9402_v7 = vpop.f32.mrf.mxu3 }
 0x450   : > { %v4982_v59 = vpop.eup %4981  ;;  %v9391_v44 = vmul.f32 %v4976_v47, %v3514_v18  ;;  %v9394_v27 = vadd.f32 %v3060_v23, %v8999_v0  ;;  %v2892_v1 = vadd.f32 %v11594_v14, %v9329_v62  ;;  %11595 = vst [vmem:[#allocation32_spill] sm:$0xff] %v9402_v7  ;;  %4991 = vrcp.f32 %v9360_v51  ;;  %v11598_v31 = vld [vmem:[#allocation150_spill] sm:$0xff]  ;;  %v11600_v0 = vld [vmem:[#allocation36_spill] sm:$0xff] }
 0x451   : > { %3318 = vmatmul.bf16.gmra.mxu0 %v11592_v50  ;;  %v9400_v15 = vpop.eup %4983  ;;  %v9408_v26 = vadd.f32 %v11596_v24, %v2747_v28  ;;  %v9411_v18 = vadd.f32 %v11598_v31, %v2834_v9  ;;  %4993 = vpow2.f32 %v4793_v42  ;;  %v9418_v3 = vmul.f32 -1.442695, %v3117_v34 }
 0x452   : > { %3357 = vmatmul.bf16.gmra.mxu1 %v11530_v5  ;;  %11593 = vst [vmem:[#allocation14_spill] sm:$0xff] %v9394_v27  ;;  %v9405_v5 = vadd.f32 1.0, %v4978_v30  ;;  %v9413_v47 = vpop.eup %4985  ;;  %v4081_v25 = vmul.f32 %v9400_v15, %v9343_v52  ;;  %v4091_v30 = vand.u32 2147483648, %v9343_v52  ;;  %v4106_v9 = vand.u32 2147483648, %v9349_v38 }
 0x453   : > { %4771 = vmatmul.msk.bf16.gmra.mxu3 %vm2659_vm10, %v11499_v43  ;;  %11597 = vst [vmem:[#allocation154_spill] sm:$0xff] %v9408_v26  ;;  %v4089_v43 = vand.u32 2147483647, %v9343_v52  ;;  %v9420_v33 = vpop.eup %4987  ;;  %v4096_v28 = vmul.f32 %v9413_v47, %v9349_v38  ;;  %v9426_v50 = vadd.f32 1.0, %v4980_v12  ;;  %v4121_v24 = vand.u32 2147483648, %v9354_v60 }
 0x454   : > { %11599 = vst [vmem:[#allocation42_spill] sm:$0xff] %v9411_v18  ;;  %v4082_v23 = vsub.f32 1.0, %v4081_v25  ;;  %v4111_v14 = vmul.f32 %v9420_v33, %v9354_v60  ;;  %4995 = vrcp.f32 %v9405_v5  ;;  %vm4085_vm12 = vweird.f32 %v9343_v52 }
 0x455   : > { %v9432_v42 = vpop.eup %4989  ;;  %v4097_v34 = vsub.f32 1.0, %v4096_v28  ;;  %v9437_v29 = vadd.f32 %v11600_v0, %v2892_v1  ;;  %vm4100_vm13 = vweird.f32 %v9349_v38  ;;  %v9443_v7 = vadd.f32 1.0, %v4982_v59 }
 0x456   : > { %v4083_v12 = vmul.f32 %v9400_v15, %v4082_v23  ;;  %v4112_v25 = vsub.f32 1.0, %v4111_v14  ;;  %v4126_v51 = vmul.f32 %v9432_v42, %v9357_v11  ;;  %v9445_v27 = vpop.eup %4991  ;;  %vm9447_vm14 = vcmp.eq.f32.partialorder %v4089_v43, 8.507059e+37 }
 0x457   : > { %11601 = vst [vmem:[#allocation147_spill] sm:$0xff] %v9445_v27  ;;  %v4092_v28 = vor.u32 1.1754944e-38, %v4091_v30  ;;  %vm4115_vm15 = vweird.f32 %v9354_v60  ;;  %v4136_v0 = vand.u32 2147483648, %v9357_v11  ;;  %4997 = vrcp.f32 %v9426_v50  ;;  %v4994_v1 = vpop.eup %4993 }
 0x458   : > { %v4098_v23 = vmul.f32 %v9413_v47, %v4097_v34  ;;  %v9455_v14 = vor.u32 1.1754944e-38, %v4106_v9  ;;  %v4119_v59 = vand.u32 2147483647, %v9354_v60  ;;  %v9458_v31 = vor.u32 1.1754944e-38, %v4121_v24  ;;  %v9467_v9 = vpop.f32.mrf.mxu3 }
 0x459   : > { %v4084_v43 = vadd.f32 %v9400_v15, %v4083_v12  ;;  %vm4086_vm0 = vweird.f32 %v9400_v15  ;;  %v4113_v30 = vmul.f32 %v9420_v33, %v4112_v25  ;;  %v4127_v27 = vsub.f32 1.0, %v4126_v51  ;;  %11604 = vst [vmem:[#allocation57_spill] sm:$0xff] %v9467_v9 }
 0x45a   : > { %v4996_v26 = vpop.eup %4995  ;;  %v4134_v46 = vand.u32 2147483647, %v9357_v11  ;;  %v3769_v8 = vand.u32 2147483647, %v9405_v5  ;;  %v3771_v34 = vand.u32 2147483648, %v9405_v5  ;;  %4999 = vrcp.f32 %v9443_v7  ;;  %vm9478_vm3 = vmor %vm4085_vm12, %vm4086_vm0 }
 0x45b   : > { %vm4101_vm1 = vweird.f32 %v9413_v47  ;;  %vm4130_vm2 = vweird.f32 %v9357_v11  ;;  %v9471_v24 = vor.u32 1.1754944e-38, %v4136_v0  ;;  %v9473_v12 = vadd.f32 1.0, %v4994_v1 }
 0x45c   : > { %v3761_v51 = vmul.f32 %v4996_v26, %v9405_v5  ;;  %v9483_v32 = vadd.f32 %v9413_v47, %v4098_v23  ;;  %vm4116_vm4 = vweird.f32 %v9420_v33  ;;  %vm4131_vm5 = vweird.f32 %v9432_v42  ;;  %vm9506_vm8 = vmor %vm4100_vm13, %vm4101_vm1 }
 0x45d   : > { %vm3765_vm6 = vweird.f32 %v9405_v5  ;;  %v4998_v0 = vpop.eup %4997  ;;  %v4088_v1 = vsel %vm9478_vm3, %v9400_v15, %v4084_v43  ;;  %v9492_v52 = vadd.f32 %v9420_v33, %v4113_v30  ;;  %v4128_v9 = vmul.f32 %v9432_v42, %v4127_v27  ;;  %vm9526_vm11 = vmor %vm4115_vm15, %vm4116_vm4 }
 0x45e   : > { %v3762_v2 = vsub.f32 1.0, %v3761_v51  ;;  %vm9495_vm7 = vcmp.eq.f32.partialorder %v3769_v8, 8.507059e+37  ;;  %v3772_v16 = vor.u32 1.1754944e-38, %v3771_v34  ;;  %v3776_v57 = vmul.f32 %v4998_v0, %v9426_v50  ;;  %4768 = vmatmul.msk.bf16.gmra.mxu2 %vm2659_vm10, %v11205_v4  ;;  %vm9572_vm4 = vmor %vm4130_vm2, %vm4131_vm5 }
 0x45f   : > { %v3784_v63 = vand.u32 2147483647, %v9426_v50  ;;  %vm3766_vm9 = vweird.f32 %v4996_v26  ;;  %v3786_v8 = vand.u32 2147483648, %v9426_v50  ;;  %5001 = vrcp.f32 %v9473_v12 }
 0x460   : > { %v3763_v27 = vmul.f32 %v4996_v26, %v3762_v2  ;;  %v5000_v43 = vpop.eup %4999  ;;  %v4103_v30 = vsel %vm9506_vm8, %v9413_v47, %v9483_v32  ;;  %v3777_v34 = vsub.f32 1.0, %v3776_v57  ;;  %vm3780_vm12 = vweird.f32 %v9426_v50  ;;  %vm3767_vm15 = vmor %vm3765_vm6, %vm3766_vm9  ;;  %v9581_v15 = vpop.f32.mrf.mxu3 }
 0x461   : > { %3323 = vmatmul.bf16.gmra.mxu0 %v11609_v53  ;;  %v9516_v53 = vsel %vm9447_vm14, %v4092_v28, %v4088_v1  ;;  %v4118_v32 = vsel %vm9526_vm11, %v9420_v33, %v9492_v52  ;;  %v4129_v18 = vadd.f32 %v9432_v42, %v4128_v9  ;;  %v3791_v60 = vmul.f32 %v5000_v43, %v9443_v7  ;;  %v743_v1 = vld [vmem:[%s9558_s25] sm:$0xff] }
 0x462   : > { %v3764_v47 = vadd.f32 %v4996_v26, %v3763_v27  ;;  %v11614_v28 = vand.u32 2147483647, %v9349_v38  ;;  %vm9545_vm14 = vcmp.eq.f32.partialorder %v4119_v59, 8.507059e+37  ;;  %vm3781_vm0 = vweird.f32 %v4998_v0  ;;  %v746_v38 = vld [vmem:[%s9558_s25 + $0x18] sm:$0xff] }
 0x463   : > { %4772 = vmatmul.msk.bf16.gmra.mxu3 %vm2659_vm10, %v11205_v4  ;;  %v3778_v4 = vmul.f32 %v4998_v0, %v3777_v34  ;;  %v3799_v33 = vand.u32 2147483647, %v9443_v7  ;;  %5003 = vpow2.f32 %v9418_v3  ;;  %vm9560_vm1 = vcmp.eq.f32.partialorder %v4134_v46, 8.507059e+37  ;;  %vm3782_vm2 = vmor %vm3780_vm12, %vm3781_vm0 }
 0x464   : > { %vm9541_vm13 = vcmp.eq.f32.partialorder %v11614_v28, 8.507059e+37  ;;  %v3768_v59 = vsel %vm3767_vm15, %v4996_v26, %v3764_v47  ;;  %vm9564_vm3 = vcmp.eq.f32.partialorder %v3784_v63, 8.507059e+37  ;;  %v3787_v9 = vor.u32 1.1754944e-38, %v3786_v8  ;;  %v744_v47 = vld [vmem:[%s9558_s25 + $0x8] sm:$0xff] }
 0x465   : > { %v3792_v25 = vsub.f32 1.0, %v3791_v60  ;;  %v3773_v46 = vsel %vm9495_vm7, %v3772_v16, %v3768_v59  ;;  %v3779_v26 = vadd.f32 %v4998_v0, %v3778_v4  ;;  %vm3795_vm6 = vweird.f32 %v9443_v7  ;;  %v5002_v52 = vpop.eup %5001 }
 0x466   : > { %v3801_v63 = vand.u32 2147483648, %v9443_v7  ;;  %v4133_v11 = vsel %vm9572_vm4, %v9432_v42, %v4129_v18  ;;  %vm3796_vm5 = vweird.f32 %v5000_v43  ;;  %v4320_v23 = vmul.f32 %v3773_v46, %v743_v1 }
 0x467   : > { %v3793_v27 = vmul.f32 %v5000_v43, %v3792_v25  ;;  %v3783_v16 = vsel %vm3782_vm2, %v4998_v0, %v3779_v26  ;;  %vm9589_vm7 = vcmp.eq.f32.partialorder %v3799_v33, 8.507059e+37  ;;  %v3806_v2 = vmul.f32 %v5002_v52, %v9473_v12  ;;  %vm3797_vm8 = vmor %vm3795_vm6, %vm3796_vm5 }
 0x468   : > { %v3578_v34 = vsub.f32 1.0, %v9311_v58  ;;  %v3788_v42 = vsel %vm9564_vm3, %v3787_v9, %v3783_v16  ;;  %v3814_v50 = vand.u32 2147483647, %v9473_v12  ;;  %v9600_v60 = vadd.f32 %v9380_v13, %v4320_v23  ;;  %v745_v9 = vld [vmem:[%s9558_s25 + $0x10] sm:$0xff] }
 0x469   : > { %v3794_v18 = vadd.f32 %v5000_v43, %v3793_v27  ;;  %v5004_v0 = vpop.eup %5003  ;;  %v3802_v28 = vor.u32 1.1754944e-38, %v3801_v63  ;;  %v3807_v4 = vsub.f32 1.0, %v3806_v2  ;;  %v3816_v33 = vand.u32 2147483648, %v9473_v12 }
 0x46a   : > { %v4321_v58 = vmul.f32 %v3788_v42, %v744_v47  ;;  %vm3811_vm9 = vweird.f32 %v5002_v52  ;;  %5005 = vtanh.f32 %v9600_v60  ;;  %v9606_v5 = vadd.f32 1.0, %v5004_v0 }
 0x46b   : > { %v3798_v59 = vsel %vm3797_vm8, %v5000_v43, %v3794_v18  ;;  %v3808_v25 = vmul.f32 %v5002_v52, %v3807_v4  ;;  %v3579_v7 = vmul.f32 %v9250_v40, %v3578_v34  ;;  %v4108_v1 = vsel %vm9541_vm13, %v9455_v14, %v4103_v30 }
 0x46c   : > { %v3803_v13 = vsel %vm9589_vm7, %v3802_v28, %v3798_v59  ;;  %v9612_v3 = vadd.f32 %v9383_v39, %v4321_v58  ;;  %v4123_v43 = vsel %vm9545_vm14, %v9458_v31, %v4118_v32  ;;  %5007 = vrcp.f32 %v9606_v5  ;;  %v11627_v31 = vld [vmem:[#allocation68_spill] sm:$0xff]  ;;  %v9698_v28 = vpop.f32.mrf.mxu0 }
 0x46d   : > { %v4322_v46 = vmul.f32 %v3803_v13, %v745_v9  ;;  %v9625_v26 = vsel %vm9560_vm1, %v9471_v24, %v4133_v11  ;;  %v3809_v39 = vadd.f32 %v5002_v52, %v3808_v25  ;;  %vm3810_vm11 = vweird.f32 %v9473_v12  ;;  %v11632_v13 = vld [vmem:[#allocation37_spill] sm:$0xff] }
 0x46e   : > { %5009 = vtanh.f32 %v9612_v3  ;;  %vm3812_vm12 = vmor %vm3810_vm11, %vm3811_vm9  ;;  %v3817_v14 = vor.u32 1.1754944e-38, %v3816_v33  ;;  %v2979_v32 = vadd.f32 %v11627_v31, %v9329_v62  ;;  %v3593_v51 = vsub.f32 1.0, %v9367_v54  ;;  %4769 = vmatmul.msk.bf16.gmra.mxu2 %vm2659_vm10, %v11542_v49 }
 0x46f   : > { %v9631_v30 = vadd.f32 %v9389_v37, %v4322_v46  ;;  %v3813_v57 = vsel %vm3812_vm12, %v5002_v52, %v3809_v39  ;;  %vm3815_vm13 = vcmp.eq.f32.partialorder %v3814_v50, 8.507059e+37  ;;  %v3580_v24 = vadd.f32 %v9250_v40, %v3579_v7  ;;  %v9641_v37 = vpop.f32.mrf.mxu3  ;;  %v9687_v50 = vpop.f32.mrf.mxu1 }
 0x470   : > { %vm3582_vm14 = vweird.f32 %v9250_v40  ;;  %v5006_v12 = vpop.eup %5005  ;;  %v3818_v63 = vsel %vm3815_vm13, %v3817_v14, %v3813_v57  ;;  %v3587_v11 = vand.u32 2147483648, %v9168_v36  ;;  %v3594_v54 = vmul.f32 %v9272_v6, %v3593_v51 }
 0x471   : > { %3328 = vmatmul.bf16.gmra.mxu0 %v11312_v55  ;;  %5011 = vtanh.f32 %v9631_v30  ;;  %v4323_v52 = vmul.f32 %v3818_v63, %v746_v38  ;;  %v4384_v27 = vmul.f32 %v5006_v12, %v9516_v53  ;;  %vm3581_vm15 = vweird.f32 %v9168_v36  ;;  %v11638_v63 = vld [vmem:[#allocation78_spill] sm:$0xff] }
 0x472   : > { %vm3597_vm0 = vweird.f32 %v9272_v6  ;;  %v9652_v55 = vpop.eup %5007  ;;  %v3008_v23 = vadd.f32 %v8908_v19, %v2979_v32  ;;  %vm9663_vm1 = vmor %vm3581_vm15, %vm3582_vm14  ;;  %v3585_v16 = vand.u32 2147483647, %v9168_v36  ;;  %v3608_v8 = vsub.f32 1.0, %v9371_v61 }
 0x473   : > { %4773 = vmatmul.msk.bf16.gmra.mxu3 %vm2659_vm10, %v11542_v49  ;;  %v3595_v49 = vadd.f32 %v9272_v6, %v3594_v54  ;;  %v9671_v34 = vadd.f32 %v9391_v44, %v4323_v52  ;;  %4412 = vst [vmem:[%s9658_s1] sm:$0xff] %v4384_v27  ;;  %v3584_v19 = vsel %vm9663_vm1, %v9250_v40, %v3580_v24  ;;  %vm3596_vm10 = vweird.f32 %v9202_v41  ;;  %v11637_v24 = vld [vmem:[#allocation138_spill] sm:$0xff] }
 0x474   : > { %v5010_v2 = vpop.eup %5009  ;;  %v3602_v47 = vand.u32 2147483648, %v9202_v41  ;;  %v3588_v36 = vor.u32 1.1754944e-38, %v3587_v11  ;;  %vm9681_vm3 = vmor %vm3596_vm10, %vm3597_vm0  ;;  %v3600_v44 = vand.u32 2147483647, %v9202_v41  ;;  %v3609_v18 = vmul.f32 %v9277_v10, %v3608_v8  ;;  %v11642_v8 = vld [vmem:[#allocation125_spill] sm:$0xff] }
 0x475   : > { %v4385_v42 = vmul.f32 %v5010_v2, %v4108_v1  ;;  %5013 = vtanh.f32 %v9671_v34  ;;  %v9692_v40 = vmul.f32 %v9652_v55, %v9606_v5  ;;  %v3599_v0 = vsel %vm9681_vm3, %v9272_v6, %v3595_v49 }
 0x476   : > { %vm3612_vm4 = vweird.f32 %v9277_v10  ;;  %v3610_v4 = vadd.f32 %v9277_v10, %v3609_v18  ;;  %v3615_v33 = vand.u32 2147483647, %v9212_v48  ;;  %v3617_v58 = vand.u32 2147483648, %v9212_v48  ;;  %v9859_v18 = vld [vmem:[%s9558_s25 + $0x60] sm:$0xff] }
 0x477   : > { %v5012_v41 = vpop.eup %5011  ;;  %4413 = vst [vmem:[%s9658_s1 + $0x8] sm:$0xff] %v4385_v42  ;;  %v3623_v59 = vsub.f32 1.0, %v9376_v21  ;;  %v9707_v25 = vadd.f32 %v11632_v13, %v9437_v29  ;;  %vm3586_vm6 = vcmp.eq.f32.partialorder %v3585_v16, 8.507059e+37  ;;  %v3603_v6 = vor.u32 1.1754944e-38, %v3602_v47  ;;  %v9733_v31 = vpop.f32.mrf.mxu3  ;;  %v11641_v16 = vld [vmem:[#allocation130_spill] sm:$0xff] }
 0x478   : > { %v4386_v9 = vmul.f32 %v5012_v41, %v4123_v43  ;;  %v9710_v7 = vadd.f32 %v9210_v45, %v3008_v23  ;;  %v9712_v1 = vsel %vm3586_vm6, %v3588_v36, %v3584_v19  ;;  %vm3601_vm2 = vcmp.eq.f32.partialorder %v3600_v44, 8.507059e+37  ;;  %v9745_v54 = vpop.f32.mrf.mxu1  ;;  %v9754_v23 = vpop.f32.mrf.mxu2  ;;  %v11644_v19 = vld [vmem:[#allocation17_spill] sm:$0xff] }
 0x479   : > { %vm3611_vm5 = vweird.f32 %v9212_v48  ;;  %v3822_v46 = vsub.f32 1.0, %v9692_v40  ;;  %v9717_v39 = vsel %vm3601_vm2, %v3603_v6, %v3599_v0  ;;  %v3624_v21 = vmul.f32 %v9296_v17, %v3623_v59  ;;  %v9774_v44 = vpop.f32.mrf.mxu0  ;;  %v11654_v6 = vld [vmem:[#allocation137_spill] sm:$0xff] }
 0x47a   : > { %4414 = vst [vmem:[%s9658_s1 + $0x10] sm:$0xff] %v4386_v9  ;;  %vm9721_vm7 = vmor %vm3611_vm5, %vm3612_vm4  ;;  %v11635_v45 = vsub.f32 1.0, %v9147_v35  ;;  %vm3616_vm8 = vcmp.eq.f32.partialorder %v3615_v33, 8.507059e+37  ;;  %v3618_v14 = vor.u32 1.1754944e-38, %v3617_v58  ;;  %vm3626_vm9 = vweird.f32 %v9239_v20  ;;  %v11652_v9 = vld [vmem:[#allocation75_spill] sm:$0xff] }
 0x47b   : > { %v3614_v48 = vsel %vm9721_vm7, %v9277_v10, %v3610_v4  ;;  %v5014_v32 = vpop.eup %5013  ;;  %v3632_v51 = vand.u32 2147483648, %v9239_v20  ;;  %vm3886_vm11 = vweird.f32 %v9120_v22  ;;  %v11636_v35 = vsub.f32 1.0, %v9188_v56  ;;  %v11649_v4 = vld [vmem:[#allocation129_spill] sm:$0xff] }
 0x47c   : > { %v3883_v43 = vmul.f32 %v9120_v22, %v11635_v45  ;;  %v4387_v10 = vmul.f32 %v5014_v32, %v9625_v26  ;;  %vm3627_vm12 = vweird.f32 %v9296_v17  ;;  %v3630_v38 = vand.u32 2147483647, %v9239_v20  ;;  %v11659_v32 = vld [vmem:[#allocation154_spill] sm:$0xff]  ;;  %v752_v26 = vld [vmem:[%s9558_s25 + $0x48] sm:$0xff] }
 0x47d   : > { %v3898_v12 = vmul.f32 %v11637_v24, %v11636_v35  ;;  %v3891_v11 = vand.u32 2147483648, %v11638_v63  ;;  %v9747_v52 = vsel %vm3616_vm8, %v3618_v14, %v3614_v48  ;;  %v9750_v27 = vadd.f32 %v9296_v17, %v3624_v21  ;;  %vm9780_vm1 = vmor %vm3626_vm9, %vm3627_vm12  ;;  %v11672_v48 = vld [vmem:[#allocation113_spill] sm:$0xff] }
 0x47e   : > { %v3884_v57 = vadd.f32 %v9120_v22, %v3883_v43  ;;  %vm3885_vm13 = vweird.f32 %v11638_v63  ;;  %v3889_v56 = vand.u32 2147483647, %v11638_v63  ;;  %4415 = vst [vmem:[%s9658_s1 + $0x18] sm:$0xff] %v4387_v10  ;;  %vm3901_vm15 = vweird.f32 %v11637_v24  ;;  %v11663_v10 = vld [vmem:[#allocation42_spill] sm:$0xff]  ;;  %v9897_v35 = vld [vmem:[%s9558_s25 + $0x78] sm:$0xff] }
 0x47f   : > { %vm9757_vm14 = vmor %vm3885_vm13, %vm3886_vm11  ;;  %v3899_v53 = vadd.f32 %v11637_v24, %v3898_v12  ;;  %v3904_v49 = vand.u32 2147483647, %v11641_v16  ;;  %v11643_v2 = vsub.f32 1.0, %v11642_v8  ;;  %v9767_v42 = vor.u32 1.1754944e-38, %v3632_v51  ;;  %v9820_v51 = vpop.permute.xlu1 %2596  ;;  %v751_v63 = vld [vmem:[%s9558_s25 + $0x40] sm:$0xff]  ;;  %v11666_v8 = vld [vmem:[#allocation87_spill] sm:$0xff] }
 0x480   : > { %v3888_v36 = vsel %vm9757_vm14, %v9120_v22, %v3884_v57  ;;  %vm3900_vm0 = vweird.f32 %v11641_v16  ;;  %v3906_v61 = vand.u32 2147483648, %v11641_v16  ;;  %vm9784_vm10 = vcmp.eq.f32.partialorder %v3630_v38, 8.507059e+37  ;;  %v9831_v38 = vpop.f32.mrf.mxu3  ;;  %v754_v16 = vld [vmem:[%s9558_s25 + $0x58] sm:$0xff]  ;;  %v9870_v58 = vpop.f32.mrf.mxu2  ;;  %11675 = vst [vmem:[#allocation16_spill] sm:$0xff] %v9897_v35 }
 0x481   : > { %v3913_v47 = vmul.f32 %v11644_v19, %v11643_v2  ;;  %v3892_v41 = vor.u32 1.1754944e-38, %v3891_v11  ;;  %vm3916_vm3 = vweird.f32 %v11644_v19  ;;  %v3919_v33 = vand.u32 2147483647, %v11649_v4  ;;  %vm9797_vm6 = vmor %vm3900_vm0, %vm3901_vm15  ;;  %v11667_v2 = vld [vmem:[#allocation25_spill] sm:$0xff] }
 0x482   : > { %v3629_v20 = vsel %vm9780_vm1, %v9296_v17, %v9750_v27  ;;  %vm3890_vm4 = vcmp.eq.f32.partialorder %v3889_v56, 8.507059e+37  ;;  %v3921_v59 = vand.u32 2147483648, %v11649_v4  ;;  %v11653_v13 = vsub.f32 1.0, %v11652_v9  ;;  %v9837_v56 = vpop.f32.mrf.mxu1  ;;  %v9876_v9 = vld [vmem:[%s9558_s25 + $0x68] sm:$0xff]  ;;  %v11671_v17 = vld [vmem:[#allocation73_spill] sm:$0xff] }
 0x483   : > { %v3914_v22 = vadd.f32 %v11644_v19, %v3913_v47  ;;  %v3893_v21 = vsel %vm3890_vm4, %v3892_v41, %v3888_v36  ;;  %v3903_v45 = vsel %vm9797_vm6, %v11637_v24, %v3899_v53  ;;  %vm9808_vm2 = vcmp.eq.f32.partialorder %v3904_v49, 8.507059e+37  ;;  %v11662_v24 = vld [vmem:[#allocation134_spill] sm:$0xff]  ;;  %v753_v53 = vld [vmem:[%s9558_s25 + $0x50] sm:$0xff] }
 0x484   : > { %v3928_v29 = vmul.f32 %v11654_v6, %v11653_v13  ;;  %vm3915_vm5 = vweird.f32 %v11649_v4  ;;  %v3907_v43 = vor.u32 1.1754944e-38, %v3906_v61  ;;  %vm3931_vm8 = vweird.f32 %v11654_v6  ;;  %v11668_v47 = vld [vmem:[#allocation82_spill] sm:$0xff]  ;;  %v11669_v4 = vld [vmem:[#allocation61_spill] sm:$0xff]  ;;  %v9879_v13 = vld [vmem:[%s9558_s25 + $0x30] sm:$0xff] }
 0x485   : > { %vm9813_vm7 = vmor %vm3915_vm5, %vm3916_vm3  ;;  %5015 = vtanh.f32 %v11659_v32  ;;  %vm9825_vm9 = vcmp.eq.f32.partialorder %v3919_v33, 8.507059e+37  ;;  %v3936_v12 = vand.u32 2147483648, %v11662_v24  ;;  %v3922_v11 = vor.u32 1.1754944e-38, %v3921_v59  ;;  %v9856_v61 = vld [vmem:[%s9558_s25 + $0x20] sm:$0xff]  ;;  %v9873_v59 = vld [vmem:[%s9558_s25 + $0x28] sm:$0xff] }
 0x486   : > { %v3929_v14 = vadd.f32 %v11654_v6, %v3928_v29  ;;  %v3918_v57 = vsel %vm9813_vm7, %v11644_v19, %v3914_v22  ;;  %5017 = vtanh.f32 %v11663_v10  ;;  %vm3930_vm11 = vweird.f32 %v11662_v24  ;;  %v9891_v32 = vld [vmem:[%s9558_s25 + $0x70] sm:$0xff] }
 0x487   : > { %v3934_v27 = vand.u32 2147483647, %v11662_v24  ;;  %5019 = vtanh.f32 %v9707_v25  ;;  %vm9844_vm12 = vmor %vm3930_vm11, %vm3931_vm8  ;;  %v2723_v25 = vadd.f32 %v11666_v8, %v9820_v51  ;;  %v2810_v19 = vadd.f32 %v11667_v2, %v9820_v51  ;;  %11673 = vst [vmem:[#allocation74_spill] sm:$0xff] %v9891_v32  ;;  %v9903_v8 = vpop.f32.mrf.mxu0 }
 0x488   : > { %5021 = vtanh.f32 %v9710_v7  ;;  %v2897_v36 = vadd.f32 %v11668_v47, %v9820_v51  ;;  %v3908_v41 = vsel %vm9808_vm2, %v3907_v43, %v3903_v45  ;;  %v3923_v7 = vsel %vm9825_vm9, %v3922_v11, %v3918_v57  ;;  %v11670_v45 = vld [vmem:[#allocation121_spill] sm:$0xff]  ;;  %v11676_v11 = vld [vmem:[#allocation30_spill] sm:$0xff]  ;;  %v11677_v47 = vld [vmem:[#allocation28_spill] sm:$0xff] }
 0x489   : > { %v3933_v22 = vsel %vm9844_vm12, %v11654_v6, %v3929_v14  ;;  %v2984_v33 = vadd.f32 %v11669_v4, %v9820_v51  ;;  %v3937_v29 = vor.u32 1.1754944e-38, %v3936_v12  ;;  %v2752_v6 = vadd.f32 %v11670_v45, %v2723_v25  ;;  %v9894_v57 = vld [vmem:[%s9558_s25 + $0x38] sm:$0xff]  ;;  %v11678_v4 = vld [vmem:[#allocation14_spill] sm:$0xff]  ;;  %s5216_s25 = scalar_lea.hbm %s5215_s6, 32 }
 0x48a   : > { %v2839_v43 = vadd.f32 %v11671_v17, %v2810_v19  ;;  %v2926_v14 = vadd.f32 %v11672_v48, %v2897_v36  ;;  %11674 = vst [vmem:[#allocation103_spill] sm:$0xff] %v9894_v57  ;;  %v3634_v10 = vsel %vm9784_vm10, %v9767_v42, %v3629_v20  ;;  %vm3935_vm13 = vcmp.eq.f32.partialorder %v3934_v27, 8.507059e+37  ;;  %v11679_v27 = vld [vmem:[#allocation92_spill] sm:$0xff]  ;;  %p5217_p11 = scmp.ne.s32.totalorder %s5215_s6, %s5216_s25  ;;  %p5222_p1 = scmp.lt.s32.totalorder %s5220_s4, %s5216_s25 }
 0x48b   : > { %v5016_v24 = vpop.eup %5015  ;;  %v4328_v12 = vmul.f32 %v3893_v21, %v751_v63  ;;  %v3013_v49 = vadd.f32 %v11676_v11, %v2984_v33  ;;  %4428 = vst [vmem:[%s9885_s27] sm:$0xff] %v9600_v60  ;;  %v3938_v2 = vsel %vm3935_vm13, %v3937_v29, %v3933_v22  ;;  %v2781_v36 = vadd.f32 %v11677_v47, %v2752_v6  ;;  %v11680_v29 = vld [vmem:[#allocation83_spill] sm:$0xff]  ;;  %v11681_v6 = vld [vmem:[#allocation133_spill] sm:$0xff]  ;;  %v11685_v11 = vld [vmem:[#allocation104_spill] sm:$0xff] }
 0x48c   : > { %v5018_v25 = vpop.eup %5017  ;;  %v4344_v19 = vmul.f32 %v5016_v24, %v9712_v1  ;;  %v3090_v0 = vadd.f32 %v9698_v28, %v11678_v4  ;;  %4429 = vst [vmem:[%s9885_s27 + $0x8] sm:$0xff] %v9612_v3  ;;  %v4329_v20 = vmul.f32 %v3908_v41, %v752_v26  ;;  %v4330_v21 = vmul.f32 %v3923_v7, %v753_v53  ;;  %v11682_v53 = vld [vmem:[#allocation32_spill] sm:$0xff]  ;;  %v11683_v7 = vld [vmem:[#allocation101_spill] sm:$0xff]  ;;  %v9933_v24 = vpop.f32.mrf.mxu1  ;;  %p5218_p12 = pnand %p5217_p11, %p5386_p5  ;;  %p5223_p2 = por %p5222_p1, %p5221_p0 }
 0x48d   : > { %v5020_v42 = vpop.eup %5019  ;;  %v4345_v63 = vmul.f32 %v5018_v25, %v9717_v39  ;;  %v2868_v33 = vadd.f32 %v11679_v27, %v2839_v43  ;;  %4430 = vst [vmem:[%s9885_s27 + $0x10] sm:$0xff] %v9631_v30  ;;  %v2955_v45 = vadd.f32 %v11680_v29, %v2926_v14  ;;  %v3064_v28 = vadd.f32 %v9754_v23, %v11681_v6  ;;  %v11684_v30 = vld [vmem:[#allocation147_spill] sm:$0xff]  ;;  %v9927_v14 = vpop.f32.mrf.mxu3 }
 0x48e   : > { %v5022_v60 = vpop.eup %5021  ;;  %v4346_v1 = vmul.f32 %v5020_v42, %v9747_v52  ;;  %v4360_v22 = vadd.f32 %v4344_v19, %v4328_v12  ;;  %4431 = vst [vmem:[%s9885_s27 + $0x18] sm:$0xff] %v9671_v34  ;;  %v4331_v3 = vmul.f32 %v3938_v2, %v754_v16  ;;  %v3042_v41 = vadd.f32 %v11682_v53, %v3013_v49  ;;  %v11687_v49 = vld [vmem:[#allocation21_spill] sm:$0xff]  ;;  %v3068_v2 = vpop.f32.mrf.mxu2  ;;  %p5219_p13 = pneg %p5218_p12 }
 0x48f   : > { %v4347_v26 = vmul.f32 %v5022_v60, %v3634_v10  ;;  %v4361_v39 = vadd.f32 %v4345_v63, %v4329_v20  ;;  %v3637_v17 = vmul.f32 %v11684_v30, %v11683_v7  ;;  %v4814_v52 = vmul.f32 -1.442695, %v2781_v36  ;;  %v3097_v4 = vpop.f32.mrf.mxu0 }
 0x490   : > { %v4362_v43 = vadd.f32 %v4346_v1, %v4330_v21  ;;  %v3119_v48 = vadd.f32 %v9687_v50, %v3090_v0  ;;  %4436 = vst [vmem:[%s9885_s27 + $0x40] sm:$0xff] %v4360_v22  ;;  %v3823_v34 = vmul.f32 %v9652_v55, %v3822_v46  ;;  %5023 = vtanh.f32 %v4360_v22  ;;  %p5224_p3 = pnand %p5223_p2, %p5219_p13 }
 0x491   : > { %v4363_v23 = vadd.f32 %v4347_v26, %v4331_v3  ;;  %v4815_v16 = vmul.f32 -1.442695, %v2868_v33  ;;  %4437 = vst [vmem:[%s9885_s27 + $0x48] sm:$0xff] %v4361_v39  ;;  %vm3825_vm14 = vweird.f32 %v9606_v5  ;;  %5025 = vtanh.f32 %v4361_v39 }
 0x492   : > { %v4816_v10 = vmul.f32 -1.442695, %v2955_v45  ;;  %v3093_v50 = vadd.f32 %v9774_v44, %v3064_v28  ;;  %4438 = vst [vmem:[%s9885_s27 + $0x50] sm:$0xff] %v4362_v43  ;;  %v3831_v12 = vand.u32 2147483648, %v9606_v5  ;;  %5027 = vtanh.f32 %v4362_v43  ;;  %v11688_v44 = vld [vmem:[#allocation48_spill] sm:$0xff] }
 0x493   : > { %v4817_v40 = vmul.f32 -1.442695, %v3042_v41  ;;  %v11686_v46 = vsub.f32 1.0, %v11685_v11  ;;  %4439 = vst [vmem:[%s9885_s27 + $0x58] sm:$0xff] %v4363_v23  ;;  %vm3826_vm15 = vweird.f32 %v9652_v55  ;;  %5029 = vpow2.f32 %v4814_v52 }
 0x494   : > { %v4802_v19 = vmul.f32 -1.442695, %v3119_v48  ;;  %v3066_v47 = vadd.f32 %v9870_v58, %v9329_v62  ;;  %5031 = vpow2.f32 %v4815_v16  ;;  %vm3521_vm0 = vweird.f32 %v11688_v44  ;;  %vm9959_vm10 = vmor %vm3825_vm14, %vm3826_vm15  ;;  %v9981_v29 = vpop.f32.mrf.mxu1  ;;  %v11695_v48 = vld [vmem:[#allocation94_spill] sm:$0xff] }
 0x495   : > { %v3519_v25 = vmul.f32 %v11687_v49, %v11686_v46  ;;  %vm3522_vm1 = vweird.f32 %v11687_v49  ;;  %v3824_v36 = vadd.f32 %v9652_v55, %v3823_v34  ;;  %5033 = vpow2.f32 %v4816_v10  ;;  %v9987_v39 = vpop.f32.mrf.mxu3  ;;  %v11696_v10 = vld [vmem:[#allocation55_spill] sm:$0xff] }
 0x496   : > { %v3122_v0 = vadd.f32 %v9745_v54, %v3093_v50  ;;  %v3525_v42 = vand.u32 2147483647, %v11688_v44  ;;  %v3527_v20 = vand.u32 2147483648, %v11688_v44  ;;  %v9953_v21 = vpop.eup %5023  ;;  %v3638_v63 = vsub.f32 1.0, %v3637_v17  ;;  %vm9971_vm3 = vmor %vm3521_vm0, %vm3522_vm1  ;;  %v11697_v50 = vld [vmem:[#allocation57_spill] sm:$0xff] }
 0x497   : > { %5035 = vpow2.f32 %v4817_v40  ;;  %v3520_v27 = vadd.f32 %v11687_v49, %v3519_v25  ;;  %v3829_v54 = vand.u32 2147483647, %v9606_v5  ;;  %v9965_v33 = vpop.eup %5025  ;;  %v3095_v1 = vadd.f32 %v9903_v8, %v3066_v47  ;;  %v11698_v40 = vld [vmem:[#allocation56_spill] sm:$0xff] }
 0x498   : > { %5037 = vtanh.f32 %v4363_v23  ;;  %v9976_v22 = vpop.eup %5027  ;;  %v3828_v5 = vsel %vm9959_vm10, %v9652_v55, %v3824_v36  ;;  %v3832_v28 = vor.u32 1.1754944e-38, %v3831_v12  ;;  %vm9983_vm4 = vcmp.eq.f32.partialorder %v3525_v42, 8.507059e+37 }
 0x499   : > { %5039 = vpow2.f32 %v4802_v19  ;;  %v5030_v45 = vpop.eup %5029  ;;  %v3528_v26 = vor.u32 1.1754944e-38, %v3527_v20  ;;  %v3524_v41 = vsel %vm9971_vm3, %v11687_v49, %v3520_v27  ;;  %vm3830_vm6 = vcmp.eq.f32.partialorder %v3829_v54, 8.507059e+37  ;;  %v3070_v49 = vpop.f32.mrf.mxu2 }
 0x49a   : > { %5041 = vtanh.f32 %v3122_v0  ;;  %v5032_v8 = vpop.eup %5031  ;;  %v9989_v53 = vadd.f32 1.0, %v5030_v45  ;;  %v3639_v55 = vmul.f32 %v11684_v30, %v3638_v63  ;;  %v3833_v52 = vsel %vm3830_vm6, %v3832_v28, %v3828_v5  ;;  %v3099_v0 = vpop.f32.mrf.mxu0 }
 0x49b   : > { %v5034_v17 = vpop.eup %5033  ;;  %v9995_v43 = vadd.f32 1.0, %v5032_v8  ;;  %v3069_v34 = vadd.f32 %v3068_v2, %v11695_v48  ;;  %v3124_v23 = vadd.f32 %v9837_v56, %v3095_v1  ;;  %v10001_v12 = vadd.f32 %v11697_v50, %v11696_v10 }
 0x49c   : > { %v10005_v11 = vadd.f32 %v9581_v15, %v11698_v40  ;;  %v10007_v46 = vadd.f32 1.0, %v5034_v17  ;;  %5043 = vrcp.f32 %v9989_v53  ;;  %v3529_v56 = vsel %vm9983_vm4, %v3528_v26, %v3524_v41  ;;  %v3227_v54 = vpop.f32.mrf.mxu1 }
 0x49d   : > { %v5036_v16 = vpop.eup %5035  ;;  %5045 = vrcp.f32 %v9995_v43  ;;  %v3098_v2 = vadd.f32 %v3097_v4, %v3069_v34  ;;  %v4324_v15 = vmul.f32 %v3833_v52, %v9856_v61  ;;  %v10020_v44 = vadd.f32 %v11684_v30, %v3639_v55  ;;  %v10049_v52 = vpop.f32.mrf.mxu3 }
 0x49e   : > { %v10010_v25 = vpop.eup %5037  ;;  %v10012_v19 = vadd.f32 1.0, %v5036_v16  ;;  %5047 = vrcp.f32 %v10007_v46  ;;  %v4209_v20 = vand.u32 2147483647, %v9989_v53  ;;  %v4211_v63 = vand.u32 2147483648, %v9989_v53 }
 0x49f   : > { %v5040_v47 = vpop.eup %5039  ;;  %5049 = vtanh.f32 %v3124_v23  ;;  %v3071_v58 = vadd.f32 %v3070_v49, %v9820_v51  ;;  %v4224_v4 = vand.u32 2147483647, %v9995_v43  ;;  %v4226_v27 = vand.u32 2147483648, %v9995_v43 }
 0x4a0   : > { %v5042_v42 = vpop.eup %5041  ;;  %v4241_v61 = vand.u32 2147483648, %v10007_v46  ;;  %5051 = vrcp.f32 %v10012_v19  ;;  %vm4205_vm2 = vweird.f32 %v9989_v53  ;;  %v4239_v60 = vand.u32 2147483647, %v10007_v46 }
 0x4a1   : > { %v3127_v1 = vadd.f32 %v9933_v24, %v3098_v2  ;;  %v3100_v5 = vadd.f32 %v3099_v0, %v3071_v58  ;;  %vm4220_vm5 = vweird.f32 %v9995_v43  ;;  %v4256_v28 = vand.u32 2147483648, %v10012_v19  ;;  %v3169_v32 = vpop.f32.mrf.mxu2 }
 0x4a2   : > { %v10033_v45 = vpop.eup %5043  ;;  %v10037_v3 = vadd.f32 1.0, %v5040_v47  ;;  %v4340_v26 = vmul.f32 %v5042_v42, %v3529_v56  ;;  %vm10043_vm7 = vcmp.eq.f32.partialorder %v4209_v20, 8.507059e+37  ;;  %v4212_v24 = vor.u32 1.1754944e-38, %v4211_v63  ;;  %v3198_v57 = vpop.f32.mrf.mxu0 }
 0x4a3   : > { %v10039_v8 = vpop.eup %5045  ;;  %v4201_v41 = vmul.f32 %v10033_v45, %v9989_v53  ;;  %vm4235_vm8 = vweird.f32 %v10007_v46  ;;  %v4254_v17 = vand.u32 2147483647, %v10012_v19  ;;  %vm10053_vm9 = vcmp.eq.f32.partialorder %v4224_v4, 8.507059e+37 }
 0x4a4   : > { %v5048_v34 = vpop.eup %5047  ;;  %v4216_v23 = vmul.f32 %v10039_v8, %v9995_v43  ;;  %v4227_v50 = vor.u32 1.1754944e-38, %v4226_v27  ;;  %v4242_v49 = vor.u32 1.1754944e-38, %v4241_v61  ;;  %5053 = vrcp.f32 %v10037_v3 }
 0x4a5   : > { %v10058_v56 = vpop.eup %5049  ;;  %v4202_v2 = vsub.f32 1.0, %v4201_v41  ;;  %vm4206_vm11 = vweird.f32 %v10033_v45  ;;  %v4231_v47 = vmul.f32 %v5048_v34, %v10007_v46  ;;  %vm10062_vm12 = vcmp.eq.f32.partialorder %v4239_v60, 8.507059e+37 }
 0x4a6   : > { %vm4250_vm13 = vweird.f32 %v10012_v19  ;;  %vm3642_vm14 = vweird.f32 %v11684_v30  ;;  %v4810_v42 = vmul.f32 -1.442695, %v3127_v1  ;;  %v5052_v20 = vpop.eup %5051  ;;  %v4217_v63 = vsub.f32 1.0, %v4216_v23  ;;  %vm4207_vm4 = vmor %vm4205_vm2, %vm4206_vm11 }
 0x4a7   : > { %vm4221_vm15 = vweird.f32 %v10039_v8  ;;  %v4257_v58 = vor.u32 1.1754944e-38, %v4256_v28  ;;  %v10069_v4 = vadd.f32 %v4340_v26, %v4324_v15  ;;  %v4203_v27 = vmul.f32 %v10033_v45, %v4202_v2  ;;  %v3229_v26 = vpop.f32.mrf.mxu1 }
 0x4a8   : > { %v4232_v61 = vsub.f32 1.0, %v4231_v47  ;;  %v4246_v60 = vmul.f32 %v5052_v20, %v10012_v19  ;;  %vm10073_vm0 = vcmp.eq.f32.partialorder %v4254_v17, 8.507059e+37  ;;  %vm3641_vm10 = vweird.f32 %v11683_v7  ;;  %vm4222_vm1 = vmor %vm4220_vm5, %vm4221_vm15 }
 0x4a9   : > { %v4218_v1 = vmul.f32 %v10039_v8, %v4217_v63  ;;  %vm4236_vm3 = vweird.f32 %v5048_v34  ;;  %v3951_v28 = vand.u32 2147483648, %v10037_v3  ;;  %v3949_v15 = vand.u32 2147483647, %v10037_v3  ;;  %4432 = vst [vmem:[%s9885_s27 + $0x20] sm:$0xff] %v10069_v4 }
 0x4aa   : > { %v4204_v23 = vadd.f32 %v10033_v45, %v4203_v27  ;;  %v4233_v17 = vmul.f32 %v5048_v34, %v4232_v61  ;;  %v4247_v2 = vsub.f32 1.0, %v4246_v60  ;;  %5055 = vpow2.f32 %v4810_v42  ;;  %v10085_v47 = vpop.eup %5053  ;;  %v3256_v60 = vpop.f32.mrf.mxu3  ;;  %vm4237_vm2 = vmor %vm4235_vm8, %vm4236_vm3 }
 0x4ab   : > { %v4219_v63 = vadd.f32 %v10039_v8, %v4218_v1  ;;  %vm4251_vm6 = vweird.f32 %v5052_v20  ;;  %v3129_v36 = vadd.f32 %v9981_v29, %v3100_v5  ;;  %v3228_v35 = vadd.f32 %v3227_v54, %v11696_v10 }
 0x4ac   : > { %v4208_v27 = vsel %vm4207_vm4, %v10033_v45, %v4204_v23  ;;  %v4234_v42 = vadd.f32 %v5048_v34, %v4233_v17  ;;  %v4248_v61 = vmul.f32 %v5052_v20, %v4247_v2  ;;  %v3941_v53 = vmul.f32 %v10085_v47, %v10037_v3  ;;  %vm4252_vm5 = vmor %vm4250_vm13, %vm4251_vm6  ;;  %v3171_v17 = vpop.f32.mrf.mxu2  ;;  %v3200_v2 = vpop.f32.mrf.mxu0 }
 0x4ad   : > { %v4213_v29 = vsel %vm10043_vm7, %v4212_v24, %v4208_v27  ;;  %v4223_v54 = vsel %vm4222_vm1, %v10039_v8, %v4219_v63  ;;  %vm3946_vm11 = vweird.f32 %v10085_v47  ;;  %v4818_v43 = vmul.f32 -1.442695, %v3129_v36  ;;  %vm10130_vm7 = vmor %vm3641_vm10, %vm3642_vm14 }
 0x4ae   : > { %v4228_v5 = vsel %vm10053_vm9, %v4227_v50, %v4223_v54  ;;  %v4238_v45 = vsel %vm4237_vm2, %v5048_v34, %v4234_v42  ;;  %v4249_v1 = vadd.f32 %v5052_v20, %v4248_v61  ;;  %v4392_v23 = vmul.f32 %v9953_v21, %v4213_v29 }
 0x4af   : > { %v4243_v55 = vsel %vm10062_vm12, %v4242_v49, %v4238_v45  ;;  %v4393_v46 = vmul.f32 %v9965_v33, %v4228_v5  ;;  %v3942_v8 = vsub.f32 1.0, %v3941_v53  ;;  %5057 = vpow2.f32 %v4818_v43  ;;  %v11713_v43 = vld [vmem:[#allocation143_spill] sm:$0xff] }
 0x4b0   : > { %v5056_v36 = vpop.eup %5055  ;;  %v4253_v24 = vsel %vm4252_vm5, %v5052_v20, %v4249_v1  ;;  %v4394_v16 = vmul.f32 %v9976_v22, %v4243_v55  ;;  %4420 = vst [vmem:[%s9658_s1 + $0x40] sm:$0xff] %v4392_v23  ;;  %v3170_v34 = vadd.f32 %v3169_v32, %v10001_v12  ;;  %v10120_v21 = vadd.f32 %v3256_v60, %v3228_v35  ;;  %v10135_v35 = vpop.f32.mrf.mxu1 }
 0x4b1   : > { %v4258_v50 = vsel %vm10073_vm0, %v4257_v58, %v4253_v24  ;;  %4421 = vst [vmem:[%s9658_s1 + $0x48] sm:$0xff] %v4393_v46  ;;  %v3943_v19 = vmul.f32 %v10085_v47, %v3942_v8  ;;  %v3645_v22 = vand.u32 2147483647, %v11683_v7  ;;  %v4068_v32 = vadd.f32 1.0, %v5056_v36 }
 0x4b2   : > { %v4395_v12 = vmul.f32 %v10010_v25, %v4258_v50  ;;  %4422 = vst [vmem:[%s9658_s1 + $0x50] sm:$0xff] %v4394_v16  ;;  %vm11709_vm8 = vweird.f32 %v10037_v3  ;;  %v3952_v0 = vor.u32 1.1754944e-38, %v3951_v28  ;;  %v3644_v20 = vsel %vm10130_vm7, %v11684_v30, %v10020_v44  ;;  %v3258_v42 = vpop.f32.mrf.mxu3 }
 0x4b3   : > { %vm10143_vm9 = vmor %vm11709_vm8, %vm3946_vm11  ;;  %v3199_v58 = vadd.f32 %v3198_v57, %v3170_v34  ;;  %v3944_v41 = vadd.f32 %v10085_v47, %v3943_v19  ;;  %vm3950_vm12 = vcmp.eq.f32.partialorder %v3949_v15, 8.507059e+37  ;;  %5059 = vrcp.f32 %v4068_v32  ;;  %v11714_v19 = vld [vmem:[#allocation29_spill] sm:$0xff] }
 0x4b4   : > { %v3230_v25 = vadd.f32 %v3229_v26, %v11698_v40  ;;  %4423 = vst [vmem:[%s9658_s1 + $0x58] sm:$0xff] %v4395_v12  ;;  %v11712_v3 = vand.u32 2147483648, %v11683_v7  ;;  %v3172_v28 = vadd.f32 %v3171_v17, %v10005_v11  ;;  %vm3646_vm13 = vcmp.eq.f32.partialorder %v3645_v22, 8.507059e+37  ;;  %v3174_v1 = vpop.f32.mrf.mxu2  ;;  %v3203_v23 = vpop.f32.mrf.mxu0 }
 0x4b5   : > { %v4779_v27 = vmul.f32 -1.442695, %v3199_v58  ;;  %v5058_v61 = vpop.eup %5057  ;;  %v3948_v57 = vsel %vm10143_vm9, %v10085_v47, %v3944_v41  ;;  %v3146_v5 = vadd.f32 %v9641_v37, %v11713_v43  ;;  %v4149_v8 = vand.u32 2147483647, %v4068_v32 }
 0x4b6   : > { %v3648_v63 = vor.u32 1.1754944e-38, %v11712_v3  ;;  %v10160_v30 = vadd.f32 %v3258_v42, %v3230_v25  ;;  %v3953_v15 = vsel %vm3950_vm12, %v3952_v0, %v3948_v57  ;;  %v10162_v26 = vadd.f32 1.0, %v5058_v61 }
 0x4b7   : > { %5061 = vpow2.f32 %v4779_v27  ;;  %v4332_v7 = vmul.f32 %v3953_v15, %v9859_v18  ;;  %v3201_v11 = vadd.f32 %v3200_v2, %v3172_v28  ;;  %v3175_v18 = vadd.f32 %v3174_v1, %v3146_v5 }
 0x4b8   : > { %v3649_v44 = vsel %vm3646_vm13, %v3648_v63, %v3644_v20  ;;  %5063 = vrcp.f32 %v10162_v26  ;;  %v10167_v54 = vpop.f32.mrf.mxu1  ;;  %v4151_v36 = vand.u32 2147483648, %v4068_v32  ;;  %v3148_v33 = vadd.f32 %v9733_v31, %v11714_v19 }
 0x4b9   : > { %v4348_v53 = vmul.f32 %v10058_v56, %v3649_v44  ;;  %v5060_v60 = vpop.eup %5059  ;;  %v4787_v47 = vmul.f32 -1.442695, %v3201_v11  ;;  %v3204_v37 = vadd.f32 %v3203_v23, %v3175_v18  ;;  %vm4145_vm15 = vweird.f32 %v4068_v32 }
 0x4ba   : > { %v4141_v45 = vmul.f32 %v5060_v60, %v4068_v32  ;;  %v10172_v56 = vpop.f32.mrf.mxu3  ;;  %vm4146_vm14 = vweird.f32 %v5060_v60  ;;  %vm4150_vm1 = vcmp.eq.f32.partialorder %v4149_v8, 8.507059e+37  ;;  %v4269_v41 = vand.u32 2147483647, %v10162_v26 }
 0x4bb   : > { %v4364_v29 = vadd.f32 %v4348_v53, %v4332_v7  ;;  %5065 = vpow2.f32 %v4787_v47  ;;  %v4795_v12 = vmul.f32 -1.442695, %v3204_v37  ;;  %vm4147_vm0 = vmor %vm4145_vm15, %vm4146_vm14  ;;  %v4271_v25 = vand.u32 2147483648, %v10162_v26 }
 0x4bc   : > { %v4142_v46 = vsub.f32 1.0, %v4141_v45  ;;  %5067 = vtanh.f32 %v10069_v4  ;;  %v4152_v4 = vor.u32 1.1754944e-38, %v4151_v36  ;;  %v3176_v3 = vpop.f32.mrf.mxu2  ;;  %v3205_v63 = vpop.f32.mrf.mxu0  ;;  %vm4265_vm3 = vweird.f32 %v10162_v26 }
 0x4bd   : > { %4440 = vst [vmem:[%s9885_s27 + $0x60] sm:$0xff] %v4364_v29  ;;  %v5062_v55 = vpop.eup %5061  ;;  %v3177_v28 = vadd.f32 %v3176_v3, %v3148_v33  ;;  %v4272_v44 = vor.u32 1.1754944e-38, %v4271_v25  ;;  %vm4270_vm6 = vcmp.eq.f32.partialorder %v4269_v41, 8.507059e+37 }
 0x4be   : > { %v10175_v24 = vadd.f32 1.0, %v5062_v55  ;;  %v5064_v16 = vpop.eup %5063  ;;  %v4143_v34 = vmul.f32 %v5060_v60, %v4142_v46 }
 0x4bf   : > { %v4261_v50 = vmul.f32 %v5064_v16, %v10162_v26  ;;  %vm4266_vm10 = vweird.f32 %v5064_v16  ;;  %v3206_v15 = vadd.f32 %v3205_v63, %v3177_v28  ;;  %v3151_v26 = vadd.f32 %v9831_v38, %v11681_v6 }
 0x4c0   : > { %5069 = vrcp.f32 %v10175_v24  ;;  %v4144_v22 = vadd.f32 %v5060_v60, %v4143_v34  ;;  %v10181_v0 = vpop.f32.mrf.mxu1  ;;  %vm4267_vm4 = vmor %vm4265_vm3, %vm4266_vm10 }
 0x4c1   : > { %5071 = vtanh.f32 %v4364_v29  ;;  %v4262_v49 = vsub.f32 1.0, %v4261_v50  ;;  %v5066_v20 = vpop.eup %5065  ;;  %v4803_v47 = vmul.f32 -1.442695, %v3206_v15 }
 0x4c2   : > { %v4148_v58 = vsel %vm4147_vm0, %v5060_v60, %v4144_v22  ;;  %5073 = vpow2.f32 %v4795_v12  ;;  %v5068_v17 = vpop.eup %5067  ;;  %v10185_v32 = vadd.f32 1.0, %v5066_v20  ;;  %v10187_v42 = vpop.f32.mrf.mxu3  ;;  %v3153_v22 = vadd.f32 %v9927_v14, %v9329_v62 }
 0x4c3   : > { %v4153_v31 = vsel %vm4150_vm1, %v4152_v4, %v4148_v58  ;;  %v4263_v2 = vmul.f32 %v5064_v16, %v4262_v49 }
 0x4c4   : > { %v4388_v27 = vmul.f32 %v5068_v17, %v4153_v31  ;;  %5075 = vrcp.f32 %v10185_v32  ;;  %v3179_v23 = vpop.f32.mrf.mxu2  ;;  %v3208_v55 = vpop.f32.mrf.mxu0 }
 0x4c5   : > { %v4264_v57 = vadd.f32 %v5064_v16, %v4263_v2  ;;  %5077 = vpow2.f32 %v4803_v47  ;;  %v3180_v8 = vadd.f32 %v3179_v23, %v3151_v26 }
 0x4c6   : > { %v10189_v61 = vpop.eup %5069  ;;  %4416 = vst [vmem:[%s9658_s1 + $0x20] sm:$0xff] %v4388_v27 }
 0x4c7   : > { %v5072_v7 = vpop.eup %5071  ;;  %v4268_v53 = vsel %vm4267_vm4, %v5064_v16, %v4264_v57  ;;  %v3532_v29 = vmul.f32 %v10189_v61, %v10175_v24  ;;  %v3209_v16 = vadd.f32 %v3208_v55, %v3180_v8 }
 0x4c8   : > { %v5074_v11 = vpop.eup %5073  ;;  %v4273_v60 = vsel %vm4270_vm6, %v4272_v44, %v4268_v53  ;;  %v10200_v1 = vpop.f32.mrf.mxu1 }
 0x4c9   : > { %v4396_v5 = vmul.f32 %v5072_v7, %v4273_v60  ;;  %v10196_v45 = vadd.f32 1.0, %v5074_v11  ;;  %v3533_v18 = vsub.f32 1.0, %v3532_v29 }
 0x4ca   : > { %v10204_v46 = vpop.eup %5075  ;;  %v10206_v36 = vpop.f32.mrf.mxu3 }
 0x4cb   : > { %4424 = vst [vmem:[%s9658_s1 + $0x60] sm:$0xff] %v4396_v5  ;;  %5079 = vrcp.f32 %v10196_v45  ;;  %v3652_v34 = vmul.f32 %v10204_v46, %v10185_v32  ;;  %v5078_v38 = vpop.eup %5077  ;;  %v3534_v37 = vmul.f32 %v10189_v61, %v3533_v18 }
 0x4cc   : > { %v10216_v33 = vadd.f32 1.0, %v5078_v38  ;;  %5081 = vtanh.f32 %v3209_v16  ;;  %v3181_v49 = vpop.f32.mrf.mxu2  ;;  %v3210_v20 = vpop.f32.mrf.mxu0 }
 0x4cd   : > { %v3653_v4 = vsub.f32 1.0, %v3652_v34 }
 0x4ce   : > { %5083 = vrcp.f32 %v10216_v33 }
 0x4d1   : > { %v5080_v50 = vpop.eup %5079 }
 0x4d2   : > { %v3836_v12 = vmul.f32 %v5080_v50, %v10196_v45 }
 0x4d3   : > { %5227 = shalt.err (!%p5224_p3)
}
 0x4d4   : > { %4848 = dma.vmem_to_hbm [thread:$0]  (%p5386_p5), %s4474_s2, 512, %s4476_s22, %s4445_s21   ;;  %v3837_v14 = vsub.f32 1.0, %v3836_v12  ;;  %v10234_v58 = vpop.f32.mrf.mxu1  ;;  %v3535_v41 = vadd.f32 %v10189_v61, %v3534_v37  ;;  %vm3537_vm2 = vweird.f32 %v10189_v61  ;;  %v3182_v25 = vadd.f32 %v3181_v49, %v3153_v22  ;;  %v10238_v17 = vpop.f32.mrf.mxu3 }
 0x4d5   : > { %v3846_v31 = vand.u32 2147483648, %v10196_v45  ;;  %v3540_v2 = vand.u32 2147483647, %v10175_v24  ;;  %v3542_v3 = vand.u32 2147483648, %v10175_v24  ;;  %vm3841_vm11 = vweird.f32 %v5080_v50  ;;  %v5082_v15 = vpop.eup %5081  ;;  %v3213_v23 = vpop.f32.mrf.mxu0 }
 0x4d6   : > { %v3838_v63 = vmul.f32 %v5080_v50, %v3837_v14  ;;  %vm3536_vm5 = vweird.f32 %v10175_v24  ;;  %v3844_v27 = vand.u32 2147483647, %v10196_v45  ;;  %v3211_v57 = vadd.f32 %v3210_v20, %v3182_v25  ;;  %v5084_v11 = vpop.eup %5083 }
 0x4d7   : > { %vm10245_vm7 = vmor %vm3536_vm5, %vm3537_vm2  ;;  %v3654_v44 = vmul.f32 %v10204_v46, %v3653_v4  ;;  %v3156_v7 = vadd.f32 %v9987_v39, %v11695_v48  ;;  %vm3840_vm8 = vweird.f32 %v10196_v45  ;;  %v3847_v60 = vor.u32 1.1754944e-38, %v3846_v31 }
 0x4d8   : > { %v3539_v53 = vsel %vm10245_vm7, %v10189_v61, %v3535_v41  ;;  %v3839_v24 = vadd.f32 %v5080_v50, %v3838_v63  ;;  %vm3842_vm9 = vmor %vm3840_vm8, %vm3841_vm11  ;;  %vm3541_vm12 = vcmp.eq.f32.partialorder %v3540_v2, 8.507059e+37  ;;  %v3543_v29 = vor.u32 1.1754944e-38, %v3542_v3  ;;  %v3184_v61 = vpop.f32.mrf.mxu2 }
 0x4d9   : > { %vm3656_vm13 = vweird.f32 %v10185_v32  ;;  %v3956_v47 = vmul.f32 %v5084_v11, %v10216_v33  ;;  %vm3845_vm14 = vcmp.eq.f32.partialorder %v3844_v27, 8.507059e+37  ;;  %vm3657_vm15 = vweird.f32 %v10204_v46 }
 0x4da   : > { %v3843_v5 = vsel %vm3842_vm9, %v5080_v50, %v3839_v24  ;;  %v3544_v39 = vsel %vm3541_vm12, %v3543_v29, %v3539_v53  ;;  %v3655_v26 = vadd.f32 %v10204_v46, %v3654_v44  ;;  %5085 = vtanh.f32 %v3211_v57  ;;  %vm10273_vm1 = vmor %vm3656_vm13, %vm3657_vm15 }
 0x4db   : > { %v3848_v45 = vsel %vm3845_vm14, %v3847_v60, %v3843_v5  ;;  %v3957_v55 = vsub.f32 1.0, %v3956_v47  ;;  %v4341_v8 = vmul.f32 %v5082_v15, %v3544_v39  ;;  %v3185_v16 = vadd.f32 %v3184_v61, %v3156_v7 }
 0x4dc   : > { %v4325_v18 = vmul.f32 %v3848_v45, %v9873_v59  ;;  %v3966_v34 = vand.u32 2147483648, %v10216_v33  ;;  %v3660_v38 = vand.u32 2147483647, %v10185_v32  ;;  %v3662_v37 = vand.u32 2147483648, %v10185_v32  ;;  %v10265_v12 = vpop.f32.mrf.mxu1  ;;  %v10267_v20 = vpop.f32.mrf.mxu3 }
 0x4dd   : > { %v3964_v50 = vand.u32 2147483647, %v10216_v33  ;;  %v3958_v22 = vmul.f32 %v5084_v11, %v3957_v55  ;;  %vm3961_vm0 = vweird.f32 %v5084_v11  ;;  %v3214_v49 = vadd.f32 %v3213_v23, %v3185_v16  ;;  %v3215_v57 = vpop.f32.mrf.mxu0 }
 0x4de   : > { %v4357_v4 = vadd.f32 %v4341_v8, %v4325_v18  ;;  %vm3960_vm10 = vweird.f32 %v10216_v33  ;;  %v3659_v14 = vsel %vm10273_vm1, %v10204_v46, %v3655_v26  ;;  %v3158_v2 = vadd.f32 %v10049_v52, %v9820_v51 }
 0x4df   : > { %v3959_v41 = vadd.f32 %v5084_v11, %v3958_v22  ;;  %v4811_v25 = vmul.f32 -1.442695, %v3214_v49  ;;  %vm3962_vm3 = vmor %vm3960_vm10, %vm3961_vm0  ;;  %v3967_v3 = vor.u32 1.1754944e-38, %v3966_v34  ;;  %v3663_v32 = vor.u32 1.1754944e-38, %v3662_v37 }
 0x4e0   : > { %4433 = vst [vmem:[%s9885_s27 + $0x28] sm:$0xff] %v4357_v4  ;;  %v5086_v31 = vpop.eup %5085  ;;  %vm3661_vm4 = vcmp.eq.f32.partialorder %v3660_v38, 8.507059e+37  ;;  %vm3965_vm6 = vcmp.eq.f32.partialorder %v3964_v50, 8.507059e+37  ;;  %v3186_v28 = vpop.f32.mrf.mxu2 }
 0x4e1   : > { %v3963_v63 = vsel %vm3962_vm3, %v5084_v11, %v3959_v41  ;;  %5087 = vpow2.f32 %v4811_v25  ;;  %v3664_v33 = vsel %vm3661_vm4, %v3663_v32, %v3659_v14  ;;  %v3187_v15 = vadd.f32 %v3186_v28, %v3158_v2 }
 0x4e2   : > { %v3968_v27 = vsel %vm3965_vm6, %v3967_v3, %v3963_v63  ;;  %v4349_v44 = vmul.f32 %v5086_v31, %v3664_v33  ;;  %v3233_v3 = vadd.f32 %v10135_v35, %v11713_v43 }
 0x4e3   : > { %v4333_v46 = vmul.f32 %v3968_v27, %v9876_v9  ;;  %v3216_v53 = vadd.f32 %v3215_v57, %v3187_v15  ;;  %v3235_v15 = vadd.f32 %v10167_v54, %v11714_v19 }
 0x4e4   : > { %v10285_v24 = vpop.f32.mrf.mxu3  ;;  %v3343_v52 = vpop.f32.mrf.mxu1 }
 0x4e5   : > { %v4365_v7 = vadd.f32 %v4349_v44, %v4333_v46  ;;  %v4819_v29 = vmul.f32 -1.442695, %v3216_v53  ;;  %v3314_v5 = vpop.f32.mrf.mxu0 }
 0x4e6   : > { %v3315_v45 = vadd.f32 %v3314_v5, %v11696_v10  ;;  %v3238_v5 = vadd.f32 %v10181_v0, %v11681_v6 }
 0x4e7   : > { %v5088_v60 = vpop.eup %5087  ;;  %4441 = vst [vmem:[%s9885_s27 + $0x68] sm:$0xff] %v4365_v7  ;;  %5089 = vpow2.f32 %v4819_v29 }
 0x4e8   : > { %v4069_v11 = vadd.f32 1.0, %v5088_v60  ;;  %v3285_v47 = vpop.f32.mrf.mxu2  ;;  %v3344_v26 = vadd.f32 %v3343_v52, %v3315_v45 }
 0x4e9   : > { %v3286_v39 = vadd.f32 %v3285_v47, %v10120_v21 }
 0x4ea   : > { %5091 = vrcp.f32 %v4069_v11  ;;  %v4164_v49 = vand.u32 2147483647, %v4069_v11  ;;  %v4166_v59 = vand.u32 2147483648, %v4069_v11  ;;  %vm4160_vm11 = vweird.f32 %v4069_v11 }
 0x4eb   : > { %v4780_v9 = vmul.f32 -1.442695, %v3286_v39 }
 0x4ec   : > { %v3372_v61 = vpop.f32.mrf.mxu3  ;;  %v3345_v18 = vpop.f32.mrf.mxu1  ;;  %vm4165_vm7 = vcmp.eq.f32.partialorder %v4164_v49, 8.507059e+37  ;;  %v3243_v49 = vadd.f32 %v10234_v58, %v11695_v48 }
 0x4ed   : > { %v5090_v23 = vpop.eup %5089  ;;  %5093 = vpow2.f32 %v4780_v9  ;;  %v3373_v55 = vadd.f32 %v3372_v61, %v3344_v26  ;;  %v3316_v50 = vpop.f32.mrf.mxu0 }
 0x4ee   : > { %v10290_v16 = vadd.f32 1.0, %v5090_v23  ;;  %v3317_v10 = vadd.f32 %v3316_v50, %v11698_v40  ;;  %v3262_v40 = vadd.f32 %v10172_v56, %v3233_v3  ;;  %v10338_v58 = vadd.f32 %v10267_v20, %v3243_v49 }
 0x4ef   : > { %v4781_v38 = vmul.f32 -1.442695, %v3373_v55  ;;  %v3264_v55 = vadd.f32 %v10187_v42, %v3235_v15 }
 0x4f0   : > { %v5092_v8 = vpop.eup %5091  ;;  %5095 = vrcp.f32 %v10290_v16  ;;  %v3287_v37 = vpop.f32.mrf.mxu2  ;;  %v3346_v31 = vadd.f32 %v3345_v18, %v3317_v10  ;;  %v4286_v39 = vand.u32 2147483648, %v10290_v16  ;;  %v4284_v9 = vand.u32 2147483647, %v10290_v16 }
 0x4f1   : > { %v4156_v34 = vmul.f32 %v5092_v8, %v4069_v11  ;;  %v3288_v21 = vadd.f32 %v3287_v37, %v10160_v30  ;;  %5097 = vpow2.f32 %v4781_v38  ;;  %vm4161_vm2 = vweird.f32 %v5092_v8 }
 0x4f2   : > { %5099 = vtanh.f32 %v4357_v4  ;;  %vm4162_vm5 = vmor %vm4160_vm11, %vm4161_vm2  ;;  %v4167_v4 = vor.u32 1.1754944e-38, %v4166_v59  ;;  %vm4280_vm9 = vweird.f32 %v10290_v16  ;;  %v3240_v38 = vadd.f32 %v10200_v1, %v9329_v62 }
 0x4f3   : > { %v4157_v22 = vsub.f32 1.0, %v4156_v34  ;;  %v5094_v14 = vpop.eup %5093  ;;  %v4788_v25 = vmul.f32 -1.442695, %v3288_v21  ;;  %v4287_v37 = vor.u32 1.1754944e-38, %v4286_v39  ;;  %vm4285_vm13 = vcmp.eq.f32.partialorder %v4284_v9, 8.507059e+37 }
 0x4f4   : > { %v3374_v2 = vpop.f32.mrf.mxu3  ;;  %v10297_v32 = vadd.f32 1.0, %v5094_v14  ;;  %v3348_v35 = vpop.f32.mrf.mxu1 }
 0x4f5   : > { %v4158_v41 = vmul.f32 %v5092_v8, %v4157_v22  ;;  %5101 = vpow2.f32 %v4788_v25  ;;  %v3375_v30 = vadd.f32 %v3374_v2, %v3346_v31  ;;  %v3319_v60 = vpop.f32.mrf.mxu0  ;;  %v3267_v22 = vadd.f32 %v10206_v36, %v3238_v5 }
 0x4f6   : > { %v5096_v33 = vpop.eup %5095  ;;  %5103 = vrcp.f32 %v10297_v32  ;;  %v3320_v45 = vadd.f32 %v3319_v60, %v11713_v43  ;;  %v10332_v31 = vadd.f32 %v10238_v17, %v3240_v38  ;;  %v3557_v20 = vand.u32 2147483648, %v10297_v32 }
 0x4f7   : > { %v4159_v63 = vadd.f32 %v5092_v8, %v4158_v41  ;;  %v5098_v27 = vpop.eup %5097  ;;  %v4276_v57 = vmul.f32 %v5096_v33, %v10290_v16  ;;  %v4789_v46 = vmul.f32 -1.442695, %v3375_v30  ;;  %5105 = vtanh.f32 %v4365_v7 }
 0x4f8   : > { %v5100_v44 = vpop.eup %5099  ;;  %v10304_v52 = vadd.f32 1.0, %v5098_v27  ;;  %v3290_v56 = vpop.f32.mrf.mxu2  ;;  %vm4281_vm8 = vweird.f32 %v5096_v33  ;;  %v3349_v0 = vadd.f32 %v3348_v35, %v3320_v45  ;;  %v3245_v30 = vadd.f32 %v10265_v12, %v9820_v51 }
 0x4f9   : > { %v4163_v28 = vsel %vm4162_vm5, %v5092_v8, %v4159_v63  ;;  %v4277_v11 = vsub.f32 1.0, %v4276_v57  ;;  %v3291_v47 = vadd.f32 %v3290_v56, %v3262_v40  ;;  %5107 = vpow2.f32 %v4789_v46  ;;  %vm4282_vm12 = vmor %vm4280_vm9, %vm4281_vm8 }
 0x4fa   : > { %v4168_v53 = vsel %vm4165_vm7, %v4167_v4, %v4163_v28  ;;  %5109 = vrcp.f32 %v10304_v52  ;;  %v3555_v12 = vand.u32 2147483647, %v10297_v32  ;;  %v10353_v35 = vadd.f32 %v10285_v24, %v3245_v30 }
 0x4fb   : > { %v4389_v29 = vmul.f32 %v5100_v44, %v4168_v53  ;;  %v5102_v54 = vpop.eup %5101  ;;  %v4278_v7 = vmul.f32 %v5096_v33, %v4277_v11  ;;  %v4796_v26 = vmul.f32 -1.442695, %v3291_v47  ;;  %vm3551_vm14 = vweird.f32 %v10297_v32 }
 0x4fc   : > { %v3377_v61 = vpop.f32.mrf.mxu3  ;;  %v10313_v23 = vpop.eup %5103  ;;  %v10316_v18 = vadd.f32 1.0, %v5102_v54  ;;  %vm10364_vm0 = vcmp.eq.f32.partialorder %v3555_v12, 8.507059e+37  ;;  %v3558_v39 = vor.u32 1.1754944e-38, %v3557_v20  ;;  %vm3566_vm6 = vweird.f32 %v10304_v52 }
 0x4fd   : > { %4417 = vst [vmem:[%s9658_s1 + $0x28] sm:$0xff] %v4389_v29  ;;  %v4279_v8 = vadd.f32 %v5096_v33, %v4278_v7  ;;  %v3547_v43 = vmul.f32 %v10313_v23, %v10297_v32  ;;  %5111 = vpow2.f32 %v4796_v26  ;;  %v5106_v34 = vpop.eup %5105  ;;  %v3378_v50 = vadd.f32 %v3377_v61, %v3349_v0  ;;  %v3321_v25 = vpop.f32.mrf.mxu0 }
 0x4fe   : > { %5113 = vrcp.f32 %v10316_v18  ;;  %v3322_v3 = vadd.f32 %v3321_v25, %v11714_v19  ;;  %v3350_v63 = vpop.f32.mrf.mxu1  ;;  %v3677_v46 = vand.u32 2147483648, %v10316_v18  ;;  %vm3552_vm15 = vweird.f32 %v10313_v23 }
 0x4ff   : > { %v5108_v42 = vpop.eup %5107  ;;  %v4283_v21 = vsel %vm4282_vm12, %v5096_v33, %v4279_v8  ;;  %v3548_v10 = vsub.f32 1.0, %v3547_v43  ;;  %v4797_v41 = vmul.f32 -1.442695, %v3378_v50  ;;  %v3675_v53 = vand.u32 2147483647, %v10316_v18  ;;  %vm10380_vm4 = vmor %vm3551_vm14, %vm3552_vm15 }
 0x500   : > { %v10325_v16 = vpop.eup %5109  ;;  %v4288_v59 = vsel %vm4285_vm13, %v4287_v37, %v4283_v21  ;;  %v10329_v14 = vadd.f32 1.0, %v5108_v42  ;;  %v3292_v1 = vpop.f32.mrf.mxu2  ;;  %v3351_v4 = vadd.f32 %v3350_v63, %v3322_v3  ;;  %vm3671_vm1 = vweird.f32 %v10316_v18 }
 0x501   : > { %v4397_v2 = vmul.f32 %v5106_v34, %v4288_v59  ;;  %v3293_v36 = vadd.f32 %v3292_v1, %v3264_v55  ;;  %v3562_v33 = vmul.f32 %v10325_v16, %v10304_v52  ;;  %v3549_v27 = vmul.f32 %v10313_v23, %v3548_v10 }
 0x502   : > { %5115 = vrcp.f32 %v10329_v14  ;;  %v10369_v54 = vor.u32 1.1754944e-38, %v3677_v46  ;;  %vm3567_vm3 = vweird.f32 %v10325_v16  ;;  %vm10392_vm11 = vcmp.eq.f32.partialorder %v3675_v53, 8.507059e+37 }
 0x503   : > { %v5112_v40 = vpop.eup %5111  ;;  %4425 = vst [vmem:[%s9658_s1 + $0x68] sm:$0xff] %v4397_v2  ;;  %v4804_v17 = vmul.f32 -1.442695, %v3293_v36  ;;  %5117 = vpow2.f32 %v4797_v41  ;;  %v3563_v60 = vsub.f32 1.0, %v3562_v33  ;;  %v3550_v29 = vadd.f32 %v10313_v23, %v3549_v27  ;;  %vm10448_vm14 = vmor %vm3566_vm6, %vm3567_vm3  ;;  %v11738_v27 = vld [vmem:[#allocation103_spill] sm:$0xff] }
 0x504   : > { %v3379_v19 = vpop.f32.mrf.mxu3  ;;  %v10345_v28 = vpop.eup %5113  ;;  %v10347_v57 = vadd.f32 1.0, %v5112_v40  ;;  %v3572_v25 = vand.u32 2147483648, %v10304_v52 }
 0x505   : > { %v3667_v44 = vmul.f32 %v10345_v28, %v10316_v18  ;;  %5119 = vpow2.f32 %v4804_v17  ;;  %v3380_v15 = vadd.f32 %v3379_v19, %v3351_v4  ;;  %v3324_v45 = vpop.f32.mrf.mxu0  ;;  %vm3672_vm10 = vweird.f32 %v10345_v28 }
 0x506   : > { %5121 = vrcp.f32 %v10347_v57  ;;  %v3861_v26 = vand.u32 2147483648, %v10347_v57  ;;  %v3325_v0 = vadd.f32 %v3324_v45, %v11681_v6  ;;  %vm3855_vm2 = vweird.f32 %v10347_v57  ;;  %v3353_v32 = vpop.f32.mrf.mxu1  ;;  %vm10425_vm7 = vmor %vm3671_vm1, %vm3672_vm10 }
 0x507   : > { %v3668_v56 = vsub.f32 1.0, %v3667_v44  ;;  %v4805_v11 = vmul.f32 -1.442695, %v3380_v15  ;;  %v3554_v34 = vsel %vm10380_vm4, %v10313_v23, %v3550_v29  ;;  %v3859_v38 = vand.u32 2147483647, %v10347_v57 }
 0x508   : > { %v10362_v24 = vpop.eup %5115  ;;  %v3295_v47 = vpop.f32.mrf.mxu2  ;;  %v3564_v6 = vmul.f32 %v10325_v16, %v3563_v60  ;;  %v3570_v23 = vand.u32 2147483647, %v10304_v52  ;;  %v3354_v10 = vadd.f32 %v3353_v32, %v3325_v0  ;;  %v3862_v59 = vor.u32 1.1754944e-38, %v3861_v26 }
 0x509   : > { %v5118_v7 = vpop.eup %5117  ;;  %v3296_v9 = vadd.f32 %v3295_v47, %v3267_v22  ;;  %5123 = vpow2.f32 %v4805_v11  ;;  %v3669_v8 = vmul.f32 %v10345_v28, %v3668_v56  ;;  %v10399_v42 = vmul.f32 %v10362_v24, %v10329_v14 }
 0x50a   : > { %v10374_v61 = vadd.f32 1.0, %v5118_v7  ;;  %v3559_v1 = vsel %vm10364_vm0, %v3558_v39, %v3554_v34  ;;  %vm10412_vm5 = vcmp.eq.f32.partialorder %v3859_v38, 8.507059e+37  ;;  %v3565_v30 = vadd.f32 %v10325_v16, %v3564_v6 }
 0x50b   : > { %v5120_v43 = vpop.eup %5119  ;;  %v3670_v49 = vadd.f32 %v10345_v28, %v3669_v8  ;;  %v3683_v33 = vsub.f32 1.0, %v10399_v42  ;;  %vm10429_vm8 = vcmp.eq.f32.partialorder %v3570_v23, 8.507059e+37  ;;  %v3573_v15 = vor.u32 1.1754944e-38, %v3572_v25 }
 0x50c   : > { %v5122_v50 = vpop.eup %5121  ;;  %v10401_v22 = vadd.f32 1.0, %v5120_v43  ;;  %5125 = vrcp.f32 %v10374_v61  ;;  %v3382_v41 = vpop.f32.mrf.mxu3  ;;  %v3876_v3 = vand.u32 2147483648, %v10374_v61  ;;  %vm3870_vm12 = vweird.f32 %v10374_v61 }
 0x50d   : > { %v3851_v21 = vmul.f32 %v5122_v50, %v10347_v57  ;;  %5127 = vtanh.f32 %v3296_v9  ;;  %vm3856_vm9 = vweird.f32 %v5122_v50  ;;  %v3674_v20 = vsel %vm10425_vm7, %v10345_v28, %v3670_v49  ;;  %v3326_v53 = vpop.f32.mrf.mxu0 }
 0x50e   : > { %5129 = vrcp.f32 %v10401_v22  ;;  %v3981_v40 = vand.u32 2147483648, %v10401_v22  ;;  %v3383_v46 = vadd.f32 %v3382_v41, %v3354_v10  ;;  %vm3975_vm13 = vweird.f32 %v10401_v22  ;;  %vm3857_vm15 = vmor %vm3855_vm2, %vm3856_vm9  ;;  %v3355_v26 = vpop.f32.mrf.mxu1 }
 0x50f   : > { %v5124_v2 = vpop.eup %5123  ;;  %v3852_v36 = vsub.f32 1.0, %v3851_v21  ;;  %v3877_v29 = vor.u32 1.1754944e-38, %v3876_v3  ;;  %v3679_v5 = vsel %vm10392_vm11, %v10369_v54, %v3674_v20  ;;  %v3979_v39 = vand.u32 2147483647, %v10401_v22 }
 0x510   : > { %v10419_v17 = vadd.f32 1.0, %v5124_v2  ;;  %v3297_v4 = vpop.f32.mrf.mxu2  ;;  %v3569_v52 = vsel %vm10448_vm14, %v10325_v16, %v3565_v30  ;;  %v3327_v0 = vadd.f32 %v3326_v53, %v9329_v62  ;;  %v3874_v37 = vand.u32 2147483647, %v10374_v61 }
 0x511   : > { %v3853_v12 = vmul.f32 %v5122_v50, %v3852_v36  ;;  %v3298_v18 = vadd.f32 %v3297_v4, %v10332_v31  ;;  %v3982_v31 = vor.u32 1.1754944e-38, %v3981_v40  ;;  %vm10470_vm1 = vcmp.eq.f32.partialorder %v3979_v39, 8.507059e+37 }
 0x512   : > { %v10436_v44 = vpop.eup %5125  ;;  %5131 = vrcp.f32 %v10419_v17  ;;  %v3996_v16 = vand.u32 2147483648, %v10419_v17  ;;  %v3574_v32 = vsel %vm10429_vm8, %v3573_v15, %v3569_v52  ;;  %vm3990_vm3 = vweird.f32 %v10419_v17 }
 0x513   : > { %v5128_v56 = vpop.eup %5127  ;;  %v3866_v60 = vmul.f32 %v10436_v44, %v10374_v61  ;;  %v3854_v11 = vadd.f32 %v5122_v50, %v3853_v12  ;;  %5133 = vtanh.f32 %v3383_v46  ;;  %vm3871_vm0 = vweird.f32 %v10436_v44 }
 0x514   : > { %v5130_v47 = vpop.eup %5129  ;;  %v4342_v55 = vmul.f32 %v5128_v56, %v3559_v1  ;;  %5135 = vtanh.f32 %v3298_v18  ;;  %v3356_v23 = vadd.f32 %v3355_v26, %v3327_v0  ;;  %v3384_v10 = vpop.f32.mrf.mxu3  ;;  %vm10487_vm4 = vmor %vm3870_vm12, %vm3871_vm0  ;;  %v3997_v41 = vor.u32 1.1754944e-38, %v3996_v16 }
 0x515   : > { %v3971_v45 = vmul.f32 %v5130_v47, %v10401_v22  ;;  %v3867_v7 = vsub.f32 1.0, %v3866_v60  ;;  %v3858_v9 = vsel %vm3857_vm15, %v5122_v50, %v3854_v11  ;;  %vm3976_vm10 = vweird.f32 %v5130_v47  ;;  %v3329_v63 = vpop.f32.mrf.mxu0  ;;  %v11739_v22 = vld [vmem:[#allocation74_spill] sm:$0xff] }
 0x516   : > { %v3863_v57 = vsel %vm10412_vm5, %v3862_v59, %v3858_v9  ;;  %v3684_v2 = vmul.f32 %v10362_v24, %v3683_v33  ;;  %vm3977_vm6 = vmor %vm3975_vm13, %vm3976_vm10  ;;  %vm3875_vm2 = vcmp.eq.f32.partialorder %v3874_v37, 8.507059e+37  ;;  %v3385_v3 = vadd.f32 %v3384_v10, %v3356_v23  ;;  %v3358_v15 = vpop.f32.mrf.mxu1 }
 0x517   : > { %v3972_v54 = vsub.f32 1.0, %v3971_v45  ;;  %v3868_v8 = vmul.f32 %v10436_v44, %v3867_v7  ;;  %v4326_v43 = vmul.f32 %v3863_v57, %v9879_v13  ;;  %vm3687_vm7 = vweird.f32 %v10362_v24 }
 0x518   : > { %v5132_v34 = vpop.eup %5131  ;;  %v3300_v62 = vpop.f32.mrf.mxu2  ;;  %v3994_v60 = vand.u32 2147483647, %v10419_v17  ;;  %vm3686_vm8 = vweird.f32 %v10329_v14  ;;  %v3692_v28 = vand.u32 2147483648, %v10329_v14 }
 0x519   : > { %v3973_v6 = vmul.f32 %v5130_v47, %v3972_v54  ;;  %v10477_v50 = vadd.f32 %v4342_v55, %v4326_v43  ;;  %v3986_v13 = vmul.f32 %v5132_v34, %v10419_v17  ;;  %v3869_v42 = vadd.f32 %v10436_v44, %v3868_v8  ;;  %v5134_v49 = vpop.eup %5133  ;;  %vm10526_vm12 = vmor %vm3686_vm8, %vm3687_vm7 }
 0x51a   : > { %v3301_v21 = vadd.f32 %v3300_v62, %v10338_v58  ;;  %v5136_v36 = vpop.eup %5135  ;;  %vm3991_vm11 = vweird.f32 %v5132_v34  ;;  %v4343_v12 = vmul.f32 %v5134_v49, %v3574_v32  ;;  %vm3995_vm9 = vcmp.eq.f32.partialorder %v3994_v60, 8.507059e+37 }
 0x51b   : > { %v3987_v1 = vsub.f32 1.0, %v3986_v13  ;;  %v3974_v25 = vadd.f32 %v5130_v47, %v3973_v6  ;;  %4434 = vst [vmem:[%s9885_s27 + $0x30] sm:$0xff] %v10477_v50  ;;  %v3873_v58 = vsel %vm10487_vm4, %v10436_v44, %v3869_v42  ;;  %v4350_v46 = vmul.f32 %v5136_v36, %v3679_v5  ;;  %vm10507_vm5 = vmor %vm3990_vm3, %vm3991_vm11 }
 0x51c   : > { %v4812_v61 = vmul.f32 -1.442695, %v3301_v21  ;;  %v3878_v4 = vsel %vm3875_vm2, %v3877_v29, %v3873_v58  ;;  %v3685_v44 = vadd.f32 %v10362_v24, %v3684_v2  ;;  %v3330_v5 = vadd.f32 %v3329_v63, %v11695_v48  ;;  %v3387_v39 = vpop.f32.mrf.mxu3 }
 0x51d   : > { %v3988_v30 = vmul.f32 %v5132_v34, %v3987_v1  ;;  %v3978_v40 = vsel %vm3977_vm6, %v5130_v47, %v3974_v25  ;;  %v4327_v19 = vmul.f32 %v3878_v4, %v11738_v27  ;;  %v3693_v55 = vor.u32 1.1754944e-38, %v3692_v28  ;;  %v3331_v8 = vpop.f32.mrf.mxu0 }
 0x51e   : > { %v3983_v33 = vsel %vm10470_vm1, %v3982_v31, %v3978_v40  ;;  %5137 = vpow2.f32 %v4812_v61  ;;  %v3690_v31 = vand.u32 2147483647, %v10329_v14  ;;  %v3689_v14 = vsel %vm10526_vm12, %v10362_v24, %v3685_v44  ;;  %v3360_v32 = vpop.f32.mrf.mxu1 }
 0x51f   : > { %v4334_v20 = vmul.f32 %v3983_v33, %v11739_v22  ;;  %v3989_v18 = vadd.f32 %v5132_v34, %v3988_v30  ;;  %v10511_v56 = vadd.f32 %v4343_v12, %v4327_v19  ;;  %5139 = vtanh.f32 %v3385_v3 }
 0x520   : > { %v3302_v29 = vpop.f32.mrf.mxu2  ;;  %v3359_v9 = vadd.f32 %v3358_v15, %v3330_v5  ;;  %vm3691_vm13 = vcmp.eq.f32.partialorder %v3690_v31, 8.507059e+37  ;;  %v3332_v38 = vadd.f32 %v3331_v8, %v9820_v51 }
 0x521   : > { %v10515_v11 = vadd.f32 %v4350_v46, %v4334_v20  ;;  %v3993_v47 = vsel %vm10507_vm5, %v5132_v34, %v3989_v18  ;;  %4435 = vst [vmem:[%s9885_s27 + $0x38] sm:$0xff] %v10511_v56  ;;  %v3303_v17 = vadd.f32 %v3302_v29, %v10353_v35  ;;  %v11744_v35 = vld [vmem:[#allocation16_spill] sm:$0xff]  ;;  %v3694_v43 = vsel %vm3691_vm13, %v3693_v55, %v3689_v14 }
 0x522   : > { %v3998_v45 = vsel %vm3995_vm9, %v3997_v41, %v3993_v47  ;;  %v3388_v54 = vadd.f32 %v3387_v39, %v3359_v9  ;;  %v3361_v37 = vadd.f32 %v3360_v32, %v3332_v38 }
 0x523   : > { %4442 = vst [vmem:[%s9885_s27 + $0x70] sm:$0xff] %v10515_v11  ;;  %v4820_v26 = vmul.f32 -1.442695, %v3303_v17  ;;  %v4335_v0 = vmul.f32 %v3998_v45, %v11744_v35 }
 0x524   : > { %v5138_v7 = vpop.eup %5137  ;;  %v4813_v34 = vmul.f32 -1.442695, %v3388_v54  ;;  %v3389_v62 = vpop.f32.mrf.mxu3 }
 0x525   : > { %v4070_v57 = vadd.f32 1.0, %v5138_v7  ;;  %v5140_v48 = vpop.eup %5139  ;;  %5141 = vpow2.f32 %v4820_v26  ;;  %v3390_v13 = vadd.f32 %v3389_v62, %v3361_v37 }
 0x526   : > { %v4351_v16 = vmul.f32 %v5140_v48, %v3694_v43 }
 0x527   : > { %5143 = vrcp.f32 %v4070_v57  ;;  %v4821_v10 = vmul.f32 -1.442695, %v3390_v13  ;;  %v4181_v51 = vand.u32 2147483648, %v4070_v57  ;;  %v4179_v25 = vand.u32 2147483647, %v4070_v57 }
 0x528   : > { %v10537_v24 = vadd.f32 %v4351_v16, %v4335_v0  ;;  %5145 = vpow2.f32 %v4813_v34  ;;  %vm4175_vm15 = vweird.f32 %v4070_v57 }
 0x529   : > { %v4182_v58 = vor.u32 1.1754944e-38, %v4181_v51  ;;  %vm4180_vm1 = vcmp.eq.f32.partialorder %v4179_v25, 8.507059e+37 }
 0x52a   : > { %4443 = vst [vmem:[%s9885_s27 + $0x78] sm:$0xff] %v10537_v24 }
 0x52b   : > { %v5142_v6 = vpop.eup %5141 }
 0x52c   : > { %v4078_v23 = vadd.f32 1.0, %v5142_v6 }
 0x52d   : > { %v5144_v42 = vpop.eup %5143 }
 0x52e   : > { %v4171_v21 = vmul.f32 %v5144_v42, %v4070_v57  ;;  %5147 = vrcp.f32 %v4078_v23  ;;  %v5146_v49 = vpop.eup %5145  ;;  %vm4176_vm14 = vweird.f32 %v5144_v42  ;;  %v4299_v19 = vand.u32 2147483647, %v4078_v23 }
 0x52f   : > { %5149 = vpow2.f32 %v4821_v10  ;;  %v4071_v1 = vadd.f32 1.0, %v5146_v49  ;;  %vm4177_vm0 = vmor %vm4175_vm15, %vm4176_vm14  ;;  %v4301_v12 = vand.u32 2147483648, %v4078_v23  ;;  %vm4295_vm3 = vweird.f32 %v4078_v23 }
 0x530   : > { %v4172_v59 = vsub.f32 1.0, %v4171_v21  ;;  %5151 = vtanh.f32 %v10477_v50  ;;  %vm4300_vm6 = vcmp.eq.f32.partialorder %v4299_v19, 8.507059e+37 }
 0x531   : > { %5153 = vrcp.f32 %v4071_v1  ;;  %v4302_v18 = vor.u32 1.1754944e-38, %v4301_v12  ;;  %v4196_v15 = vand.u32 2147483648, %v4071_v1  ;;  %vm4190_vm11 = vweird.f32 %v4071_v1 }
 0x532   : > { %v4173_v41 = vmul.f32 %v5144_v42, %v4172_v59  ;;  %5155 = vtanh.f32 %v10515_v11  ;;  %v4194_v11 = vand.u32 2147483647, %v4071_v1 }
 0x533   : > { %v4197_v39 = vor.u32 1.1754944e-38, %v4196_v15 }
 0x534   : > { %v4174_v2 = vadd.f32 %v5144_v42, %v4173_v41  ;;  %v5148_v36 = vpop.eup %5147  ;;  %vm4195_vm7 = vcmp.eq.f32.partialorder %v4194_v11, 8.507059e+37 }
 0x535   : > { %v5150_v61 = vpop.eup %5149  ;;  %v4291_v63 = vmul.f32 %v5148_v36, %v4078_v23  ;;  %vm4296_vm10 = vweird.f32 %v5148_v36 }
 0x536   : > { %v4178_v3 = vsel %vm4177_vm0, %v5144_v42, %v4174_v2  ;;  %v5152_v30 = vpop.eup %5151  ;;  %v4079_v4 = vadd.f32 1.0, %v5150_v61  ;;  %vm4297_vm4 = vmor %vm4295_vm3, %vm4296_vm10 }
 0x537   : > { %v4183_v40 = vsel %vm4180_vm1, %v4182_v58, %v4178_v3  ;;  %v4292_v33 = vsub.f32 1.0, %v4291_v63  ;;  %v5154_v27 = vpop.eup %5153 }
 0x538   : > { %v4390_v50 = vmul.f32 %v5152_v30, %v4183_v40  ;;  %5157 = vrcp.f32 %v4079_v4  ;;  %v4186_v20 = vmul.f32 %v5154_v27, %v4071_v1  ;;  %v5156_v53 = vpop.eup %5155  ;;  %vm4191_vm2 = vweird.f32 %v5154_v27 }
 0x539   : > { %v4293_v22 = vmul.f32 %v5148_v36, %v4292_v33  ;;  %5159 = vtanh.f32 %v10511_v56  ;;  %vm4192_vm5 = vmor %vm4190_vm11, %vm4191_vm2  ;;  %v4316_v14 = vand.u32 2147483648, %v4079_v4  ;;  %v4314_v57 = vand.u32 2147483647, %v4079_v4 }
 0x53a   : > { %4418 = vst [vmem:[%s9658_s1 + $0x30] sm:$0xff] %v4390_v50  ;;  %v4187_v44 = vsub.f32 1.0, %v4186_v20  ;;  %5161 = vtanh.f32 %v10537_v24  ;;  %vm4310_vm9 = vweird.f32 %v4079_v4 }
 0x53b   : > { %v4294_v46 = vadd.f32 %v5148_v36, %v4293_v22  ;;  %v4317_v48 = vor.u32 1.1754944e-38, %v4316_v14  ;;  %vm4315_vm13 = vcmp.eq.f32.partialorder %v4314_v57, 8.507059e+37 }
 0x53c   : > { %v4188_v29 = vmul.f32 %v5154_v27, %v4187_v44 }
 0x53d   : > { %v4298_v60 = vsel %vm4297_vm4, %v5148_v36, %v4294_v46 }
 0x53e   : > { %v5158_v28 = vpop.eup %5157  ;;  %v4303_v47 = vsel %vm4300_vm6, %v4302_v18, %v4298_v60  ;;  %v4189_v5 = vadd.f32 %v5154_v27, %v4188_v29 }
 0x53f   : > { %v4398_v31 = vmul.f32 %v5156_v53, %v4303_v47  ;;  %v4306_v17 = vmul.f32 %v5158_v28, %v4079_v4  ;;  %v5160_v45 = vpop.eup %5159  ;;  %vm4311_vm8 = vweird.f32 %v5158_v28 }
 0x540   : > { %v4193_v56 = vsel %vm4192_vm5, %v5154_v27, %v4189_v5  ;;  %vm4312_vm12 = vmor %vm4310_vm9, %vm4311_vm8  ;;  %v5162_v0 = vpop.eup %5161 }
 0x541   : > { %4426 = vst [vmem:[%s9658_s1 + $0x70] sm:$0xff] %v4398_v31  ;;  %v4307_v52 = vsub.f32 1.0, %v4306_v17  ;;  %v4198_v7 = vsel %vm4195_vm7, %v4197_v39, %v4193_v56 }
 0x542   : > { %v4391_v9 = vmul.f32 %v5160_v45, %v4198_v7 }
 0x543   : > { %v4308_v26 = vmul.f32 %v5158_v28, %v4307_v52 }
 0x544   : > { %4419 = vst [vmem:[%s9658_s1 + $0x38] sm:$0xff] %v4391_v9 }
 0x545   : > { %v4309_v55 = vadd.f32 %v5158_v28, %v4308_v26 }
 0x547   : > { %v4313_v35 = vsel %vm4312_vm12, %v5158_v28, %v4309_v55 }
 0x548   : > { %v4318_v54 = vsel %vm4315_vm13, %v4317_v48, %v4313_v35 }
 0x549   : > { %v4399_v8 = vmul.f32 %v5162_v0, %v4318_v54 }
 0x54b   : > { %4427 = vst [vmem:[%s9658_s1 + $0x78] sm:$0xff] %v4399_v8 }
 0x54c PF: > { %p4854_p4 = scmp.ge.s32.totalorder %s5262_s16, 2  ;;  %s4496_s23 = sand.u32 1, %s5250_s29  }
 0x54d   : > { %s4497_s27 = scalar_lea.sflag [#allocation3], %s4496_s23 }
 0x54e   : > { %p4851_p5 = pnand %p4854_p4, %p5390_p6 }
 0x550   : > { %p4852_p7 = pneg %p4851_p5 }
 0x552   : > { %5245 = dma.done.wait (%p4852_p7), %s4497_s27, 512  }
 0x553   : > { %5247 = vsyncadd (%p4852_p7), %s4497_s27, 4294966784  ;;  %s11745_s0 = sld [smem:[#allocation5_spill]]  ;;  %p25_p8 = scmp.ge.s32.totalorder %s5373_s19, 4  }
 0x554   : > { %s11746_s15 = sld [smem:[#allocation6_spill]]  ;;  %s11747_s29 = smov %s5254_s30 }
 0x555   : > { %s11749_s16 = smov %s5373_s19  ;;  %27 = sbr.rel (!%p25_p8) target bundleno = 10 (0xa), region = 151 }
 0x559   : > { %s11748_s30 = smov %s11745_s0 }
 0x55a   :  { %4527 = vsyncpa [#allocation3], 1 }
 0x55b   :  { %4529 = vsyncpa [#allocation3 + $0x1], 1 }

</bundles_post_ra>
